<compile_context>
chip_gen: v5e
topology: v5e:2x2
jax: 0.10.0
libtpu: 0.0.40
codegen_flags: <defaults>
</compile_context>

<pallas_src>
import functools
import math

import jax
import jax.numpy as jnp
from jax.experimental import pallas as pl
from jax.experimental.pallas import tpu as pltpu


GEO_FEAT_DIM = 15
HIDDEN = 32
OUT_LIDAR_COLOR_DIM = 2            # lidar-nerf: (intensity, raydrop)
DENSITY_OUT = 1 + GEO_FEAT_DIM     # [sigma | geo_feat]
COLOR_IN = 3 + 3 + GEO_FEAT_DIM    # [xyz | dir | geo_feat]
SLAB_ROWS = 3 + 3 + DENSITY_OUT    # VMEM color-input slab rows: [xyz|dir|sigma_raw|geo]
VMEM_LIMIT_BYTES = 32 * 1024 * 1024
SLAB_BUDGET_BYTES = 8 * 1024 * 1024


# -----------------------------------------------------------------------------
# tiling heuristics
# -----------------------------------------------------------------------------
def _pick_ray_tile(n, t_steps):
    """Largest lane tile (multiple of 128) under the slab VMEM budget; prefer grid>=2."""
    cands = [c for c in (1024, 512, 256, 128)
             if SLAB_ROWS * t_steps * c * 4 <= SLAB_BUDGET_BYTES]
    if not cands:
        cands = [128]
    for c in cands:                       # keep >= 2 grid steps so both v7x TCs get work
        if n % c == 0 and n // c >= 2:
            return c
    for c in cands:
        if n % c == 0:
            return c
    return 128


def _pick_chunk_t(t_steps, r):
    """Samples folded per wide matmul: keep chunk_t*r ~ 1024 lanes (bounded vreg live set)."""
    cap = max(1, 1024 // r)
    for c in (16, 8, 4, 2, 1):
        if c <= cap and t_steps % c == 0:
            return c
    return 1


# -----------------------------------------------------------------------------
# small math helpers (all TPU-lowerable; exp/log/recip hit the EUP slot)
# -----------------------------------------------------------------------------
def _softplus(x):
    return jnp.maximum(x, 0.0) + jnp.log(1.0 + jnp.exp(-jnp.abs(x)))


def _sigmoid(x):
    return pl.reciprocal(1.0 + jnp.exp(-x), approx=True)


def _volume_weights(z, sig, sample_dist, density_scale):
    """z, sig: (T, R) f32 -> transmittance weights (T, R). Pure f32 VPU/XLU math."""
    t_steps, r = z.shape
    sd_row = jnp.full((1, r), sample_dist, jnp.float32)
    deltas = jnp.concatenate([z[1:, :] - z[:-1, :], sd_row], axis=0)
    alphas = 1.0 - jnp.exp(-deltas * density_scale * sig)
    logt = jnp.log(1.0 - alphas + 1e-15)
    # exclusive prefix sum of logt along the sample axis (Hillis-Steele, log2(T) steps)
    excl = jnp.concatenate([jnp.zeros((1, r), jnp.float32), logt[:-1, :]], axis=0)
    s = 1
    while s < t_steps:
        shifted = jnp.concatenate(
            [jnp.zeros((s, r), jnp.float32), excl[:-s, :]], axis=0)
        excl = excl + shifted
        s *= 2
    return alphas * jnp.exp(excl)


# -----------------------------------------------------------------------------
# Pallas kernel 1: coarse pass — fused density MLP + transmittance weights
#   inputs (per ray tile r): o,d (3,r), z (T,r), density-MLP weights (bf16)
#   output: weights (T, r)   — lane-dense row-packed store
# -----------------------------------------------------------------------------
def coarse_weights_kernel(o_ref, d_ref, z_ref, w1_ref, b1_ref, w2s_ref, b2s_ref,
                          w_out_ref, xbuf, sbuf,
                          *, density_scale, sample_dist, bound, chunk_t):
    t_steps, r = z_ref.shape
    n_chunks = t_steps // chunk_t
    cwidth = chunk_t * r

    o = o_ref[...]                        # (3, r) f32
    d = d_ref[...]                        # (3, r) f32
    w1 = w1_ref[...]                      # (H, 3)  bf16
    b1 = b1_ref[...]                      # (H, 1)  f32
    w2s = w2s_ref[...]                    # (1, H)  bf16  (sigma row of W2 only)
    b2s = b2s_ref[...]                    # (1, 1)  f32

    for g in range(n_chunks):
        # fold chunk_t samples into the lane axis of a (3, chunk_t*r) slab
        for tt in range(chunk_t):
            t = g * chunk_t + tt
            zt = z_ref[t:t + 1, :]                                    # (1, r)
            xbuf[:, tt * r:(tt + 1) * r] = jnp.clip(o + d * zt, -bound, bound)
        xs = xbuf[...]                                                # (3, cwidth)
        h = jnp.maximum(
            jnp.dot(w1, xs.astype(jnp.bfloat16),
                    preferred_element_type=jnp.float32) + b1, 0.0)    # (H, cwidth)
        sig = _softplus(
            jnp.dot(w2s, h.astype(jnp.bfloat16),
                    preferred_element_type=jnp.float32) + b2s)        # (1, cwidth)
        # un-fold sigma back to (T, r) sublane layout for the transmittance
        for tt in range(chunk_t):
            row = g * chunk_t + tt
            sbuf[row:row + 1, :] = sig[:, tt * r:(tt + 1) * r]

    w_out_ref[...] = _volume_weights(z_ref[...], sbuf[...], sample_dist, density_scale)


def coarse_weights_pallas(oT, dT, zT, params, density_scale, sample_dist, bound,
                          ray_tile=None):
    t_steps, n = zT.shape
    r = _pick_ray_tile(n, t_steps) if ray_tile is None else ray_tile
    chunk_t = _pick_chunk_t(t_steps, r)
    w1 = params["d_w1"].T.astype(jnp.bfloat16)                        # (H, 3)
    b1 = params["d_b1"].reshape(-1, 1).astype(jnp.float32)            # (H, 1)
    w2s = params["d_w2"][:, 0:1].T.astype(jnp.bfloat16)               # (1, H)
    b2s = params["d_b2"][0:1].reshape(1, 1).astype(jnp.float32)       # (1, 1)
    kernel = functools.partial(coarse_weights_kernel,
                               density_scale=float(density_scale),
                               sample_dist=float(sample_dist),
                               bound=float(bound), chunk_t=chunk_t)
    return pl.pallas_call(
        kernel,
        out_shape=jax.ShapeDtypeStruct((t_steps, n), jnp.float32),
        grid=(n // r,),
        in_specs=[
            pl.BlockSpec((3, r), lambda i: (0, i)),                   # rays_o
            pl.BlockSpec((3, r), lambda i: (0, i)),                   # rays_d
            pl.BlockSpec((t_steps, r), lambda i: (0, i)),             # z
            pl.BlockSpec((HIDDEN, 3), lambda i: (0, 0)),              # W1^T
            pl.BlockSpec((HIDDEN, 1), lambda i: (0, 0)),              # b1
            pl.BlockSpec((1, HIDDEN), lambda i: (0, 0)),              # W2 sigma row
            pl.BlockSpec((1, 1), lambda i: (0, 0)),                   # b2 sigma
        ],
        out_specs=pl.BlockSpec((t_steps, r), lambda i: (0, i)),
        scratch_shapes=[pltpu.VMEM((3, chunk_t * r), jnp.float32),
                        pltpu.VMEM((t_steps, r), jnp.float32)],
        compiler_params=pltpu.CompilerParams(
            dimension_semantics=("parallel",),
            vmem_limit_bytes=VMEM_LIMIT_BYTES),
    )(oT, dT, zT, w1, b1, w2s, b2s)


# -----------------------------------------------------------------------------
# Pallas kernel 2: fine pass — fused density MLP (recomputed on sorted z), color MLP,
# and volume-rendering composite.  One lane-dense (2+C, N) output slab:
#   row 0 = weights_sum, row 1 = depth, rows 2.. = image channels.
# -----------------------------------------------------------------------------
def composite_kernel(o_ref, d_ref, z_ref,
                     dw1_ref, db1_ref, dw2_ref, db2_ref,
                     cw1_ref, cb1_ref, cw2_ref, cb2_ref,
                     out_ref, cbuf, sbuf,
                     *, density_scale, sample_dist, bound, chunk_t):
    t_steps, r = z_ref.shape
    n_chunks = t_steps // chunk_t
    cwidth = chunk_t * r

    o = o_ref[...]                        # (3, r)
    d = d_ref[...]                        # (3, r)
    dw1 = dw1_ref[...]                    # (H, 3)    bf16
    db1 = db1_ref[...]                    # (H, 1)    f32
    dw2 = dw2_ref[...]                    # (16, H)   bf16
    db2 = db2_ref[...]                    # (16, 1)   f32

    # ---- pass 1: positions + density MLP, T folded into lanes (wide MXU matmuls) ----
    for g in range(n_chunks):
        base = g * cwidth
        for tt in range(chunk_t):
            t = g * chunk_t + tt
            zt = z_ref[t:t + 1, :]                                    # (1, r)
            xyz = jnp.clip(o + d * zt, -bound, bound)                 # (3, r)
            cbuf[0:6, base + tt * r: base + (tt + 1) * r] = (
                jnp.concatenate([xyz, d], axis=0))                    # [xyz | dir]
        xs = cbuf[0:3, base:base + cwidth]                            # (3, cwidth)
        h = jnp.maximum(
            jnp.dot(dw1, xs.astype(jnp.bfloat16),
                    preferred_element_type=jnp.float32) + db1, 0.0)   # (H, cwidth)
        dout = jnp.dot(dw2, h.astype(jnp.bfloat16),
                       preferred_element_type=jnp.float32) + db2      # (16, cwidth)
        cbuf[6:6 + DENSITY_OUT, base:base + cwidth] = dout            # raw sigma + geo
        sig = _softplus(dout[0:1, :])                                 # (1, cwidth)
        for tt in range(chunk_t):
            row = g * chunk_t + tt
            sbuf[row:row + 1, :] = sig[:, tt * r:(tt + 1) * r]

    # ---- pass 2: transmittance weights / depth (f32 VPU/XLU) ----
    z = z_ref[...]
    weights = _volume_weights(z, sbuf[...], sample_dist, density_scale)   # (T, r)
    wsum = jnp.sum(weights, axis=0, keepdims=True)                        # (1, r)
    depth = jnp.sum(weights * z, axis=0, keepdims=True)                   # (1, r)
    sbuf[...] = weights                     # reuse scratch: row reads in pass 3

    # ---- pass 3: color MLP + composite (rgbs never leave VMEM) ----
    cw1 = cw1_ref[...]                     # (H, 22) bf16 (zero column for raw-sigma row)
    cb1 = cb1_ref[...]                     # (H, 1)
    cw2 = cw2_ref[...]                     # (C, H)  bf16
    cb2 = cb2_ref[...]                     # (C, 1)
    n_color = cw2.shape[0]
    img = jnp.zeros((n_color, r), jnp.float32)
    for g in range(n_chunks):
        base = g * cwidth
        cin = cbuf[:, base:base + cwidth]                                 # (22, cwidth)
        h = jnp.maximum(
            jnp.dot(cw1, cin.astype(jnp.bfloat16),
                    preferred_element_type=jnp.float32) + cb1, 0.0)       # (H, cwidth)
        rgb = _sigmoid(jnp.dot(cw2, h.astype(jnp.bfloat16),
                               preferred_element_type=jnp.float32) + cb2)  # (C, cwidth)
        for tt in range(chunk_t):
            t = g * chunk_t + tt
            wt = sbuf[t:t + 1, :]                                          # (1, r)
            img = img + wt * rgb[:, tt * r:(tt + 1) * r]
    out_ref[...] = jnp.concatenate([wsum, depth, img], axis=0)             # (2+C, r)


def composite_pallas(oT, dT, zT, params, density_scale, sample_dist, bound,
                     ray_tile=None):
    t_steps, n = zT.shape
    c = OUT_LIDAR_COLOR_DIM
    r = _pick_ray_tile(n, t_steps) if ray_tile is None else ray_tile
    chunk_t = _pick_chunk_t(t_steps, r)

    dw1 = params["d_w1"].T.astype(jnp.bfloat16)                        # (H, 3)
    db1 = params["d_b1"].reshape(-1, 1).astype(jnp.float32)            # (H, 1)
    dw2 = params["d_w2"].T.astype(jnp.bfloat16)                        # (16, H)
    db2 = params["d_b2"].reshape(-1, 1).astype(jnp.float32)            # (16, 1)
    cw1_t = params["c_w1"].T                                           # (H, 21) [xyz|dir|geo]
    # slab row 6 holds the raw sigma from the density MLP -> insert a zero weight column
    cw1 = jnp.concatenate(
        [cw1_t[:, 0:6], jnp.zeros((HIDDEN, 1), cw1_t.dtype), cw1_t[:, 6:]],
        axis=1).astype(jnp.bfloat16)                                   # (H, 22)
    cb1 = params["c_b1"].reshape(-1, 1).astype(jnp.float32)
    cw2 = params["c_w2"].T.astype(jnp.bfloat16)                        # (C, H)
    cb2 = params["c_b2"].reshape(-1, 1).astype(jnp.float32)

    kernel = functools.partial(composite_kernel,
                               density_scale=float(density_scale),
                               sample_dist=float(sample_dist),
                               bound=float(bound), chunk_t=chunk_t)
    return pl.pallas_call(
        kernel,
        out_shape=jax.ShapeDtypeStruct((2 + c, n), jnp.float32),
        grid=(n // r,),
        in_specs=[
            pl.BlockSpec((3, r), lambda i: (0, i)),                    # rays_o
            pl.BlockSpec((3, r), lambda i: (0, i)),                    # rays_d
            pl.BlockSpec((t_steps, r), lambda i: (0, i)),              # sorted z
            pl.BlockSpec((HIDDEN, 3), lambda i: (0, 0)),               # density W1^T
            pl.BlockSpec((HIDDEN, 1), lambda i: (0, 0)),               # density b1
            pl.BlockSpec((DENSITY_OUT, HIDDEN), lambda i: (0, 0)),     # density W2^T
            pl.BlockSpec((DENSITY_OUT, 1), lambda i: (0, 0)),          # density b2
            pl.BlockSpec((HIDDEN, COLOR_IN + 1), lambda i: (0, 0)),    # color W1^T (padded)
            pl.BlockSpec((HIDDEN, 1), lambda i: (0, 0)),               # color b1
            pl.BlockSpec((c, HIDDEN), lambda i: (0, 0)),               # color W2^T
            pl.BlockSpec((c, 1), lambda i: (0, 0)),                    # color b2
        ],
        out_specs=pl.BlockSpec((2 + c, r), lambda i: (0, i)),
        scratch_shapes=[pltpu.VMEM((SLAB_ROWS, t_steps * r), jnp.float32),
                        pltpu.VMEM((t_steps, r), jnp.float32)],
        compiler_params=pltpu.CompilerParams(
            dimension_semantics=("parallel",),
            vmem_limit_bytes=VMEM_LIMIT_BYTES),
    )(oT, dT, zT, dw1, db1, dw2, db2, cw1, cb1, cw2, cb2)


# -----------------------------------------------------------------------------
# sample_pdf (inverse-CDF sampling) — deterministic (eval-mode) path, plain JAX glue
# -----------------------------------------------------------------------------
def sample_pdf_jax(bins, weights, n_samples, det=True):
    # TODO(synk): stochastic (training-mode) u~Uniform path omitted; eval-mode det only.
    weights = weights + 1e-5
    pdf = weights / jnp.sum(weights, -1, keepdims=True)
    cdf = jnp.cumsum(pdf, -1)
    cdf = jnp.concatenate([jnp.zeros_like(cdf[..., :1]), cdf], -1)
    u = jnp.linspace(0.5 / n_samples, 1.0 - 0.5 / n_samples, n_samples, dtype=cdf.dtype)
    u = jnp.broadcast_to(u, cdf.shape[:-1] + (n_samples,))
    inds = jnp.sum((cdf[..., None, :] <= u[..., :, None]).astype(jnp.int32), axis=-1)
    below = jnp.maximum(0, inds - 1)
    above = jnp.minimum(cdf.shape[-1] - 1, inds)
    cdf_g0 = jnp.take_along_axis(cdf, below, axis=-1)
    cdf_g1 = jnp.take_along_axis(cdf, above, axis=-1)
    bins_g0 = jnp.take_along_axis(bins, below, axis=-1)
    bins_g1 = jnp.take_along_axis(bins, above, axis=-1)
    denom = cdf_g1 - cdf_g0
    denom = jnp.where(denom < 1e-5, jnp.ones_like(denom), denom)
    t = (u - cdf_g0) / denom
    return bins_g0 + t * (bins_g1 - bins_g0)


# -----------------------------------------------------------------------------
# Renderer
# -----------------------------------------------------------------------------
class NeRFRendererPallas:
    def __init__(self, bound=1, density_scale=1, min_near=0.2, min_near_lidar=0.2,
                 density_thresh=0.01, bg_radius=-1, key=None):
        self.bound = bound
        self.cascade = 1 + math.ceil(math.log2(bound))
        self.grid_size = 128
        self.density_scale = density_scale
        self.min_near = min_near
        self.min_near_lidar = min_near_lidar
        self.density_thresh = density_thresh
        self.bg_radius = bg_radius
        self.out_lidar_color_dim = OUT_LIDAR_COLOR_DIM
        self.out_color_dim = 3
        self.aabb = jnp.array([-bound, -bound, -bound, bound, bound, bound], jnp.float32)
        # deterministic synthetic parameters for the (abstract) density/color networks;
        # their forward passes run fused inside the Pallas kernels above.
        if key is None:
            key = jax.random.PRNGKey(42)
        k = jax.random.split(key, 4)
        self.params = {
            "d_w1": 0.5 * jax.random.normal(k[0], (3, HIDDEN), jnp.float32),
            "d_b1": jnp.zeros((HIDDEN,), jnp.float32),
            "d_w2": 0.5 * jax.random.normal(k[1], (HIDDEN, DENSITY_OUT), jnp.float32),
            "d_b2": jnp.zeros((DENSITY_OUT,), jnp.float32),
            "c_w1": 0.5 * jax.random.normal(k[2], (COLOR_IN, HIDDEN), jnp.float32),
            "c_b1": jnp.zeros((HIDDEN,), jnp.float32),
            "c_w2": 0.5 * jax.random.normal(k[3], (HIDDEN, OUT_LIDAR_COLOR_DIM), jnp.float32),
            "c_b2": jnp.zeros((OUT_LIDAR_COLOR_DIM,), jnp.float32),
        }

    def run(self, rays_o, rays_d, cal_lidar_color=True, num_steps=16,
            upsample_steps=16, bg_color=None, perturb=False, **kwargs):
        if not cal_lidar_color:
            # TODO(synk): raymarching.near_far_from_aabb is a CUDA extension; only the
            # lidar (cal_lidar_color=True) path is implemented.
            raise NotImplementedError("only the lidar (cal_lidar_color=True) path is supported")
        # TODO(synk): perturb=True (training-time z jitter) not implemented (eval path).
        out_dim = self.out_lidar_color_dim
        prefix = rays_o.shape[:-1]
        rays_o = rays_o.reshape(-1, 3).astype(jnp.float32)
        rays_d = rays_d.reshape(-1, 3).astype(jnp.float32)
        n = rays_o.shape[0]

        # pad ray count to a multiple of 128 so every kernel tile is lane-dense.
        pad = (-n) % 128
        if pad:
            rays_o = jnp.concatenate([rays_o, jnp.zeros((pad, 3), jnp.float32)], axis=0)
            rays_d = jnp.concatenate([rays_d, jnp.zeros((pad, 3), jnp.float32)], axis=0)
        n_total = n + pad
        oT = rays_o.T                              # (3, N)
        dT = rays_d.T                              # (3, N)

        near = float(self.min_near_lidar)
        far = float(self.min_near_lidar) * 81.0
        sample_dist = (far - near) / num_steps

        lin = jnp.linspace(0.0, 1.0, num_steps, dtype=jnp.float32)[:, None]
        zT = jnp.broadcast_to(near + (far - near) * lin, (num_steps, n_total))  # (T1, N)

        if upsample_steps > 0:
            # fused coarse pass: density MLP + transmittance weights, weights-only output
            wT = coarse_weights_pallas(oT, dT, zT, self.params, self.density_scale,
                                       sample_dist, self.bound)          # (T1, N)
            z_vals = zT.T                          # (N, T1)
            weights = wT.T                         # (N, T1)
            deltas = z_vals[:, 1:] - z_vals[:, :-1]
            z_mid = z_vals[:, :-1] + 0.5 * deltas
            new_z = sample_pdf_jax(z_mid, weights[:, 1:-1], upsample_steps, det=True)
            # only z needs sorting: the composite kernel recomputes xyz / density on the
            # sorted samples, so the argsort + 18-channel gather of the reference is gone.
            z_all = jnp.sort(jnp.concatenate([z_vals, new_z], axis=-1), axis=-1)
            zT_final = z_all.T                     # (T1+S, N)
        else:
            zT_final = zT

        # fused density + color MLP + composite: one lane-dense (2+C, N) output slab
        # TODO(synk): mask=weights>1e-4 sparse color evaluation is a compute optimization
        # in the reference; here color is evaluated densely (numerically equivalent up to
        # <1e-4-weighted contributions).
        out = composite_pallas(oT, dT, zT_final, self.params, self.density_scale,
                               sample_dist, self.bound)                  # (2+C, N)
        weights_sum = out[0, :n]
        depth = out[1, :n]
        image = out[2:, :n].T                      # (N, C)

        # bg_radius>0 / non-lidar background blending not reachable on this path.
        image = image.reshape(*prefix, out_dim)
        depth = depth.reshape(*prefix)
        return {"depth_lidar": depth, "image_lidar": image,
                "weights_sum_lidar": weights_sum}

    def render(self, rays_o, rays_d, cal_lidar_color=True, staged=False,
               max_ray_batch=4096, **kwargs):
        # staged path of the reference is just a python-level batching loop over run().
        return self.run(rays_o, rays_d, cal_lidar_color=cal_lidar_color, **kwargs)


# -----------------------------------------------------------------------------
if __name__ == "__main__":
    key = jax.random.PRNGKey(0)
    k1, k2 = jax.random.split(key)
    B, NR = 2, 128   # N = 256 rays -> ray tile 128, grid of 2 (feeds both v7x TCs)
    rays_o = 0.1 * jax.random.normal(k1, (B, NR, 3), jnp.float32)
    d = jax.random.normal(k2, (B, NR, 3), jnp.float32)
    rays_d = d / jnp.linalg.norm(d, axis=-1, keepdims=True)

    renderer = NeRFRendererPallas(bound=1, key=jax.random.PRNGKey(42))
    run_fn = jax.jit(functools.partial(renderer.run, cal_lidar_color=True,
                                       num_steps=16, upsample_steps=16))
    out = run_fn(rays_o, rays_d)
    out = jax.block_until_ready(out)

    assert out["depth_lidar"].shape == (B, NR)
    assert out["image_lidar"].shape == (B, NR, OUT_LIDAR_COLOR_DIM)
    assert out["weights_sum_lidar"].shape == (B * NR,)
    assert bool(jnp.all(jnp.isfinite(out["depth_lidar"])))
    assert bool(jnp.all(jnp.isfinite(out["image_lidar"])))
    assert bool(jnp.all(jnp.isfinite(out["weights_sum_lidar"])))
    print("KERNEL_OK")
</pallas_src>

<mosaic_0001>
module attributes {stable_mosaic.version = 11 : i64} {
  func.func @coarse_weights_kernel(%arg0: i32, %arg1: memref<3x128xf32, #tpu.memory_space<vmem>>, %arg2: memref<3x128xf32, #tpu.memory_space<vmem>>, %arg3: memref<16x128xf32, #tpu.memory_space<vmem>>, %arg4: memref<32x3xbf16, #tpu.memory_space<vmem>>, %arg5: memref<32x1xf32, #tpu.memory_space<vmem>>, %arg6: memref<1x32xbf16, #tpu.memory_space<vmem>>, %arg7: memref<1x1xf32, #tpu.memory_space<vmem>>, %arg8: memref<16x128xf32, #tpu.memory_space<vmem>>, %arg9: memref<3x1024xf32, #tpu.memory_space<vmem>>, %arg10: memref<16x128xf32, #tpu.memory_space<vmem>>) attributes {dimension_semantics = [#tpu.dimension_semantics<parallel>], iteration_bounds = array<i64: 2>, scalar_prefetch = 0 : i64, scratch_operands = 2 : i64, tpu.core_type = #tpu.core_type<tc>, window_params = [{transform_indices = @transform_0, window_bounds = array<i64: 3, 128>}, {transform_indices = @transform_1, window_bounds = array<i64: 3, 128>}, {transform_indices = @transform_2, window_bounds = array<i64: 16, 128>}, {pipeline_mode = #tpu.pipeline_mode<synchronous>, transform_indices = @transform_3, window_bounds = array<i64: 32, 3>}, {pipeline_mode = #tpu.pipeline_mode<synchronous>, transform_indices = @transform_4, window_bounds = array<i64: 32, 1>}, {pipeline_mode = #tpu.pipeline_mode<synchronous>, transform_indices = @transform_5, window_bounds = array<i64: 1, 32>}, {pipeline_mode = #tpu.pipeline_mode<synchronous>, transform_indices = @transform_6, window_bounds = array<i64: 1, 1>}, {transform_indices = @transform_7, window_bounds = array<i64: 16, 128>}]} {
    %c0 = arith.constant 0 : index
    %c0_0 = arith.constant 0 : index
    %0 = vector.load %arg1[%c0, %c0_0] : memref<3x128xf32, #tpu.memory_space<vmem>>, vector<3x128xf32>
    %c0_1 = arith.constant 0 : index
    %c0_2 = arith.constant 0 : index
    %1 = vector.load %arg2[%c0_1, %c0_2] : memref<3x128xf32, #tpu.memory_space<vmem>>, vector<3x128xf32>
    %c0_3 = arith.constant 0 : index
    %c0_4 = arith.constant 0 : index
    %2 = vector.load %arg4[%c0_3, %c0_4] : memref<32x3xbf16, #tpu.memory_space<vmem>>, vector<32x3xbf16>
    %c0_5 = arith.constant 0 : index
    %c0_6 = arith.constant 0 : index
    %3 = vector.load %arg5[%c0_5, %c0_6] : memref<32x1xf32, #tpu.memory_space<vmem>>, vector<32x1xf32>
    %c0_7 = arith.constant 0 : index
    %c0_8 = arith.constant 0 : index
    %4 = vector.load %arg6[%c0_7, %c0_8] : memref<1x32xbf16, #tpu.memory_space<vmem>>, vector<1x32xbf16>
    %c0_9 = arith.constant 0 : index
    %c0_10 = arith.constant 0 : index
    %5 = vector.load %arg7[%c0_9, %c0_10] : memref<1x1xf32, #tpu.memory_space<vmem>>, vector<1x1xf32>
    %c0_11 = arith.constant 0 : index
    %c0_12 = arith.constant 0 : index
    %6 = vector.load %arg3[%c0_11, %c0_12] : memref<16x128xf32, #tpu.memory_space<vmem>>, vector<1x128xf32>
    %7 = vector.broadcast %6 : vector<1x128xf32> to vector<3x128xf32>
    %8 = arith.mulf %1, %7 : vector<3x128xf32>
    %9 = arith.addf %0, %8 : vector<3x128xf32>
    %cst = arith.constant -1.000000e+00 : f32
    %cst_13 = arith.constant 1.000000e+00 : f32
    %10 = vector.broadcast %cst : f32 to vector<3x128xf32>
    %11 = arith.maximumf %10, %9 : vector<3x128xf32>
    %12 = vector.broadcast %cst_13 : f32 to vector<3x128xf32>
    %13 = arith.minimumf %12, %11 : vector<3x128xf32>
    %c0_14 = arith.constant 0 : index
    %c0_15 = arith.constant 0 : index
    %14 = vector.load %arg9[%c0_14, %c0_15] : memref<3x1024xf32, #tpu.memory_space<vmem>>, vector<3x128xf32>
    tpu.vector_store %arg9[%c0_14, %c0_15], %13 {strides = array<i32>} : memref<3x1024xf32, #tpu.memory_space<vmem>>, vector<3x128xf32>,
    %c1 = arith.constant 1 : index
    %c0_16 = arith.constant 0 : index
    %15 = vector.load %arg3[%c1, %c0_16] : memref<16x128xf32, #tpu.memory_space<vmem>>, vector<1x128xf32>
    %16 = vector.broadcast %15 : vector<1x128xf32> to vector<3x128xf32>
    %17 = arith.mulf %1, %16 : vector<3x128xf32>
    %18 = arith.addf %0, %17 : vector<3x128xf32>
    %cst_17 = arith.constant -1.000000e+00 : f32
    %cst_18 = arith.constant 1.000000e+00 : f32
    %19 = vector.broadcast %cst_17 : f32 to vector<3x128xf32>
    %20 = arith.maximumf %19, %18 : vector<3x128xf32>
    %21 = vector.broadcast %cst_18 : f32 to vector<3x128xf32>
    %22 = arith.minimumf %21, %20 : vector<3x128xf32>
    %c0_19 = arith.constant 0 : index
    %c128 = arith.constant 128 : index
    %23 = vector.load %arg9[%c0_19, %c128] : memref<3x1024xf32, #tpu.memory_space<vmem>>, vector<3x128xf32>
    tpu.vector_store %arg9[%c0_19, %c128], %22 {strides = array<i32>} : memref<3x1024xf32, #tpu.memory_space<vmem>>, vector<3x128xf32>,
    %c2 = arith.constant 2 : index
    %c0_20 = arith.constant 0 : index
    %24 = vector.load %arg3[%c2, %c0_20] : memref<16x128xf32, #tpu.memory_space<vmem>>, vector<1x128xf32>
    %25 = vector.broadcast %24 : vector<1x128xf32> to vector<3x128xf32>
    %26 = arith.mulf %1, %25 : vector<3x128xf32>
    %27 = arith.addf %0, %26 : vector<3x128xf32>
    %cst_21 = arith.constant -1.000000e+00 : f32
    %cst_22 = arith.constant 1.000000e+00 : f32
    %28 = vector.broadcast %cst_21 : f32 to vector<3x128xf32>
    %29 = arith.maximumf %28, %27 : vector<3x128xf32>
    %30 = vector.broadcast %cst_22 : f32 to vector<3x128xf32>
    %31 = arith.minimumf %30, %29 : vector<3x128xf32>
    %c0_23 = arith.constant 0 : index
    %c256 = arith.constant 256 : index
    %32 = vector.load %arg9[%c0_23, %c256] : memref<3x1024xf32, #tpu.memory_space<vmem>>, vector<3x128xf32>
    tpu.vector_store %arg9[%c0_23, %c256], %31 {strides = array<i32>} : memref<3x1024xf32, #tpu.memory_space<vmem>>, vector<3x128xf32>,
    %c3 = arith.constant 3 : index
    %c0_24 = arith.constant 0 : index
    %33 = vector.load %arg3[%c3, %c0_24] : memref<16x128xf32, #tpu.memory_space<vmem>>, vector<1x128xf32>
    %34 = vector.broadcast %33 : vector<1x128xf32> to vector<3x128xf32>
    %35 = arith.mulf %1, %34 : vector<3x128xf32>
    %36 = arith.addf %0, %35 : vector<3x128xf32>
    %cst_25 = arith.constant -1.000000e+00 : f32
    %cst_26 = arith.constant 1.000000e+00 : f32
    %37 = vector.broadcast %cst_25 : f32 to vector<3x128xf32>
    %38 = arith.maximumf %37, %36 : vector<3x128xf32>
    %39 = vector.broadcast %cst_26 : f32 to vector<3x128xf32>
    %40 = arith.minimumf %39, %38 : vector<3x128xf32>
    %c0_27 = arith.constant 0 : index
    %c384 = arith.constant 384 : index
    %41 = vector.load %arg9[%c0_27, %c384] : memref<3x1024xf32, #tpu.memory_space<vmem>>, vector<3x128xf32>
    tpu.vector_store %arg9[%c0_27, %c384], %40 {strides = array<i32>} : memref<3x1024xf32, #tpu.memory_space<vmem>>, vector<3x128xf32>,
    %c4 = arith.constant 4 : index
    %c0_28 = arith.constant 0 : index
    %42 = vector.load %arg3[%c4, %c0_28] : memref<16x128xf32, #tpu.memory_space<vmem>>, vector<1x128xf32>
    %43 = vector.broadcast %42 : vector<1x128xf32> to vector<3x128xf32>
    %44 = arith.mulf %1, %43 : vector<3x128xf32>
    %45 = arith.addf %0, %44 : vector<3x128xf32>
    %cst_29 = arith.constant -1.000000e+00 : f32
    %cst_30 = arith.constant 1.000000e+00 : f32
    %46 = vector.broadcast %cst_29 : f32 to vector<3x128xf32>
    %47 = arith.maximumf %46, %45 : vector<3x128xf32>
    %48 = vector.broadcast %cst_30 : f32 to vector<3x128xf32>
    %49 = arith.minimumf %48, %47 : vector<3x128xf32>
    %c0_31 = arith.constant 0 : index
    %c512 = arith.constant 512 : index
    %50 = vector.load %arg9[%c0_31, %c512] : memref<3x1024xf32, #tpu.memory_space<vmem>>, vector<3x128xf32>
    tpu.vector_store %arg9[%c0_31, %c512], %49 {strides = array<i32>} : memref<3x1024xf32, #tpu.memory_space<vmem>>, vector<3x128xf32>,
    %c5 = arith.constant 5 : index
    %c0_32 = arith.constant 0 : index
    %51 = vector.load %arg3[%c5, %c0_32] : memref<16x128xf32, #tpu.memory_space<vmem>>, vector<1x128xf32>
    %52 = vector.broadcast %51 : vector<1x128xf32> to vector<3x128xf32>
    %53 = arith.mulf %1, %52 : vector<3x128xf32>
    %54 = arith.addf %0, %53 : vector<3x128xf32>
    %cst_33 = arith.constant -1.000000e+00 : f32
    %cst_34 = arith.constant 1.000000e+00 : f32
    %55 = vector.broadcast %cst_33 : f32 to vector<3x128xf32>
    %56 = arith.maximumf %55, %54 : vector<3x128xf32>
    %57 = vector.broadcast %cst_34 : f32 to vector<3x128xf32>
    %58 = arith.minimumf %57, %56 : vector<3x128xf32>
    %c0_35 = arith.constant 0 : index
    %c640 = arith.constant 640 : index
    %59 = vector.load %arg9[%c0_35, %c640] : memref<3x1024xf32, #tpu.memory_space<vmem>>, vector<3x128xf32>
    tpu.vector_store %arg9[%c0_35, %c640], %58 {strides = array<i32>} : memref<3x1024xf32, #tpu.memory_space<vmem>>, vector<3x128xf32>,
    %c6 = arith.constant 6 : index
    %c0_36 = arith.constant 0 : index
    %60 = vector.load %arg3[%c6, %c0_36] : memref<16x128xf32, #tpu.memory_space<vmem>>, vector<1x128xf32>
    %61 = vector.broadcast %60 : vector<1x128xf32> to vector<3x128xf32>
    %62 = arith.mulf %1, %61 : vector<3x128xf32>
    %63 = arith.addf %0, %62 : vector<3x128xf32>
    %cst_37 = arith.constant -1.000000e+00 : f32
    %cst_38 = arith.constant 1.000000e+00 : f32
    %64 = vector.broadcast %cst_37 : f32 to vector<3x128xf32>
    %65 = arith.maximumf %64, %63 : vector<3x128xf32>
    %66 = vector.broadcast %cst_38 : f32 to vector<3x128xf32>
    %67 = arith.minimumf %66, %65 : vector<3x128xf32>
    %c0_39 = arith.constant 0 : index
    %c768 = arith.constant 768 : index
    %68 = vector.load %arg9[%c0_39, %c768] : memref<3x1024xf32, #tpu.memory_space<vmem>>, vector<3x128xf32>
    tpu.vector_store %arg9[%c0_39, %c768], %67 {strides = array<i32>} : memref<3x1024xf32, #tpu.memory_space<vmem>>, vector<3x128xf32>,
    %c7 = arith.constant 7 : index
    %c0_40 = arith.constant 0 : index
    %69 = vector.load %arg3[%c7, %c0_40] : memref<16x128xf32, #tpu.memory_space<vmem>>, vector<1x128xf32>
    %70 = vector.broadcast %69 : vector<1x128xf32> to vector<3x128xf32>
    %71 = arith.mulf %1, %70 : vector<3x128xf32>
    %72 = arith.addf %0, %71 : vector<3x128xf32>
    %cst_41 = arith.constant -1.000000e+00 : f32
    %cst_42 = arith.constant 1.000000e+00 : f32
    %73 = vector.broadcast %cst_41 : f32 to vector<3x128xf32>
    %74 = arith.maximumf %73, %72 : vector<3x128xf32>
    %75 = vector.broadcast %cst_42 : f32 to vector<3x128xf32>
    %76 = arith.minimumf %75, %74 : vector<3x128xf32>
    %c0_43 = arith.constant 0 : index
    %c896 = arith.constant 896 : index
    %77 = vector.load %arg9[%c0_43, %c896] : memref<3x1024xf32, #tpu.memory_space<vmem>>, vector<3x128xf32>
    tpu.vector_store %arg9[%c0_43, %c896], %76 {strides = array<i32>} : memref<3x1024xf32, #tpu.memory_space<vmem>>, vector<3x128xf32>,
    %c0_44 = arith.constant 0 : index
    %c0_45 = arith.constant 0 : index
    %78 = vector.load %arg9[%c0_44, %c0_45] : memref<3x1024xf32, #tpu.memory_space<vmem>>, vector<3x1024xf32>
    %79 = arith.truncf %78 : vector<3x1024xf32> to vector<3x1024xbf16>
    %cst_46 = arith.constant dense<0.000000e+00> : vector<32x1024xf32>
    %80 = tpu.matmul %2, %79, %cst_46 {dimension_numbers = #tpu.dot_dimension_numbers<[1], [0], [0], [1], [0, 0, 1, 1], [], []>} : vector<32x3xbf16>, vector<3x1024xbf16>, vector<32x1024xf32> -> vector<32x1024xf32>
    %81 = vector.broadcast %3 : vector<32x1xf32> to vector<32x1024xf32>
    %82 = arith.addf %80, %81 : vector<32x1024xf32>
    %cst_47 = arith.constant 0.000000e+00 : f32
    %83 = vector.broadcast %cst_47 : f32 to vector<32x1024xf32>
    %84 = arith.maximumf %82, %83 : vector<32x1024xf32>
    %85 = arith.truncf %84 : vector<32x1024xf32> to vector<32x1024xbf16>
    %cst_48 = arith.constant dense<0.000000e+00> : vector<1x1024xf32>
    %86 = tpu.matmul %4, %85, %cst_48 {dimension_numbers = #tpu.dot_dimension_numbers<[1], [0], [0], [1], [0, 0, 1, 1], [], []>} : vector<1x32xbf16>, vector<32x1024xbf16>, vector<1x1024xf32> -> vector<1x1024xf32>
    %87 = vector.broadcast %5 : vector<1x1xf32> to vector<1x1024xf32>
    %88 = arith.addf %86, %87 : vector<1x1024xf32>
    %cst_49 = arith.constant 0.000000e+00 : f32
    %89 = vector.broadcast %cst_49 : f32 to vector<1x1024xf32>
    %90 = arith.maximumf %88, %89 : vector<1x1024xf32>
    %91 = math.absf %88 : vector<1x1024xf32>
    %cst_50 = arith.constant 0.000000e+00 : f32
    %92 = vector.broadcast %cst_50 : f32 to vector<1x1024xf32>
    %93 = arith.subf %92, %91 : vector<1x1024xf32>
    %94 = math.exp %93 : vector<1x1024xf32>
    %cst_51 = arith.constant 1.000000e+00 : f32
    %95 = vector.broadcast %cst_51 : f32 to vector<1x1024xf32>
    %96 = arith.addf %95, %94 : vector<1x1024xf32>
    %97 = math.log %96 : vector<1x1024xf32>
    %98 = arith.addf %90, %97 : vector<1x1024xf32>
    %99 = vector.extract_strided_slice %98 {offsets = [0, 0], sizes = [1, 128], strides = [1, 1]} : vector<1x1024xf32> to vector<1x128xf32>
    %c0_52 = arith.constant 0 : index
    %c0_53 = arith.constant 0 : index
    %100 = vector.load %arg10[%c0_52, %c0_53] : memref<16x128xf32, #tpu.memory_space<vmem>>, vector<1x128xf32>
    tpu.vector_store %arg10[%c0_52, %c0_53], %99 {strides = array<i32>} : memref<16x128xf32, #tpu.memory_space<vmem>>, vector<1x128xf32>,
    %101 = vector.extract_strided_slice %98 {offsets = [0, 128], sizes = [1, 128], strides = [1, 1]} : vector<1x1024xf32> to vector<1x128xf32>
    %c1_54 = arith.constant 1 : index
    %c0_55 = arith.constant 0 : index
    %102 = vector.load %arg10[%c1_54, %c0_55] : memref<16x128xf32, #tpu.memory_space<vmem>>, vector<1x128xf32>
    tpu.vector_store %arg10[%c1_54, %c0_55], %101 {strides = array<i32>} : memref<16x128xf32, #tpu.memory_space<vmem>>, vector<1x128xf32>,
    %103 = vector.extract_strided_slice %98 {offsets = [0, 256], sizes = [1, 128], strides = [1, 1]} : vector<1x1024xf32> to vector<1x128xf32>
    %c2_56 = arith.constant 2 : index
    %c0_57 = arith.constant 0 : index
    %104 = vector.load %arg10[%c2_56, %c0_57] : memref<16x128xf32, #tpu.memory_space<vmem>>, vector<1x128xf32>
    tpu.vector_store %arg10[%c2_56, %c0_57], %103 {strides = array<i32>} : memref<16x128xf32, #tpu.memory_space<vmem>>, vector<1x128xf32>,
    %105 = vector.extract_strided_slice %98 {offsets = [0, 384], sizes = [1, 128], strides = [1, 1]} : vector<1x1024xf32> to vector<1x128xf32>
    %c3_58 = arith.constant 3 : index
    %c0_59 = arith.constant 0 : index
    %106 = vector.load %arg10[%c3_58, %c0_59] : memref<16x128xf32, #tpu.memory_space<vmem>>, vector<1x128xf32>
    tpu.vector_store %arg10[%c3_58, %c0_59], %105 {strides = array<i32>} : memref<16x128xf32, #tpu.memory_space<vmem>>, vector<1x128xf32>,
    %107 = vector.extract_strided_slice %98 {offsets = [0, 512], sizes = [1, 128], strides = [1, 1]} : vector<1x1024xf32> to vector<1x128xf32>
    %c4_60 = arith.constant 4 : index
    %c0_61 = arith.constant 0 : index
    %108 = vector.load %arg10[%c4_60, %c0_61] : memref<16x128xf32, #tpu.memory_space<vmem>>, vector<1x128xf32>
    tpu.vector_store %arg10[%c4_60, %c0_61], %107 {strides = array<i32>} : memref<16x128xf32, #tpu.memory_space<vmem>>, vector<1x128xf32>,
    %109 = vector.extract_strided_slice %98 {offsets = [0, 640], sizes = [1, 128], strides = [1, 1]} : vector<1x1024xf32> to vector<1x128xf32>
    %c5_62 = arith.constant 5 : index
    %c0_63 = arith.constant 0 : index
    %110 = vector.load %arg10[%c5_62, %c0_63] : memref<16x128xf32, #tpu.memory_space<vmem>>, vector<1x128xf32>
    tpu.vector_store %arg10[%c5_62, %c0_63], %109 {strides = array<i32>} : memref<16x128xf32, #tpu.memory_space<vmem>>, vector<1x128xf32>,
    %111 = vector.extract_strided_slice %98 {offsets = [0, 768], sizes = [1, 128], strides = [1, 1]} : vector<1x1024xf32> to vector<1x128xf32>
    %c6_64 = arith.constant 6 : index
    %c0_65 = arith.constant 0 : index
    %112 = vector.load %arg10[%c6_64, %c0_65] : memref<16x128xf32, #tpu.memory_space<vmem>>, vector<1x128xf32>
    tpu.vector_store %arg10[%c6_64, %c0_65], %111 {strides = array<i32>} : memref<16x128xf32, #tpu.memory_space<vmem>>, vector<1x128xf32>,
    %113 = vector.extract_strided_slice %98 {offsets = [0, 896], sizes = [1, 128], strides = [1, 1]} : vector<1x1024xf32> to vector<1x128xf32>
    %c7_66 = arith.constant 7 : index
    %c0_67 = arith.constant 0 : index
    %114 = vector.load %arg10[%c7_66, %c0_67] : memref<16x128xf32, #tpu.memory_space<vmem>>, vector<1x128xf32>
    tpu.vector_store %arg10[%c7_66, %c0_67], %113 {strides = array<i32>} : memref<16x128xf32, #tpu.memory_space<vmem>>, vector<1x128xf32>,
    %c8 = arith.constant 8 : index
    %c0_68 = arith.constant 0 : index
    %115 = vector.load %arg3[%c8, %c0_68] : memref<16x128xf32, #tpu.memory_space<vmem>>, vector<1x128xf32>
    %116 = vector.broadcast %115 : vector<1x128xf32> to vector<3x128xf32>
    %117 = arith.mulf %1, %116 : vector<3x128xf32>
    %118 = arith.addf %0, %117 : vector<3x128xf32>
    %cst_69 = arith.constant -1.000000e+00 : f32
    %cst_70 = arith.constant 1.000000e+00 : f32
    %119 = vector.broadcast %cst_69 : f32 to vector<3x128xf32>
    %120 = arith.maximumf %119, %118 : vector<3x128xf32>
    %121 = vector.broadcast %cst_70 : f32 to vector<3x128xf32>
    %122 = arith.minimumf %121, %120 : vector<3x128xf32>
    %c0_71 = arith.constant 0 : index
    %c0_72 = arith.constant 0 : index
    %123 = vector.load %arg9[%c0_71, %c0_72] : memref<3x1024xf32, #tpu.memory_space<vmem>>, vector<3x128xf32>
    tpu.vector_store %arg9[%c0_71, %c0_72], %122 {strides = array<i32>} : memref<3x1024xf32, #tpu.memory_space<vmem>>, vector<3x128xf32>,
    %c9 = arith.constant 9 : index
    %c0_73 = arith.constant 0 : index
    %124 = vector.load %arg3[%c9, %c0_73] : memref<16x128xf32, #tpu.memory_space<vmem>>, vector<1x128xf32>
    %125 = vector.broadcast %124 : vector<1x128xf32> to vector<3x128xf32>
    %126 = arith.mulf %1, %125 : vector<3x128xf32>
    %127 = arith.addf %0, %126 : vector<3x128xf32>
    %cst_74 = arith.constant -1.000000e+00 : f32
    %cst_75 = arith.constant 1.000000e+00 : f32
    %128 = vector.broadcast %cst_74 : f32 to vector<3x128xf32>
    %129 = arith.maximumf %128, %127 : vector<3x128xf32>
    %130 = vector.broadcast %cst_75 : f32 to vector<3x128xf32>
    %131 = arith.minimumf %130, %129 : vector<3x128xf32>
    %c0_76 = arith.constant 0 : index
    %c128_77 = arith.constant 128 : index
    %132 = vector.load %arg9[%c0_76, %c128_77] : memref<3x1024xf32, #tpu.memory_space<vmem>>, vector<3x128xf32>
    tpu.vector_store %arg9[%c0_76, %c128_77], %131 {strides = array<i32>} : memref<3x1024xf32, #tpu.memory_space<vmem>>, vector<3x128xf32>,
    %c10 = arith.constant 10 : index
    %c0_78 = arith.constant 0 : index
    %133 = vector.load %arg3[%c10, %c0_78] : memref<16x128xf32, #tpu.memory_space<vmem>>, vector<1x128xf32>
    %134 = vector.broadcast %133 : vector<1x128xf32> to vector<3x128xf32>
    %135 = arith.mulf %1, %134 : vector<3x128xf32>
    %136 = arith.addf %0, %135 : vector<3x128xf32>
    %cst_79 = arith.constant -1.000000e+00 : f32
    %cst_80 = arith.constant 1.000000e+00 : f32
    %137 = vector.broadcast %cst_79 : f32 to vector<3x128xf32>
    %138 = arith.maximumf %137, %136 : vector<3x128xf32>
    %139 = vector.broadcast %cst_80 : f32 to vector<3x128xf32>
    %140 = arith.minimumf %139, %138 : vector<3x128xf32>
    %c0_81 = arith.constant 0 : index
    %c256_82 = arith.constant 256 : index
    %141 = vector.load %arg9[%c0_81, %c256_82] : memref<3x1024xf32, #tpu.memory_space<vmem>>, vector<3x128xf32>
    tpu.vector_store %arg9[%c0_81, %c256_82], %140 {strides = array<i32>} : memref<3x1024xf32, #tpu.memory_space<vmem>>, vector<3x128xf32>,
    %c11 = arith.constant 11 : index
    %c0_83 = arith.constant 0 : index
    %142 = vector.load %arg3[%c11, %c0_83] : memref<16x128xf32, #tpu.memory_space<vmem>>, vector<1x128xf32>
    %143 = vector.broadcast %142 : vector<1x128xf32> to vector<3x128xf32>
    %144 = arith.mulf %1, %143 : vector<3x128xf32>
    %145 = arith.addf %0, %144 : vector<3x128xf32>
    %cst_84 = arith.constant -1.000000e+00 : f32
    %cst_85 = arith.constant 1.000000e+00 : f32
    %146 = vector.broadcast %cst_84 : f32 to vector<3x128xf32>
    %147 = arith.maximumf %146, %145 : vector<3x128xf32>
    %148 = vector.broadcast %cst_85 : f32 to vector<3x128xf32>
    %149 = arith.minimumf %148, %147 : vector<3x128xf32>
    %c0_86 = arith.constant 0 : index
    %c384_87 = arith.constant 384 : index
    %150 = vector.load %arg9[%c0_86, %c384_87] : memref<3x1024xf32, #tpu.memory_space<vmem>>, vector<3x128xf32>
    tpu.vector_store %arg9[%c0_86, %c384_87], %149 {strides = array<i32>} : memref<3x1024xf32, #tpu.memory_space<vmem>>, vector<3x128xf32>,
    %c12 = arith.constant 12 : index
    %c0_88 = arith.constant 0 : index
    %151 = vector.load %arg3[%c12, %c0_88] : memref<16x128xf32, #tpu.memory_space<vmem>>, vector<1x128xf32>
    %152 = vector.broadcast %151 : vector<1x128xf32> to vector<3x128xf32>
    %153 = arith.mulf %1, %152 : vector<3x128xf32>
    %154 = arith.addf %0, %153 : vector<3x128xf32>
    %cst_89 = arith.constant -1.000000e+00 : f32
    %cst_90 = arith.constant 1.000000e+00 : f32
    %155 = vector.broadcast %cst_89 : f32 to vector<3x128xf32>
    %156 = arith.maximumf %155, %154 : vector<3x128xf32>
    %157 = vector.broadcast %cst_90 : f32 to vector<3x128xf32>
    %158 = arith.minimumf %157, %156 : vector<3x128xf32>
    %c0_91 = arith.constant 0 : index
    %c512_92 = arith.constant 512 : index
    %159 = vector.load %arg9[%c0_91, %c512_92] : memref<3x1024xf32, #tpu.memory_space<vmem>>, vector<3x128xf32>
    tpu.vector_store %arg9[%c0_91, %c512_92], %158 {strides = array<i32>} : memref<3x1024xf32, #tpu.memory_space<vmem>>, vector<3x128xf32>,
    %c13 = arith.constant 13 : index
    %c0_93 = arith.constant 0 : index
    %160 = vector.load %arg3[%c13, %c0_93] : memref<16x128xf32, #tpu.memory_space<vmem>>, vector<1x128xf32>
    %161 = vector.broadcast %160 : vector<1x128xf32> to vector<3x128xf32>
    %162 = arith.mulf %1, %161 : vector<3x128xf32>
    %163 = arith.addf %0, %162 : vector<3x128xf32>
    %cst_94 = arith.constant -1.000000e+00 : f32
    %cst_95 = arith.constant 1.000000e+00 : f32
    %164 = vector.broadcast %cst_94 : f32 to vector<3x128xf32>
    %165 = arith.maximumf %164, %163 : vector<3x128xf32>
    %166 = vector.broadcast %cst_95 : f32 to vector<3x128xf32>
    %167 = arith.minimumf %166, %165 : vector<3x128xf32>
    %c0_96 = arith.constant 0 : index
    %c640_97 = arith.constant 640 : index
    %168 = vector.load %arg9[%c0_96, %c640_97] : memref<3x1024xf32, #tpu.memory_space<vmem>>, vector<3x128xf32>
    tpu.vector_store %arg9[%c0_96, %c640_97], %167 {strides = array<i32>} : memref<3x1024xf32, #tpu.memory_space<vmem>>, vector<3x128xf32>,
    %c14 = arith.constant 14 : index
    %c0_98 = arith.constant 0 : index
    %169 = vector.load %arg3[%c14, %c0_98] : memref<16x128xf32, #tpu.memory_space<vmem>>, vector<1x128xf32>
    %170 = vector.broadcast %169 : vector<1x128xf32> to vector<3x128xf32>
    %171 = arith.mulf %1, %170 : vector<3x128xf32>
    %172 = arith.addf %0, %171 : vector<3x128xf32>
    %cst_99 = arith.constant -1.000000e+00 : f32
    %cst_100 = arith.constant 1.000000e+00 : f32
    %173 = vector.broadcast %cst_99 : f32 to vector<3x128xf32>
    %174 = arith.maximumf %173, %172 : vector<3x128xf32>
    %175 = vector.broadcast %cst_100 : f32 to vector<3x128xf32>
    %176 = arith.minimumf %175, %174 : vector<3x128xf32>
    %c0_101 = arith.constant 0 : index
    %c768_102 = arith.constant 768 : index
    %177 = vector.load %arg9[%c0_101, %c768_102] : memref<3x1024xf32, #tpu.memory_space<vmem>>, vector<3x128xf32>
    tpu.vector_store %arg9[%c0_101, %c768_102], %176 {strides = array<i32>} : memref<3x1024xf32, #tpu.memory_space<vmem>>, vector<3x128xf32>,
    %c15 = arith.constant 15 : index
    %c0_103 = arith.constant 0 : index
    %178 = vector.load %arg3[%c15, %c0_103] : memref<16x128xf32, #tpu.memory_space<vmem>>, vector<1x128xf32>
    %179 = vector.broadcast %178 : vector<1x128xf32> to vector<3x128xf32>
    %180 = arith.mulf %1, %179 : vector<3x128xf32>
    %181 = arith.addf %0, %180 : vector<3x128xf32>
    %cst_104 = arith.constant -1.000000e+00 : f32
    %cst_105 = arith.constant 1.000000e+00 : f32
    %182 = vector.broadcast %cst_104 : f32 to vector<3x128xf32>
    %183 = arith.maximumf %182, %181 : vector<3x128xf32>
    %184 = vector.broadcast %cst_105 : f32 to vector<3x128xf32>
    %185 = arith.minimumf %184, %183 : vector<3x128xf32>
    %c0_106 = arith.constant 0 : index
    %c896_107 = arith.constant 896 : index
    %186 = vector.load %arg9[%c0_106, %c896_107] : memref<3x1024xf32, #tpu.memory_space<vmem>>, vector<3x128xf32>
    tpu.vector_store %arg9[%c0_106, %c896_107], %185 {strides = array<i32>} : memref<3x1024xf32, #tpu.memory_space<vmem>>, vector<3x128xf32>,
    %c0_108 = arith.constant 0 : index
    %c0_109 = arith.constant 0 : index
    %187 = vector.load %arg9[%c0_108, %c0_109] : memref<3x1024xf32, #tpu.memory_space<vmem>>, vector<3x1024xf32>
    %188 = arith.truncf %187 : vector<3x1024xf32> to vector<3x1024xbf16>
    %cst_110 = arith.constant dense<0.000000e+00> : vector<32x1024xf32>
    %189 = tpu.matmul %2, %188, %cst_110 {dimension_numbers = #tpu.dot_dimension_numbers<[1], [0], [0], [1], [0, 0, 1, 1], [], []>} : vector<32x3xbf16>, vector<3x1024xbf16>, vector<32x1024xf32> -> vector<32x1024xf32>
    %190 = vector.broadcast %3 : vector<32x1xf32> to vector<32x1024xf32>
    %191 = arith.addf %189, %190 : vector<32x1024xf32>
    %cst_111 = arith.constant 0.000000e+00 : f32
    %192 = vector.broadcast %cst_111 : f32 to vector<32x1024xf32>
    %193 = arith.maximumf %191, %192 : vector<32x1024xf32>
    %194 = arith.truncf %193 : vector<32x1024xf32> to vector<32x1024xbf16>
    %cst_112 = arith.constant dense<0.000000e+00> : vector<1x1024xf32>
    %195 = tpu.matmul %4, %194, %cst_112 {dimension_numbers = #tpu.dot_dimension_numbers<[1], [0], [0], [1], [0, 0, 1, 1], [], []>} : vector<1x32xbf16>, vector<32x1024xbf16>, vector<1x1024xf32> -> vector<1x1024xf32>
    %196 = vector.broadcast %5 : vector<1x1xf32> to vector<1x1024xf32>
    %197 = arith.addf %195, %196 : vector<1x1024xf32>
    %cst_113 = arith.constant 0.000000e+00 : f32
    %198 = vector.broadcast %cst_113 : f32 to vector<1x1024xf32>
    %199 = arith.maximumf %197, %198 : vector<1x1024xf32>
    %200 = math.absf %197 : vector<1x1024xf32>
    %cst_114 = arith.constant 0.000000e+00 : f32
    %201 = vector.broadcast %cst_114 : f32 to vector<1x1024xf32>
    %202 = arith.subf %201, %200 : vector<1x1024xf32>
    %203 = math.exp %202 : vector<1x1024xf32>
    %cst_115 = arith.constant 1.000000e+00 : f32
    %204 = vector.broadcast %cst_115 : f32 to vector<1x1024xf32>
    %205 = arith.addf %204, %203 : vector<1x1024xf32>
    %206 = math.log %205 : vector<1x1024xf32>
    %207 = arith.addf %199, %206 : vector<1x1024xf32>
    %208 = vector.extract_strided_slice %207 {offsets = [0, 0], sizes = [1, 128], strides = [1, 1]} : vector<1x1024xf32> to vector<1x128xf32>
    %c8_116 = arith.constant 8 : index
    %c0_117 = arith.constant 0 : index
    %209 = vector.load %arg10[%c8_116, %c0_117] : memref<16x128xf32, #tpu.memory_space<vmem>>, vector<1x128xf32>
    tpu.vector_store %arg10[%c8_116, %c0_117], %208 {strides = array<i32>} : memref<16x128xf32, #tpu.memory_space<vmem>>, vector<1x128xf32>,
    %210 = vector.extract_strided_slice %207 {offsets = [0, 128], sizes = [1, 128], strides = [1, 1]} : vector<1x1024xf32> to vector<1x128xf32>
    %c9_118 = arith.constant 9 : index
    %c0_119 = arith.constant 0 : index
    %211 = vector.load %arg10[%c9_118, %c0_119] : memref<16x128xf32, #tpu.memory_space<vmem>>, vector<1x128xf32>
    tpu.vector_store %arg10[%c9_118, %c0_119], %210 {strides = array<i32>} : memref<16x128xf32, #tpu.memory_space<vmem>>, vector<1x128xf32>,
    %212 = vector.extract_strided_slice %207 {offsets = [0, 256], sizes = [1, 128], strides = [1, 1]} : vector<1x1024xf32> to vector<1x128xf32>
    %c10_120 = arith.constant 10 : index
    %c0_121 = arith.constant 0 : index
    %213 = vector.load %arg10[%c10_120, %c0_121] : memref<16x128xf32, #tpu.memory_space<vmem>>, vector<1x128xf32>
    tpu.vector_store %arg10[%c10_120, %c0_121], %212 {strides = array<i32>} : memref<16x128xf32, #tpu.memory_space<vmem>>, vector<1x128xf32>,
    %214 = vector.extract_strided_slice %207 {offsets = [0, 384], sizes = [1, 128], strides = [1, 1]} : vector<1x1024xf32> to vector<1x128xf32>
    %c11_122 = arith.constant 11 : index
    %c0_123 = arith.constant 0 : index
    %215 = vector.load %arg10[%c11_122, %c0_123] : memref<16x128xf32, #tpu.memory_space<vmem>>, vector<1x128xf32>
    tpu.vector_store %arg10[%c11_122, %c0_123], %214 {strides = array<i32>} : memref<16x128xf32, #tpu.memory_space<vmem>>, vector<1x128xf32>,
    %216 = vector.extract_strided_slice %207 {offsets = [0, 512], sizes = [1, 128], strides = [1, 1]} : vector<1x1024xf32> to vector<1x128xf32>
    %c12_124 = arith.constant 12 : index
    %c0_125 = arith.constant 0 : index
    %217 = vector.load %arg10[%c12_124, %c0_125] : memref<16x128xf32, #tpu.memory_space<vmem>>, vector<1x128xf32>
    tpu.vector_store %arg10[%c12_124, %c0_125], %216 {strides = array<i32>} : memref<16x128xf32, #tpu.memory_space<vmem>>, vector<1x128xf32>,
    %218 = vector.extract_strided_slice %207 {offsets = [0, 640], sizes = [1, 128], strides = [1, 1]} : vector<1x1024xf32> to vector<1x128xf32>
    %c13_126 = arith.constant 13 : index
    %c0_127 = arith.constant 0 : index
    %219 = vector.load %arg10[%c13_126, %c0_127] : memref<16x128xf32, #tpu.memory_space<vmem>>, vector<1x128xf32>
    tpu.vector_store %arg10[%c13_126, %c0_127], %218 {strides = array<i32>} : memref<16x128xf32, #tpu.memory_space<vmem>>, vector<1x128xf32>,
    %220 = vector.extract_strided_slice %207 {offsets = [0, 768], sizes = [1, 128], strides = [1, 1]} : vector<1x1024xf32> to vector<1x128xf32>
    %c14_128 = arith.constant 14 : index
    %c0_129 = arith.constant 0 : index
    %221 = vector.load %arg10[%c14_128, %c0_129] : memref<16x128xf32, #tpu.memory_space<vmem>>, vector<1x128xf32>
    tpu.vector_store %arg10[%c14_128, %c0_129], %220 {strides = array<i32>} : memref<16x128xf32, #tpu.memory_space<vmem>>, vector<1x128xf32>,
    %222 = vector.extract_strided_slice %207 {offsets = [0, 896], sizes = [1, 128], strides = [1, 1]} : vector<1x1024xf32> to vector<1x128xf32>
    %c15_130 = arith.constant 15 : index
    %c0_131 = arith.constant 0 : index
    %223 = vector.load %arg10[%c15_130, %c0_131] : memref<16x128xf32, #tpu.memory_space<vmem>>, vector<1x128xf32>
    tpu.vector_store %arg10[%c15_130, %c0_131], %222 {strides = array<i32>} : memref<16x128xf32, #tpu.memory_space<vmem>>, vector<1x128xf32>,
    %c0_132 = arith.constant 0 : index
    %c0_133 = arith.constant 0 : index
    %224 = vector.load %arg3[%c0_132, %c0_133] : memref<16x128xf32, #tpu.memory_space<vmem>>, vector<16x128xf32>
    %c0_134 = arith.constant 0 : index
    %c0_135 = arith.constant 0 : index
    %225 = vector.load %arg10[%c0_134, %c0_135] : memref<16x128xf32, #tpu.memory_space<vmem>>, vector<16x128xf32>
    %cst_136 = arith.constant 1.000000e+00 : f32
    %226 = vector.broadcast %cst_136 : f32 to vector<1x128xf32>
    %227 = vector.extract_strided_slice %224 {offsets = [1, 0], sizes = [15, 128], strides = [1, 1]} : vector<16x128xf32> to vector<15x128xf32>
    %228 = vector.extract_strided_slice %224 {offsets = [0, 0], sizes = [15, 128], strides = [1, 1]} : vector<16x128xf32> to vector<15x128xf32>
    %229 = arith.subf %227, %228 : vector<15x128xf32>
    %230 = tpu.concatenate %229, %226 in 0 : vector<15x128xf32>, vector<1x128xf32> -> vector<16x128xf32>
    %cst_137 = arith.constant 0.000000e+00 : f32
    %231 = vector.broadcast %cst_137 : f32 to vector<16x128xf32>
    %232 = arith.subf %231, %230 : vector<16x128xf32>
    %cst_138 = arith.constant 1.000000e+00 : f32
    %233 = vector.broadcast %cst_138 : f32 to vector<16x128xf32>
    %234 = arith.mulf %232, %233 : vector<16x128xf32>
    %235 = arith.mulf %234, %225 : vector<16x128xf32>
    %236 = math.exp %235 : vector<16x128xf32>
    %cst_139 = arith.constant 1.000000e+00 : f32
    %237 = vector.broadcast %cst_139 : f32 to vector<16x128xf32>
    %238 = arith.subf %237, %236 : vector<16x128xf32>
    %cst_140 = arith.constant 1.000000e+00 : f32
    %239 = vector.broadcast %cst_140 : f32 to vector<16x128xf32>
    %240 = arith.subf %239, %238 : vector<16x128xf32>
    %cst_141 = arith.constant 1.000000e-15 : f32
    %241 = vector.broadcast %cst_141 : f32 to vector<16x128xf32>
    %242 = arith.addf %240, %241 : vector<16x128xf32>
    %243 = math.log %242 : vector<16x128xf32>
    %cst_142 = arith.constant 0.000000e+00 : f32
    %244 = vector.broadcast %cst_142 : f32 to vector<1x128xf32>
    %245 = vector.extract_strided_slice %243 {offsets = [0, 0], sizes = [15, 128], strides = [1, 1]} : vector<16x128xf32> to vector<15x128xf32>
    %246 = tpu.concatenate %244, %245 in 0 : vector<1x128xf32>, vector<15x128xf32> -> vector<16x128xf32>
    %cst_143 = arith.constant 0.000000e+00 : f32
    %247 = vector.broadcast %cst_143 : f32 to vector<1x128xf32>
    %248 = vector.extract_strided_slice %246 {offsets = [0, 0], sizes = [15, 128], strides = [1, 1]} : vector<16x128xf32> to vector<15x128xf32>
    %249 = tpu.concatenate %247, %248 in 0 : vector<1x128xf32>, vector<15x128xf32> -> vector<16x128xf32>
    %250 = arith.addf %246, %249 : vector<16x128xf32>
    %cst_144 = arith.constant 0.000000e+00 : f32
    %251 = vector.broadcast %cst_144 : f32 to vector<2x128xf32>
    %252 = vector.extract_strided_slice %250 {offsets = [0, 0], sizes = [14, 128], strides = [1, 1]} : vector<16x128xf32> to vector<14x128xf32>
    %253 = tpu.concatenate %251, %252 in 0 : vector<2x128xf32>, vector<14x128xf32> -> vector<16x128xf32>
    %254 = arith.addf %250, %253 : vector<16x128xf32>
    %cst_145 = arith.constant 0.000000e+00 : f32
    %255 = vector.broadcast %cst_145 : f32 to vector<4x128xf32>
    %256 = vector.extract_strided_slice %254 {offsets = [0, 0], sizes = [12, 128], strides = [1, 1]} : vector<16x128xf32> to vector<12x128xf32>
    %257 = tpu.concatenate %255, %256 in 0 : vector<4x128xf32>, vector<12x128xf32> -> vector<16x128xf32>
    %258 = arith.addf %254, %257 : vector<16x128xf32>
    %cst_146 = arith.constant 0.000000e+00 : f32
    %259 = vector.broadcast %cst_146 : f32 to vector<8x128xf32>
    %260 = vector.extract_strided_slice %258 {offsets = [0, 0], sizes = [8, 128], strides = [1, 1]} : vector<16x128xf32> to vector<8x128xf32>
    %261 = tpu.concatenate %259, %260 in 0 : vector<8x128xf32>, vector<8x128xf32> -> vector<16x128xf32>
    %262 = arith.addf %258, %261 : vector<16x128xf32>
    %263 = math.exp %262 : vector<16x128xf32>
    %264 = arith.mulf %238, %263 : vector<16x128xf32>
    %c0_147 = arith.constant 0 : index
    %c0_148 = arith.constant 0 : index
    %265 = vector.load %arg8[%c0_147, %c0_148] : memref<16x128xf32, #tpu.memory_space<vmem>>, vector<16x128xf32>
    tpu.vector_store %arg8[%c0_147, %c0_148], %264 {strides = array<i32>} : memref<16x128xf32, #tpu.memory_space<vmem>>, vector<16x128xf32>,
    return
  }
  func.func @transform_0(%arg0: i32) -> (i32, i32) {
    %c0_i32 = arith.constant 0 : i32
    %c0_i32_0 = arith.constant 0 : i32
    return %c0_i32, %arg0 : i32, i32
  }
  func.func @transform_1(%arg0: i32) -> (i32, i32) {
    %c0_i32 = arith.constant 0 : i32
    %c0_i32_0 = arith.constant 0 : i32
    return %c0_i32, %arg0 : i32, i32
  }
  func.func @transform_2(%arg0: i32) -> (i32, i32) {
    %c0_i32 = arith.constant 0 : i32
    %c0_i32_0 = arith.constant 0 : i32
    return %c0_i32, %arg0 : i32, i32
  }
  func.func @transform_3(%arg0: i32) -> (i32, i32) {
    %c0_i32 = arith.constant 0 : i32
    %c0_i32_0 = arith.constant 0 : i32
    %c0_i32_1 = arith.constant 0 : i32
    return %c0_i32, %c0_i32_0 : i32, i32
  }
  func.func @transform_4(%arg0: i32) -> (i32, i32) {
    %c0_i32 = arith.constant 0 : i32
    %c0_i32_0 = arith.constant 0 : i32
    %c0_i32_1 = arith.constant 0 : i32
    return %c0_i32, %c0_i32_0 : i32, i32
  }
  func.func @transform_5(%arg0: i32) -> (i32, i32) {
    %c0_i32 = arith.constant 0 : i32
    %c0_i32_0 = arith.constant 0 : i32
    %c0_i32_1 = arith.constant 0 : i32
    return %c0_i32, %c0_i32_0 : i32, i32
  }
  func.func @transform_6(%arg0: i32) -> (i32, i32) {
    %c0_i32 = arith.constant 0 : i32
    %c0_i32_0 = arith.constant 0 : i32
    %c0_i32_1 = arith.constant 0 : i32
    return %c0_i32, %c0_i32_0 : i32, i32
  }
  func.func @transform_7(%arg0: i32) -> (i32, i32) {
    %c0_i32 = arith.constant 0 : i32
    %c0_i32_0 = arith.constant 0 : i32
    return %c0_i32, %arg0 : i32, i32
  }
}

module attributes {stable_mosaic.version = 11 : i64} {
  func.func @composite_kernel(%arg0: i32, %arg1: memref<3x128xf32, #tpu.memory_space<vmem>>, %arg2: memref<3x128xf32, #tpu.memory_space<vmem>>, %arg3: memref<32x128xf32, #tpu.memory_space<vmem>>, %arg4: memref<32x3xbf16, #tpu.memory_space<vmem>>, %arg5: memref<32x1xf32, #tpu.memory_space<vmem>>, %arg6: memref<16x32xbf16, #tpu.memory_space<vmem>>, %arg7: memref<16x1xf32, #tpu.memory_space<vmem>>, %arg8: memref<32x22xbf16, #tpu.memory_space<vmem>>, %arg9: memref<32x1xf32, #tpu.memory_space<vmem>>, %arg10: memref<2x32xbf16, #tpu.memory_space<vmem>>, %arg11: memref<2x1xf32, #tpu.memory_space<vmem>>, %arg12: memref<4x128xf32, #tpu.memory_space<vmem>>, %arg13: memref<22x4096xf32, #tpu.memory_space<vmem>>, %arg14: memref<32x128xf32, #tpu.memory_space<vmem>>) attributes {dimension_semantics = [#tpu.dimension_semantics<parallel>], iteration_bounds = array<i64: 2>, scalar_prefetch = 0 : i64, scratch_operands = 2 : i64, tpu.core_type = #tpu.core_type<tc>, window_params = [{transform_indices = @transform_0, window_bounds = array<i64: 3, 128>}, {transform_indices = @transform_1, window_bounds = array<i64: 3, 128>}, {transform_indices = @transform_2, window_bounds = array<i64: 32, 128>}, {pipeline_mode = #tpu.pipeline_mode<synchronous>, transform_indices = @transform_3, window_bounds = array<i64: 32, 3>}, {pipeline_mode = #tpu.pipeline_mode<synchronous>, transform_indices = @transform_4, window_bounds = array<i64: 32, 1>}, {pipeline_mode = #tpu.pipeline_mode<synchronous>, transform_indices = @transform_5, window_bounds = array<i64: 16, 32>}, {pipeline_mode = #tpu.pipeline_mode<synchronous>, transform_indices = @transform_6, window_bounds = array<i64: 16, 1>}, {pipeline_mode = #tpu.pipeline_mode<synchronous>, transform_indices = @transform_7, window_bounds = array<i64: 32, 22>}, {pipeline_mode = #tpu.pipeline_mode<synchronous>, transform_indices = @transform_8, window_bounds = array<i64: 32, 1>}, {pipeline_mode = #tpu.pipeline_mode<synchronous>, transform_indices = @transform_9, window_bounds = array<i64: 2, 32>}, {pipeline_mode = #tpu.pipeline_mode<synchronous>, transform_indices = @transform_10, window_bounds = array<i64: 2, 1>}, {transform_indices = @transform_11, window_bounds = array<i64: 4, 128>}]} {
    %c0 = arith.constant 0 : index
    %c0_0 = arith.constant 0 : index
    %0 = vector.load %arg1[%c0, %c0_0] : memref<3x128xf32, #tpu.memory_space<vmem>>, vector<3x128xf32>
    %c0_1 = arith.constant 0 : index
    %c0_2 = arith.constant 0 : index
    %1 = vector.load %arg2[%c0_1, %c0_2] : memref<3x128xf32, #tpu.memory_space<vmem>>, vector<3x128xf32>
    %c0_3 = arith.constant 0 : index
    %c0_4 = arith.constant 0 : index
    %2 = vector.load %arg4[%c0_3, %c0_4] : memref<32x3xbf16, #tpu.memory_space<vmem>>, vector<32x3xbf16>
    %c0_5 = arith.constant 0 : index
    %c0_6 = arith.constant 0 : index
    %3 = vector.load %arg5[%c0_5, %c0_6] : memref<32x1xf32, #tpu.memory_space<vmem>>, vector<32x1xf32>
    %c0_7 = arith.constant 0 : index
    %c0_8 = arith.constant 0 : index
    %4 = vector.load %arg6[%c0_7, %c0_8] : memref<16x32xbf16, #tpu.memory_space<vmem>>, vector<16x32xbf16>
    %c0_9 = arith.constant 0 : index
    %c0_10 = arith.constant 0 : index
    %5 = vector.load %arg7[%c0_9, %c0_10] : memref<16x1xf32, #tpu.memory_space<vmem>>, vector<16x1xf32>
    %c0_11 = arith.constant 0 : index
    %c0_12 = arith.constant 0 : index
    %6 = vector.load %arg3[%c0_11, %c0_12] : memref<32x128xf32, #tpu.memory_space<vmem>>, vector<1x128xf32>
    %7 = vector.broadcast %6 : vector<1x128xf32> to vector<3x128xf32>
    %8 = arith.mulf %1, %7 : vector<3x128xf32>
    %9 = arith.addf %0, %8 : vector<3x128xf32>
    %cst = arith.constant -1.000000e+00 : f32
    %cst_13 = arith.constant 1.000000e+00 : f32
    %10 = vector.broadcast %cst : f32 to vector<3x128xf32>
    %11 = arith.maximumf %10, %9 : vector<3x128xf32>
    %12 = vector.broadcast %cst_13 : f32 to vector<3x128xf32>
    %13 = arith.minimumf %12, %11 : vector<3x128xf32>
    %14 = tpu.concatenate %13, %1 in 0 : vector<3x128xf32>, vector<3x128xf32> -> vector<6x128xf32>
    %c0_14 = arith.constant 0 : index
    %c0_15 = arith.constant 0 : index
    %15 = vector.load %arg13[%c0_14, %c0_15] : memref<22x4096xf32, #tpu.memory_space<vmem>>, vector<6x128xf32>
    tpu.vector_store %arg13[%c0_14, %c0_15], %14 {strides = array<i32>} : memref<22x4096xf32, #tpu.memory_space<vmem>>, vector<6x128xf32>,
    %c1 = arith.constant 1 : index
    %c0_16 = arith.constant 0 : index
    %16 = vector.load %arg3[%c1, %c0_16] : memref<32x128xf32, #tpu.memory_space<vmem>>, vector<1x128xf32>
    %17 = vector.broadcast %16 : vector<1x128xf32> to vector<3x128xf32>
    %18 = arith.mulf %1, %17 : vector<3x128xf32>
    %19 = arith.addf %0, %18 : vector<3x128xf32>
    %cst_17 = arith.constant -1.000000e+00 : f32
    %cst_18 = arith.constant 1.000000e+00 : f32
    %20 = vector.broadcast %cst_17 : f32 to vector<3x128xf32>
    %21 = arith.maximumf %20, %19 : vector<3x128xf32>
    %22 = vector.broadcast %cst_18 : f32 to vector<3x128xf32>
    %23 = arith.minimumf %22, %21 : vector<3x128xf32>
    %24 = tpu.concatenate %23, %1 in 0 : vector<3x128xf32>, vector<3x128xf32> -> vector<6x128xf32>
    %c0_19 = arith.constant 0 : index
    %c128 = arith.constant 128 : index
    %25 = vector.load %arg13[%c0_19, %c128] : memref<22x4096xf32, #tpu.memory_space<vmem>>, vector<6x128xf32>
    tpu.vector_store %arg13[%c0_19, %c128], %24 {strides = array<i32>} : memref<22x4096xf32, #tpu.memory_space<vmem>>, vector<6x128xf32>,
    %c2 = arith.constant 2 : index
    %c0_20 = arith.constant 0 : index
    %26 = vector.load %arg3[%c2, %c0_20] : memref<32x128xf32, #tpu.memory_space<vmem>>, vector<1x128xf32>
    %27 = vector.broadcast %26 : vector<1x128xf32> to vector<3x128xf32>
    %28 = arith.mulf %1, %27 : vector<3x128xf32>
    %29 = arith.addf %0, %28 : vector<3x128xf32>
    %cst_21 = arith.constant -1.000000e+00 : f32
    %cst_22 = arith.constant 1.000000e+00 : f32
    %30 = vector.broadcast %cst_21 : f32 to vector<3x128xf32>
    %31 = arith.maximumf %30, %29 : vector<3x128xf32>
    %32 = vector.broadcast %cst_22 : f32 to vector<3x128xf32>
    %33 = arith.minimumf %32, %31 : vector<3x128xf32>
    %34 = tpu.concatenate %33, %1 in 0 : vector<3x128xf32>, vector<3x128xf32> -> vector<6x128xf32>
    %c0_23 = arith.constant 0 : index
    %c256 = arith.constant 256 : index
    %35 = vector.load %arg13[%c0_23, %c256] : memref<22x4096xf32, #tpu.memory_space<vmem>>, vector<6x128xf32>
    tpu.vector_store %arg13[%c0_23, %c256], %34 {strides = array<i32>} : memref<22x4096xf32, #tpu.memory_space<vmem>>, vector<6x128xf32>,
    %c3 = arith.constant 3 : index
    %c0_24 = arith.constant 0 : index
    %36 = vector.load %arg3[%c3, %c0_24] : memref<32x128xf32, #tpu.memory_space<vmem>>, vector<1x128xf32>
    %37 = vector.broadcast %36 : vector<1x128xf32> to vector<3x128xf32>
    %38 = arith.mulf %1, %37 : vector<3x128xf32>
    %39 = arith.addf %0, %38 : vector<3x128xf32>
    %cst_25 = arith.constant -1.000000e+00 : f32
    %cst_26 = arith.constant 1.000000e+00 : f32
    %40 = vector.broadcast %cst_25 : f32 to vector<3x128xf32>
    %41 = arith.maximumf %40, %39 : vector<3x128xf32>
    %42 = vector.broadcast %cst_26 : f32 to vector<3x128xf32>
    %43 = arith.minimumf %42, %41 : vector<3x128xf32>
    %44 = tpu.concatenate %43, %1 in 0 : vector<3x128xf32>, vector<3x128xf32> -> vector<6x128xf32>
    %c0_27 = arith.constant 0 : index
    %c384 = arith.constant 384 : index
    %45 = vector.load %arg13[%c0_27, %c384] : memref<22x4096xf32, #tpu.memory_space<vmem>>, vector<6x128xf32>
    tpu.vector_store %arg13[%c0_27, %c384], %44 {strides = array<i32>} : memref<22x4096xf32, #tpu.memory_space<vmem>>, vector<6x128xf32>,
    %c4 = arith.constant 4 : index
    %c0_28 = arith.constant 0 : index
    %46 = vector.load %arg3[%c4, %c0_28] : memref<32x128xf32, #tpu.memory_space<vmem>>, vector<1x128xf32>
    %47 = vector.broadcast %46 : vector<1x128xf32> to vector<3x128xf32>
    %48 = arith.mulf %1, %47 : vector<3x128xf32>
    %49 = arith.addf %0, %48 : vector<3x128xf32>
    %cst_29 = arith.constant -1.000000e+00 : f32
    %cst_30 = arith.constant 1.000000e+00 : f32
    %50 = vector.broadcast %cst_29 : f32 to vector<3x128xf32>
    %51 = arith.maximumf %50, %49 : vector<3x128xf32>
    %52 = vector.broadcast %cst_30 : f32 to vector<3x128xf32>
    %53 = arith.minimumf %52, %51 : vector<3x128xf32>
    %54 = tpu.concatenate %53, %1 in 0 : vector<3x128xf32>, vector<3x128xf32> -> vector<6x128xf32>
    %c0_31 = arith.constant 0 : index
    %c512 = arith.constant 512 : index
    %55 = vector.load %arg13[%c0_31, %c512] : memref<22x4096xf32, #tpu.memory_space<vmem>>, vector<6x128xf32>
    tpu.vector_store %arg13[%c0_31, %c512], %54 {strides = array<i32>} : memref<22x4096xf32, #tpu.memory_space<vmem>>, vector<6x128xf32>,
    %c5 = arith.constant 5 : index
    %c0_32 = arith.constant 0 : index
    %56 = vector.load %arg3[%c5, %c0_32] : memref<32x128xf32, #tpu.memory_space<vmem>>, vector<1x128xf32>
    %57 = vector.broadcast %56 : vector<1x128xf32> to vector<3x128xf32>
    %58 = arith.mulf %1, %57 : vector<3x128xf32>
    %59 = arith.addf %0, %58 : vector<3x128xf32>
    %cst_33 = arith.constant -1.000000e+00 : f32
    %cst_34 = arith.constant 1.000000e+00 : f32
    %60 = vector.broadcast %cst_33 : f32 to vector<3x128xf32>
    %61 = arith.maximumf %60, %59 : vector<3x128xf32>
    %62 = vector.broadcast %cst_34 : f32 to vector<3x128xf32>
    %63 = arith.minimumf %62, %61 : vector<3x128xf32>
    %64 = tpu.concatenate %63, %1 in 0 : vector<3x128xf32>, vector<3x128xf32> -> vector<6x128xf32>
    %c0_35 = arith.constant 0 : index
    %c640 = arith.constant 640 : index
    %65 = vector.load %arg13[%c0_35, %c640] : memref<22x4096xf32, #tpu.memory_space<vmem>>, vector<6x128xf32>
    tpu.vector_store %arg13[%c0_35, %c640], %64 {strides = array<i32>} : memref<22x4096xf32, #tpu.memory_space<vmem>>, vector<6x128xf32>,
    %c6 = arith.constant 6 : index
    %c0_36 = arith.constant 0 : index
    %66 = vector.load %arg3[%c6, %c0_36] : memref<32x128xf32, #tpu.memory_space<vmem>>, vector<1x128xf32>
    %67 = vector.broadcast %66 : vector<1x128xf32> to vector<3x128xf32>
    %68 = arith.mulf %1, %67 : vector<3x128xf32>
    %69 = arith.addf %0, %68 : vector<3x128xf32>
    %cst_37 = arith.constant -1.000000e+00 : f32
    %cst_38 = arith.constant 1.000000e+00 : f32
    %70 = vector.broadcast %cst_37 : f32 to vector<3x128xf32>
    %71 = arith.maximumf %70, %69 : vector<3x128xf32>
    %72 = vector.broadcast %cst_38 : f32 to vector<3x128xf32>
    %73 = arith.minimumf %72, %71 : vector<3x128xf32>
    %74 = tpu.concatenate %73, %1 in 0 : vector<3x128xf32>, vector<3x128xf32> -> vector<6x128xf32>
    %c0_39 = arith.constant 0 : index
    %c768 = arith.constant 768 : index
    %75 = vector.load %arg13[%c0_39, %c768] : memref<22x4096xf32, #tpu.memory_space<vmem>>, vector<6x128xf32>
    tpu.vector_store %arg13[%c0_39, %c768], %74 {strides = array<i32>} : memref<22x4096xf32, #tpu.memory_space<vmem>>, vector<6x128xf32>,
    %c7 = arith.constant 7 : index
    %c0_40 = arith.constant 0 : index
    %76 = vector.load %arg3[%c7, %c0_40] : memref<32x128xf32, #tpu.memory_space<vmem>>, vector<1x128xf32>
    %77 = vector.broadcast %76 : vector<1x128xf32> to vector<3x128xf32>
    %78 = arith.mulf %1, %77 : vector<3x128xf32>
    %79 = arith.addf %0, %78 : vector<3x128xf32>
    %cst_41 = arith.constant -1.000000e+00 : f32
    %cst_42 = arith.constant 1.000000e+00 : f32
    %80 = vector.broadcast %cst_41 : f32 to vector<3x128xf32>
    %81 = arith.maximumf %80, %79 : vector<3x128xf32>
    %82 = vector.broadcast %cst_42 : f32 to vector<3x128xf32>
    %83 = arith.minimumf %82, %81 : vector<3x128xf32>
    %84 = tpu.concatenate %83, %1 in 0 : vector<3x128xf32>, vector<3x128xf32> -> vector<6x128xf32>
    %c0_43 = arith.constant 0 : index
    %c896 = arith.constant 896 : index
    %85 = vector.load %arg13[%c0_43, %c896] : memref<22x4096xf32, #tpu.memory_space<vmem>>, vector<6x128xf32>
    tpu.vector_store %arg13[%c0_43, %c896], %84 {strides = array<i32>} : memref<22x4096xf32, #tpu.memory_space<vmem>>, vector<6x128xf32>,
    %c0_44 = arith.constant 0 : index
    %c0_45 = arith.constant 0 : index
    %86 = vector.load %arg13[%c0_44, %c0_45] : memref<22x4096xf32, #tpu.memory_space<vmem>>, vector<3x1024xf32>
    %87 = arith.truncf %86 : vector<3x1024xf32> to vector<3x1024xbf16>
    %cst_46 = arith.constant dense<0.000000e+00> : vector<32x1024xf32>
    %88 = tpu.matmul %2, %87, %cst_46 {dimension_numbers = #tpu.dot_dimension_numbers<[1], [0], [0], [1], [0, 0, 1, 1], [], []>} : vector<32x3xbf16>, vector<3x1024xbf16>, vector<32x1024xf32> -> vector<32x1024xf32>
    %89 = vector.broadcast %3 : vector<32x1xf32> to vector<32x1024xf32>
    %90 = arith.addf %88, %89 : vector<32x1024xf32>
    %cst_47 = arith.constant 0.000000e+00 : f32
    %91 = vector.broadcast %cst_47 : f32 to vector<32x1024xf32>
    %92 = arith.maximumf %90, %91 : vector<32x1024xf32>
    %93 = arith.truncf %92 : vector<32x1024xf32> to vector<32x1024xbf16>
    %cst_48 = arith.constant dense<0.000000e+00> : vector<16x1024xf32>
    %94 = tpu.matmul %4, %93, %cst_48 {dimension_numbers = #tpu.dot_dimension_numbers<[1], [0], [0], [1], [0, 0, 1, 1], [], []>} : vector<16x32xbf16>, vector<32x1024xbf16>, vector<16x1024xf32> -> vector<16x1024xf32>
    %95 = vector.broadcast %5 : vector<16x1xf32> to vector<16x1024xf32>
    %96 = arith.addf %94, %95 : vector<16x1024xf32>
    %c6_49 = arith.constant 6 : index
    %c0_50 = arith.constant 0 : index
    %97 = vector.load %arg13[%c6_49, %c0_50] : memref<22x4096xf32, #tpu.memory_space<vmem>>, vector<16x1024xf32>
    tpu.vector_store %arg13[%c6_49, %c0_50], %96 {strides = array<i32>} : memref<22x4096xf32, #tpu.memory_space<vmem>>, vector<16x1024xf32>,
    %98 = vector.extract_strided_slice %96 {offsets = [0, 0], sizes = [1, 1024], strides = [1, 1]} : vector<16x1024xf32> to vector<1x1024xf32>
    %cst_51 = arith.constant 0.000000e+00 : f32
    %99 = vector.broadcast %cst_51 : f32 to vector<1x1024xf32>
    %100 = arith.maximumf %98, %99 : vector<1x1024xf32>
    %101 = math.absf %98 : vector<1x1024xf32>
    %cst_52 = arith.constant 0.000000e+00 : f32
    %102 = vector.broadcast %cst_52 : f32 to vector<1x1024xf32>
    %103 = arith.subf %102, %101 : vector<1x1024xf32>
    %104 = math.exp %103 : vector<1x1024xf32>
    %cst_53 = arith.constant 1.000000e+00 : f32
    %105 = vector.broadcast %cst_53 : f32 to vector<1x1024xf32>
    %106 = arith.addf %105, %104 : vector<1x1024xf32>
    %107 = math.log %106 : vector<1x1024xf32>
    %108 = arith.addf %100, %107 : vector<1x1024xf32>
    %109 = vector.extract_strided_slice %108 {offsets = [0, 0], sizes = [1, 128], strides = [1, 1]} : vector<1x1024xf32> to vector<1x128xf32>
    %c0_54 = arith.constant 0 : index
    %c0_55 = arith.constant 0 : index
    %110 = vector.load %arg14[%c0_54, %c0_55] : memref<32x128xf32, #tpu.memory_space<vmem>>, vector<1x128xf32>
    tpu.vector_store %arg14[%c0_54, %c0_55], %109 {strides = array<i32>} : memref<32x128xf32, #tpu.memory_space<vmem>>, vector<1x128xf32>,
    %111 = vector.extract_strided_slice %108 {offsets = [0, 128], sizes = [1, 128], strides = [1, 1]} : vector<1x1024xf32> to vector<1x128xf32>
    %c1_56 = arith.constant 1 : index
    %c0_57 = arith.constant 0 : index
    %112 = vector.load %arg14[%c1_56, %c0_57] : memref<32x128xf32, #tpu.memory_space<vmem>>, vector<1x128xf32>
    tpu.vector_store %arg14[%c1_56, %c0_57], %111 {strides = array<i32>} : memref<32x128xf32, #tpu.memory_space<vmem>>, vector<1x128xf32>,
    %113 = vector.extract_strided_slice %108 {offsets = [0, 256], sizes = [1, 128], strides = [1, 1]} : vector<1x1024xf32> to vector<1x128xf32>
    %c2_58 = arith.constant 2 : index
    %c0_59 = arith.constant 0 : index
    %114 = vector.load %arg14[%c2_58, %c0_59] : memref<32x128xf32, #tpu.memory_space<vmem>>, vector<1x128xf32>
    tpu.vector_store %arg14[%c2_58, %c0_59], %113 {strides = array<i32>} : memref<32x128xf32, #tpu.memory_space<vmem>>, vector<1x128xf32>,
    %115 = vector.extract_strided_slice %108 {offsets = [0, 384], sizes = [1, 128], strides = [1, 1]} : vector<1x1024xf32> to vector<1x128xf32>
    %c3_60 = arith.constant 3 : index
    %c0_61 = arith.constant 0 : index
    %116 = vector.load %arg14[%c3_60, %c0_61] : memref<32x128xf32, #tpu.memory_space<vmem>>, vector<1x128xf32>
    tpu.vector_store %arg14[%c3_60, %c0_61], %115 {strides = array<i32>} : memref<32x128xf32, #tpu.memory_space<vmem>>, vector<1x128xf32>,
    %117 = vector.extract_strided_slice %108 {offsets = [0, 512], sizes = [1, 128], strides = [1, 1]} : vector<1x1024xf32> to vector<1x128xf32>
    %c4_62 = arith.constant 4 : index
    %c0_63 = arith.constant 0 : index
    %118 = vector.load %arg14[%c4_62, %c0_63] : memref<32x128xf32, #tpu.memory_space<vmem>>, vector<1x128xf32>
    tpu.vector_store %arg14[%c4_62, %c0_63], %117 {strides = array<i32>} : memref<32x128xf32, #tpu.memory_space<vmem>>, vector<1x128xf32>,
    %119 = vector.extract_strided_slice %108 {offsets = [0, 640], sizes = [1, 128], strides = [1, 1]} : vector<1x1024xf32> to vector<1x128xf32>
    %c5_64 = arith.constant 5 : index
    %c0_65 = arith.constant 0 : index
    %120 = vector.load %arg14[%c5_64, %c0_65] : memref<32x128xf32, #tpu.memory_space<vmem>>, vector<1x128xf32>
    tpu.vector_store %arg14[%c5_64, %c0_65], %119 {strides = array<i32>} : memref<32x128xf32, #tpu.memory_space<vmem>>, vector<1x128xf32>,
    %121 = vector.extract_strided_slice %108 {offsets = [0, 768], sizes = [1, 128], strides = [1, 1]} : vector<1x1024xf32> to vector<1x128xf32>
    %c6_66 = arith.constant 6 : index
    %c0_67 = arith.constant 0 : index
    %122 = vector.load %arg14[%c6_66, %c0_67] : memref<32x128xf32, #tpu.memory_space<vmem>>, vector<1x128xf32>
    tpu.vector_store %arg14[%c6_66, %c0_67], %121 {strides = array<i32>} : memref<32x128xf32, #tpu.memory_space<vmem>>, vector<1x128xf32>,
    %123 = vector.extract_strided_slice %108 {offsets = [0, 896], sizes = [1, 128], strides = [1, 1]} : vector<1x1024xf32> to vector<1x128xf32>
    %c7_68 = arith.constant 7 : index
    %c0_69 = arith.constant 0 : index
    %124 = vector.load %arg14[%c7_68, %c0_69] : memref<32x128xf32, #tpu.memory_space<vmem>>, vector<1x128xf32>
    tpu.vector_store %arg14[%c7_68, %c0_69], %123 {strides = array<i32>} : memref<32x128xf32, #tpu.memory_space<vmem>>, vector<1x128xf32>,
    %c8 = arith.constant 8 : index
    %c0_70 = arith.constant 0 : index
    %125 = vector.load %arg3[%c8, %c0_70] : memref<32x128xf32, #tpu.memory_space<vmem>>, vector<1x128xf32>
    %126 = vector.broadcast %125 : vector<1x128xf32> to vector<3x128xf32>
    %127 = arith.mulf %1, %126 : vector<3x128xf32>
    %128 = arith.addf %0, %127 : vector<3x128xf32>
    %cst_71 = arith.constant -1.000000e+00 : f32
    %cst_72 = arith.constant 1.000000e+00 : f32
    %129 = vector.broadcast %cst_71 : f32 to vector<3x128xf32>
    %130 = arith.maximumf %129, %128 : vector<3x128xf32>
    %131 = vector.broadcast %cst_72 : f32 to vector<3x128xf32>
    %132 = arith.minimumf %131, %130 : vector<3x128xf32>
    %133 = tpu.concatenate %132, %1 in 0 : vector<3x128xf32>, vector<3x128xf32> -> vector<6x128xf32>
    %c0_73 = arith.constant 0 : index
    %c1024 = arith.constant 1024 : index
    %134 = vector.load %arg13[%c0_73, %c1024] : memref<22x4096xf32, #tpu.memory_space<vmem>>, vector<6x128xf32>
    tpu.vector_store %arg13[%c0_73, %c1024], %133 {strides = array<i32>} : memref<22x4096xf32, #tpu.memory_space<vmem>>, vector<6x128xf32>,
    %c9 = arith.constant 9 : index
    %c0_74 = arith.constant 0 : index
    %135 = vector.load %arg3[%c9, %c0_74] : memref<32x128xf32, #tpu.memory_space<vmem>>, vector<1x128xf32>
    %136 = vector.broadcast %135 : vector<1x128xf32> to vector<3x128xf32>
    %137 = arith.mulf %1, %136 : vector<3x128xf32>
    %138 = arith.addf %0, %137 : vector<3x128xf32>
    %cst_75 = arith.constant -1.000000e+00 : f32
    %cst_76 = arith.constant 1.000000e+00 : f32
    %139 = vector.broadcast %cst_75 : f32 to vector<3x128xf32>
    %140 = arith.maximumf %139, %138 : vector<3x128xf32>
    %141 = vector.broadcast %cst_76 : f32 to vector<3x128xf32>
    %142 = arith.minimumf %141, %140 : vector<3x128xf32>
    %143 = tpu.concatenate %142, %1 in 0 : vector<3x128xf32>, vector<3x128xf32> -> vector<6x128xf32>
    %c0_77 = arith.constant 0 : index
    %c1152 = arith.constant 1152 : index
    %144 = vector.load %arg13[%c0_77, %c1152] : memref<22x4096xf32, #tpu.memory_space<vmem>>, vector<6x128xf32>
    tpu.vector_store %arg13[%c0_77, %c1152], %143 {strides = array<i32>} : memref<22x4096xf32, #tpu.memory_space<vmem>>, vector<6x128xf32>,
    %c10 = arith.constant 10 : index
    %c0_78 = arith.constant 0 : index
    %145 = vector.load %arg3[%c10, %c0_78] : memref<32x128xf32, #tpu.memory_space<vmem>>, vector<1x128xf32>
    %146 = vector.broadcast %145 : vector<1x128xf32> to vector<3x128xf32>
    %147 = arith.mulf %1, %146 : vector<3x128xf32>
    %148 = arith.addf %0, %147 : vector<3x128xf32>
    %cst_79 = arith.constant -1.000000e+00 : f32
    %cst_80 = arith.constant 1.000000e+00 : f32
    %149 = vector.broadcast %cst_79 : f32 to vector<3x128xf32>
    %150 = arith.maximumf %149, %148 : vector<3x128xf32>
    %151 = vector.broadcast %cst_80 : f32 to vector<3x128xf32>
    %152 = arith.minimumf %151, %150 : vector<3x128xf32>
    %153 = tpu.concatenate %152, %1 in 0 : vector<3x128xf32>, vector<3x128xf32> -> vector<6x128xf32>
    %c0_81 = arith.constant 0 : index
    %c1280 = arith.constant 1280 : index
    %154 = vector.load %arg13[%c0_81, %c1280] : memref<22x4096xf32, #tpu.memory_space<vmem>>, vector<6x128xf32>
    tpu.vector_store %arg13[%c0_81, %c1280], %153 {strides = array<i32>} : memref<22x4096xf32, #tpu.memory_space<vmem>>, vector<6x128xf32>,
    %c11 = arith.constant 11 : index
    %c0_82 = arith.constant 0 : index
    %155 = vector.load %arg3[%c11, %c0_82] : memref<32x128xf32, #tpu.memory_space<vmem>>, vector<1x128xf32>
    %156 = vector.broadcast %155 : vector<1x128xf32> to vector<3x128xf32>
    %157 = arith.mulf %1, %156 : vector<3x128xf32>
    %158 = arith.addf %0, %157 : vector<3x128xf32>
    %cst_83 = arith.constant -1.000000e+00 : f32
    %cst_84 = arith.constant 1.000000e+00 : f32
    %159 = vector.broadcast %cst_83 : f32 to vector<3x128xf32>
    %160 = arith.maximumf %159, %158 : vector<3x128xf32>
    %161 = vector.broadcast %cst_84 : f32 to vector<3x128xf32>
    %162 = arith.minimumf %161, %160 : vector<3x128xf32>
    %163 = tpu.concatenate %162, %1 in 0 : vector<3x128xf32>, vector<3x128xf32> -> vector<6x128xf32>
    %c0_85 = arith.constant 0 : index
    %c1408 = arith.constant 1408 : index
    %164 = vector.load %arg13[%c0_85, %c1408] : memref<22x4096xf32, #tpu.memory_space<vmem>>, vector<6x128xf32>
    tpu.vector_store %arg13[%c0_85, %c1408], %163 {strides = array<i32>} : memref<22x4096xf32, #tpu.memory_space<vmem>>, vector<6x128xf32>,
    %c12 = arith.constant 12 : index
    %c0_86 = arith.constant 0 : index
    %165 = vector.load %arg3[%c12, %c0_86] : memref<32x128xf32, #tpu.memory_space<vmem>>, vector<1x128xf32>
    %166 = vector.broadcast %165 : vector<1x128xf32> to vector<3x128xf32>
    %167 = arith.mulf %1, %166 : vector<3x128xf32>
    %168 = arith.addf %0, %167 : vector<3x128xf32>
    %cst_87 = arith.constant -1.000000e+00 : f32
    %cst_88 = arith.constant 1.000000e+00 : f32
    %169 = vector.broadcast %cst_87 : f32 to vector<3x128xf32>
    %170 = arith.maximumf %169, %168 : vector<3x128xf32>
    %171 = vector.broadcast %cst_88 : f32 to vector<3x128xf32>
    %172 = arith.minimumf %171, %170 : vector<3x128xf32>
    %173 = tpu.concatenate %172, %1 in 0 : vector<3x128xf32>, vector<3x128xf32> -> vector<6x128xf32>
    %c0_89 = arith.constant 0 : index
    %c1536 = arith.constant 1536 : index
    %174 = vector.load %arg13[%c0_89, %c1536] : memref<22x4096xf32, #tpu.memory_space<vmem>>, vector<6x128xf32>
    tpu.vector_store %arg13[%c0_89, %c1536], %173 {strides = array<i32>} : memref<22x4096xf32, #tpu.memory_space<vmem>>, vector<6x128xf32>,
    %c13 = arith.constant 13 : index
    %c0_90 = arith.constant 0 : index
    %175 = vector.load %arg3[%c13, %c0_90] : memref<32x128xf32, #tpu.memory_space<vmem>>, vector<1x128xf32>
    %176 = vector.broadcast %175 : vector<1x128xf32> to vector<3x128xf32>
    %177 = arith.mulf %1, %176 : vector<3x128xf32>
    %178 = arith.addf %0, %177 : vector<3x128xf32>
    %cst_91 = arith.constant -1.000000e+00 : f32
    %cst_92 = arith.constant 1.000000e+00 : f32
    %179 = vector.broadcast %cst_91 : f32 to vector<3x128xf32>
    %180 = arith.maximumf %179, %178 : vector<3x128xf32>
    %181 = vector.broadcast %cst_92 : f32 to vector<3x128xf32>
    %182 = arith.minimumf %181, %180 : vector<3x128xf32>
    %183 = tpu.concatenate %182, %1 in 0 : vector<3x128xf32>, vector<3x128xf32> -> vector<6x128xf32>
    %c0_93 = arith.constant 0 : index
    %c1664 = arith.constant 1664 : index
    %184 = vector.load %arg13[%c0_93, %c1664] : memref<22x4096xf32, #tpu.memory_space<vmem>>, vector<6x128xf32>
    tpu.vector_store %arg13[%c0_93, %c1664], %183 {strides = array<i32>} : memref<22x4096xf32, #tpu.memory_space<vmem>>, vector<6x128xf32>,
    %c14 = arith.constant 14 : index
    %c0_94 = arith.constant 0 : index
    %185 = vector.load %arg3[%c14, %c0_94] : memref<32x128xf32, #tpu.memory_space<vmem>>, vector<1x128xf32>
    %186 = vector.broadcast %185 : vector<1x128xf32> to vector<3x128xf32>
    %187 = arith.mulf %1, %186 : vector<3x128xf32>
    %188 = arith.addf %0, %187 : vector<3x128xf32>
    %cst_95 = arith.constant -1.000000e+00 : f32
    %cst_96 = arith.constant 1.000000e+00 : f32
    %189 = vector.broadcast %cst_95 : f32 to vector<3x128xf32>
    %190 = arith.maximumf %189, %188 : vector<3x128xf32>
    %191 = vector.broadcast %cst_96 : f32 to vector<3x128xf32>
    %192 = arith.minimumf %191, %190 : vector<3x128xf32>
    %193 = tpu.concatenate %192, %1 in 0 : vector<3x128xf32>, vector<3x128xf32> -> vector<6x128xf32>
    %c0_97 = arith.constant 0 : index
    %c1792 = arith.constant 1792 : index
    %194 = vector.load %arg13[%c0_97, %c1792] : memref<22x4096xf32, #tpu.memory_space<vmem>>, vector<6x128xf32>
    tpu.vector_store %arg13[%c0_97, %c1792], %193 {strides = array<i32>} : memref<22x4096xf32, #tpu.memory_space<vmem>>, vector<6x128xf32>,
    %c15 = arith.constant 15 : index
    %c0_98 = arith.constant 0 : index
    %195 = vector.load %arg3[%c15, %c0_98] : memref<32x128xf32, #tpu.memory_space<vmem>>, vector<1x128xf32>
    %196 = vector.broadcast %195 : vector<1x128xf32> to vector<3x128xf32>
    %197 = arith.mulf %1, %196 : vector<3x128xf32>
    %198 = arith.addf %0, %197 : vector<3x128xf32>
    %cst_99 = arith.constant -1.000000e+00 : f32
    %cst_100 = arith.constant 1.000000e+00 : f32
    %199 = vector.broadcast %cst_99 : f32 to vector<3x128xf32>
    %200 = arith.maximumf %199, %198 : vector<3x128xf32>
    %201 = vector.broadcast %cst_100 : f32 to vector<3x128xf32>
    %202 = arith.minimumf %201, %200 : vector<3x128xf32>
    %203 = tpu.concatenate %202, %1 in 0 : vector<3x128xf32>, vector<3x128xf32> -> vector<6x128xf32>
    %c0_101 = arith.constant 0 : index
    %c1920 = arith.constant 1920 : index
    %204 = vector.load %arg13[%c0_101, %c1920] : memref<22x4096xf32, #tpu.memory_space<vmem>>, vector<6x128xf32>
    tpu.vector_store %arg13[%c0_101, %c1920], %203 {strides = array<i32>} : memref<22x4096xf32, #tpu.memory_space<vmem>>, vector<6x128xf32>,
    %c0_102 = arith.constant 0 : index
    %c1024_103 = arith.constant 1024 : index
    %205 = vector.load %arg13[%c0_102, %c1024_103] : memref<22x4096xf32, #tpu.memory_space<vmem>>, vector<3x1024xf32>
    %206 = arith.truncf %205 : vector<3x1024xf32> to vector<3x1024xbf16>
    %cst_104 = arith.constant dense<0.000000e+00> : vector<32x1024xf32>
    %207 = tpu.matmul %2, %206, %cst_104 {dimension_numbers = #tpu.dot_dimension_numbers<[1], [0], [0], [1], [0, 0, 1, 1], [], []>} : vector<32x3xbf16>, vector<3x1024xbf16>, vector<32x1024xf32> -> vector<32x1024xf32>
    %208 = vector.broadcast %3 : vector<32x1xf32> to vector<32x1024xf32>
    %209 = arith.addf %207, %208 : vector<32x1024xf32>
    %cst_105 = arith.constant 0.000000e+00 : f32
    %210 = vector.broadcast %cst_105 : f32 to vector<32x1024xf32>
    %211 = arith.maximumf %209, %210 : vector<32x1024xf32>
    %212 = arith.truncf %211 : vector<32x1024xf32> to vector<32x1024xbf16>
    %cst_106 = arith.constant dense<0.000000e+00> : vector<16x1024xf32>
    %213 = tpu.matmul %4, %212, %cst_106 {dimension_numbers = #tpu.dot_dimension_numbers<[1], [0], [0], [1], [0, 0, 1, 1], [], []>} : vector<16x32xbf16>, vector<32x1024xbf16>, vector<16x1024xf32> -> vector<16x1024xf32>
    %214 = vector.broadcast %5 : vector<16x1xf32> to vector<16x1024xf32>
    %215 = arith.addf %213, %214 : vector<16x1024xf32>
    %c6_107 = arith.constant 6 : index
    %c1024_108 = arith.constant 1024 : index
    %216 = vector.load %arg13[%c6_107, %c1024_108] : memref<22x4096xf32, #tpu.memory_space<vmem>>, vector<16x1024xf32>
    tpu.vector_store %arg13[%c6_107, %c1024_108], %215 {strides = array<i32>} : memref<22x4096xf32, #tpu.memory_space<vmem>>, vector<16x1024xf32>,
    %217 = vector.extract_strided_slice %215 {offsets = [0, 0], sizes = [1, 1024], strides = [1, 1]} : vector<16x1024xf32> to vector<1x1024xf32>
    %cst_109 = arith.constant 0.000000e+00 : f32
    %218 = vector.broadcast %cst_109 : f32 to vector<1x1024xf32>
    %219 = arith.maximumf %217, %218 : vector<1x1024xf32>
    %220 = math.absf %217 : vector<1x1024xf32>
    %cst_110 = arith.constant 0.000000e+00 : f32
    %221 = vector.broadcast %cst_110 : f32 to vector<1x1024xf32>
    %222 = arith.subf %221, %220 : vector<1x1024xf32>
    %223 = math.exp %222 : vector<1x1024xf32>
    %cst_111 = arith.constant 1.000000e+00 : f32
    %224 = vector.broadcast %cst_111 : f32 to vector<1x1024xf32>
    %225 = arith.addf %224, %223 : vector<1x1024xf32>
    %226 = math.log %225 : vector<1x1024xf32>
    %227 = arith.addf %219, %226 : vector<1x1024xf32>
    %228 = vector.extract_strided_slice %227 {offsets = [0, 0], sizes = [1, 128], strides = [1, 1]} : vector<1x1024xf32> to vector<1x128xf32>
    %c8_112 = arith.constant 8 : index
    %c0_113 = arith.constant 0 : index
    %229 = vector.load %arg14[%c8_112, %c0_113] : memref<32x128xf32, #tpu.memory_space<vmem>>, vector<1x128xf32>
    tpu.vector_store %arg14[%c8_112, %c0_113], %228 {strides = array<i32>} : memref<32x128xf32, #tpu.memory_space<vmem>>, vector<1x128xf32>,
    %230 = vector.extract_strided_slice %227 {offsets = [0, 128], sizes = [1, 128], strides = [1, 1]} : vector<1x1024xf32> to vector<1x128xf32>
    %c9_114 = arith.constant 9 : index
    %c0_115 = arith.constant 0 : index
    %231 = vector.load %arg14[%c9_114, %c0_115] : memref<32x128xf32, #tpu.memory_space<vmem>>, vector<1x128xf32>
    tpu.vector_store %arg14[%c9_114, %c0_115], %230 {strides = array<i32>} : memref<32x128xf32, #tpu.memory_space<vmem>>, vector<1x128xf32>,
    %232 = vector.extract_strided_slice %227 {offsets = [0, 256], sizes = [1, 128], strides = [1, 1]} : vector<1x1024xf32> to vector<1x128xf32>
    %c10_116 = arith.constant 10 : index
    %c0_117 = arith.constant 0 : index
    %233 = vector.load %arg14[%c10_116, %c0_117] : memref<32x128xf32, #tpu.memory_space<vmem>>, vector<1x128xf32>
    tpu.vector_store %arg14[%c10_116, %c0_117], %232 {strides = array<i32>} : memref<32x128xf32, #tpu.memory_space<vmem>>, vector<1x128xf32>,
    %234 = vector.extract_strided_slice %227 {offsets = [0, 384], sizes = [1, 128], strides = [1, 1]} : vector<1x1024xf32> to vector<1x128xf32>
    %c11_118 = arith.constant 11 : index
    %c0_119 = arith.constant 0 : index
    %235 = vector.load %arg14[%c11_118, %c0_119] : memref<32x128xf32, #tpu.memory_space<vmem>>, vector<1x128xf32>
    tpu.vector_store %arg14[%c11_118, %c0_119], %234 {strides = array<i32>} : memref<32x128xf32, #tpu.memory_space<vmem>>, vector<1x128xf32>,
    %236 = vector.extract_strided_slice %227 {offsets = [0, 512], sizes = [1, 128], strides = [1, 1]} : vector<1x1024xf32> to vector<1x128xf32>
    %c12_120 = arith.constant 12 : index
    %c0_121 = arith.constant 0 : index
    %237 = vector.load %arg14[%c12_120, %c0_121] : memref<32x128xf32, #tpu.memory_space<vmem>>, vector<1x128xf32>
    tpu.vector_store %arg14[%c12_120, %c0_121], %236 {strides = array<i32>} : memref<32x128xf32, #tpu.memory_space<vmem>>, vector<1x128xf32>,
    %238 = vector.extract_strided_slice %227 {offsets = [0, 640], sizes = [1, 128], strides = [1, 1]} : vector<1x1024xf32> to vector<1x128xf32>
    %c13_122 = arith.constant 13 : index
    %c0_123 = arith.constant 0 : index
    %239 = vector.load %arg14[%c13_122, %c0_123] : memref<32x128xf32, #tpu.memory_space<vmem>>, vector<1x128xf32>
    tpu.vector_store %arg14[%c13_122, %c0_123], %238 {strides = array<i32>} : memref<32x128xf32, #tpu.memory_space<vmem>>, vector<1x128xf32>,
    %240 = vector.extract_strided_slice %227 {offsets = [0, 768], sizes = [1, 128], strides = [1, 1]} : vector<1x1024xf32> to vector<1x128xf32>
    %c14_124 = arith.constant 14 : index
    %c0_125 = arith.constant 0 : index
    %241 = vector.load %arg14[%c14_124, %c0_125] : memref<32x128xf32, #tpu.memory_space<vmem>>, vector<1x128xf32>
    tpu.vector_store %arg14[%c14_124, %c0_125], %240 {strides = array<i32>} : memref<32x128xf32, #tpu.memory_space<vmem>>, vector<1x128xf32>,
    %242 = vector.extract_strided_slice %227 {offsets = [0, 896], sizes = [1, 128], strides = [1, 1]} : vector<1x1024xf32> to vector<1x128xf32>
    %c15_126 = arith.constant 15 : index
    %c0_127 = arith.constant 0 : index
    %243 = vector.load %arg14[%c15_126, %c0_127] : memref<32x128xf32, #tpu.memory_space<vmem>>, vector<1x128xf32>
    tpu.vector_store %arg14[%c15_126, %c0_127], %242 {strides = array<i32>} : memref<32x128xf32, #tpu.memory_space<vmem>>, vector<1x128xf32>,
    %c16 = arith.constant 16 : index
    %c0_128 = arith.constant 0 : index
    %244 = vector.load %arg3[%c16, %c0_128] : memref<32x128xf32, #tpu.memory_space<vmem>>, vector<1x128xf32>
    %245 = vector.broadcast %244 : vector<1x128xf32> to vector<3x128xf32>
    %246 = arith.mulf %1, %245 : vector<3x128xf32>
    %247 = arith.addf %0, %246 : vector<3x128xf32>
    %cst_129 = arith.constant -1.000000e+00 : f32
    %cst_130 = arith.constant 1.000000e+00 : f32
    %248 = vector.broadcast %cst_129 : f32 to vector<3x128xf32>
    %249 = arith.maximumf %248, %247 : vector<3x128xf32>
    %250 = vector.broadcast %cst_130 : f32 to vector<3x128xf32>
    %251 = arith.minimumf %250, %249 : vector<3x128xf32>
    %252 = tpu.concatenate %251, %1 in 0 : vector<3x128xf32>, vector<3x128xf32> -> vector<6x128xf32>
    %c0_131 = arith.constant 0 : index
    %c2048 = arith.constant 2048 : index
    %253 = vector.load %arg13[%c0_131, %c2048] : memref<22x4096xf32, #tpu.memory_space<vmem>>, vector<6x128xf32>
    tpu.vector_store %arg13[%c0_131, %c2048], %252 {strides = array<i32>} : memref<22x4096xf32, #tpu.memory_space<vmem>>, vector<6x128xf32>,
    %c17 = arith.constant 17 : index
    %c0_132 = arith.constant 0 : index
    %254 = vector.load %arg3[%c17, %c0_132] : memref<32x128xf32, #tpu.memory_space<vmem>>, vector<1x128xf32>
    %255 = vector.broadcast %254 : vector<1x128xf32> to vector<3x128xf32>
    %256 = arith.mulf %1, %255 : vector<3x128xf32>
    %257 = arith.addf %0, %256 : vector<3x128xf32>
    %cst_133 = arith.constant -1.000000e+00 : f32
    %cst_134 = arith.constant 1.000000e+00 : f32
    %258 = vector.broadcast %cst_133 : f32 to vector<3x128xf32>
    %259 = arith.maximumf %258, %257 : vector<3x128xf32>
    %260 = vector.broadcast %cst_134 : f32 to vector<3x128xf32>
    %261 = arith.minimumf %260, %259 : vector<3x128xf32>
    %262 = tpu.concatenate %261, %1 in 0 : vector<3x128xf32>, vector<3x128xf32> -> vector<6x128xf32>
    %c0_135 = arith.constant 0 : index
    %c2176 = arith.constant 2176 : index
    %263 = vector.load %arg13[%c0_135, %c2176] : memref<22x4096xf32, #tpu.memory_space<vmem>>, vector<6x128xf32>
    tpu.vector_store %arg13[%c0_135, %c2176], %262 {strides = array<i32>} : memref<22x4096xf32, #tpu.memory_space<vmem>>, vector<6x128xf32>,
    %c18 = arith.constant 18 : index
    %c0_136 = arith.constant 0 : index
    %264 = vector.load %arg3[%c18, %c0_136] : memref<32x128xf32, #tpu.memory_space<vmem>>, vector<1x128xf32>
    %265 = vector.broadcast %264 : vector<1x128xf32> to vector<3x128xf32>
    %266 = arith.mulf %1, %265 : vector<3x128xf32>
    %267 = arith.addf %0, %266 : vector<3x128xf32>
    %cst_137 = arith.constant -1.000000e+00 : f32
    %cst_138 = arith.constant 1.000000e+00 : f32
    %268 = vector.broadcast %cst_137 : f32 to vector<3x128xf32>
    %269 = arith.maximumf %268, %267 : vector<3x128xf32>
    %270 = vector.broadcast %cst_138 : f32 to vector<3x128xf32>
    %271 = arith.minimumf %270, %269 : vector<3x128xf32>
    %272 = tpu.concatenate %271, %1 in 0 : vector<3x128xf32>, vector<3x128xf32> -> vector<6x128xf32>
    %c0_139 = arith.constant 0 : index
    %c2304 = arith.constant 2304 : index
    %273 = vector.load %arg13[%c0_139, %c2304] : memref<22x4096xf32, #tpu.memory_space<vmem>>, vector<6x128xf32>
    tpu.vector_store %arg13[%c0_139, %c2304], %272 {strides = array<i32>} : memref<22x4096xf32, #tpu.memory_space<vmem>>, vector<6x128xf32>,
    %c19 = arith.constant 19 : index
    %c0_140 = arith.constant 0 : index
    %274 = vector.load %arg3[%c19, %c0_140] : memref<32x128xf32, #tpu.memory_space<vmem>>, vector<1x128xf32>
    %275 = vector.broadcast %274 : vector<1x128xf32> to vector<3x128xf32>
    %276 = arith.mulf %1, %275 : vector<3x128xf32>
    %277 = arith.addf %0, %276 : vector<3x128xf32>
    %cst_141 = arith.constant -1.000000e+00 : f32
    %cst_142 = arith.constant 1.000000e+00 : f32
    %278 = vector.broadcast %cst_141 : f32 to vector<3x128xf32>
    %279 = arith.maximumf %278, %277 : vector<3x128xf32>
    %280 = vector.broadcast %cst_142 : f32 to vector<3x128xf32>
    %281 = arith.minimumf %280, %279 : vector<3x128xf32>
    %282 = tpu.concatenate %281, %1 in 0 : vector<3x128xf32>, vector<3x128xf32> -> vector<6x128xf32>
    %c0_143 = arith.constant 0 : index
    %c2432 = arith.constant 2432 : index
    %283 = vector.load %arg13[%c0_143, %c2432] : memref<22x4096xf32, #tpu.memory_space<vmem>>, vector<6x128xf32>
    tpu.vector_store %arg13[%c0_143, %c2432], %282 {strides = array<i32>} : memref<22x4096xf32, #tpu.memory_space<vmem>>, vector<6x128xf32>,
    %c20 = arith.constant 20 : index
    %c0_144 = arith.constant 0 : index
    %284 = vector.load %arg3[%c20, %c0_144] : memref<32x128xf32, #tpu.memory_space<vmem>>, vector<1x128xf32>
    %285 = vector.broadcast %284 : vector<1x128xf32> to vector<3x128xf32>
    %286 = arith.mulf %1, %285 : vector<3x128xf32>
    %287 = arith.addf %0, %286 : vector<3x128xf32>
    %cst_145 = arith.constant -1.000000e+00 : f32
    %cst_146 = arith.constant 1.000000e+00 : f32
    %288 = vector.broadcast %cst_145 : f32 to vector<3x128xf32>
    %289 = arith.maximumf %288, %287 : vector<3x128xf32>
    %290 = vector.broadcast %cst_146 : f32 to vector<3x128xf32>
    %291 = arith.minimumf %290, %289 : vector<3x128xf32>
    %292 = tpu.concatenate %291, %1 in 0 : vector<3x128xf32>, vector<3x128xf32> -> vector<6x128xf32>
    %c0_147 = arith.constant 0 : index
    %c2560 = arith.constant 2560 : index
    %293 = vector.load %arg13[%c0_147, %c2560] : memref<22x4096xf32, #tpu.memory_space<vmem>>, vector<6x128xf32>
    tpu.vector_store %arg13[%c0_147, %c2560], %292 {strides = array<i32>} : memref<22x4096xf32, #tpu.memory_space<vmem>>, vector<6x128xf32>,
    %c21 = arith.constant 21 : index
    %c0_148 = arith.constant 0 : index
    %294 = vector.load %arg3[%c21, %c0_148] : memref<32x128xf32, #tpu.memory_space<vmem>>, vector<1x128xf32>
    %295 = vector.broadcast %294 : vector<1x128xf32> to vector<3x128xf32>
    %296 = arith.mulf %1, %295 : vector<3x128xf32>
    %297 = arith.addf %0, %296 : vector<3x128xf32>
    %cst_149 = arith.constant -1.000000e+00 : f32
    %cst_150 = arith.constant 1.000000e+00 : f32
    %298 = vector.broadcast %cst_149 : f32 to vector<3x128xf32>
    %299 = arith.maximumf %298, %297 : vector<3x128xf32>
    %300 = vector.broadcast %cst_150 : f32 to vector<3x128xf32>
    %301 = arith.minimumf %300, %299 : vector<3x128xf32>
    %302 = tpu.concatenate %301, %1 in 0 : vector<3x128xf32>, vector<3x128xf32> -> vector<6x128xf32>
    %c0_151 = arith.constant 0 : index
    %c2688 = arith.constant 2688 : index
    %303 = vector.load %arg13[%c0_151, %c2688] : memref<22x4096xf32, #tpu.memory_space<vmem>>, vector<6x128xf32>
    tpu.vector_store %arg13[%c0_151, %c2688], %302 {strides = array<i32>} : memref<22x4096xf32, #tpu.memory_space<vmem>>, vector<6x128xf32>,
    %c22 = arith.constant 22 : index
    %c0_152 = arith.constant 0 : index
    %304 = vector.load %arg3[%c22, %c0_152] : memref<32x128xf32, #tpu.memory_space<vmem>>, vector<1x128xf32>
    %305 = vector.broadcast %304 : vector<1x128xf32> to vector<3x128xf32>
    %306 = arith.mulf %1, %305 : vector<3x128xf32>
    %307 = arith.addf %0, %306 : vector<3x128xf32>
    %cst_153 = arith.constant -1.000000e+00 : f32
    %cst_154 = arith.constant 1.000000e+00 : f32
    %308 = vector.broadcast %cst_153 : f32 to vector<3x128xf32>
    %309 = arith.maximumf %308, %307 : vector<3x128xf32>
    %310 = vector.broadcast %cst_154 : f32 to vector<3x128xf32>
    %311 = arith.minimumf %310, %309 : vector<3x128xf32>
    %312 = tpu.concatenate %311, %1 in 0 : vector<3x128xf32>, vector<3x128xf32> -> vector<6x128xf32>
    %c0_155 = arith.constant 0 : index
    %c2816 = arith.constant 2816 : index
    %313 = vector.load %arg13[%c0_155, %c2816] : memref<22x4096xf32, #tpu.memory_space<vmem>>, vector<6x128xf32>
    tpu.vector_store %arg13[%c0_155, %c2816], %312 {strides = array<i32>} : memref<22x4096xf32, #tpu.memory_space<vmem>>, vector<6x128xf32>,
    %c23 = arith.constant 23 : index
    %c0_156 = arith.constant 0 : index
    %314 = vector.load %arg3[%c23, %c0_156] : memref<32x128xf32, #tpu.memory_space<vmem>>, vector<1x128xf32>
    %315 = vector.broadcast %314 : vector<1x128xf32> to vector<3x128xf32>
    %316 = arith.mulf %1, %315 : vector<3x128xf32>
    %317 = arith.addf %0, %316 : vector<3x128xf32>
    %cst_157 = arith.constant -1.000000e+00 : f32
    %cst_158 = arith.constant 1.000000e+00 : f32
    %318 = vector.broadcast %cst_157 : f32 to vector<3x128xf32>
    %319 = arith.maximumf %318, %317 : vector<3x128xf32>
    %320 = vector.broadcast %cst_158 : f32 to vector<3x128xf32>
    %321 = arith.minimumf %320, %319 : vector<3x128xf32>
    %322 = tpu.concatenate %321, %1 in 0 : vector<3x128xf32>, vector<3x128xf32> -> vector<6x128xf32>
    %c0_159 = arith.constant 0 : index
    %c2944 = arith.constant 2944 : index
    %323 = vector.load %arg13[%c0_159, %c2944] : memref<22x4096xf32, #tpu.memory_space<vmem>>, vector<6x128xf32>
    tpu.vector_store %arg13[%c0_159, %c2944], %322 {strides = array<i32>} : memref<22x4096xf32, #tpu.memory_space<vmem>>, vector<6x128xf32>,
    %c0_160 = arith.constant 0 : index
    %c2048_161 = arith.constant 2048 : index
    %324 = vector.load %arg13[%c0_160, %c2048_161] : memref<22x4096xf32, #tpu.memory_space<vmem>>, vector<3x1024xf32>
    %325 = arith.truncf %324 : vector<3x1024xf32> to vector<3x1024xbf16>
    %cst_162 = arith.constant dense<0.000000e+00> : vector<32x1024xf32>
    %326 = tpu.matmul %2, %325, %cst_162 {dimension_numbers = #tpu.dot_dimension_numbers<[1], [0], [0], [1], [0, 0, 1, 1], [], []>} : vector<32x3xbf16>, vector<3x1024xbf16>, vector<32x1024xf32> -> vector<32x1024xf32>
    %327 = vector.broadcast %3 : vector<32x1xf32> to vector<32x1024xf32>
    %328 = arith.addf %326, %327 : vector<32x1024xf32>
    %cst_163 = arith.constant 0.000000e+00 : f32
    %329 = vector.broadcast %cst_163 : f32 to vector<32x1024xf32>
    %330 = arith.maximumf %328, %329 : vector<32x1024xf32>
    %331 = arith.truncf %330 : vector<32x1024xf32> to vector<32x1024xbf16>
    %cst_164 = arith.constant dense<0.000000e+00> : vector<16x1024xf32>
    %332 = tpu.matmul %4, %331, %cst_164 {dimension_numbers = #tpu.dot_dimension_numbers<[1], [0], [0], [1], [0, 0, 1, 1], [], []>} : vector<16x32xbf16>, vector<32x1024xbf16>, vector<16x1024xf32> -> vector<16x1024xf32>
    %333 = vector.broadcast %5 : vector<16x1xf32> to vector<16x1024xf32>
    %334 = arith.addf %332, %333 : vector<16x1024xf32>
    %c6_165 = arith.constant 6 : index
    %c2048_166 = arith.constant 2048 : index
    %335 = vector.load %arg13[%c6_165, %c2048_166] : memref<22x4096xf32, #tpu.memory_space<vmem>>, vector<16x1024xf32>
    tpu.vector_store %arg13[%c6_165, %c2048_166], %334 {strides = array<i32>} : memref<22x4096xf32, #tpu.memory_space<vmem>>, vector<16x1024xf32>,
    %336 = vector.extract_strided_slice %334 {offsets = [0, 0], sizes = [1, 1024], strides = [1, 1]} : vector<16x1024xf32> to vector<1x1024xf32>
    %cst_167 = arith.constant 0.000000e+00 : f32
    %337 = vector.broadcast %cst_167 : f32 to vector<1x1024xf32>
    %338 = arith.maximumf %336, %337 : vector<1x1024xf32>
    %339 = math.absf %336 : vector<1x1024xf32>
    %cst_168 = arith.constant 0.000000e+00 : f32
    %340 = vector.broadcast %cst_168 : f32 to vector<1x1024xf32>
    %341 = arith.subf %340, %339 : vector<1x1024xf32>
    %342 = math.exp %341 : vector<1x1024xf32>
    %cst_169 = arith.constant 1.000000e+00 : f32
    %343 = vector.broadcast %cst_169 : f32 to vector<1x1024xf32>
    %344 = arith.addf %343, %342 : vector<1x1024xf32>
    %345 = math.log %344 : vector<1x1024xf32>
    %346 = arith.addf %338, %345 : vector<1x1024xf32>
    %347 = vector.extract_strided_slice %346 {offsets = [0, 0], sizes = [1, 128], strides = [1, 1]} : vector<1x1024xf32> to vector<1x128xf32>
    %c16_170 = arith.constant 16 : index
    %c0_171 = arith.constant 0 : index
    %348 = vector.load %arg14[%c16_170, %c0_171] : memref<32x128xf32, #tpu.memory_space<vmem>>, vector<1x128xf32>
    tpu.vector_store %arg14[%c16_170, %c0_171], %347 {strides = array<i32>} : memref<32x128xf32, #tpu.memory_space<vmem>>, vector<1x128xf32>,
    %349 = vector.extract_strided_slice %346 {offsets = [0, 128], sizes = [1, 128], strides = [1, 1]} : vector<1x1024xf32> to vector<1x128xf32>
    %c17_172 = arith.constant 17 : index
    %c0_173 = arith.constant 0 : index
    %350 = vector.load %arg14[%c17_172, %c0_173] : memref<32x128xf32, #tpu.memory_space<vmem>>, vector<1x128xf32>
    tpu.vector_store %arg14[%c17_172, %c0_173], %349 {strides = array<i32>} : memref<32x128xf32, #tpu.memory_space<vmem>>, vector<1x128xf32>,
    %351 = vector.extract_strided_slice %346 {offsets = [0, 256], sizes = [1, 128], strides = [1, 1]} : vector<1x1024xf32> to vector<1x128xf32>
    %c18_174 = arith.constant 18 : index
    %c0_175 = arith.constant 0 : index
    %352 = vector.load %arg14[%c18_174, %c0_175] : memref<32x128xf32, #tpu.memory_space<vmem>>, vector<1x128xf32>
    tpu.vector_store %arg14[%c18_174, %c0_175], %351 {strides = array<i32>} : memref<32x128xf32, #tpu.memory_space<vmem>>, vector<1x128xf32>,
    %353 = vector.extract_strided_slice %346 {offsets = [0, 384], sizes = [1, 128], strides = [1, 1]} : vector<1x1024xf32> to vector<1x128xf32>
    %c19_176 = arith.constant 19 : index
    %c0_177 = arith.constant 0 : index
    %354 = vector.load %arg14[%c19_176, %c0_177] : memref<32x128xf32, #tpu.memory_space<vmem>>, vector<1x128xf32>
    tpu.vector_store %arg14[%c19_176, %c0_177], %353 {strides = array<i32>} : memref<32x128xf32, #tpu.memory_space<vmem>>, vector<1x128xf32>,
    %355 = vector.extract_strided_slice %346 {offsets = [0, 512], sizes = [1, 128], strides = [1, 1]} : vector<1x1024xf32> to vector<1x128xf32>
    %c20_178 = arith.constant 20 : index
    %c0_179 = arith.constant 0 : index
    %356 = vector.load %arg14[%c20_178, %c0_179] : memref<32x128xf32, #tpu.memory_space<vmem>>, vector<1x128xf32>
    tpu.vector_store %arg14[%c20_178, %c0_179], %355 {strides = array<i32>} : memref<32x128xf32, #tpu.memory_space<vmem>>, vector<1x128xf32>,
    %357 = vector.extract_strided_slice %346 {offsets = [0, 640], sizes = [1, 128], strides = [1, 1]} : vector<1x1024xf32> to vector<1x128xf32>
    %c21_180 = arith.constant 21 : index
    %c0_181 = arith.constant 0 : index
    %358 = vector.load %arg14[%c21_180, %c0_181] : memref<32x128xf32, #tpu.memory_space<vmem>>, vector<1x128xf32>
    tpu.vector_store %arg14[%c21_180, %c0_181], %357 {strides = array<i32>} : memref<32x128xf32, #tpu.memory_space<vmem>>, vector<1x128xf32>,
    %359 = vector.extract_strided_slice %346 {offsets = [0, 768], sizes = [1, 128], strides = [1, 1]} : vector<1x1024xf32> to vector<1x128xf32>
    %c22_182 = arith.constant 22 : index
    %c0_183 = arith.constant 0 : index
    %360 = vector.load %arg14[%c22_182, %c0_183] : memref<32x128xf32, #tpu.memory_space<vmem>>, vector<1x128xf32>
    tpu.vector_store %arg14[%c22_182, %c0_183], %359 {strides = array<i32>} : memref<32x128xf32, #tpu.memory_space<vmem>>, vector<1x128xf32>,
    %361 = vector.extract_strided_slice %346 {offsets = [0, 896], sizes = [1, 128], strides = [1, 1]} : vector<1x1024xf32> to vector<1x128xf32>
    %c23_184 = arith.constant 23 : index
    %c0_185 = arith.constant 0 : index
    %362 = vector.load %arg14[%c23_184, %c0_185] : memref<32x128xf32, #tpu.memory_space<vmem>>, vector<1x128xf32>
    tpu.vector_store %arg14[%c23_184, %c0_185], %361 {strides = array<i32>} : memref<32x128xf32, #tpu.memory_space<vmem>>, vector<1x128xf32>,
    %c24 = arith.constant 24 : index
    %c0_186 = arith.constant 0 : index
    %363 = vector.load %arg3[%c24, %c0_186] : memref<32x128xf32, #tpu.memory_space<vmem>>, vector<1x128xf32>
    %364 = vector.broadcast %363 : vector<1x128xf32> to vector<3x128xf32>
    %365 = arith.mulf %1, %364 : vector<3x128xf32>
    %366 = arith.addf %0, %365 : vector<3x128xf32>
    %cst_187 = arith.constant -1.000000e+00 : f32
    %cst_188 = arith.constant 1.000000e+00 : f32
    %367 = vector.broadcast %cst_187 : f32 to vector<3x128xf32>
    %368 = arith.maximumf %367, %366 : vector<3x128xf32>
    %369 = vector.broadcast %cst_188 : f32 to vector<3x128xf32>
    %370 = arith.minimumf %369, %368 : vector<3x128xf32>
    %371 = tpu.concatenate %370, %1 in 0 : vector<3x128xf32>, vector<3x128xf32> -> vector<6x128xf32>
    %c0_189 = arith.constant 0 : index
    %c3072 = arith.constant 3072 : index
    %372 = vector.load %arg13[%c0_189, %c3072] : memref<22x4096xf32, #tpu.memory_space<vmem>>, vector<6x128xf32>
    tpu.vector_store %arg13[%c0_189, %c3072], %371 {strides = array<i32>} : memref<22x4096xf32, #tpu.memory_space<vmem>>, vector<6x128xf32>,
    %c25 = arith.constant 25 : index
    %c0_190 = arith.constant 0 : index
    %373 = vector.load %arg3[%c25, %c0_190] : memref<32x128xf32, #tpu.memory_space<vmem>>, vector<1x128xf32>
    %374 = vector.broadcast %373 : vector<1x128xf32> to vector<3x128xf32>
    %375 = arith.mulf %1, %374 : vector<3x128xf32>
    %376 = arith.addf %0, %375 : vector<3x128xf32>
    %cst_191 = arith.constant -1.000000e+00 : f32
    %cst_192 = arith.constant 1.000000e+00 : f32
    %377 = vector.broadcast %cst_191 : f32 to vector<3x128xf32>
    %378 = arith.maximumf %377, %376 : vector<3x128xf32>
    %379 = vector.broadcast %cst_192 : f32 to vector<3x128xf32>
    %380 = arith.minimumf %379, %378 : vector<3x128xf32>
    %381 = tpu.concatenate %380, %1 in 0 : vector<3x128xf32>, vector<3x128xf32> -> vector<6x128xf32>
    %c0_193 = arith.constant 0 : index
    %c3200 = arith.constant 3200 : index
    %382 = vector.load %arg13[%c0_193, %c3200] : memref<22x4096xf32, #tpu.memory_space<vmem>>, vector<6x128xf32>
    tpu.vector_store %arg13[%c0_193, %c3200], %381 {strides = array<i32>} : memref<22x4096xf32, #tpu.memory_space<vmem>>, vector<6x128xf32>,
    %c26 = arith.constant 26 : index
    %c0_194 = arith.constant 0 : index
    %383 = vector.load %arg3[%c26, %c0_194] : memref<32x128xf32, #tpu.memory_space<vmem>>, vector<1x128xf32>
    %384 = vector.broadcast %383 : vector<1x128xf32> to vector<3x128xf32>
    %385 = arith.mulf %1, %384 : vector<3x128xf32>
    %386 = arith.addf %0, %385 : vector<3x128xf32>
    %cst_195 = arith.constant -1.000000e+00 : f32
    %cst_196 = arith.constant 1.000000e+00 : f32
    %387 = vector.broadcast %cst_195 : f32 to vector<3x128xf32>
    %388 = arith.maximumf %387, %386 : vector<3x128xf32>
    %389 = vector.broadcast %cst_196 : f32 to vector<3x128xf32>
    %390 = arith.minimumf %389, %388 : vector<3x128xf32>
    %391 = tpu.concatenate %390, %1 in 0 : vector<3x128xf32>, vector<3x128xf32> -> vector<6x128xf32>
    %c0_197 = arith.constant 0 : index
    %c3328 = arith.constant 3328 : index
    %392 = vector.load %arg13[%c0_197, %c3328] : memref<22x4096xf32, #tpu.memory_space<vmem>>, vector<6x128xf32>
    tpu.vector_store %arg13[%c0_197, %c3328], %391 {strides = array<i32>} : memref<22x4096xf32, #tpu.memory_space<vmem>>, vector<6x128xf32>,
    %c27 = arith.constant 27 : index
    %c0_198 = arith.constant 0 : index
    %393 = vector.load %arg3[%c27, %c0_198] : memref<32x128xf32, #tpu.memory_space<vmem>>, vector<1x128xf32>
    %394 = vector.broadcast %393 : vector<1x128xf32> to vector<3x128xf32>
    %395 = arith.mulf %1, %394 : vector<3x128xf32>
    %396 = arith.addf %0, %395 : vector<3x128xf32>
    %cst_199 = arith.constant -1.000000e+00 : f32
    %cst_200 = arith.constant 1.000000e+00 : f32
    %397 = vector.broadcast %cst_199 : f32 to vector<3x128xf32>
    %398 = arith.maximumf %397, %396 : vector<3x128xf32>
    %399 = vector.broadcast %cst_200 : f32 to vector<3x128xf32>
    %400 = arith.minimumf %399, %398 : vector<3x128xf32>
    %401 = tpu.concatenate %400, %1 in 0 : vector<3x128xf32>, vector<3x128xf32> -> vector<6x128xf32>
    %c0_201 = arith.constant 0 : index
    %c3456 = arith.constant 3456 : index
    %402 = vector.load %arg13[%c0_201, %c3456] : memref<22x4096xf32, #tpu.memory_space<vmem>>, vector<6x128xf32>
    tpu.vector_store %arg13[%c0_201, %c3456], %401 {strides = array<i32>} : memref<22x4096xf32, #tpu.memory_space<vmem>>, vector<6x128xf32>,
    %c28 = arith.constant 28 : index
    %c0_202 = arith.constant 0 : index
    %403 = vector.load %arg3[%c28, %c0_202] : memref<32x128xf32, #tpu.memory_space<vmem>>, vector<1x128xf32>
    %404 = vector.broadcast %403 : vector<1x128xf32> to vector<3x128xf32>
    %405 = arith.mulf %1, %404 : vector<3x128xf32>
    %406 = arith.addf %0, %405 : vector<3x128xf32>
    %cst_203 = arith.constant -1.000000e+00 : f32
    %cst_204 = arith.constant 1.000000e+00 : f32
    %407 = vector.broadcast %cst_203 : f32 to vector<3x128xf32>
    %408 = arith.maximumf %407, %406 : vector<3x128xf32>
    %409 = vector.broadcast %cst_204 : f32 to vector<3x128xf32>
    %410 = arith.minimumf %409, %408 : vector<3x128xf32>
    %411 = tpu.concatenate %410, %1 in 0 : vector<3x128xf32>, vector<3x128xf32> -> vector<6x128xf32>
    %c0_205 = arith.constant 0 : index
    %c3584 = arith.constant 3584 : index
    %412 = vector.load %arg13[%c0_205, %c3584] : memref<22x4096xf32, #tpu.memory_space<vmem>>, vector<6x128xf32>
    tpu.vector_store %arg13[%c0_205, %c3584], %411 {strides = array<i32>} : memref<22x4096xf32, #tpu.memory_space<vmem>>, vector<6x128xf32>,
    %c29 = arith.constant 29 : index
    %c0_206 = arith.constant 0 : index
    %413 = vector.load %arg3[%c29, %c0_206] : memref<32x128xf32, #tpu.memory_space<vmem>>, vector<1x128xf32>
    %414 = vector.broadcast %413 : vector<1x128xf32> to vector<3x128xf32>
    %415 = arith.mulf %1, %414 : vector<3x128xf32>
    %416 = arith.addf %0, %415 : vector<3x128xf32>
    %cst_207 = arith.constant -1.000000e+00 : f32
    %cst_208 = arith.constant 1.000000e+00 : f32
    %417 = vector.broadcast %cst_207 : f32 to vector<3x128xf32>
    %418 = arith.maximumf %417, %416 : vector<3x128xf32>
    %419 = vector.broadcast %cst_208 : f32 to vector<3x128xf32>
    %420 = arith.minimumf %419, %418 : vector<3x128xf32>
    %421 = tpu.concatenate %420, %1 in 0 : vector<3x128xf32>, vector<3x128xf32> -> vector<6x128xf32>
    %c0_209 = arith.constant 0 : index
    %c3712 = arith.constant 3712 : index
    %422 = vector.load %arg13[%c0_209, %c3712] : memref<22x4096xf32, #tpu.memory_space<vmem>>, vector<6x128xf32>
    tpu.vector_store %arg13[%c0_209, %c3712], %421 {strides = array<i32>} : memref<22x4096xf32, #tpu.memory_space<vmem>>, vector<6x128xf32>,
    %c30 = arith.constant 30 : index
    %c0_210 = arith.constant 0 : index
    %423 = vector.load %arg3[%c30, %c0_210] : memref<32x128xf32, #tpu.memory_space<vmem>>, vector<1x128xf32>
    %424 = vector.broadcast %423 : vector<1x128xf32> to vector<3x128xf32>
    %425 = arith.mulf %1, %424 : vector<3x128xf32>
    %426 = arith.addf %0, %425 : vector<3x128xf32>
    %cst_211 = arith.constant -1.000000e+00 : f32
    %cst_212 = arith.constant 1.000000e+00 : f32
    %427 = vector.broadcast %cst_211 : f32 to vector<3x128xf32>
    %428 = arith.maximumf %427, %426 : vector<3x128xf32>
    %429 = vector.broadcast %cst_212 : f32 to vector<3x128xf32>
    %430 = arith.minimumf %429, %428 : vector<3x128xf32>
    %431 = tpu.concatenate %430, %1 in 0 : vector<3x128xf32>, vector<3x128xf32> -> vector<6x128xf32>
    %c0_213 = arith.constant 0 : index
    %c3840 = arith.constant 3840 : index
    %432 = vector.load %arg13[%c0_213, %c3840] : memref<22x4096xf32, #tpu.memory_space<vmem>>, vector<6x128xf32>
    tpu.vector_store %arg13[%c0_213, %c3840], %431 {strides = array<i32>} : memref<22x4096xf32, #tpu.memory_space<vmem>>, vector<6x128xf32>,
    %c31 = arith.constant 31 : index
    %c0_214 = arith.constant 0 : index
    %433 = vector.load %arg3[%c31, %c0_214] : memref<32x128xf32, #tpu.memory_space<vmem>>, vector<1x128xf32>
    %434 = vector.broadcast %433 : vector<1x128xf32> to vector<3x128xf32>
    %435 = arith.mulf %1, %434 : vector<3x128xf32>
    %436 = arith.addf %0, %435 : vector<3x128xf32>
    %cst_215 = arith.constant -1.000000e+00 : f32
    %cst_216 = arith.constant 1.000000e+00 : f32
    %437 = vector.broadcast %cst_215 : f32 to vector<3x128xf32>
    %438 = arith.maximumf %437, %436 : vector<3x128xf32>
    %439 = vector.broadcast %cst_216 : f32 to vector<3x128xf32>
    %440 = arith.minimumf %439, %438 : vector<3x128xf32>
    %441 = tpu.concatenate %440, %1 in 0 : vector<3x128xf32>, vector<3x128xf32> -> vector<6x128xf32>
    %c0_217 = arith.constant 0 : index
    %c3968 = arith.constant 3968 : index
    %442 = vector.load %arg13[%c0_217, %c3968] : memref<22x4096xf32, #tpu.memory_space<vmem>>, vector<6x128xf32>
    tpu.vector_store %arg13[%c0_217, %c3968], %441 {strides = array<i32>} : memref<22x4096xf32, #tpu.memory_space<vmem>>, vector<6x128xf32>,
    %c0_218 = arith.constant 0 : index
    %c3072_219 = arith.constant 3072 : index
    %443 = vector.load %arg13[%c0_218, %c3072_219] : memref<22x4096xf32, #tpu.memory_space<vmem>>, vector<3x1024xf32>
    %444 = arith.truncf %443 : vector<3x1024xf32> to vector<3x1024xbf16>
    %cst_220 = arith.constant dense<0.000000e+00> : vector<32x1024xf32>
    %445 = tpu.matmul %2, %444, %cst_220 {dimension_numbers = #tpu.dot_dimension_numbers<[1], [0], [0], [1], [0, 0, 1, 1], [], []>} : vector<32x3xbf16>, vector<3x1024xbf16>, vector<32x1024xf32> -> vector<32x1024xf32>
    %446 = vector.broadcast %3 : vector<32x1xf32> to vector<32x1024xf32>
    %447 = arith.addf %445, %446 : vector<32x1024xf32>
    %cst_221 = arith.constant 0.000000e+00 : f32
    %448 = vector.broadcast %cst_221 : f32 to vector<32x1024xf32>
    %449 = arith.maximumf %447, %448 : vector<32x1024xf32>
    %450 = arith.truncf %449 : vector<32x1024xf32> to vector<32x1024xbf16>
    %cst_222 = arith.constant dense<0.000000e+00> : vector<16x1024xf32>
    %451 = tpu.matmul %4, %450, %cst_222 {dimension_numbers = #tpu.dot_dimension_numbers<[1], [0], [0], [1], [0, 0, 1, 1], [], []>} : vector<16x32xbf16>, vector<32x1024xbf16>, vector<16x1024xf32> -> vector<16x1024xf32>
    %452 = vector.broadcast %5 : vector<16x1xf32> to vector<16x1024xf32>
    %453 = arith.addf %451, %452 : vector<16x1024xf32>
    %c6_223 = arith.constant 6 : index
    %c3072_224 = arith.constant 3072 : index
    %454 = vector.load %arg13[%c6_223, %c3072_224] : memref<22x4096xf32, #tpu.memory_space<vmem>>, vector<16x1024xf32>
    tpu.vector_store %arg13[%c6_223, %c3072_224], %453 {strides = array<i32>} : memref<22x4096xf32, #tpu.memory_space<vmem>>, vector<16x1024xf32>,
    %455 = vector.extract_strided_slice %453 {offsets = [0, 0], sizes = [1, 1024], strides = [1, 1]} : vector<16x1024xf32> to vector<1x1024xf32>
    %cst_225 = arith.constant 0.000000e+00 : f32
    %456 = vector.broadcast %cst_225 : f32 to vector<1x1024xf32>
    %457 = arith.maximumf %455, %456 : vector<1x1024xf32>
    %458 = math.absf %455 : vector<1x1024xf32>
    %cst_226 = arith.constant 0.000000e+00 : f32
    %459 = vector.broadcast %cst_226 : f32 to vector<1x1024xf32>
    %460 = arith.subf %459, %458 : vector<1x1024xf32>
    %461 = math.exp %460 : vector<1x1024xf32>
    %cst_227 = arith.constant 1.000000e+00 : f32
    %462 = vector.broadcast %cst_227 : f32 to vector<1x1024xf32>
    %463 = arith.addf %462, %461 : vector<1x1024xf32>
    %464 = math.log %463 : vector<1x1024xf32>
    %465 = arith.addf %457, %464 : vector<1x1024xf32>
    %466 = vector.extract_strided_slice %465 {offsets = [0, 0], sizes = [1, 128], strides = [1, 1]} : vector<1x1024xf32> to vector<1x128xf32>
    %c24_228 = arith.constant 24 : index
    %c0_229 = arith.constant 0 : index
    %467 = vector.load %arg14[%c24_228, %c0_229] : memref<32x128xf32, #tpu.memory_space<vmem>>, vector<1x128xf32>
    tpu.vector_store %arg14[%c24_228, %c0_229], %466 {strides = array<i32>} : memref<32x128xf32, #tpu.memory_space<vmem>>, vector<1x128xf32>,
    %468 = vector.extract_strided_slice %465 {offsets = [0, 128], sizes = [1, 128], strides = [1, 1]} : vector<1x1024xf32> to vector<1x128xf32>
    %c25_230 = arith.constant 25 : index
    %c0_231 = arith.constant 0 : index
    %469 = vector.load %arg14[%c25_230, %c0_231] : memref<32x128xf32, #tpu.memory_space<vmem>>, vector<1x128xf32>
    tpu.vector_store %arg14[%c25_230, %c0_231], %468 {strides = array<i32>} : memref<32x128xf32, #tpu.memory_space<vmem>>, vector<1x128xf32>,
    %470 = vector.extract_strided_slice %465 {offsets = [0, 256], sizes = [1, 128], strides = [1, 1]} : vector<1x1024xf32> to vector<1x128xf32>
    %c26_232 = arith.constant 26 : index
    %c0_233 = arith.constant 0 : index
    %471 = vector.load %arg14[%c26_232, %c0_233] : memref<32x128xf32, #tpu.memory_space<vmem>>, vector<1x128xf32>
    tpu.vector_store %arg14[%c26_232, %c0_233], %470 {strides = array<i32>} : memref<32x128xf32, #tpu.memory_space<vmem>>, vector<1x128xf32>,
    %472 = vector.extract_strided_slice %465 {offsets = [0, 384], sizes = [1, 128], strides = [1, 1]} : vector<1x1024xf32> to vector<1x128xf32>
    %c27_234 = arith.constant 27 : index
    %c0_235 = arith.constant 0 : index
    %473 = vector.load %arg14[%c27_234, %c0_235] : memref<32x128xf32, #tpu.memory_space<vmem>>, vector<1x128xf32>
    tpu.vector_store %arg14[%c27_234, %c0_235], %472 {strides = array<i32>} : memref<32x128xf32, #tpu.memory_space<vmem>>, vector<1x128xf32>,
    %474 = vector.extract_strided_slice %465 {offsets = [0, 512], sizes = [1, 128], strides = [1, 1]} : vector<1x1024xf32> to vector<1x128xf32>
    %c28_236 = arith.constant 28 : index
    %c0_237 = arith.constant 0 : index
    %475 = vector.load %arg14[%c28_236, %c0_237] : memref<32x128xf32, #tpu.memory_space<vmem>>, vector<1x128xf32>
    tpu.vector_store %arg14[%c28_236, %c0_237], %474 {strides = array<i32>} : memref<32x128xf32, #tpu.memory_space<vmem>>, vector<1x128xf32>,
    %476 = vector.extract_strided_slice %465 {offsets = [0, 640], sizes = [1, 128], strides = [1, 1]} : vector<1x1024xf32> to vector<1x128xf32>
    %c29_238 = arith.constant 29 : index
    %c0_239 = arith.constant 0 : index
    %477 = vector.load %arg14[%c29_238, %c0_239] : memref<32x128xf32, #tpu.memory_space<vmem>>, vector<1x128xf32>
    tpu.vector_store %arg14[%c29_238, %c0_239], %476 {strides = array<i32>} : memref<32x128xf32, #tpu.memory_space<vmem>>, vector<1x128xf32>,
    %478 = vector.extract_strided_slice %465 {offsets = [0, 768], sizes = [1, 128], strides = [1, 1]} : vector<1x1024xf32> to vector<1x128xf32>
    %c30_240 = arith.constant 30 : index
    %c0_241 = arith.constant 0 : index
    %479 = vector.load %arg14[%c30_240, %c0_241] : memref<32x128xf32, #tpu.memory_space<vmem>>, vector<1x128xf32>
    tpu.vector_store %arg14[%c30_240, %c0_241], %478 {strides = array<i32>} : memref<32x128xf32, #tpu.memory_space<vmem>>, vector<1x128xf32>,
    %480 = vector.extract_strided_slice %465 {offsets = [0, 896], sizes = [1, 128], strides = [1, 1]} : vector<1x1024xf32> to vector<1x128xf32>
    %c31_242 = arith.constant 31 : index
    %c0_243 = arith.constant 0 : index
    %481 = vector.load %arg14[%c31_242, %c0_243] : memref<32x128xf32, #tpu.memory_space<vmem>>, vector<1x128xf32>
    tpu.vector_store %arg14[%c31_242, %c0_243], %480 {strides = array<i32>} : memref<32x128xf32, #tpu.memory_space<vmem>>, vector<1x128xf32>,
    %c0_244 = arith.constant 0 : index
    %c0_245 = arith.constant 0 : index
    %482 = vector.load %arg3[%c0_244, %c0_245] : memref<32x128xf32, #tpu.memory_space<vmem>>, vector<32x128xf32>
    %c0_246 = arith.constant 0 : index
    %c0_247 = arith.constant 0 : index
    %483 = vector.load %arg14[%c0_246, %c0_247] : memref<32x128xf32, #tpu.memory_space<vmem>>, vector<32x128xf32>
    %cst_248 = arith.constant 1.000000e+00 : f32
    %484 = vector.broadcast %cst_248 : f32 to vector<1x128xf32>
    %485 = vector.extract_strided_slice %482 {offsets = [1, 0], sizes = [31, 128], strides = [1, 1]} : vector<32x128xf32> to vector<31x128xf32>
    %486 = vector.extract_strided_slice %482 {offsets = [0, 0], sizes = [31, 128], strides = [1, 1]} : vector<32x128xf32> to vector<31x128xf32>
    %487 = arith.subf %485, %486 : vector<31x128xf32>
    %488 = tpu.concatenate %487, %484 in 0 : vector<31x128xf32>, vector<1x128xf32> -> vector<32x128xf32>
    %cst_249 = arith.constant 0.000000e+00 : f32
    %489 = vector.broadcast %cst_249 : f32 to vector<32x128xf32>
    %490 = arith.subf %489, %488 : vector<32x128xf32>
    %cst_250 = arith.constant 1.000000e+00 : f32
    %491 = vector.broadcast %cst_250 : f32 to vector<32x128xf32>
    %492 = arith.mulf %490, %491 : vector<32x128xf32>
    %493 = arith.mulf %492, %483 : vector<32x128xf32>
    %494 = math.exp %493 : vector<32x128xf32>
    %cst_251 = arith.constant 1.000000e+00 : f32
    %495 = vector.broadcast %cst_251 : f32 to vector<32x128xf32>
    %496 = arith.subf %495, %494 : vector<32x128xf32>
    %cst_252 = arith.constant 1.000000e+00 : f32
    %497 = vector.broadcast %cst_252 : f32 to vector<32x128xf32>
    %498 = arith.subf %497, %496 : vector<32x128xf32>
    %cst_253 = arith.constant 1.000000e-15 : f32
    %499 = vector.broadcast %cst_253 : f32 to vector<32x128xf32>
    %500 = arith.addf %498, %499 : vector<32x128xf32>
    %501 = math.log %500 : vector<32x128xf32>
    %cst_254 = arith.constant 0.000000e+00 : f32
    %502 = vector.broadcast %cst_254 : f32 to vector<1x128xf32>
    %503 = vector.extract_strided_slice %501 {offsets = [0, 0], sizes = [31, 128], strides = [1, 1]} : vector<32x128xf32> to vector<31x128xf32>
    %504 = tpu.concatenate %502, %503 in 0 : vector<1x128xf32>, vector<31x128xf32> -> vector<32x128xf32>
    %cst_255 = arith.constant 0.000000e+00 : f32
    %505 = vector.broadcast %cst_255 : f32 to vector<1x128xf32>
    %506 = vector.extract_strided_slice %504 {offsets = [0, 0], sizes = [31, 128], strides = [1, 1]} : vector<32x128xf32> to vector<31x128xf32>
    %507 = tpu.concatenate %505, %506 in 0 : vector<1x128xf32>, vector<31x128xf32> -> vector<32x128xf32>
    %508 = arith.addf %504, %507 : vector<32x128xf32>
    %cst_256 = arith.constant 0.000000e+00 : f32
    %509 = vector.broadcast %cst_256 : f32 to vector<2x128xf32>
    %510 = vector.extract_strided_slice %508 {offsets = [0, 0], sizes = [30, 128], strides = [1, 1]} : vector<32x128xf32> to vector<30x128xf32>
    %511 = tpu.concatenate %509, %510 in 0 : vector<2x128xf32>, vector<30x128xf32> -> vector<32x128xf32>
    %512 = arith.addf %508, %511 : vector<32x128xf32>
    %cst_257 = arith.constant 0.000000e+00 : f32
    %513 = vector.broadcast %cst_257 : f32 to vector<4x128xf32>
    %514 = vector.extract_strided_slice %512 {offsets = [0, 0], sizes = [28, 128], strides = [1, 1]} : vector<32x128xf32> to vector<28x128xf32>
    %515 = tpu.concatenate %513, %514 in 0 : vector<4x128xf32>, vector<28x128xf32> -> vector<32x128xf32>
    %516 = arith.addf %512, %515 : vector<32x128xf32>
    %cst_258 = arith.constant 0.000000e+00 : f32
    %517 = vector.broadcast %cst_258 : f32 to vector<8x128xf32>
    %518 = vector.extract_strided_slice %516 {offsets = [0, 0], sizes = [24, 128], strides = [1, 1]} : vector<32x128xf32> to vector<24x128xf32>
    %519 = tpu.concatenate %517, %518 in 0 : vector<8x128xf32>, vector<24x128xf32> -> vector<32x128xf32>
    %520 = arith.addf %516, %519 : vector<32x128xf32>
    %cst_259 = arith.constant 0.000000e+00 : f32
    %521 = vector.broadcast %cst_259 : f32 to vector<16x128xf32>
    %522 = vector.extract_strided_slice %520 {offsets = [0, 0], sizes = [16, 128], strides = [1, 1]} : vector<32x128xf32> to vector<16x128xf32>
    %523 = tpu.concatenate %521, %522 in 0 : vector<16x128xf32>, vector<16x128xf32> -> vector<32x128xf32>
    %524 = arith.addf %520, %523 : vector<32x128xf32>
    %525 = math.exp %524 : vector<32x128xf32>
    %526 = arith.mulf %496, %525 : vector<32x128xf32>
    %cst_260 = arith.constant dense<0.000000e+00> : vector<128xf32>
    %527 = vector.multi_reduction <add>, %526, %cst_260 [0] : vector<32x128xf32> to vector<128xf32>
    %528 = vector.shape_cast %527 : vector<128xf32> to vector<1x128xf32>
    %529 = arith.mulf %526, %482 : vector<32x128xf32>
    %cst_261 = arith.constant dense<0.000000e+00> : vector<128xf32>
    %530 = vector.multi_reduction <add>, %529, %cst_261 [0] : vector<32x128xf32> to vector<128xf32>
    %531 = vector.shape_cast %530 : vector<128xf32> to vector<1x128xf32>
    %c0_262 = arith.constant 0 : index
    %c0_263 = arith.constant 0 : index
    %532 = vector.load %arg14[%c0_262, %c0_263] : memref<32x128xf32, #tpu.memory_space<vmem>>, vector<32x128xf32>
    tpu.vector_store %arg14[%c0_262, %c0_263], %526 {strides = array<i32>} : memref<32x128xf32, #tpu.memory_space<vmem>>, vector<32x128xf32>,
    %c0_264 = arith.constant 0 : index
    %c0_265 = arith.constant 0 : index
    %533 = vector.load %arg8[%c0_264, %c0_265] : memref<32x22xbf16, #tpu.memory_space<vmem>>, vector<32x22xbf16>
    %c0_266 = arith.constant 0 : index
    %c0_267 = arith.constant 0 : index
    %534 = vector.load %arg9[%c0_266, %c0_267] : memref<32x1xf32, #tpu.memory_space<vmem>>, vector<32x1xf32>
    %c0_268 = arith.constant 0 : index
    %c0_269 = arith.constant 0 : index
    %535 = vector.load %arg10[%c0_268, %c0_269] : memref<2x32xbf16, #tpu.memory_space<vmem>>, vector<2x32xbf16>
    %c0_270 = arith.constant 0 : index
    %c0_271 = arith.constant 0 : index
    %536 = vector.load %arg11[%c0_270, %c0_271] : memref<2x1xf32, #tpu.memory_space<vmem>>, vector<2x1xf32>
    %cst_272 = arith.constant 0.000000e+00 : f32
    %537 = vector.broadcast %cst_272 : f32 to vector<2x128xf32>
    %c0_273 = arith.constant 0 : index
    %c0_274 = arith.constant 0 : index
    %538 = vector.load %arg13[%c0_273, %c0_274] : memref<22x4096xf32, #tpu.memory_space<vmem>>, vector<22x1024xf32>
    %539 = arith.truncf %538 : vector<22x1024xf32> to vector<22x1024xbf16>
    %cst_275 = arith.constant dense<0.000000e+00> : vector<32x1024xf32>
    %540 = tpu.matmul %533, %539, %cst_275 {dimension_numbers = #tpu.dot_dimension_numbers<[1], [0], [0], [1], [0, 0, 1, 1], [], []>} : vector<32x22xbf16>, vector<22x1024xbf16>, vector<32x1024xf32> -> vector<32x1024xf32>
    %541 = vector.broadcast %534 : vector<32x1xf32> to vector<32x1024xf32>
    %542 = arith.addf %540, %541 : vector<32x1024xf32>
    %cst_276 = arith.constant 0.000000e+00 : f32
    %543 = vector.broadcast %cst_276 : f32 to vector<32x1024xf32>
    %544 = arith.maximumf %542, %543 : vector<32x1024xf32>
    %545 = arith.truncf %544 : vector<32x1024xf32> to vector<32x1024xbf16>
    %cst_277 = arith.constant dense<0.000000e+00> : vector<2x1024xf32>
    %546 = tpu.matmul %535, %545, %cst_277 {dimension_numbers = #tpu.dot_dimension_numbers<[1], [0], [0], [1], [0, 0, 1, 1], [], []>} : vector<2x32xbf16>, vector<32x1024xbf16>, vector<2x1024xf32> -> vector<2x1024xf32>
    %547 = vector.broadcast %536 : vector<2x1xf32> to vector<2x1024xf32>
    %548 = arith.addf %546, %547 : vector<2x1024xf32>
    %cst_278 = arith.constant 0.000000e+00 : f32
    %549 = vector.broadcast %cst_278 : f32 to vector<2x1024xf32>
    %550 = arith.subf %549, %548 : vector<2x1024xf32>
    %551 = math.exp %550 : vector<2x1024xf32>
    %cst_279 = arith.constant 1.000000e+00 : f32
    %552 = vector.broadcast %cst_279 : f32 to vector<2x1024xf32>
    %553 = arith.addf %552, %551 : vector<2x1024xf32>
    %554 = tpu.reciprocal %553 {approx = true} : vector<2x1024xf32> -> vector<2x1024xf32>
    %c0_280 = arith.constant 0 : index
    %c0_281 = arith.constant 0 : index
    %555 = vector.load %arg14[%c0_280, %c0_281] : memref<32x128xf32, #tpu.memory_space<vmem>>, vector<1x128xf32>
    %556 = vector.extract_strided_slice %554 {offsets = [0, 0], sizes = [2, 128], strides = [1, 1]} : vector<2x1024xf32> to vector<2x128xf32>
    %557 = vector.broadcast %555 : vector<1x128xf32> to vector<2x128xf32>
    %558 = arith.mulf %557, %556 : vector<2x128xf32>
    %559 = arith.addf %537, %558 : vector<2x128xf32>
    %c1_282 = arith.constant 1 : index
    %c0_283 = arith.constant 0 : index
    %560 = vector.load %arg14[%c1_282, %c0_283] : memref<32x128xf32, #tpu.memory_space<vmem>>, vector<1x128xf32>
    %561 = vector.extract_strided_slice %554 {offsets = [0, 128], sizes = [2, 128], strides = [1, 1]} : vector<2x1024xf32> to vector<2x128xf32>
    %562 = vector.broadcast %560 : vector<1x128xf32> to vector<2x128xf32>
    %563 = arith.mulf %562, %561 : vector<2x128xf32>
    %564 = arith.addf %559, %563 : vector<2x128xf32>
    %c2_284 = arith.constant 2 : index
    %c0_285 = arith.constant 0 : index
    %565 = vector.load %arg14[%c2_284, %c0_285] : memref<32x128xf32, #tpu.memory_space<vmem>>, vector<1x128xf32>
    %566 = vector.extract_strided_slice %554 {offsets = [0, 256], sizes = [2, 128], strides = [1, 1]} : vector<2x1024xf32> to vector<2x128xf32>
    %567 = vector.broadcast %565 : vector<1x128xf32> to vector<2x128xf32>
    %568 = arith.mulf %567, %566 : vector<2x128xf32>
    %569 = arith.addf %564, %568 : vector<2x128xf32>
    %c3_286 = arith.constant 3 : index
    %c0_287 = arith.constant 0 : index
    %570 = vector.load %arg14[%c3_286, %c0_287] : memref<32x128xf32, #tpu.memory_space<vmem>>, vector<1x128xf32>
    %571 = vector.extract_strided_slice %554 {offsets = [0, 384], sizes = [2, 128], strides = [1, 1]} : vector<2x1024xf32> to vector<2x128xf32>
    %572 = vector.broadcast %570 : vector<1x128xf32> to vector<2x128xf32>
    %573 = arith.mulf %572, %571 : vector<2x128xf32>
    %574 = arith.addf %569, %573 : vector<2x128xf32>
    %c4_288 = arith.constant 4 : index
    %c0_289 = arith.constant 0 : index
    %575 = vector.load %arg14[%c4_288, %c0_289] : memref<32x128xf32, #tpu.memory_space<vmem>>, vector<1x128xf32>
    %576 = vector.extract_strided_slice %554 {offsets = [0, 512], sizes = [2, 128], strides = [1, 1]} : vector<2x1024xf32> to vector<2x128xf32>
    %577 = vector.broadcast %575 : vector<1x128xf32> to vector<2x128xf32>
    %578 = arith.mulf %577, %576 : vector<2x128xf32>
    %579 = arith.addf %574, %578 : vector<2x128xf32>
    %c5_290 = arith.constant 5 : index
    %c0_291 = arith.constant 0 : index
    %580 = vector.load %arg14[%c5_290, %c0_291] : memref<32x128xf32, #tpu.memory_space<vmem>>, vector<1x128xf32>
    %581 = vector.extract_strided_slice %554 {offsets = [0, 640], sizes = [2, 128], strides = [1, 1]} : vector<2x1024xf32> to vector<2x128xf32>
    %582 = vector.broadcast %580 : vector<1x128xf32> to vector<2x128xf32>
    %583 = arith.mulf %582, %581 : vector<2x128xf32>
    %584 = arith.addf %579, %583 : vector<2x128xf32>
    %c6_292 = arith.constant 6 : index
    %c0_293 = arith.constant 0 : index
    %585 = vector.load %arg14[%c6_292, %c0_293] : memref<32x128xf32, #tpu.memory_space<vmem>>, vector<1x128xf32>
    %586 = vector.extract_strided_slice %554 {offsets = [0, 768], sizes = [2, 128], strides = [1, 1]} : vector<2x1024xf32> to vector<2x128xf32>
    %587 = vector.broadcast %585 : vector<1x128xf32> to vector<2x128xf32>
    %588 = arith.mulf %587, %586 : vector<2x128xf32>
    %589 = arith.addf %584, %588 : vector<2x128xf32>
    %c7_294 = arith.constant 7 : index
    %c0_295 = arith.constant 0 : index
    %590 = vector.load %arg14[%c7_294, %c0_295] : memref<32x128xf32, #tpu.memory_space<vmem>>, vector<1x128xf32>
    %591 = vector.extract_strided_slice %554 {offsets = [0, 896], sizes = [2, 128], strides = [1, 1]} : vector<2x1024xf32> to vector<2x128xf32>
    %592 = vector.broadcast %590 : vector<1x128xf32> to vector<2x128xf32>
    %593 = arith.mulf %592, %591 : vector<2x128xf32>
    %594 = arith.addf %589, %593 : vector<2x128xf32>
    %c0_296 = arith.constant 0 : index
    %c1024_297 = arith.constant 1024 : index
    %595 = vector.load %arg13[%c0_296, %c1024_297] : memref<22x4096xf32, #tpu.memory_space<vmem>>, vector<22x1024xf32>
    %596 = arith.truncf %595 : vector<22x1024xf32> to vector<22x1024xbf16>
    %cst_298 = arith.constant dense<0.000000e+00> : vector<32x1024xf32>
    %597 = tpu.matmul %533, %596, %cst_298 {dimension_numbers = #tpu.dot_dimension_numbers<[1], [0], [0], [1], [0, 0, 1, 1], [], []>} : vector<32x22xbf16>, vector<22x1024xbf16>, vector<32x1024xf32> -> vector<32x1024xf32>
    %598 = vector.broadcast %534 : vector<32x1xf32> to vector<32x1024xf32>
    %599 = arith.addf %597, %598 : vector<32x1024xf32>
    %cst_299 = arith.constant 0.000000e+00 : f32
    %600 = vector.broadcast %cst_299 : f32 to vector<32x1024xf32>
    %601 = arith.maximumf %599, %600 : vector<32x1024xf32>
    %602 = arith.truncf %601 : vector<32x1024xf32> to vector<32x1024xbf16>
    %cst_300 = arith.constant dense<0.000000e+00> : vector<2x1024xf32>
    %603 = tpu.matmul %535, %602, %cst_300 {dimension_numbers = #tpu.dot_dimension_numbers<[1], [0], [0], [1], [0, 0, 1, 1], [], []>} : vector<2x32xbf16>, vector<32x1024xbf16>, vector<2x1024xf32> -> vector<2x1024xf32>
    %604 = vector.broadcast %536 : vector<2x1xf32> to vector<2x1024xf32>
    %605 = arith.addf %603, %604 : vector<2x1024xf32>
    %cst_301 = arith.constant 0.000000e+00 : f32
    %606 = vector.broadcast %cst_301 : f32 to vector<2x1024xf32>
    %607 = arith.subf %606, %605 : vector<2x1024xf32>
    %608 = math.exp %607 : vector<2x1024xf32>
    %cst_302 = arith.constant 1.000000e+00 : f32
    %609 = vector.broadcast %cst_302 : f32 to vector<2x1024xf32>
    %610 = arith.addf %609, %608 : vector<2x1024xf32>
    %611 = tpu.reciprocal %610 {approx = true} : vector<2x1024xf32> -> vector<2x1024xf32>
    %c8_303 = arith.constant 8 : index
    %c0_304 = arith.constant 0 : index
    %612 = vector.load %arg14[%c8_303, %c0_304] : memref<32x128xf32, #tpu.memory_space<vmem>>, vector<1x128xf32>
    %613 = vector.extract_strided_slice %611 {offsets = [0, 0], sizes = [2, 128], strides = [1, 1]} : vector<2x1024xf32> to vector<2x128xf32>
    %614 = vector.broadcast %612 : vector<1x128xf32> to vector<2x128xf32>
    %615 = arith.mulf %614, %613 : vector<2x128xf32>
    %616 = arith.addf %594, %615 : vector<2x128xf32>
    %c9_305 = arith.constant 9 : index
    %c0_306 = arith.constant 0 : index
    %617 = vector.load %arg14[%c9_305, %c0_306] : memref<32x128xf32, #tpu.memory_space<vmem>>, vector<1x128xf32>
    %618 = vector.extract_strided_slice %611 {offsets = [0, 128], sizes = [2, 128], strides = [1, 1]} : vector<2x1024xf32> to vector<2x128xf32>
    %619 = vector.broadcast %617 : vector<1x128xf32> to vector<2x128xf32>
    %620 = arith.mulf %619, %618 : vector<2x128xf32>
    %621 = arith.addf %616, %620 : vector<2x128xf32>
    %c10_307 = arith.constant 10 : index
    %c0_308 = arith.constant 0 : index
    %622 = vector.load %arg14[%c10_307, %c0_308] : memref<32x128xf32, #tpu.memory_space<vmem>>, vector<1x128xf32>
    %623 = vector.extract_strided_slice %611 {offsets = [0, 256], sizes = [2, 128], strides = [1, 1]} : vector<2x1024xf32> to vector<2x128xf32>
    %624 = vector.broadcast %622 : vector<1x128xf32> to vector<2x128xf32>
    %625 = arith.mulf %624, %623 : vector<2x128xf32>
    %626 = arith.addf %621, %625 : vector<2x128xf32>
    %c11_309 = arith.constant 11 : index
    %c0_310 = arith.constant 0 : index
    %627 = vector.load %arg14[%c11_309, %c0_310] : memref<32x128xf32, #tpu.memory_space<vmem>>, vector<1x128xf32>
    %628 = vector.extract_strided_slice %611 {offsets = [0, 384], sizes = [2, 128], strides = [1, 1]} : vector<2x1024xf32> to vector<2x128xf32>
    %629 = vector.broadcast %627 : vector<1x128xf32> to vector<2x128xf32>
    %630 = arith.mulf %629, %628 : vector<2x128xf32>
    %631 = arith.addf %626, %630 : vector<2x128xf32>
    %c12_311 = arith.constant 12 : index
    %c0_312 = arith.constant 0 : index
    %632 = vector.load %arg14[%c12_311, %c0_312] : memref<32x128xf32, #tpu.memory_space<vmem>>, vector<1x128xf32>
    %633 = vector.extract_strided_slice %611 {offsets = [0, 512], sizes = [2, 128], strides = [1, 1]} : vector<2x1024xf32> to vector<2x128xf32>
    %634 = vector.broadcast %632 : vector<1x128xf32> to vector<2x128xf32>
    %635 = arith.mulf %634, %633 : vector<2x128xf32>
    %636 = arith.addf %631, %635 : vector<2x128xf32>
    %c13_313 = arith.constant 13 : index
    %c0_314 = arith.constant 0 : index
    %637 = vector.load %arg14[%c13_313, %c0_314] : memref<32x128xf32, #tpu.memory_space<vmem>>, vector<1x128xf32>
    %638 = vector.extract_strided_slice %611 {offsets = [0, 640], sizes = [2, 128], strides = [1, 1]} : vector<2x1024xf32> to vector<2x128xf32>
    %639 = vector.broadcast %637 : vector<1x128xf32> to vector<2x128xf32>
    %640 = arith.mulf %639, %638 : vector<2x128xf32>
    %641 = arith.addf %636, %640 : vector<2x128xf32>
    %c14_315 = arith.constant 14 : index
    %c0_316 = arith.constant 0 : index
    %642 = vector.load %arg14[%c14_315, %c0_316] : memref<32x128xf32, #tpu.memory_space<vmem>>, vector<1x128xf32>
    %643 = vector.extract_strided_slice %611 {offsets = [0, 768], sizes = [2, 128], strides = [1, 1]} : vector<2x1024xf32> to vector<2x128xf32>
    %644 = vector.broadcast %642 : vector<1x128xf32> to vector<2x128xf32>
    %645 = arith.mulf %644, %643 : vector<2x128xf32>
    %646 = arith.addf %641, %645 : vector<2x128xf32>
    %c15_317 = arith.constant 15 : index
    %c0_318 = arith.constant 0 : index
    %647 = vector.load %arg14[%c15_317, %c0_318] : memref<32x128xf32, #tpu.memory_space<vmem>>, vector<1x128xf32>
    %648 = vector.extract_strided_slice %611 {offsets = [0, 896], sizes = [2, 128], strides = [1, 1]} : vector<2x1024xf32> to vector<2x128xf32>
    %649 = vector.broadcast %647 : vector<1x128xf32> to vector<2x128xf32>
    %650 = arith.mulf %649, %648 : vector<2x128xf32>
    %651 = arith.addf %646, %650 : vector<2x128xf32>
    %c0_319 = arith.constant 0 : index
    %c2048_320 = arith.constant 2048 : index
    %652 = vector.load %arg13[%c0_319, %c2048_320] : memref<22x4096xf32, #tpu.memory_space<vmem>>, vector<22x1024xf32>
    %653 = arith.truncf %652 : vector<22x1024xf32> to vector<22x1024xbf16>
    %cst_321 = arith.constant dense<0.000000e+00> : vector<32x1024xf32>
    %654 = tpu.matmul %533, %653, %cst_321 {dimension_numbers = #tpu.dot_dimension_numbers<[1], [0], [0], [1], [0, 0, 1, 1], [], []>} : vector<32x22xbf16>, vector<22x1024xbf16>, vector<32x1024xf32> -> vector<32x1024xf32>
    %655 = vector.broadcast %534 : vector<32x1xf32> to vector<32x1024xf32>
    %656 = arith.addf %654, %655 : vector<32x1024xf32>
    %cst_322 = arith.constant 0.000000e+00 : f32
    %657 = vector.broadcast %cst_322 : f32 to vector<32x1024xf32>
    %658 = arith.maximumf %656, %657 : vector<32x1024xf32>
    %659 = arith.truncf %658 : vector<32x1024xf32> to vector<32x1024xbf16>
    %cst_323 = arith.constant dense<0.000000e+00> : vector<2x1024xf32>
    %660 = tpu.matmul %535, %659, %cst_323 {dimension_numbers = #tpu.dot_dimension_numbers<[1], [0], [0], [1], [0, 0, 1, 1], [], []>} : vector<2x32xbf16>, vector<32x1024xbf16>, vector<2x1024xf32> -> vector<2x1024xf32>
    %661 = vector.broadcast %536 : vector<2x1xf32> to vector<2x1024xf32>
    %662 = arith.addf %660, %661 : vector<2x1024xf32>
    %cst_324 = arith.constant 0.000000e+00 : f32
    %663 = vector.broadcast %cst_324 : f32 to vector<2x1024xf32>
    %664 = arith.subf %663, %662 : vector<2x1024xf32>
    %665 = math.exp %664 : vector<2x1024xf32>
    %cst_325 = arith.constant 1.000000e+00 : f32
    %666 = vector.broadcast %cst_325 : f32 to vector<2x1024xf32>
    %667 = arith.addf %666, %665 : vector<2x1024xf32>
    %668 = tpu.reciprocal %667 {approx = true} : vector<2x1024xf32> -> vector<2x1024xf32>
    %c16_326 = arith.constant 16 : index
    %c0_327 = arith.constant 0 : index
    %669 = vector.load %arg14[%c16_326, %c0_327] : memref<32x128xf32, #tpu.memory_space<vmem>>, vector<1x128xf32>
    %670 = vector.extract_strided_slice %668 {offsets = [0, 0], sizes = [2, 128], strides = [1, 1]} : vector<2x1024xf32> to vector<2x128xf32>
    %671 = vector.broadcast %669 : vector<1x128xf32> to vector<2x128xf32>
    %672 = arith.mulf %671, %670 : vector<2x128xf32>
    %673 = arith.addf %651, %672 : vector<2x128xf32>
    %c17_328 = arith.constant 17 : index
    %c0_329 = arith.constant 0 : index
    %674 = vector.load %arg14[%c17_328, %c0_329] : memref<32x128xf32, #tpu.memory_space<vmem>>, vector<1x128xf32>
    %675 = vector.extract_strided_slice %668 {offsets = [0, 128], sizes = [2, 128], strides = [1, 1]} : vector<2x1024xf32> to vector<2x128xf32>
    %676 = vector.broadcast %674 : vector<1x128xf32> to vector<2x128xf32>
    %677 = arith.mulf %676, %675 : vector<2x128xf32>
    %678 = arith.addf %673, %677 : vector<2x128xf32>
    %c18_330 = arith.constant 18 : index
    %c0_331 = arith.constant 0 : index
    %679 = vector.load %arg14[%c18_330, %c0_331] : memref<32x128xf32, #tpu.memory_space<vmem>>, vector<1x128xf32>
    %680 = vector.extract_strided_slice %668 {offsets = [0, 256], sizes = [2, 128], strides = [1, 1]} : vector<2x1024xf32> to vector<2x128xf32>
    %681 = vector.broadcast %679 : vector<1x128xf32> to vector<2x128xf32>
    %682 = arith.mulf %681, %680 : vector<2x128xf32>
    %683 = arith.addf %678, %682 : vector<2x128xf32>
    %c19_332 = arith.constant 19 : index
    %c0_333 = arith.constant 0 : index
    %684 = vector.load %arg14[%c19_332, %c0_333] : memref<32x128xf32, #tpu.memory_space<vmem>>, vector<1x128xf32>
    %685 = vector.extract_strided_slice %668 {offsets = [0, 384], sizes = [2, 128], strides = [1, 1]} : vector<2x1024xf32> to vector<2x128xf32>
    %686 = vector.broadcast %684 : vector<1x128xf32> to vector<2x128xf32>
    %687 = arith.mulf %686, %685 : vector<2x128xf32>
    %688 = arith.addf %683, %687 : vector<2x128xf32>
    %c20_334 = arith.constant 20 : index
    %c0_335 = arith.constant 0 : index
    %689 = vector.load %arg14[%c20_334, %c0_335] : memref<32x128xf32, #tpu.memory_space<vmem>>, vector<1x128xf32>
    %690 = vector.extract_strided_slice %668 {offsets = [0, 512], sizes = [2, 128], strides = [1, 1]} : vector<2x1024xf32> to vector<2x128xf32>
    %691 = vector.broadcast %689 : vector<1x128xf32> to vector<2x128xf32>
    %692 = arith.mulf %691, %690 : vector<2x128xf32>
    %693 = arith.addf %688, %692 : vector<2x128xf32>
    %c21_336 = arith.constant 21 : index
    %c0_337 = arith.constant 0 : index
    %694 = vector.load %arg14[%c21_336, %c0_337] : memref<32x128xf32, #tpu.memory_space<vmem>>, vector<1x128xf32>
    %695 = vector.extract_strided_slice %668 {offsets = [0, 640], sizes = [2, 128], strides = [1, 1]} : vector<2x1024xf32> to vector<2x128xf32>
    %696 = vector.broadcast %694 : vector<1x128xf32> to vector<2x128xf32>
    %697 = arith.mulf %696, %695 : vector<2x128xf32>
    %698 = arith.addf %693, %697 : vector<2x128xf32>
    %c22_338 = arith.constant 22 : index
    %c0_339 = arith.constant 0 : index
    %699 = vector.load %arg14[%c22_338, %c0_339] : memref<32x128xf32, #tpu.memory_space<vmem>>, vector<1x128xf32>
    %700 = vector.extract_strided_slice %668 {offsets = [0, 768], sizes = [2, 128], strides = [1, 1]} : vector<2x1024xf32> to vector<2x128xf32>
    %701 = vector.broadcast %699 : vector<1x128xf32> to vector<2x128xf32>
    %702 = arith.mulf %701, %700 : vector<2x128xf32>
    %703 = arith.addf %698, %702 : vector<2x128xf32>
    %c23_340 = arith.constant 23 : index
    %c0_341 = arith.constant 0 : index
    %704 = vector.load %arg14[%c23_340, %c0_341] : memref<32x128xf32, #tpu.memory_space<vmem>>, vector<1x128xf32>
    %705 = vector.extract_strided_slice %668 {offsets = [0, 896], sizes = [2, 128], strides = [1, 1]} : vector<2x1024xf32> to vector<2x128xf32>
    %706 = vector.broadcast %704 : vector<1x128xf32> to vector<2x128xf32>
    %707 = arith.mulf %706, %705 : vector<2x128xf32>
    %708 = arith.addf %703, %707 : vector<2x128xf32>
    %c0_342 = arith.constant 0 : index
    %c3072_343 = arith.constant 3072 : index
    %709 = vector.load %arg13[%c0_342, %c3072_343] : memref<22x4096xf32, #tpu.memory_space<vmem>>, vector<22x1024xf32>
    %710 = arith.truncf %709 : vector<22x1024xf32> to vector<22x1024xbf16>
    %cst_344 = arith.constant dense<0.000000e+00> : vector<32x1024xf32>
    %711 = tpu.matmul %533, %710, %cst_344 {dimension_numbers = #tpu.dot_dimension_numbers<[1], [0], [0], [1], [0, 0, 1, 1], [], []>} : vector<32x22xbf16>, vector<22x1024xbf16>, vector<32x1024xf32> -> vector<32x1024xf32>
    %712 = vector.broadcast %534 : vector<32x1xf32> to vector<32x1024xf32>
    %713 = arith.addf %711, %712 : vector<32x1024xf32>
    %cst_345 = arith.constant 0.000000e+00 : f32
    %714 = vector.broadcast %cst_345 : f32 to vector<32x1024xf32>
    %715 = arith.maximumf %713, %714 : vector<32x1024xf32>
    %716 = arith.truncf %715 : vector<32x1024xf32> to vector<32x1024xbf16>
    %cst_346 = arith.constant dense<0.000000e+00> : vector<2x1024xf32>
    %717 = tpu.matmul %535, %716, %cst_346 {dimension_numbers = #tpu.dot_dimension_numbers<[1], [0], [0], [1], [0, 0, 1, 1], [], []>} : vector<2x32xbf16>, vector<32x1024xbf16>, vector<2x1024xf32> -> vector<2x1024xf32>
    %718 = vector.broadcast %536 : vector<2x1xf32> to vector<2x1024xf32>
    %719 = arith.addf %717, %718 : vector<2x1024xf32>
    %cst_347 = arith.constant 0.000000e+00 : f32
    %720 = vector.broadcast %cst_347 : f32 to vector<2x1024xf32>
    %721 = arith.subf %720, %719 : vector<2x1024xf32>
    %722 = math.exp %721 : vector<2x1024xf32>
    %cst_348 = arith.constant 1.000000e+00 : f32
    %723 = vector.broadcast %cst_348 : f32 to vector<2x1024xf32>
    %724 = arith.addf %723, %722 : vector<2x1024xf32>
    %725 = tpu.reciprocal %724 {approx = true} : vector<2x1024xf32> -> vector<2x1024xf32>
    %c24_349 = arith.constant 24 : index
    %c0_350 = arith.constant 0 : index
    %726 = vector.load %arg14[%c24_349, %c0_350] : memref<32x128xf32, #tpu.memory_space<vmem>>, vector<1x128xf32>
    %727 = vector.extract_strided_slice %725 {offsets = [0, 0], sizes = [2, 128], strides = [1, 1]} : vector<2x1024xf32> to vector<2x128xf32>
    %728 = vector.broadcast %726 : vector<1x128xf32> to vector<2x128xf32>
    %729 = arith.mulf %728, %727 : vector<2x128xf32>
    %730 = arith.addf %708, %729 : vector<2x128xf32>
    %c25_351 = arith.constant 25 : index
    %c0_352 = arith.constant 0 : index
    %731 = vector.load %arg14[%c25_351, %c0_352] : memref<32x128xf32, #tpu.memory_space<vmem>>, vector<1x128xf32>
    %732 = vector.extract_strided_slice %725 {offsets = [0, 128], sizes = [2, 128], strides = [1, 1]} : vector<2x1024xf32> to vector<2x128xf32>
    %733 = vector.broadcast %731 : vector<1x128xf32> to vector<2x128xf32>
    %734 = arith.mulf %733, %732 : vector<2x128xf32>
    %735 = arith.addf %730, %734 : vector<2x128xf32>
    %c26_353 = arith.constant 26 : index
    %c0_354 = arith.constant 0 : index
    %736 = vector.load %arg14[%c26_353, %c0_354] : memref<32x128xf32, #tpu.memory_space<vmem>>, vector<1x128xf32>
    %737 = vector.extract_strided_slice %725 {offsets = [0, 256], sizes = [2, 128], strides = [1, 1]} : vector<2x1024xf32> to vector<2x128xf32>
    %738 = vector.broadcast %736 : vector<1x128xf32> to vector<2x128xf32>
    %739 = arith.mulf %738, %737 : vector<2x128xf32>
    %740 = arith.addf %735, %739 : vector<2x128xf32>
    %c27_355 = arith.constant 27 : index
    %c0_356 = arith.constant 0 : index
    %741 = vector.load %arg14[%c27_355, %c0_356] : memref<32x128xf32, #tpu.memory_space<vmem>>, vector<1x128xf32>
    %742 = vector.extract_strided_slice %725 {offsets = [0, 384], sizes = [2, 128], strides = [1, 1]} : vector<2x1024xf32> to vector<2x128xf32>
    %743 = vector.broadcast %741 : vector<1x128xf32> to vector<2x128xf32>
    %744 = arith.mulf %743, %742 : vector<2x128xf32>
    %745 = arith.addf %740, %744 : vector<2x128xf32>
    %c28_357 = arith.constant 28 : index
    %c0_358 = arith.constant 0 : index
    %746 = vector.load %arg14[%c28_357, %c0_358] : memref<32x128xf32, #tpu.memory_space<vmem>>, vector<1x128xf32>
    %747 = vector.extract_strided_slice %725 {offsets = [0, 512], sizes = [2, 128], strides = [1, 1]} : vector<2x1024xf32> to vector<2x128xf32>
    %748 = vector.broadcast %746 : vector<1x128xf32> to vector<2x128xf32>
    %749 = arith.mulf %748, %747 : vector<2x128xf32>
    %750 = arith.addf %745, %749 : vector<2x128xf32>
    %c29_359 = arith.constant 29 : index
    %c0_360 = arith.constant 0 : index
    %751 = vector.load %arg14[%c29_359, %c0_360] : memref<32x128xf32, #tpu.memory_space<vmem>>, vector<1x128xf32>
    %752 = vector.extract_strided_slice %725 {offsets = [0, 640], sizes = [2, 128], strides = [1, 1]} : vector<2x1024xf32> to vector<2x128xf32>
    %753 = vector.broadcast %751 : vector<1x128xf32> to vector<2x128xf32>
    %754 = arith.mulf %753, %752 : vector<2x128xf32>
    %755 = arith.addf %750, %754 : vector<2x128xf32>
    %c30_361 = arith.constant 30 : index
    %c0_362 = arith.constant 0 : index
    %756 = vector.load %arg14[%c30_361, %c0_362] : memref<32x128xf32, #tpu.memory_space<vmem>>, vector<1x128xf32>
    %757 = vector.extract_strided_slice %725 {offsets = [0, 768], sizes = [2, 128], strides = [1, 1]} : vector<2x1024xf32> to vector<2x128xf32>
    %758 = vector.broadcast %756 : vector<1x128xf32> to vector<2x128xf32>
    %759 = arith.mulf %758, %757 : vector<2x128xf32>
    %760 = arith.addf %755, %759 : vector<2x128xf32>
    %c31_363 = arith.constant 31 : index
    %c0_364 = arith.constant 0 : index
    %761 = vector.load %arg14[%c31_363, %c0_364] : memref<32x128xf32, #tpu.memory_space<vmem>>, vector<1x128xf32>
    %762 = vector.extract_strided_slice %725 {offsets = [0, 896], sizes = [2, 128], strides = [1, 1]} : vector<2x1024xf32> to vector<2x128xf32>
    %763 = vector.broadcast %761 : vector<1x128xf32> to vector<2x128xf32>
    %764 = arith.mulf %763, %762 : vector<2x128xf32>
    %765 = arith.addf %760, %764 : vector<2x128xf32>
    %766 = tpu.concatenate %528, %531, %765 in 0 : vector<1x128xf32>, vector<1x128xf32>, vector<2x128xf32> -> vector<4x128xf32>
    %c0_365 = arith.constant 0 : index
    %c0_366 = arith.constant 0 : index
    %767 = vector.load %arg12[%c0_365, %c0_366] : memref<4x128xf32, #tpu.memory_space<vmem>>, vector<4x128xf32>
    tpu.vector_store %arg12[%c0_365, %c0_366], %766 {strides = array<i32>} : memref<4x128xf32, #tpu.memory_space<vmem>>, vector<4x128xf32>,
    return
  }
  func.func @transform_0(%arg0: i32) -> (i32, i32) {
    %c0_i32 = arith.constant 0 : i32
    %c0_i32_0 = arith.constant 0 : i32
    return %c0_i32, %arg0 : i32, i32
  }
  func.func @transform_1(%arg0: i32) -> (i32, i32) {
    %c0_i32 = arith.constant 0 : i32
    %c0_i32_0 = arith.constant 0 : i32
    return %c0_i32, %arg0 : i32, i32
  }
  func.func @transform_2(%arg0: i32) -> (i32, i32) {
    %c0_i32 = arith.constant 0 : i32
    %c0_i32_0 = arith.constant 0 : i32
    return %c0_i32, %arg0 : i32, i32
  }
  func.func @transform_3(%arg0: i32) -> (i32, i32) {
    %c0_i32 = arith.constant 0 : i32
    %c0_i32_0 = arith.constant 0 : i32
    %c0_i32_1 = arith.constant 0 : i32
    return %c0_i32, %c0_i32_0 : i32, i32
  }
  func.func @transform_4(%arg0: i32) -> (i32, i32) {
    %c0_i32 = arith.constant 0 : i32
    %c0_i32_0 = arith.constant 0 : i32
    %c0_i32_1 = arith.constant 0 : i32
    return %c0_i32, %c0_i32_0 : i32, i32
  }
  func.func @transform_5(%arg0: i32) -> (i32, i32) {
    %c0_i32 = arith.constant 0 : i32
    %c0_i32_0 = arith.constant 0 : i32
    %c0_i32_1 = arith.constant 0 : i32
    return %c0_i32, %c0_i32_0 : i32, i32
  }
  func.func @transform_6(%arg0: i32) -> (i32, i32) {
    %c0_i32 = arith.constant 0 : i32
    %c0_i32_0 = arith.constant 0 : i32
    %c0_i32_1 = arith.constant 0 : i32
    return %c0_i32, %c0_i32_0 : i32, i32
  }
  func.func @transform_7(%arg0: i32) -> (i32, i32) {
    %c0_i32 = arith.constant 0 : i32
    %c0_i32_0 = arith.constant 0 : i32
    %c0_i32_1 = arith.constant 0 : i32
    return %c0_i32, %c0_i32_0 : i32, i32
  }
  func.func @transform_8(%arg0: i32) -> (i32, i32) {
    %c0_i32 = arith.constant 0 : i32
    %c0_i32_0 = arith.constant 0 : i32
    %c0_i32_1 = arith.constant 0 : i32
    return %c0_i32, %c0_i32_0 : i32, i32
  }
  func.func @transform_9(%arg0: i32) -> (i32, i32) {
    %c0_i32 = arith.constant 0 : i32
    %c0_i32_0 = arith.constant 0 : i32
    %c0_i32_1 = arith.constant 0 : i32
    return %c0_i32, %c0_i32_0 : i32, i32
  }
  func.func @transform_10(%arg0: i32) -> (i32, i32) {
    %c0_i32 = arith.constant 0 : i32
    %c0_i32_0 = arith.constant 0 : i32
    %c0_i32_1 = arith.constant 0 : i32
    return %c0_i32, %c0_i32_0 : i32, i32
  }
  func.func @transform_11(%arg0: i32) -> (i32, i32) {
    %c0_i32 = arith.constant 0 : i32
    %c0_i32_0 = arith.constant 0 : i32
    return %c0_i32, %arg0 : i32, i32
  }
}

</mosaic_0001>

<bundles_post_ra>
// kernel: run.2
= control target key start
LH: loop header
LB: loop body
LE: loop exit
PB: predicated region body
PF: predicated region fallthrough
CT: control target
= control target key end

     0   :  { %s2539_s0 = inlined_call_operand.vmem [shape: f32[3,256], index: 0, kind: input, shape index: {}]   ;;  %s2540_s1 = inlined_call_operand.vmem [shape: f32[3,256], index: 1, kind: input, shape index: {}]   ;;  %s2541_s2 = inlined_call_operand.vmem [shape: f32[16,256], index: 2, kind: input, shape index: {}]   ;;  %s2542_s3 = inlined_call_operand.hbm [shape: bf16[32,3], index: 3, kind: input, shape index: {}]   ;;  %s2543_s4 = inlined_call_operand.vmem [shape: f32[32,1], index: 4, kind: input, shape index: {}]   ;;  %s2544_s5 = inlined_call_operand.hbm [shape: bf16[1,32], index: 5, kind: input, shape index: {}]   ;;  %s2545_s6 = inlined_call_operand.<no memory space> [shape: f32[1,1], index: 6, kind: input, shape index: {}]   ;;  %s2546_s7 = inlined_call_operand.vmem [shape: f32[16,256], index: 7, kind: output, shape index: {}]  }
   0x1   :  { %v12_v0 = vstv %s2545_s6 }
   0x2   :  { %13 = vst [vmem:[#allocation4] sm:$0x1] %v12_v0 }
   0x3   :  { %14 = vsyncpa [#allocation7], 0 }
   0x4   :  { %15 = vsyncpa [#allocation9], 0  ;;  %s2064_s26 = smov 0   ;;  %s2066_s27 = smov 0  }
   0x5   :  { %s2068_s28 = smov 0  }
   0x6 LB: > { %s2080_s6 = sadd.s32 4294967295, %s2013_s28   ;;  %s2083_s29 = sadd.s32 1, %s2013_s28   ;;  %s2013_s28 = sphi %s2068_s28, %s2552_s28   ;;  %s2009_s27 = sphi %s2066_s27, %s2551_s27   ;;  %s2005_s26 = sphi %s2064_s26, %s2550_s26  }
   0x7   : > { %s77_s30 = ssub.s32 %s2013_s28, %s2083_s29  ;;  %s80_s8 = sadd.s32 1, %s2009_s27 }
   0x8   : > { %p78_p0 = scmp.eq.s32.totalorder %s77_s30, 0  ;;  %p87_p1 = scmp.ne.s32.totalorder %s2009_s27, %s2005_s26 }
   0x9   : > { %p88_p2 = scmp.eq.s32.totalorder %s2013_s28, 0  ;;  %p201_p3 = scmp.eq.s32.totalorder %s2080_s6, 1 }
   0xa   : > { %s2093_s9 = scalar_select %p78_p0, %s2009_s27, %s80_s8  }
   0xb   : > { %p2095_p4 = por %p88_p2, %p87_p1  ;;  %p2099_p5 = por %p201_p3, %p87_p1 }
   0xc   : > { %p1688_p6 = scmp.ge.s32.totalorder %s2013_s28, 1  ;;  %p214_p7 = scmp.lt.s32.totalorder %s2013_s28, 3 }
   0xd   : > { %p1794_p8 = scmp.eq.s32.totalorder %s2080_s6, 0  ;;  %s225_s15 = sshll.u32 %s2542_s3, 4  ;;  %s226_s15 = int_to_ptr.hbm [resolvable:$true] %s225_s15 }
   0xe   : > { %p2106_p9 = pnand %p1688_p6, %p214_p7  ;;  %s2015_s16 = smov [#allocation6]  }
   0xf   : > { %s227_s17 = sshll.u32 %s2015_s16, 4  ;;  %s243_s20 = sshll.u32 %s2544_s5, 4  ;;  %s228_s17 = int_to_ptr.vmem [resolvable:$true] %s227_s17  ;;  %s244_s20 = int_to_ptr.hbm [resolvable:$true] %s243_s20 }
  0x10   : > { %p1787_p10 = pneg %p2106_p9  ;;  %s2016_s21 = smov 64  }
  0x11   : > { %s2017_s22 = smov 4   ;;  %s2018_s23 = smov [#allocation8]  }
  0x12   : > { %p1788_p11 = pnand %p1794_p8, %p1787_p10  ;;  %s245_s24 = sshll.u32 %s2018_s23, 4  ;;  %s246_s24 = int_to_ptr.vmem [resolvable:$true] %s245_s24 }
  0x13   : > { %p1691_p12 = scmp.ge.s32.totalorder %s2013_s28, 2 }
  0x14   : > { %1790 = dma.hbm_to_vmem [thread:$0]  (!%p1788_p11), %s226_s15, 256, %s228_s17, [#allocation7], %s2016_s21, %s2016_s21, %s2017_s22  }
  0x15   : > { %1793 = dma.hbm_to_vmem [thread:$0]  (!%p1788_p11), %s244_s20, 16, %s246_s24, [#allocation9]  }
  0x16   : > { %255 = sbr.rel (%p1691_p12) target bundleno = 33 (0x21), region = 32 }
  0x1b   : > { %272 = sbr.rel (!%p2095_p4) target bundleno = 33 (0x21), region = 44  ;;  %s274_s25 = sand.u32 (%p2095_p4), 1, %s2009_s27  }
  0x1c   : > { %s1693_s30 = sshll.u32 (%p2095_p4), %s2013_s28, 3  ;;  %s1692_s8 = sshll.u32 (%p2095_p4), %s274_s25, 4 }
  0x1d   : > { %s278_s16 = scalar_lea.vmem (%p2095_p4), %s2541_s2, %s1693_s30  ;;  %s276_s15 = scalar_lea.vmem (%p2095_p4), [#allocation5], %s1692_s8 }
  0x1e   : > { %v309_v1 = vld [vmem:[%s278_s16] sm:$0xff] (%p2095_p4)  ;;  %v311_v2 = vld [vmem:[%s278_s16 + $0x10] sm:$0xff] (%p2095_p4) }
  0x1f   : > { %310 = vst [vmem:[%s276_s15] sm:$0xff] (%p2095_p4), %v309_v1 }
  0x20   : > { %312 = vst [vmem:[%s276_s15 + $0x8] sm:$0xff] %v311_v2 }
  0x21 PF: > { %321 = sbr.rel (%p2106_p9) target bundleno = 735 (0x2df), region = 82  ;;  %s324_s10 = sand.u32 (!%p2106_p9), 1, %s2005_s26  }
  0x22   : > { %s2131_s17 = sshll.u32 (!%p2106_p9), %s324_s10, 4 }
  0x23   : > { %s2134_s28 = scalar_lea.vmem (!%p2106_p9), [#allocation5], %s2131_s17 }
  0x26   : > { %1996 = dma.done.wait (%p1794_p8), [#allocation7], 256  }
  0x27   : > { %1998 = vsyncadd (%p1794_p8), [#allocation7], 4294967040 }
  0x28   : > { %2000 = dma.done.wait (%p1794_p8), [#allocation9], 16  }
  0x29   : > { %2002 = vsyncadd (%p1794_p8), [#allocation9], 4294967280  ;;  %p372_p13 = scmp.lt.s32.totalorder %s2080_s6, 1  ;;  %v1831_v5 = vld [vmem:[%s2134_s28] ss:$0 sm:$0xff]  ;;  %v2019_v39 = vmov 0  }
  0x2a   : > { %v1832_v6 = vld [vmem:[%s2134_s28 + $0x1] ss:$0 sm:$0xff]  ;;  %v1833_v7 = vld [vmem:[%s2134_s28 + $0x8] ss:$0 sm:$0xff]  ;;  %v1834_v10 = vld [vmem:[%s2134_s28 + $0x9] ss:$0 sm:$0xff]  ;;  %1829 = vset.pattern.permute.xlu1 %v2019_v39  ;;  %1828 = vset.pattern.permute.xlu0 %v2019_v39 }
  0x2b   : > { %s373_s26 = scalar_select %p372_p13, %s2080_s6, 1  ;;  %v1835_v11 = vld [vmem:[%s2134_s28 + $0x2] ss:$0 sm:$0xff]  ;;  %v1836_v12 = vld [vmem:[%s2134_s28 + $0x3] ss:$0 sm:$0xff]  ;;  %1830 = vset.pattern.permute.xlu2 %v2019_v39  ;;  %vm525_vm0 = vcmask 1040384  }
  0x2c   : > { %v1837_v16 = vld [vmem:[%s2134_s28 + $0xa] ss:$0 sm:$0xff]  ;;  %v1838_v19 = vld [vmem:[%s2134_s28 + $0xb] ss:$0 sm:$0xff]  ;;  %v1839_v20 = vld [vmem:[%s2134_s28 + $0x6] ss:$0 sm:$0xff] }
  0x2d   : > { %s1699_s12 = sshll.u32 %s373_s26, 2  ;;  %v1840_v24 = vld [vmem:[%s2134_s28 + $0x7] ss:$0 sm:$0xff]  ;;  %v1841_v27 = vld [vmem:[%s2134_s28 + $0xe] ss:$0 sm:$0xff]  ;;  %vm526_vm1 = vcmask 1041408  }
  0x2e   : > { %s375_s20 = scalar_lea.vmem %s2539_s0, %s1699_s12  ;;  %s379_s23 = scalar_lea.vmem %s2540_s1, %s1699_s12  ;;  %v1842_v34 = vld [vmem:[%s2134_s28 + $0xf] ss:$0 sm:$0xff]  ;;  %v1843_v40 = vld [vmem:[%s2134_s28 + $0x4] ss:$0 sm:$0xff]  ;;  %v1844_v46 = vld [vmem:[%s2134_s28 + $0x5] ss:$0 sm:$0xff] }
  0x2f   : > { %v2152_v3 = vld [vmem:[%s375_s20] sm:$0x7]  ;;  %v2020_v59 = vmov 65535   ;;  %v389_v62 = vld [vmem:[%s2543_s4 + $0x10] sm:$0xff]  ;;  %vm518_vm2 = vcmask 23552   ;;  %vm759_vm3 = vcmask 261120  }
  0x30   : > { %v2154_v4 = vld [vmem:[%s379_s23] sm:$0x7]  ;;  %v527_v60 = vsel %vm525_vm0, 4294967295, %v2020_v59  ;;  %500 = vperm.xlu0 %1828, %v389_v62   ;;  %vm1465_vm4 = vcmask 1046528   ;;  %vm1519_vm5 = vcmask 1043456   ;;  %s2494_s10 = scalar_lea.vmem [#allocation10], %s2131_s17 }
  0x31   : > { %v395_v8 = vmul.f32 %v1831_v5, %v2154_v4  ;;  %v402_v9 = vmul.f32 %v1832_v6, %v2154_v4  ;;  %v409_v15 = vmul.f32 %v1835_v11, %v2154_v4  ;;  %v949_v17 = vmul.f32 %v1833_v7, %v2154_v4  ;;  %v387_v61 = vld [vmem:[%s2543_s4] sm:$0xff]  ;;  %s1774_s17 = sshll.u32 (%p2099_p5), %s2080_s6, 3 }
  0x32   : > { %v416_v18 = vmul.f32 %v1836_v12, %v2154_v4  ;;  %v956_v25 = vmul.f32 %v1834_v10, %v2154_v4  ;;  %v437_v29 = vmul.f32 %v1839_v20, %v2154_v4  ;;  %v444_v30 = vmul.f32 %v1840_v24, %v2154_v4  ;;  %490 = vperm.xlu1 %1829, %v387_v61   ;;  %v1845_v5 = vld [vmem:[%s2134_s28 + $0xc] ss:$0 sm:$0xff]  ;;  %s1546_s12 = scalar_lea.vmem (%p2099_p5), %s2546_s7, %s1774_s17 }
  0x33   : > { %v396_v13 = vadd.f32 %v395_v8, %v2152_v3  ;;  %v403_v14 = vadd.f32 %v402_v9, %v2152_v3  ;;  %v410_v23 = vadd.f32 %v409_v15, %v2152_v3  ;;  %v950_v31 = vadd.f32 %v949_v17, %v2152_v3  ;;  %v1846_v8 = vld [vmem:[%s2134_s28 + $0xd] ss:$0 sm:$0xff] }
  0x34   : > { %v417_v26 = vadd.f32 %v416_v18, %v2152_v3  ;;  %v963_v33 = vmul.f32 %v1837_v16, %v2154_v4  ;;  %v970_v35 = vmul.f32 %v1838_v19, %v2154_v4  ;;  %v438_v36 = vadd.f32 %v437_v29, %v2152_v3  ;;  %v388_v19 = vld [vmem:[%s2543_s4 + $0x8] sm:$0xff] }
  0x35   : > { %v1701_v21 = vclamps-f32 %v396_v13, 1.0  ;;  %v1702_v22 = vclamps-f32 %v403_v14, 1.0  ;;  %v1703_v28 = vclamps-f32 %v410_v23, 1.0  ;;  %v445_v37 = vadd.f32 %v444_v30, %v2152_v3  ;;  %v2217_v23 = vld [vmem:[#allocation6] sm:$0xff]  ;;  %v2236_v39 = vld [vmem:[#allocation6 + $0x8] sm:$0xff] }
  0x36   : > { %v1704_v32 = vclamps-f32 %v417_v26, 1.0  ;;  %v957_v38 = vadd.f32 %v956_v25, %v2152_v3  ;;  %v1707_v41 = vclamps-f32 %v438_v36, 1.0  ;;  %v964_v43 = vadd.f32 %v963_v33, %v2152_v3 }
  0x37   : > { %399 = vst [vmem:[#allocation2] sm:$0x7] %v1701_v21  ;;  %v1708_v42 = vclamps-f32 %v445_v37, 1.0  ;;  %v991_v44 = vmul.f32 %v1841_v27, %v2154_v4  ;;  %v998_v45 = vmul.f32 %v1842_v34, %v2154_v4  ;;  %v1741_v47 = vclamps-f32 %v950_v31, 1.0 }
  0x38   : > { %406 = vst [vmem:[#allocation2 + $0x4] sm:$0x7] %v1702_v22  ;;  %v971_v48 = vadd.f32 %v970_v35, %v2152_v3  ;;  %v1742_v49 = vclamps-f32 %v957_v38, 1.0  ;;  %v423_v50 = vmul.f32 %v1843_v40, %v2154_v4  ;;  %v1743_v52 = vclamps-f32 %v964_v43, 1.0  ;;  %v390_v38 = vld [vmem:[%s2543_s4 + $0x18] sm:$0xff] }
  0x39   : > { %413 = vst [vmem:[#allocation2 + $0x8] sm:$0x7] %v1703_v28  ;;  %v992_v53 = vadd.f32 %v991_v44, %v2152_v3  ;;  %v999_v54 = vadd.f32 %v998_v45, %v2152_v3  ;;  %v430_v55 = vmul.f32 %v1844_v46, %v2154_v4  ;;  %v2207_v6 = vsel %vm526_vm1, %v527_v60, 0  ;;  %505 = vperm.xlu0 %1828, %v390_v38  }
  0x3a   : > { %420 = vst [vmem:[#allocation2 + $0xc] sm:$0x7] %v1704_v32  ;;  %v1744_v57 = vclamps-f32 %v971_v48, 1.0  ;;  %v424_v58 = vadd.f32 %v423_v50, %v2152_v3  ;;  %v977_v15 = vmul.f32 %v1845_v5, %v2154_v4  ;;  %v984_v20 = vmul.f32 %v1846_v8, %v2154_v4  ;;  %495 = vperm.xlu1 %1829, %v388_v19  }
  0x3b   : > { %441 = vst [vmem:[#allocation2 + $0x18] sm:$0x7] %v1707_v41  ;;  %v1747_v63 = vclamps-f32 %v992_v53, 1.0  ;;  %v1748_v0 = vclamps-f32 %v999_v54, 1.0  ;;  %v431_v1 = vadd.f32 %v430_v55, %v2152_v3 }
  0x3c   : > { %448 = vst [vmem:[#allocation2 + $0x1c] sm:$0x7] %v1708_v42  ;;  %v1705_v7 = vclamps-f32 %v424_v58, 1.0  ;;  %v978_v28 = vadd.f32 %v977_v15, %v2152_v3  ;;  %v985_v31 = vadd.f32 %v984_v20, %v2152_v3 }
  0x3d   : > { %v1706_v13 = vclamps-f32 %v431_v1, 1.0 }
  0x3e   : > { %427 = vst [vmem:[#allocation2 + $0x10] sm:$0x7] %v1705_v7  ;;  %v1745_v36 = vclamps-f32 %v978_v28, 1.0  ;;  %v1746_v3 = vclamps-f32 %v985_v31, 1.0 }
  0x3f   : > { %v449_v51 = vld [vmem:[#allocation2] sm:$0x77]  ;;  %434 = vst [vmem:[#allocation2 + $0x14] sm:$0x7] %v1706_v13 }
  0x40   : > { %457 = vst [vmem:[#allocation1] ss:$2 sm:$0xff] %v449_v51 }
  0x41   : > { %953 = vst [vmem:[#allocation2] sm:$0x7] %v1741_v47  ;;  %v450_v56 = vld [vmem:[#allocation2 + $0x8] sm:$0x77] }
  0x42   : > { %960 = vst [vmem:[#allocation2 + $0x4] sm:$0x7] %v1742_v49 }
  0x43   : > { %459 = vst [vmem:[#allocation1 + $0x10] ss:$2 sm:$0xff] %v450_v56  ;;  %v452_v2 = vld [vmem:[#allocation2 + $0x18] sm:$0x77] }
  0x44   : > { %967 = vst [vmem:[#allocation2 + $0x8] sm:$0x7] %v1743_v52 }
  0x45   : > { %974 = vst [vmem:[#allocation2 + $0xc] sm:$0x7] %v1744_v57 }
  0x46   : > { %463 = vst [vmem:[#allocation1 + $0x30] ss:$2 sm:$0xff] %v452_v2  ;;  %v451_v37 = vld [vmem:[#allocation2 + $0x10] sm:$0x77] }
  0x47   : > { %v464_v9 = vld.sshfl [vmem:[#allocation1] sm:$0xff pattern:$0x75316420]  ;;  %v465_v10 = vld.sshfl [vmem:[#allocation1 + $0x8] sm:$0xff pattern:$0x75316420] }
  0x48   : > { %v480_v11 = vpack.c.bf16 %v464_v9, %v464_v9  ;;  %v481_v12 = vpack.c.bf16 %v465_v10, %v465_v10  ;;  %995 = vst [vmem:[#allocation2 + $0x18] sm:$0x7] %v1747_v63 }
  0x49   : > { %v1003_v14 = vld [vmem:[#allocation2] sm:$0x77]  ;;  %1002 = vst [vmem:[#allocation2 + $0x1c] sm:$0x7] %v1748_v0 }
  0x4a   : > { %v530_v16 = vand.u32 %v2207_v6, %v480_v11  ;;  %v533_v17 = vand.u32 %v2207_v6, %v481_v12  ;;  %1011 = vst [vmem:[#allocation1] ss:$2 sm:$0xff] %v1003_v14  ;;  %v466_v18 = vld.sshfl [vmem:[#allocation1 + $0x10] sm:$0xff pattern:$0x75316420] }
  0x4b   : > { %v482_v21 = vpack.c.bf16 %v466_v18, %v466_v18  ;;  %v467_v22 = vld.sshfl [vmem:[#allocation1 + $0x18] sm:$0xff pattern:$0x75316420]  ;;  %461 = vst [vmem:[#allocation1 + $0x20] ss:$2 sm:$0xff] %v451_v37 }
  0x4c   : > { %560 = vmatpush.bf16.msra.mxu0 %v530_v16  ;;  %579 = vmatpush.bf16.msra.mxu1 %v533_v17  ;;  %v483_v24 = vpack.c.bf16 %v467_v22, %v467_v22  ;;  %v1004_v25 = vld [vmem:[#allocation2 + $0x8] sm:$0x77]  ;;  %981 = vst [vmem:[#allocation2 + $0x10] sm:$0x7] %v1745_v36 }
  0x4d   : > { %v536_v26 = vand.u32 %v2207_v6, %v482_v21  ;;  %1013 = vst [vmem:[#allocation1 + $0x10] ss:$2 sm:$0xff] %v1004_v25  ;;  %v470_v27 = vld.sshfl [vmem:[#allocation1 + $0x30] sm:$0xff pattern:$0x75316420] }
  0x4e   : > { %v539_v4 = vand.u32 %v2207_v6, %v483_v24  ;;  %v486_v29 = vpack.c.bf16 %v470_v27, %v470_v27  ;;  %v471_v30 = vld.sshfl [vmem:[#allocation1 + $0x38] sm:$0xff pattern:$0x75316420]  ;;  %988 = vst [vmem:[#allocation2 + $0x14] sm:$0x7] %v1746_v3 }
  0x4f   : > { %598 = vmatpush.bf16.msra.mxu2 %v536_v26  ;;  %1717 = vmatmul.msk.bf16.vlgmr.msra.gmra.mxu0 %vm518_vm2, %v2217_v23  ;;  %v487_v32 = vpack.c.bf16 %v471_v30, %v471_v30 }
  0x50   : > { %617 = vmatpush.bf16.msra.mxu3 %v539_v4  ;;  %1719 = vmatmul.msk.bf16.vlgmr.msra.gmra.mxu1 %vm518_vm2, %v2217_v23  ;;  %v548_v33 = vand.u32 %v2207_v6, %v486_v29  ;;  %v1006_v34 = vld [vmem:[#allocation2 + $0x18] sm:$0x77] }
  0x51   : > { %v551_v35 = vand.u32 %v2207_v6, %v487_v32  ;;  %1017 = vst [vmem:[#allocation1 + $0x30] ss:$2 sm:$0xff] %v1006_v34 }
  0x52   : > { %1721 = vmatmul.msk.bf16.vlgmr.msra.gmra.mxu2 %vm518_vm2, %v2217_v23  ;;  %v468_v40 = vld.sshfl [vmem:[#allocation1 + $0x20] sm:$0xff pattern:$0x75316420]  ;;  %v469_v41 = vld.sshfl [vmem:[#allocation1 + $0x28] sm:$0xff pattern:$0x75316420] }
  0x53   : > { %1723 = vmatmul.msk.bf16.vlgmr.msra.gmra.mxu3 %vm518_vm2, %v2217_v23  ;;  %674 = vmatpush.bf16.msrb.mxu2 %v548_v33  ;;  %v484_v42 = vpack.c.bf16 %v468_v40, %v468_v40  ;;  %v485_v43 = vpack.c.bf16 %v469_v41, %v469_v41  ;;  %v2288_v40 = vld [vmem:[#allocation8] sm:$0x1] }
  0x54   : > { %693 = vmatpush.bf16.msrb.mxu3 %v551_v35 }
  0x55   : > { %v1005_v44 = vld [vmem:[#allocation2 + $0x10] sm:$0x77]  ;;  %v542_v45 = vand.u32 %v2207_v6, %v484_v42  ;;  %v545_v46 = vand.u32 %v2207_v6, %v485_v43 }
  0x56   : > { %1015 = vst [vmem:[#allocation1 + $0x20] ss:$2 sm:$0xff] %v1005_v44 }
  0x57   : > { %636 = vmatpush.bf16.msrb.mxu0 %v542_v45  ;;  %655 = vmatpush.bf16.msrb.mxu1 %v545_v46 }
  0x5f   : > { %1718 = vmatmul.msk.bf16.gmra.mxu0 %vm518_vm2, %v2236_v39 }
  0x60   : > { %1720 = vmatmul.msk.bf16.gmra.mxu1 %vm518_vm2, %v2236_v39 }
  0x62   : > { %1722 = vmatmul.msk.bf16.gmra.mxu2 %vm518_vm2, %v2236_v39 }
  0x63   : > { %1724 = vmatmul.msk.bf16.gmra.mxu3 %vm518_vm2, %v2236_v39 }
  0x6f   : > { %1725 = vmatmul.msk.bf16.vlgmr.msrb.gmra.mxu0 %vm518_vm2, %v2217_v23 }
  0x70   : > { %1727 = vmatmul.msk.bf16.vlgmr.msrb.gmra.mxu1 %vm518_vm2, %v2217_v23 }
  0x72   : > { %1729 = vmatmul.msk.bf16.vlgmr.msrb.gmra.mxu2 %vm518_vm2, %v2217_v23 }
  0x73   : > { %1731 = vmatmul.msk.bf16.vlgmr.msrb.gmra.mxu3 %vm518_vm2, %v2217_v23 }
  0x7f   : > { %1726 = vmatmul.msk.bf16.gmra.mxu0 %vm518_vm2, %v2236_v39 }
  0x80   : > { %1728 = vmatmul.msk.bf16.gmra.mxu1 %vm518_vm2, %v2236_v39 }
  0x82   : > { %1730 = vmatmul.msk.bf16.gmra.mxu2 %vm518_vm2, %v2236_v39 }
  0x83   : > { %1732 = vmatmul.msk.bf16.gmra.mxu3 %vm518_vm2, %v2236_v39 }
  0xa2   : > { %v2264_v53 = vpop.permute.xlu0 %500 }
  0xa4   : > { %v2266_v54 = vpop.permute.xlu1 %490 }
  0xab   : > { %v2270_v61 = vpop.permute.xlu0 %505 }
  0xac   : > { %v2272_v62 = vpop.permute.xlu1 %495 }
  0xcc   : > { %v562_v47 = vpop.f32.mrf.mxu0 }
  0xcd   : > { %v581_v48 = vpop.f32.mrf.mxu1  ;;  %v563_v7 = vadd.f32 %v562_v47, %v2266_v54 }
  0xce   : > { %v582_v12 = vadd.f32 %v581_v48, %v2266_v54 }
  0xcf   : > { %v705_v17 = vmax.f32 %v563_v7, 0.0 }
  0xd0   : > { %v706_v20 = vmax.f32 %v582_v12, 0.0 }
  0xd4   : > { %v564_v49 = vpop.f32.mrf.mxu0 }
  0xd5   : > { %v600_v50 = vpop.f32.mrf.mxu2  ;;  %v583_v51 = vpop.f32.mrf.mxu1  ;;  %v565_v8 = vadd.f32 %v564_v49, %v2272_v62 }
  0xd6   : > { %v619_v52 = vpop.f32.mrf.mxu3  ;;  %v584_v13 = vadd.f32 %v583_v51, %v2272_v62  ;;  %v601_v34 = vadd.f32 %v600_v50, %v2266_v54 }
  0xd7   : > { %v713_v18 = vmax.f32 %v565_v8, 0.0  ;;  %v620_v3 = vadd.f32 %v619_v52, %v2266_v54 }
  0xd8   : > { %v714_v21 = vmax.f32 %v584_v13, 0.0  ;;  %v707_v45 = vmax.f32 %v601_v34, 0.0 }
  0xd9   : > { %v737_v28 = vpack.c.bf16 %v713_v18, %v705_v17  ;;  %v708_v47 = vmax.f32 %v620_v3, 0.0  ;;  %v1020_v3 = vld.sshfl [vmem:[#allocation1 + $0x10] sm:$0xff pattern:$0x75316420] }
  0xda   : > { %v738_v31 = vpack.c.bf16 %v714_v21, %v706_v20 }
  0xdc   : > { %v567_v55 = vpop.f32.mrf.mxu0 }
  0xdd   : > { %v602_v56 = vpop.f32.mrf.mxu2  ;;  %v586_v57 = vpop.f32.mrf.mxu1  ;;  %v568_v59 = vadd.f32 %v567_v55, %v2264_v53 }
  0xde   : > { %v621_v58 = vpop.f32.mrf.mxu3  ;;  %v587_v60 = vadd.f32 %v586_v57, %v2264_v53  ;;  %v603_v4 = vadd.f32 %v602_v56, %v2272_v62  ;;  %v392_v56 = vld [vmem:[#allocation4] sm:$0x1] }
  0xdf   : > { %v721_v0 = vmax.f32 %v568_v59, 0.0  ;;  %v622_v32 = vadd.f32 %v621_v58, %v2272_v62  ;;  %755 = vperm.xlu2 %1830, %v392_v56  }
  0xe0   : > { %v722_v9 = vmax.f32 %v587_v60, 0.0  ;;  %v715_v41 = vmax.f32 %v603_v4, 0.0 }
  0xe1   : > { %v716_v43 = vmax.f32 %v622_v32, 0.0 }
  0xe2   : > { %v739_v50 = vpack.c.bf16 %v715_v41, %v707_v45  ;;  %v1021_v41 = vld.sshfl [vmem:[#allocation1 + $0x18] sm:$0xff pattern:$0x75316420] }
  0xe3   : > { %v740_v52 = vpack.c.bf16 %v716_v43, %v708_v47  ;;  %v1037_v56 = vpack.c.bf16 %v1021_v41, %v1021_v41 }
  0xe4   : > { %v569_v63 = vpop.f32.mrf.mxu0 }
  0xe5   : > { %v605_v1 = vpop.f32.mrf.mxu2  ;;  %v570_v2 = vadd.f32 %v569_v63, %v2270_v61  ;;  %v588_v5 = vpop.f32.mrf.mxu1 }
  0xe6   : > { %v624_v10 = vpop.f32.mrf.mxu3  ;;  %v589_v11 = vadd.f32 %v588_v5, %v2270_v61  ;;  %v606_v22 = vadd.f32 %v605_v1, %v2264_v53 }
  0xe7   : > { %v729_v14 = vmax.f32 %v570_v2, 0.0  ;;  %v625_v25 = vadd.f32 %v624_v10, %v2264_v53 }
  0xe8   : > { %v730_v15 = vmax.f32 %v589_v11, 0.0  ;;  %v723_v35 = vmax.f32 %v606_v22, 0.0 }
  0xe9   : > { %v745_v16 = vpack.c.bf16 %v729_v14, %v721_v0  ;;  %v724_v37 = vmax.f32 %v625_v25, 0.0  ;;  %v1019_v14 = vld.sshfl [vmem:[#allocation1 + $0x8] sm:$0xff pattern:$0x75316420] }
  0xea   : > { %v746_v19 = vpack.c.bf16 %v730_v15, %v722_v9  ;;  %v1018_v9 = vld.sshfl [vmem:[#allocation1] sm:$0xff pattern:$0x75316420] }
  0xeb   : > { %769 = vmatpush.bf16.msra.mxu0 %v745_v16 }
  0xec   : > { %782 = vmatpush.bf16.msra.mxu1 %v746_v19  ;;  %v638_v24 = vpop.f32.mrf.mxu0  ;;  %v1034_v19 = vpack.c.bf16 %v1018_v9, %v1018_v9  ;;  %v1022_v9 = vld.sshfl [vmem:[#allocation1 + $0x20] sm:$0xff pattern:$0x75316420] }
  0xed   : > { %v607_v26 = vpop.f32.mrf.mxu2  ;;  %v657_v27 = vpop.f32.mrf.mxu1  ;;  %v639_v1 = vadd.f32 %v638_v24, %v2266_v54  ;;  %v1035_v24 = vpack.c.bf16 %v1019_v14, %v1019_v14 }
  0xee   : > { %v608_v29 = vadd.f32 %v607_v26, %v2270_v61  ;;  %v626_v30 = vpop.f32.mrf.mxu3  ;;  %v658_v10 = vadd.f32 %v657_v27, %v2266_v54  ;;  %v1043_v4 = vand.u32 %v1034_v19, %v2207_v6 }
  0xef   : > { %v627_v33 = vadd.f32 %v626_v30, %v2270_v61  ;;  %770 = vmatpush.bf16.msra.mxu0 %v737_v28  ;;  %v709_v20 = vmax.f32 %v639_v1, 0.0  ;;  %v1046_v32 = vand.u32 %v1035_v24, %v2207_v6 }
  0xf0   : > { %v731_v36 = vmax.f32 %v608_v29, 0.0  ;;  %783 = vmatpush.bf16.msra.mxu1 %v738_v31  ;;  %v710_v25 = vmax.f32 %v658_v10, 0.0  ;;  %v1023_v10 = vld.sshfl [vmem:[#allocation1 + $0x28] sm:$0xff pattern:$0x75316420] }
  0xf1   : > { %v732_v38 = vmax.f32 %v627_v33, 0.0 }
  0xf2   : > { %v747_v42 = vpack.c.bf16 %v731_v36, %v723_v35  ;;  %1733 = vmatmul.msk.bf16.vlgmr.msra.gmra.mxu0 %vm759_vm3, %v2288_v40 }
  0xf3   : > { %v748_v44 = vpack.c.bf16 %v732_v38, %v724_v37  ;;  %1734 = vmatmul.msk.bf16.vlgmr.msra.gmra.mxu1 %vm759_vm3, %v2288_v40 }
  0xf4   : > { %795 = vmatpush.bf16.msra.mxu2 %v747_v42  ;;  %v640_v46 = vpop.f32.mrf.mxu0 }
  0xf5   : > { %808 = vmatpush.bf16.msra.mxu3 %v748_v44  ;;  %v676_v48 = vpop.f32.mrf.mxu2  ;;  %v659_v49 = vpop.f32.mrf.mxu1  ;;  %v641_v2 = vadd.f32 %v640_v46, %v2272_v62 }
  0xf6   : > { %v695_v51 = vpop.f32.mrf.mxu3  ;;  %v660_v11 = vadd.f32 %v659_v49, %v2272_v62  ;;  %v677_v42 = vadd.f32 %v676_v48, %v2266_v54  ;;  %v1036_v49 = vpack.c.bf16 %v1020_v3, %v1020_v3 }
  0xf7   : > { %v717_v21 = vmax.f32 %v641_v2, 0.0  ;;  %v696_v45 = vadd.f32 %v695_v51, %v2266_v54  ;;  %v1052_v2 = vand.u32 %v1037_v56, %v2207_v6 }
  0xf8   : > { %796 = vmatpush.bf16.msra.mxu2 %v739_v50  ;;  %v718_v26 = vmax.f32 %v660_v11, 0.0  ;;  %v1024_v50 = vld.sshfl [vmem:[#allocation1 + $0x30] sm:$0xff pattern:$0x75316420]  ;;  %v1038_v11 = vpack.c.bf16 %v1022_v9, %v1022_v9 }
  0xf9   : > { %809 = vmatpush.bf16.msra.mxu3 %v740_v52  ;;  %v741_v29 = vpack.c.bf16 %v717_v21, %v709_v20  ;;  %v1040_v51 = vpack.c.bf16 %v1024_v50, %v1024_v50 }
  0xfa   : > { %v742_v33 = vpack.c.bf16 %v718_v26, %v710_v25 }
  0xfb   : > { %1735 = vmatmul.msk.bf16.vlgmr.msra.gmra.mxu2 %vm759_vm3, %v2288_v40 }
  0xfc   : > { %1736 = vmatmul.msk.bf16.vlgmr.msra.gmra.mxu3 %vm759_vm3, %v2288_v40  ;;  %v643_v55 = vpop.f32.mrf.mxu0 }
  0xfd   : > { %v678_v57 = vpop.f32.mrf.mxu2  ;;  %v662_v58 = vpop.f32.mrf.mxu1  ;;  %v644_v60 = vadd.f32 %v643_v55, %v2264_v53 }
  0xfe   : > { %v697_v59 = vpop.f32.mrf.mxu3  ;;  %v663_v63 = vadd.f32 %v662_v58, %v2264_v53  ;;  %v679_v34 = vadd.f32 %v678_v57, %v2272_v62  ;;  %v1025_v57 = vld.sshfl [vmem:[#allocation1 + $0x38] sm:$0xff pattern:$0x75316420] }
  0xff   : > { %v725_v15 = vmax.f32 %v644_v60, 0.0  ;;  %v698_v37 = vadd.f32 %v697_v59, %v2272_v62  ;;  %v711_v59 = vmax.f32 %v677_v42, 0.0  ;;  %v712_v60 = vmax.f32 %v696_v45, 0.0 }
 0x100   : > { %v726_v17 = vmax.f32 %v663_v63, 0.0  ;;  %v719_v52 = vmax.f32 %v679_v34, 0.0  ;;  %v1049_v63 = vand.u32 %v1036_v49, %v2207_v6 }
 0x101   : > { %v720_v58 = vmax.f32 %v698_v37, 0.0 }
 0x102   : > { %v743_v1 = vpack.c.bf16 %v719_v52, %v711_v59 }
 0x104   : > { %v645_v0 = vpop.f32.mrf.mxu0 }
 0x105   : > { %v681_v5 = vpop.f32.mrf.mxu2  ;;  %v646_v7 = vadd.f32 %v645_v0, %v2270_v61  ;;  %v664_v8 = vpop.f32.mrf.mxu1  ;;  %v1041_v0 = vpack.c.bf16 %v1025_v57, %v1025_v57 }
 0x106   : > { %v700_v12 = vpop.f32.mrf.mxu3  ;;  %v665_v13 = vadd.f32 %v664_v8, %v2270_v61  ;;  %v682_v27 = vadd.f32 %v681_v5, %v2264_v53  ;;  %v744_v5 = vpack.c.bf16 %v720_v58, %v712_v60 }
 0x107   : > { %v733_v16 = vmax.f32 %v646_v7, 0.0  ;;  %v701_v30 = vadd.f32 %v700_v12, %v2264_v53  ;;  %v1061_v7 = vand.u32 %v1040_v51, %v2207_v6  ;;  %v1064_v8 = vand.u32 %v1041_v0, %v2207_v6 }
 0x108   : > { %v734_v18 = vmax.f32 %v665_v13, 0.0  ;;  %v727_v43 = vmax.f32 %v682_v27, 0.0  ;;  %v1039_v12 = vpack.c.bf16 %v1023_v10, %v1023_v10  ;;  %v1055_v13 = vand.u32 %v1038_v11, %v2207_v6 }
 0x109   : > { %v749_v22 = vpack.c.bf16 %v733_v16, %v725_v15  ;;  %v728_v46 = vmax.f32 %v701_v30, 0.0 }
 0x10a   : > { %v750_v28 = vpack.c.bf16 %v734_v18, %v726_v17  ;;  %v1058_v14 = vand.u32 %v1039_v12, %v2207_v6 }
 0x10b   : > { %821 = vmatpush.bf16.msrb.mxu0 %v749_v22 }
 0x10c   : > { %834 = vmatpush.bf16.msrb.mxu1 %v750_v28 }
 0x10d   : > { %v683_v31 = vpop.f32.mrf.mxu2 }
 0x10e   : > { %v684_v35 = vadd.f32 %v683_v31, %v2270_v61  ;;  %v702_v36 = vpop.f32.mrf.mxu3 }
 0x10f   : > { %v703_v38 = vadd.f32 %v702_v36, %v2270_v61  ;;  %822 = vmatpush.bf16.msrb.mxu0 %v741_v29 }
 0x110   : > { %v735_v44 = vmax.f32 %v684_v35, 0.0  ;;  %835 = vmatpush.bf16.msrb.mxu1 %v742_v33 }
 0x111   : > { %v736_v47 = vmax.f32 %v703_v38, 0.0 }
 0x112   : > { %v751_v55 = vpack.c.bf16 %v735_v44, %v727_v43  ;;  %1737 = vmatmul.msk.bf16.vlgmr.msrb.gmra.mxu0 %vm759_vm3, %v2288_v40 }
 0x113   : > { %1073 = vmatpush.bf16.msra.mxu0 %v1043_v4  ;;  %v752_v48 = vpack.c.bf16 %v736_v47, %v728_v46  ;;  %1738 = vmatmul.msk.bf16.vlgmr.msrb.gmra.mxu1 %vm759_vm3, %v2288_v40 }
 0x114   : > { %1092 = vmatpush.bf16.msra.mxu1 %v1046_v32  ;;  %847 = vmatpush.bf16.msrb.mxu2 %v751_v55 }
 0x115   : > { %860 = vmatpush.bf16.msrb.mxu3 %v752_v48 }
 0x117   : > { %1149 = vmatpush.bf16.msrb.mxu0 %v1055_v13 }
 0x118   : > { %848 = vmatpush.bf16.msrb.mxu2 %v743_v1  ;;  %1168 = vmatpush.bf16.msrb.mxu1 %v1058_v14 }
 0x119   : > { %861 = vmatpush.bf16.msrb.mxu3 %v744_v5 }
 0x11b   : > { %1739 = vmatmul.msk.bf16.vlgmr.msrb.gmra.mxu2 %vm759_vm3, %v2288_v40 }
 0x11c   : > { %1111 = vmatpush.bf16.msra.mxu2 %v1049_v63  ;;  %1740 = vmatmul.msk.bf16.vlgmr.msrb.gmra.mxu3 %vm759_vm3, %v2288_v40 }
 0x11d   : > { %1130 = vmatpush.bf16.msra.mxu3 %v1052_v2 }
 0x120   : > { %1187 = vmatpush.bf16.msrb.mxu2 %v1061_v7 }
 0x121   : > { %1206 = vmatpush.bf16.msrb.mxu3 %v1064_v8 }
 0x122   : > { %1749 = vmatmul.msk.bf16.vlgmr.msra.gmra.mxu0 %vm518_vm2, %v2217_v23 }
 0x123   : > { %1751 = vmatmul.msk.bf16.vlgmr.msra.gmra.mxu1 %vm518_vm2, %v2217_v23 }
 0x12b   : > { %1753 = vmatmul.msk.bf16.vlgmr.msra.gmra.mxu2 %vm518_vm2, %v2217_v23 }
 0x12c   : > { %1755 = vmatmul.msk.bf16.vlgmr.msra.gmra.mxu3 %vm518_vm2, %v2217_v23 }
 0x132   : > { %1750 = vmatmul.msk.bf16.gmra.mxu0 %vm518_vm2, %v2236_v39 }
 0x133   : > { %1752 = vmatmul.msk.bf16.gmra.mxu1 %vm518_vm2, %v2236_v39 }
 0x139   : > { %v756_v6 = vpop.permute.xlu2 %755 }
 0x13a   : > { %v2362_v15 = vperm.slane %v756_v6, 0 }
 0x13b   : > { %1754 = vmatmul.msk.bf16.gmra.mxu2 %vm518_vm2, %v2236_v39 }
 0x13c   : > { %1756 = vmatmul.msk.bf16.gmra.mxu3 %vm518_vm2, %v2236_v39 }
 0x142   : > { %1757 = vmatmul.msk.bf16.vlgmr.msrb.gmra.mxu0 %vm518_vm2, %v2217_v23 }
 0x143   : > { %1759 = vmatmul.msk.bf16.vlgmr.msrb.gmra.mxu1 %vm518_vm2, %v2217_v23 }
 0x14b   : > { %1761 = vmatmul.msk.bf16.vlgmr.msrb.gmra.mxu2 %vm518_vm2, %v2217_v23 }
 0x14c   : > { %1763 = vmatmul.msk.bf16.vlgmr.msrb.gmra.mxu3 %vm518_vm2, %v2217_v23 }
 0x152   : > { %1758 = vmatmul.msk.bf16.gmra.mxu0 %vm518_vm2, %v2236_v39 }
 0x153   : > { %1760 = vmatmul.msk.bf16.gmra.mxu1 %vm518_vm2, %v2236_v39 }
 0x15b   : > { %1762 = vmatmul.msk.bf16.gmra.mxu2 %vm518_vm2, %v2236_v39 }
 0x15c   : > { %1764 = vmatmul.msk.bf16.gmra.mxu3 %vm518_vm2, %v2236_v39 }
 0x16f   : > { %v772_v16 = vpop.f32.mrf.mxu0 }
 0x170   : > { %v773_v17 = vadd.f32 %v772_v16, %v2362_v15  ;;  %v785_v18 = vpop.f32.mrf.mxu1 }
 0x171   : > { %v786_v23 = vadd.f32 %v785_v18, %v2362_v15 }
 0x172   : > { %v875_v19 = vand.u32 2147483647, %v773_v17  ;;  %v867_v38 = vmax.f32 %v773_v17, 0.0 }
 0x173   : > { %v876_v20 = vand.u32 2147483647, %v786_v23  ;;  %v868_v44 = vmax.f32 %v786_v23, 0.0 }
 0x174   : > { %v883_v21 = vsub.f32 0.0, %v875_v19 }
 0x175   : > { %v884_v22 = vsub.f32 0.0, %v876_v20 }
 0x176   : > { %v891_v24 = vmul.f32 1.442695, %v883_v21 }
 0x177   : > { %v893_v25 = vmul.f32 1.442695, %v884_v22  ;;  %v774_v26 = vpop.f32.mrf.mxu0 }
 0x178   : > { %1847 = vpow2.f32 %v891_v24  ;;  %v787_v28 = vpop.f32.mrf.mxu1 }
 0x179   : > { %1849 = vpow2.f32 %v893_v25 }
 0x17e   : > { %v1848_v39 = vpop.eup %1847  ;;  %v798_v27 = vpop.f32.mrf.mxu2 }
 0x17f   : > { %v1850_v4 = vpop.eup %1849  ;;  %v907_v29 = vadd.f32 1.0, %v1848_v39  ;;  %v799_v30 = vadd.f32 %v798_v27, %v2362_v15  ;;  %v811_v31 = vpop.f32.mrf.mxu3 }
 0x180   : > { %v908_v32 = vadd.f32 1.0, %v1850_v4  ;;  %v812_v33 = vadd.f32 %v811_v31, %v2362_v15 }
 0x181   : > { %1851 = vlog2.f32 %v907_v29  ;;  %v877_v34 = vand.u32 2147483647, %v799_v30  ;;  %v869_v9 = vmax.f32 %v799_v30, 0.0 }
 0x182   : > { %1853 = vlog2.f32 %v908_v32  ;;  %v878_v35 = vand.u32 2147483647, %v812_v33  ;;  %v870_v13 = vmax.f32 %v812_v33, 0.0 }
 0x183   : > { %v885_v36 = vsub.f32 0.0, %v877_v34 }
 0x184   : > { %v886_v3 = vsub.f32 0.0, %v878_v35 }
 0x185   : > { %v895_v37 = vmul.f32 1.442695, %v885_v36 }
 0x186   : > { %v897_v41 = vmul.f32 1.442695, %v886_v3  ;;  %v800_v42 = vpop.f32.mrf.mxu2 }
 0x187   : > { %v1852_v43 = vpop.eup %1851  ;;  %1855 = vpow2.f32 %v895_v37  ;;  %v813_v45 = vpop.f32.mrf.mxu3 }
 0x188   : > { %v1854_v46 = vpop.eup %1853  ;;  %v916_v47 = vmul.f32 0.6931472, %v1852_v43  ;;  %1857 = vpow2.f32 %v897_v41  ;;  %v1450_v43 = vld [vmem:[%s2134_s28] sm:$0xff] }
 0x189   : > { %v918_v49 = vmul.f32 0.6931472, %v1854_v46 }
 0x18a   : > { %v931_v50 = vadd.f32 %v916_v47, %v867_v38  ;;  %v1456_v47 = vrot.slane %v1450_v43, 7 }
 0x18b   : > { %v932_v52 = vadd.f32 %v918_v49, %v868_v44  ;;  %v1451_v44 = vld [vmem:[%s2134_s28 + $0x8] sm:$0xff] }
 0x18c   : > { %939 = vst [vmem:[#allocation3] sm:$0x1] %v931_v50  ;;  %v1457_v49 = vrot.slane %v1451_v44, 7 }
 0x18d   : > { %v1856_v55 = vpop.eup %1855  ;;  %940 = vst [vmem:[#allocation3 + $0x1] sm:$0x1] %v932_v52 }
 0x18e   : > { %v1858_v56 = vpop.eup %1857  ;;  %v909_v57 = vadd.f32 1.0, %v1856_v55 }
 0x18f   : > { %v910_v58 = vadd.f32 1.0, %v1858_v56  ;;  %v824_v48 = vpop.f32.mrf.mxu0 }
 0x190   : > { %1859 = vlog2.f32 %v909_v57  ;;  %v825_v59 = vadd.f32 %v824_v48, %v2362_v15  ;;  %v837_v51 = vpop.f32.mrf.mxu1 }
 0x191   : > { %1861 = vlog2.f32 %v910_v58  ;;  %v838_v60 = vadd.f32 %v837_v51, %v2362_v15 }
 0x192   : > { %v879_v63 = vand.u32 2147483647, %v825_v59  ;;  %v871_v3 = vmax.f32 %v825_v59, 0.0  ;;  %v1458_v59 = vsel %vm525_vm0, %v1456_v47, %v1457_v49 }
 0x193   : > { %v880_v0 = vand.u32 2147483647, %v838_v60  ;;  %v872_v41 = vmax.f32 %v838_v60, 0.0  ;;  %v1461_v60 = vsub.f32 %v1450_v43, %v1456_v47 }
 0x194   : > { %v887_v1 = vsub.f32 0.0, %v879_v63  ;;  %v1462_v63 = vsub.f32 %v1451_v44, %v1458_v59 }
 0x195   : > { %v888_v2 = vsub.f32 0.0, %v880_v0 }
 0x196   : > { %v1860_v5 = vpop.eup %1859  ;;  %v899_v7 = vmul.f32 1.442695, %v887_v1  ;;  %v1466_v1 = vrot.slane %v1461_v60, 1 }
 0x197   : > { %v1862_v8 = vpop.eup %1861  ;;  %v920_v10 = vmul.f32 0.6931472, %v1860_v5  ;;  %v901_v11 = vmul.f32 1.442695, %v888_v2  ;;  %v826_v12 = vpop.f32.mrf.mxu0 }
 0x198   : > { %v922_v14 = vmul.f32 0.6931472, %v1862_v8  ;;  %1863 = vpow2.f32 %v899_v7  ;;  %v839_v6 = vpop.f32.mrf.mxu1 }
 0x199   : > { %v933_v16 = vadd.f32 %v920_v10, %v869_v9  ;;  %1865 = vpow2.f32 %v901_v11  ;;  %v2391_v10 = vrot.slane %v1462_v63, 1 }
 0x19a   : > { %v934_v17 = vadd.f32 %v922_v14, %v870_v13 }
 0x19b   : > { %941 = vst [vmem:[#allocation3 + $0x2] sm:$0x1] %v933_v16 }
 0x19c   : > { %942 = vst [vmem:[#allocation3 + $0x3] sm:$0x1] %v934_v17 }
 0x19e   : > { %v1864_v18 = vpop.eup %1863  ;;  %v850_v23 = vpop.f32.mrf.mxu2 }
 0x19f   : > { %v1866_v19 = vpop.eup %1865  ;;  %v911_v20 = vadd.f32 1.0, %v1864_v18  ;;  %v2371_v21 = vadd.f32 %v850_v23, %v2362_v15  ;;  %v863_v22 = vpop.f32.mrf.mxu3 }
 0x1a0   : > { %v2373_v24 = vpop.f32.mrf.mxu0  ;;  %v912_v25 = vadd.f32 1.0, %v1866_v19  ;;  %v2376_v26 = vadd.f32 %v863_v22, %v2362_v15  ;;  %v2378_v28 = vpop.f32.mrf.mxu1 }
 0x1a1   : > { %1867 = vlog2.f32 %v911_v20  ;;  %v881_v39 = vand.u32 2147483647, %v2371_v21  ;;  %v873_v8 = vmax.f32 %v2371_v21, 0.0  ;;  %v1076_v22 = vadd.f32 %v2373_v24, %v2266_v54 }
 0x1a2   : > { %1869 = vlog2.f32 %v912_v25  ;;  %v882_v27 = vand.u32 2147483647, %v2376_v26  ;;  %v874_v14 = vmax.f32 %v2376_v26, 0.0  ;;  %v1095_v26 = vadd.f32 %v2378_v28, %v2266_v54 }
 0x1a3   : > { %v889_v4 = vsub.f32 0.0, %v881_v39 }
 0x1a4   : > { %v890_v29 = vsub.f32 0.0, %v882_v27  ;;  %v1219_v24 = vmax.f32 %v1095_v26, 0.0 }
 0x1a5   : > { %v903_v30 = vmul.f32 1.442695, %v889_v4 }
 0x1a6   : > { %v905_v31 = vmul.f32 1.442695, %v890_v29  ;;  %v852_v32 = vpop.f32.mrf.mxu2 }
 0x1a7   : > { %v1868_v33 = vpop.eup %1867  ;;  %1871 = vpow2.f32 %v903_v30  ;;  %v865_v34 = vpop.f32.mrf.mxu3 }
 0x1a8   : > { %v1077_v35 = vpop.f32.mrf.mxu0  ;;  %v1870_v36 = vpop.eup %1869  ;;  %v924_v37 = vmul.f32 0.6931472, %v1868_v33  ;;  %1873 = vpow2.f32 %v905_v31  ;;  %v1468_v31 = vsel %vm1465_vm4, %v1466_v1, %v2391_v10  ;;  %v1218_v34 = vmax.f32 %v1076_v22, 0.0 }
 0x1a9   : > { %v1096_v38 = vpop.f32.mrf.mxu1  ;;  %v926_v42 = vmul.f32 0.6931472, %v1870_v36  ;;  %v1078_v16 = vadd.f32 %v1077_v35, %v2272_v62 }
 0x1aa   : > { %v935_v45 = vadd.f32 %v924_v37, %v871_v3  ;;  %v1097_v19 = vadd.f32 %v1096_v38, %v2272_v62  ;;  %v1472_v37 = vsub.f32 0.0, %v1468_v31 }
 0x1ab   : > { %v936_v46 = vadd.f32 %v926_v42, %v872_v41  ;;  %v1226_v29 = vmax.f32 %v1078_v16, 0.0 }
 0x1ac   : > { %943 = vst [vmem:[#allocation3 + $0x4] sm:$0x1] %v935_v45  ;;  %v1227_v32 = vmax.f32 %v1097_v19, 0.0 }
 0x1ad   : > { %v1872_v50 = vpop.eup %1871  ;;  %944 = vst [vmem:[#allocation3 + $0x5] sm:$0x1] %v936_v46  ;;  %v1250_v38 = vpack.c.bf16 %v1226_v29, %v1218_v34 }
 0x1ae   : > { %v1874_v52 = vpop.eup %1873  ;;  %v913_v55 = vadd.f32 1.0, %v1872_v50  ;;  %v2384_v56 = vpop.f32.mrf.mxu2  ;;  %v1251_v41 = vpack.c.bf16 %v1227_v32, %v1219_v24 }
 0x1af   : > { %v914_v57 = vadd.f32 1.0, %v1874_v52  ;;  %v2386_v58 = vpop.f32.mrf.mxu3 }
 0x1b0   : > { %v1080_v48 = vpop.f32.mrf.mxu0  ;;  %1875 = vlog2.f32 %v913_v55 }
 0x1b1   : > { %v1099_v51 = vpop.f32.mrf.mxu1  ;;  %1877 = vlog2.f32 %v914_v57  ;;  %v1081_v2 = vadd.f32 %v1080_v48, %v2264_v53 }
 0x1b2   : > { %v1100_v11 = vadd.f32 %v1099_v51, %v2264_v53  ;;  %v1114_v51 = vadd.f32 %v2384_v56, %v2266_v54 }
 0x1b3   : > { %v1234_v25 = vmax.f32 %v1081_v2, 0.0 }
 0x1b4   : > { %v1235_v27 = vmax.f32 %v1100_v11, 0.0  ;;  %v1220_v11 = vmax.f32 %v1114_v51, 0.0 }
 0x1b6   : > { %v1876_v0 = vpop.eup %1875  ;;  %v1115_v5 = vpop.f32.mrf.mxu2 }
 0x1b7   : > { %v1878_v7 = vpop.eup %1877  ;;  %v928_v9 = vmul.f32 0.6931472, %v1876_v0  ;;  %v1134_v12 = vpop.f32.mrf.mxu3  ;;  %v1116_v49 = vadd.f32 %v1115_v5, %v2272_v62  ;;  %v1133_v0 = vadd.f32 %v2386_v58, %v2266_v54 }
 0x1b8   : > { %v1082_v13 = vpop.f32.mrf.mxu0  ;;  %v930_v6 = vmul.f32 0.6931472, %v1878_v7  ;;  %v1135_v57 = vadd.f32 %v1134_v12, %v2272_v62 }
 0x1b9   : > { %v1083_v17 = vadd.f32 %v1082_v13, %v2270_v61  ;;  %v1101_v18 = vpop.f32.mrf.mxu1  ;;  %v937_v23 = vadd.f32 %v928_v9, %v873_v8  ;;  %v1228_v5 = vmax.f32 %v1116_v49, 0.0  ;;  %v1221_v13 = vmax.f32 %v1133_v0, 0.0 }
 0x1ba   : > { %v1102_v20 = vadd.f32 %v1101_v18, %v2270_v61  ;;  %v938_v21 = vadd.f32 %v930_v6, %v874_v14  ;;  %v1229_v8 = vmax.f32 %v1135_v57, 0.0 }
 0x1bb   : > { %v1242_v39 = vmax.f32 %v1083_v17, 0.0  ;;  %945 = vst [vmem:[#allocation3 + $0x6] sm:$0x1] %v937_v23  ;;  %v1252_v6 = vpack.c.bf16 %v1228_v5, %v1220_v11 }
 0x1bc   : > { %v1243_v4 = vmax.f32 %v1102_v20, 0.0  ;;  %946 = vst [vmem:[#allocation3 + $0x7] sm:$0x1] %v938_v21  ;;  %v1253_v17 = vpack.c.bf16 %v1229_v8, %v1221_v13 }
 0x1bd   : > { %v1258_v30 = vpack.c.bf16 %v1242_v39, %v1234_v25 }
 0x1be   : > { %v1259_v33 = vpack.c.bf16 %v1243_v4, %v1235_v27  ;;  %v1118_v35 = vpop.f32.mrf.mxu2 }
 0x1bf   : > { %1272 = vmatpush.bf16.msra.mxu0 %v1258_v30  ;;  %v1137_v36 = vpop.f32.mrf.mxu3  ;;  %v1119_v44 = vadd.f32 %v1118_v35, %v2264_v53 }
 0x1c0   : > { %1285 = vmatpush.bf16.msra.mxu1 %v1259_v33  ;;  %v1151_v3 = vpop.f32.mrf.mxu0  ;;  %v1138_v46 = vadd.f32 %v1137_v36, %v2264_v53 }
 0x1c1   : > { %v2405_v28 = vpop.f32.mrf.mxu1  ;;  %v1236_v60 = vmax.f32 %v1119_v44, 0.0  ;;  %v1152_v31 = vadd.f32 %v1151_v3, %v2266_v54 }
 0x1c2   : > { %v1237_v1 = vmax.f32 %v1138_v46, 0.0  ;;  %v1171_v35 = vadd.f32 %v2405_v28, %v2266_v54 }
 0x1c3   : > { %1273 = vmatpush.bf16.msra.mxu0 %v1250_v38  ;;  %v1452_v42 = vld [vmem:[#allocation3] sm:$0xff] }
 0x1c4   : > { %1286 = vmatpush.bf16.msra.mxu1 %v1251_v41  ;;  %v1474_v43 = vmul.f32 %v1472_v37, %v1452_v42  ;;  %v1223_v3 = vmax.f32 %v1171_v35, 0.0 }
 0x1c6   : > { %1765 = vmatmul.msk.bf16.vlgmr.msra.gmra.mxu0 %vm759_vm3, %v2288_v40  ;;  %v1476_v45 = vmul.f32 1.442695, %v1474_v43  ;;  %v1120_v47 = vpop.f32.mrf.mxu2 }
 0x1c7   : > { %1766 = vmatmul.msk.bf16.vlgmr.msra.gmra.mxu1 %vm759_vm3, %v2288_v40  ;;  %v1121_v50 = vadd.f32 %v1120_v47, %v2270_v61  ;;  %v1139_v52 = vpop.f32.mrf.mxu3 }
 0x1c8   : > { %v1153_v55 = vpop.f32.mrf.mxu0  ;;  %1879 = vpow2.f32 %v1476_v45  ;;  %v1140_v48 = vadd.f32 %v1139_v52, %v2270_v61  ;;  %v1222_v45 = vmax.f32 %v1152_v31, 0.0 }
 0x1c9   : > { %v1172_v59 = vpop.f32.mrf.mxu1  ;;  %v1244_v63 = vmax.f32 %v1121_v50, 0.0  ;;  %v1154_v26 = vadd.f32 %v1153_v55, %v2272_v62 }
 0x1ca   : > { %v1245_v2 = vmax.f32 %v1140_v48, 0.0  ;;  %v1173_v29 = vadd.f32 %v1172_v59, %v2272_v62 }
 0x1cb   : > { %v1260_v7 = vpack.c.bf16 %v1244_v63, %v1236_v60  ;;  %v1230_v38 = vmax.f32 %v1154_v26, 0.0 }
 0x1cc   : > { %v1261_v9 = vpack.c.bf16 %v1245_v2, %v1237_v1  ;;  %v1231_v42 = vmax.f32 %v1173_v29, 0.0 }
 0x1cd   : > { %1298 = vmatpush.bf16.msra.mxu2 %v1260_v7  ;;  %v1254_v49 = vpack.c.bf16 %v1230_v38, %v1222_v45 }
 0x1ce   : > { %v2421_v12 = vpop.eup %1879  ;;  %1311 = vmatpush.bf16.msra.mxu3 %v1261_v9  ;;  %v2423_v14 = vpop.f32.mrf.mxu2  ;;  %v1255_v52 = vpack.c.bf16 %v1231_v42, %v1223_v3 }
 0x1cf   : > { %v1480_v56 = vsub.f32 1.0, %v2421_v12  ;;  %v2426_v16 = vpop.f32.mrf.mxu3 }
 0x1d0   : > { %v1156_v58 = vpop.f32.mrf.mxu0  ;;  %v1209_v13 = vadd.f32 %v2426_v16, %v2266_v54 }
 0x1d1   : > { %v1175_v18 = vpop.f32.mrf.mxu1  ;;  %v1482_v23 = vsub.f32 1.0, %v1480_v56  ;;  %1299 = vmatpush.bf16.msra.mxu2 %v1252_v6  ;;  %v1157_v20 = vadd.f32 %v1156_v58, %v2264_v53 }
 0x1d2   : > { %1312 = vmatpush.bf16.msra.mxu3 %v1253_v17  ;;  %v1176_v22 = vadd.f32 %v1175_v18, %v2264_v53 }
 0x1d3   : > { %v1484_v19 = vadd.f32 1e-15, %v1482_v23  ;;  %v1238_v32 = vmax.f32 %v1157_v20, 0.0 }
 0x1d4   : > { %1767 = vmatmul.msk.bf16.vlgmr.msra.gmra.mxu2 %vm759_vm3, %v2288_v40  ;;  %v1239_v24 = vmax.f32 %v1176_v22, 0.0 }
 0x1d5   : > { %1881 = vlog2.f32 %v1484_v19  ;;  %1768 = vmatmul.msk.bf16.vlgmr.msra.gmra.mxu3 %vm759_vm3, %v2288_v40 }
 0x1d6   : > { %v1191_v21 = vpop.f32.mrf.mxu2 }
 0x1d7   : > { %v1210_v25 = vpop.f32.mrf.mxu3  ;;  %v1192_v63 = vadd.f32 %v1191_v21, %v2272_v62  ;;  %v1225_v21 = vmax.f32 %v1209_v13, 0.0 }
 0x1d8   : > { %v1158_v39 = vpop.f32.mrf.mxu0  ;;  %v1211_v5 = vadd.f32 %v1210_v25, %v2272_v62 }
 0x1d9   : > { %v1159_v27 = vadd.f32 %v1158_v39, %v2270_v61  ;;  %v1177_v4 = vpop.f32.mrf.mxu1  ;;  %v1232_v18 = vmax.f32 %v1192_v63, 0.0 }
 0x1da   : > { %v1178_v30 = vadd.f32 %v1177_v4, %v2270_v61  ;;  %v1233_v23 = vmax.f32 %v1211_v5, 0.0 }
 0x1db   : > { %v1246_v33 = vmax.f32 %v1159_v27, 0.0  ;;  %v1882_v34 = vpop.eup %1881 }
 0x1dc   : > { %v1247_v36 = vmax.f32 %v1178_v30, 0.0  ;;  %v2443_v37 = vmul.f32 0.6931472, %v1882_v34  ;;  %v1257_v22 = vpack.c.bf16 %v1233_v23, %v1225_v21 }
 0x1dd   : > { %v1262_v41 = vpack.c.bf16 %v1246_v33, %v1238_v32 }
 0x1de   : > { %v1263_v43 = vpack.c.bf16 %v1247_v36, %v1239_v24  ;;  %v1492_v44 = vrot.slane %v2443_v37, 7  ;;  %v1194_v46 = vpop.f32.mrf.mxu2 }
 0x1df   : > { %1324 = vmatpush.bf16.msrb.mxu0 %v1262_v41  ;;  %v1213_v47 = vpop.f32.mrf.mxu3  ;;  %v1195_v48 = vadd.f32 %v1194_v46, %v2264_v53 }
 0x1e0   : > { %1337 = vmatpush.bf16.msrb.mxu1 %v1263_v43  ;;  %v2449_v28 = vsel %vm525_vm0, 0.0, %v1492_v44  ;;  %v1214_v51 = vadd.f32 %v1213_v47, %v2264_v53  ;;  %v1190_v53 = vadd.f32 %v2423_v14, %v2266_v54 }
 0x1e1   : > { %v1499_v50 = vrot.slane %v2449_v28, 7  ;;  %v1240_v9 = vmax.f32 %v1195_v48, 0.0 }
 0x1e2   : > { %v1241_v6 = vmax.f32 %v1214_v51, 0.0  ;;  %v1224_v14 = vmax.f32 %v1190_v53, 0.0 }
 0x1e3   : > { %1325 = vmatpush.bf16.msrb.mxu0 %v1254_v49  ;;  %v1504_v55 = vsel %vm525_vm0, 0.0, %v1499_v50 }
 0x1e4   : > { %1338 = vmatpush.bf16.msrb.mxu1 %v1255_v52  ;;  %v2456_v57 = vadd.f32 %v1504_v55, %v2449_v28  ;;  %v1256_v54 = vpack.c.bf16 %v1232_v18, %v1224_v14 }
 0x1e6   : > { %1769 = vmatmul.msk.bf16.vlgmr.msrb.gmra.mxu0 %vm759_vm3, %v2288_v40  ;;  %v1509_v59 = vrot.slane %v2456_v57, 6  ;;  %v1196_v60 = vpop.f32.mrf.mxu2 }
 0x1e7   : > { %1770 = vmatmul.msk.bf16.vlgmr.msrb.gmra.mxu1 %vm759_vm3, %v2288_v40  ;;  %v1197_v0 = vadd.f32 %v1196_v60, %v2270_v61  ;;  %v1215_v1 = vpop.f32.mrf.mxu3 }
 0x1e8   : > { %v1514_v2 = vsel %vm526_vm1, 0.0, %v1509_v59  ;;  %v1216_v7 = vadd.f32 %v1215_v1, %v2270_v61 }
 0x1e9   : > { %v2473_v8 = vadd.f32 %v1514_v2, %v2456_v57  ;;  %v1248_v11 = vmax.f32 %v1197_v0, 0.0 }
 0x1ea   : > { %v1249_v58 = vmax.f32 %v1216_v7, 0.0 }
 0x1eb   : > { %v1520_v17 = vrot.slane %v2473_v8, 4  ;;  %v1264_v62 = vpack.c.bf16 %v1248_v11, %v1240_v9 }
 0x1ec   : > { %v1265_v61 = vpack.c.bf16 %v1249_v58, %v1241_v6 }
 0x1ed   : > { %v1525_v19 = vsel %vm1519_vm5, 0.0, %v1520_v17  ;;  %1350 = vmatpush.bf16.msrb.mxu2 %v1264_v62 }
 0x1ee   : > { %v2484_v20 = vadd.f32 %v1525_v19, %v2473_v8  ;;  %1363 = vmatpush.bf16.msrb.mxu3 %v1265_v61 }
 0x1f0   : > { %v1530_v16 = vmul.f32 1.442695, %v2484_v20 }
 0x1f1   : > { %1351 = vmatpush.bf16.msrb.mxu2 %v1256_v54 }
 0x1f2   : > { %1883 = vpow2.f32 %v1530_v16  ;;  %1364 = vmatpush.bf16.msrb.mxu3 %v1257_v22 }
 0x1f4   : > { %1771 = vmatmul.msk.bf16.vlgmr.msrb.gmra.mxu2 %vm759_vm3, %v2288_v40 }
 0x1f5   : > { %1772 = vmatmul.msk.bf16.vlgmr.msrb.gmra.mxu3 %vm759_vm3, %v2288_v40 }
 0x1f8   : > { %v1884_v25 = vpop.eup %1883 }
 0x1f9   : > { %v1534_v39 = vmul.f32 %v1884_v25, %v1480_v56 }
 0x1fb   : > { %1536 = vst [vmem:[%s2494_s10] sm:$0xff] %v1534_v39 }
 0x243   : > { %v1275_v26 = vpop.f32.mrf.mxu0 }
 0x244   : > { %v1276_v27 = vadd.f32 %v1275_v26, %v2362_v15  ;;  %v1288_v4 = vpop.f32.mrf.mxu1 }
 0x245   : > { %v1289_v29 = vadd.f32 %v1288_v4, %v2362_v15 }
 0x246   : > { %v1378_v30 = vand.u32 2147483647, %v1276_v27  ;;  %v1370_v45 = vmax.f32 %v1276_v27, 0.0 }
 0x247   : > { %v1379_v31 = vand.u32 2147483647, %v1289_v29  ;;  %v1371_v47 = vmax.f32 %v1289_v29, 0.0 }
 0x248   : > { %v1386_v32 = vsub.f32 0.0, %v1378_v30 }
 0x249   : > { %v1387_v33 = vsub.f32 0.0, %v1379_v31 }
 0x24a   : > { %v1394_v34 = vmul.f32 1.442695, %v1386_v32 }
 0x24b   : > { %v1396_v40 = vmul.f32 1.442695, %v1387_v33  ;;  %v1277_v35 = vpop.f32.mrf.mxu0 }
 0x24c   : > { %1885 = vpow2.f32 %v1394_v34  ;;  %v1290_v12 = vpop.f32.mrf.mxu1 }
 0x24d   : > { %1887 = vpow2.f32 %v1396_v40 }
 0x252   : > { %v1886_v56 = vpop.eup %1885 }
 0x253   : > { %v1888_v24 = vpop.eup %1887  ;;  %v1410_v36 = vadd.f32 1.0, %v1886_v56 }
 0x254   : > { %v1411_v38 = vadd.f32 1.0, %v1888_v24 }
 0x255   : > { %1889 = vlog2.f32 %v1410_v36 }
 0x256   : > { %1891 = vlog2.f32 %v1411_v38 }
 0x257   : > { %v1301_v41 = vpop.f32.mrf.mxu2 }
 0x258   : > { %v1302_v42 = vadd.f32 %v1301_v41, %v2362_v15  ;;  %v1314_v43 = vpop.f32.mrf.mxu3 }
 0x259   : > { %v1315_v46 = vadd.f32 %v1314_v43, %v2362_v15 }
 0x25a   : > { %v1380_v49 = vand.u32 2147483647, %v1302_v42  ;;  %v1372_v27 = vmax.f32 %v1302_v42, 0.0 }
 0x25b   : > { %v1890_v3 = vpop.eup %1889  ;;  %v1381_v48 = vand.u32 2147483647, %v1315_v46  ;;  %v1373_v30 = vmax.f32 %v1315_v46, 0.0 }
 0x25c   : > { %v1892_v52 = vpop.eup %1891  ;;  %v1419_v55 = vmul.f32 0.6931472, %v1890_v3  ;;  %v1388_v60 = vsub.f32 0.0, %v1380_v49 }
 0x25d   : > { %v1421_v51 = vmul.f32 0.6931472, %v1892_v52  ;;  %v1389_v0 = vsub.f32 0.0, %v1381_v48 }
 0x25e   : > { %v1434_v63 = vadd.f32 %v1419_v55, %v1370_v45  ;;  %v1398_v2 = vmul.f32 1.442695, %v1388_v60 }
 0x25f   : > { %v1435_v1 = vadd.f32 %v1421_v51, %v1371_v47  ;;  %v1400_v5 = vmul.f32 1.442695, %v1389_v0  ;;  %v1303_v7 = vpop.f32.mrf.mxu2 }
 0x260   : > { %1442 = vst [vmem:[#allocation3 + $0x8] sm:$0x1] %v1434_v63  ;;  %1893 = vpow2.f32 %v1398_v2  ;;  %v1316_v53 = vpop.f32.mrf.mxu3 }
 0x261   : > { %1443 = vst [vmem:[#allocation3 + $0x9] sm:$0x1] %v1435_v1  ;;  %1895 = vpow2.f32 %v1400_v5 }
 0x263   : > { %v1327_v9 = vpop.f32.mrf.mxu0 }
 0x264   : > { %v1328_v11 = vadd.f32 %v1327_v9, %v2362_v15  ;;  %v1340_v13 = vpop.f32.mrf.mxu1 }
 0x265   : > { %v1341_v6 = vadd.f32 %v1340_v13, %v2362_v15 }
 0x266   : > { %v1382_v58 = vand.u32 2147483647, %v1328_v11  ;;  %v1894_v18 = vpop.eup %1893  ;;  %v1374_v43 = vmax.f32 %v1328_v11, 0.0 }
 0x267   : > { %v1383_v62 = vand.u32 2147483647, %v1341_v6  ;;  %v1896_v23 = vpop.eup %1895  ;;  %v1412_v61 = vadd.f32 1.0, %v1894_v18  ;;  %v1375_v3 = vmax.f32 %v1341_v6, 0.0 }
 0x268   : > { %v1390_v19 = vsub.f32 0.0, %v1382_v58  ;;  %v1413_v14 = vadd.f32 1.0, %v1896_v23 }
 0x269   : > { %v1391_v21 = vsub.f32 0.0, %v1383_v62  ;;  %1897 = vlog2.f32 %v1412_v61  ;;  %v1471_v62 = vsel %vm1465_vm4, %v2391_v10, 1.0 }
 0x26a   : > { %v1402_v54 = vmul.f32 1.442695, %v1390_v19  ;;  %1899 = vlog2.f32 %v1413_v14  ;;  %v1473_v23 = vsub.f32 0.0, %v1471_v62 }
 0x26b   : > { %v1404_v16 = vmul.f32 1.442695, %v1391_v21  ;;  %v1329_v22 = vpop.f32.mrf.mxu0 }
 0x26c   : > { %1901 = vpow2.f32 %v1402_v54  ;;  %v1342_v25 = vpop.f32.mrf.mxu1 }
 0x26d   : > { %1903 = vpow2.f32 %v1404_v16 }
 0x26f   : > { %v1898_v39 = vpop.eup %1897 }
 0x270   : > { %v1900_v26 = vpop.eup %1899  ;;  %v1423_v4 = vmul.f32 0.6931472, %v1898_v39 }
 0x271   : > { %v1425_v31 = vmul.f32 0.6931472, %v1900_v26 }
 0x272   : > { %v1902_v29 = vpop.eup %1901  ;;  %v1436_v33 = vadd.f32 %v1423_v4, %v1372_v27 }
 0x273   : > { %v1904_v32 = vpop.eup %1903  ;;  %v1414_v34 = vadd.f32 1.0, %v1902_v29  ;;  %v1437_v40 = vadd.f32 %v1425_v31, %v1373_v30 }
 0x274   : > { %v1415_v35 = vadd.f32 1.0, %v1904_v32  ;;  %1444 = vst [vmem:[#allocation3 + $0xa] sm:$0x1] %v1436_v33 }
 0x275   : > { %1905 = vlog2.f32 %v1414_v34  ;;  %1445 = vst [vmem:[#allocation3 + $0xb] sm:$0x1] %v1437_v40 }
 0x276   : > { %1907 = vlog2.f32 %v1415_v35 }
 0x277   : > { %v1353_v12 = vpop.f32.mrf.mxu2 }
 0x278   : > { %v1354_v56 = vadd.f32 %v1353_v12, %v2362_v15  ;;  %v1366_v24 = vpop.f32.mrf.mxu3 }
 0x279   : > { %v1367_v36 = vadd.f32 %v1366_v24, %v2362_v15 }
 0x27a   : > { %v1384_v41 = vand.u32 2147483647, %v1354_v56  ;;  %v1376_v9 = vmax.f32 %v1354_v56, 0.0 }
 0x27b   : > { %v1906_v38 = vpop.eup %1905  ;;  %v1385_v46 = vand.u32 2147483647, %v1367_v36  ;;  %v1377_v13 = vmax.f32 %v1367_v36, 0.0 }
 0x27c   : > { %v1908_v42 = vpop.eup %1907  ;;  %v1427_v45 = vmul.f32 0.6931472, %v1906_v38  ;;  %v1392_v49 = vsub.f32 0.0, %v1384_v41 }
 0x27d   : > { %v1429_v47 = vmul.f32 0.6931472, %v1908_v42  ;;  %v1393_v55 = vsub.f32 0.0, %v1385_v46 }
 0x27e   : > { %v1438_v52 = vadd.f32 %v1427_v45, %v1374_v43  ;;  %v1406_v51 = vmul.f32 1.442695, %v1392_v49 }
 0x27f   : > { %v1439_v48 = vadd.f32 %v1429_v47, %v1375_v3  ;;  %v1408_v60 = vmul.f32 1.442695, %v1393_v55  ;;  %v1355_v63 = vpop.f32.mrf.mxu2 }
 0x280   : > { %1446 = vst [vmem:[#allocation3 + $0xc] sm:$0x1] %v1438_v52  ;;  %1909 = vpow2.f32 %v1406_v51  ;;  %v1368_v0 = vpop.f32.mrf.mxu3 }
 0x281   : > { %1447 = vst [vmem:[#allocation3 + $0xd] sm:$0x1] %v1439_v48  ;;  %1911 = vpow2.f32 %v1408_v60 }
 0x286   : > { %v1910_v15 = vpop.eup %1909 }
 0x287   : > { %v1912_v1 = vpop.eup %1911  ;;  %v1416_v2 = vadd.f32 1.0, %v1910_v15 }
 0x288   : > { %v1417_v5 = vadd.f32 1.0, %v1912_v1 }
 0x289   : > { %1913 = vlog2.f32 %v1416_v2 }
 0x28a   : > { %1915 = vlog2.f32 %v1417_v5 }
 0x28f   : > { %v1914_v7 = vpop.eup %1913 }
 0x290   : > { %v1916_v53 = vpop.eup %1915  ;;  %v1431_v11 = vmul.f32 0.6931472, %v1914_v7 }
 0x291   : > { %v1433_v6 = vmul.f32 0.6931472, %v1916_v53 }
 0x292   : > { %v1440_v58 = vadd.f32 %v1431_v11, %v1376_v9 }
 0x293   : > { %v1441_v18 = vadd.f32 %v1433_v6, %v1377_v13 }
 0x294   : > { %1448 = vst [vmem:[#allocation3 + $0xe] sm:$0x1] %v1440_v58 }
 0x295   : > { %1449 = vst [vmem:[#allocation3 + $0xf] sm:$0x1] %v1441_v18 }
 0x29c   : > { %v1453_v61 = vld [vmem:[#allocation3 + $0x8] sm:$0xff] }
 0x29d   : > { %v1475_v19 = vmul.f32 %v1473_v23, %v1453_v61 }
 0x29f   : > { %v1478_v14 = vmul.f32 1.442695, %v1475_v19 }
 0x2a1   : > { %1917 = vpow2.f32 %v1478_v14 }
 0x2a7   : > { %v1918_v21 = vpop.eup %1917 }
 0x2a8   : > { %v1481_v54 = vsub.f32 1.0, %v1918_v21 }
 0x2aa   : > { %v1483_v16 = vsub.f32 1.0, %v1481_v54 }
 0x2ac   : > { %v1485_v22 = vadd.f32 1e-15, %v1483_v16 }
 0x2ae   : > { %1919 = vlog2.f32 %v1485_v22 }
 0x2b4   : > { %v1920_v25 = vpop.eup %1919 }
 0x2b5   : > { %v1489_v39 = vmul.f32 0.6931472, %v1920_v25 }
 0x2b7   : > { %v1493_v26 = vrot.slane %v1489_v39, 7 }
 0x2b9   : > { %v1494_v27 = vsel %vm525_vm0, %v1492_v44, %v1493_v26 }
 0x2ba   : > { %v1500_v4 = vrot.slane %v1494_v27, 7 }
 0x2bc   : > { %v1501_v10 = vsel %vm525_vm0, %v1499_v50, %v1500_v4  ;;  %v1577_v50 = vld [vmem:[%s2494_s10] sm:$0xff] (%p2099_p5) }
 0x2bd   : > { %v1506_v29 = vadd.f32 %v1501_v10, %v1494_v27  ;;  %1578 = vst [vmem:[%s1546_s12] sm:$0xff] (%p2099_p5), %v1577_v50 }
 0x2bf   : > { %v1510_v30 = vrot.slane %v1506_v29, 6 }
 0x2c1   : > { %v1511_v31 = vsel %vm526_vm1, %v1509_v59, %v1510_v30 }
 0x2c2   : > { %v1516_v32 = vadd.f32 %v1511_v31, %v1506_v29 }
 0x2c4   : > { %v1521_v33 = vrot.slane %v1516_v32, 4 }
 0x2c6   : > { %v1522_v37 = vsel %vm1519_vm5, %v1520_v17, %v1521_v33 }
 0x2c7   : > { %v1527_v34 = vadd.f32 %v1522_v37, %v1516_v32 }
 0x2c9   : > { %v1529_v44 = vadd.f32 %v1527_v34, %v2484_v20 }
 0x2cb   : > { %v1532_v40 = vmul.f32 1.442695, %v1529_v44 }
 0x2cd   : > { %1921 = vpow2.f32 %v1532_v40 }
 0x2d2   : > { %1544 = sbr.rel (!%p2099_p5) target bundleno = 735 (0x2df), region = 98 }
 0x2d3   : > { %v1922_v28 = vpop.eup %1921 }
 0x2d4   : > { %v1535_v35 = vmul.f32 %v1922_v28, %v1481_v54 }
 0x2d6   : > { %1537 = vst [vmem:[%s2494_s10 + $0x8] sm:$0xff] %v1535_v35 }
 0x2dd   : > { %v1579_v57 = vld [vmem:[%s2494_s10 + $0x8] sm:$0xff] }
 0x2de   : > { %1580 = vst [vmem:[%s1546_s12 + $0x10] sm:$0xff] %v1579_v57 }
 0x2df PF: > { %p18_p0 = scmp.ge.s32.totalorder %s2083_s29, 4   ;;  %s2550_s26 = smov %s2009_s27 }
 0x2e0   : > { %s2551_s27 = smov %s2093_s9  ;;  %s2552_s28 = smov %s2083_s29 }
 0x2e1   :  { %20 = sbr.rel (!%p18_p0) target bundleno = 6 (0x6), region = 180 }
 0x2e6   :  { %1596 = vsyncpa [#allocation7], 1 }
 0x2e7   :  { %1598 = vsyncpa [#allocation7 + $0x1], 1 }
 0x2e8   :  { %1599 = vsyncpa [#allocation9], 1 }

// kernel: run.3
= control target key start
LH: loop header
LB: loop body
LE: loop exit
PB: predicated region body
PF: predicated region fallthrough
CT: control target
= control target key end

     0   :  { %s5725_s17 = smov 0   ;;  %s5727_s18 = smov 0   ;;  %s7370_s0 = inlined_call_operand.vmem [shape: f32[3,256], index: 0, kind: input, shape index: {}]   ;;  %s7371_s1 = inlined_call_operand.vmem [shape: f32[3,256], index: 1, kind: input, shape index: {}]   ;;  %s7372_s2 = inlined_call_operand.vmem [shape: f32[32,256], index: 2, kind: input, shape index: {}]   ;;  %s7373_s3 = inlined_call_operand.vmem [shape: bf16[32,3], index: 3, kind: input, shape index: {}]   ;;  %s7374_s4 = inlined_call_operand.vmem [shape: f32[32,1], index: 4, kind: input, shape index: {}, may-alias: {4,8}]   ;;  %s7375_s5 = inlined_call_operand.vmem [shape: bf16[16,32], index: 5, kind: input, shape index: {}]   ;;  %s7376_s6 = inlined_call_operand.vmem [shape: f32[16,1], index: 6, kind: input, shape index: {}]   ;;  %s7377_s7 = inlined_call_operand.vmem [shape: bf16[32,22], index: 7, kind: input, shape index: {}]   ;;  %s7378_s8 = inlined_call_operand.vmem [shape: f32[32,1], index: 8, kind: input, shape index: {}, may-alias: {4,8}]   ;;  %s7379_s9 = inlined_call_operand.vmem [shape: bf16[2,32], index: 9, kind: input, shape index: {}]   ;;  %s7380_s10 = inlined_call_operand.vmem [shape: f32[2,1], index: 10, kind: input, shape index: {}]   ;;  %s7381_s11 = inlined_call_operand.vmem [shape: f32[4,256], index: 11, kind: output, shape index: {}]  }
   0x1   :  { %s5729_s19 = smov 0  }
   0x2 LB: > { %s4986_s20 = sadd.s32 4294967295, %s5661_s19   ;;  %s5742_s21 = sadd.s32 1, %s5661_s19   ;;  %s5661_s19 = sphi %s5729_s19, %s7384_s19   ;;  %s5657_s18 = sphi %s5727_s18, %s7383_s18   ;;  %s5653_s17 = sphi %s5725_s17, %s7382_s17  }
   0x3   : > { %s77_s22 = ssub.s32 %s5661_s19, %s5742_s21  ;;  %s80_s23 = sadd.s32 1, %s5657_s18 }
   0x4   : > { %p78_p0 = scmp.eq.s32.totalorder %s77_s22, 0  ;;  %p87_p1 = scmp.ne.s32.totalorder %s5657_s18, %s5653_s17 }
   0x5   : > { %p88_p2 = scmp.eq.s32.totalorder %s5661_s19, 0  ;;  %p4989_p4 = scmp.ge.s32.totalorder %s5661_s19, 2 }
   0x6   : > { %s5751_s24 = scalar_select %p78_p0, %s5657_s18, %s80_s23  }
   0x7   : > { %p89_p3 = por %p88_p2, %p87_p1  ;;  %331 = sbr.rel (%p4989_p4) target bundleno = 20 (0x14), region = 48 }
   0xc   : > { %348 = sbr.rel (!%p89_p3) target bundleno = 20 (0x14), region = 60  ;;  %s350_s25 = sand.u32 (%p89_p3), 1, %s5657_s18  }
   0xd   : > { %s4991_s26 = sshll.u32 (%p89_p3), %s5661_s19, 3  ;;  %s4990_s27 = sshll.u32 (%p89_p3), %s350_s25, 5 }
   0xe   : > { %s354_s30 = scalar_lea.vmem (%p89_p3), %s7372_s2, %s4991_s26  ;;  %s352_s12 = scalar_lea.vmem (%p89_p3), [#allocation4], %s4990_s27 }
   0xf   : > { %v389_v0 = vld [vmem:[%s354_s30] sm:$0xff] (%p89_p3)  ;;  %v391_v1 = vld [vmem:[%s354_s30 + $0x10] sm:$0xff] (%p89_p3) }
  0x10   : > { %v393_v2 = vld [vmem:[%s354_s30 + $0x20] sm:$0xff] (%p89_p3)  ;;  %390 = vst [vmem:[%s352_s12] sm:$0xff] (%p89_p3), %v389_v0  ;;  %v395_v3 = vld [vmem:[%s354_s30 + $0x30] sm:$0xff] (%p89_p3) }
  0x11   : > { %392 = vst [vmem:[%s352_s12 + $0x8] sm:$0xff] %v391_v1 }
  0x12   : > { %394 = vst [vmem:[%s352_s12 + $0x10] sm:$0xff] %v393_v2 }
  0x13   : > { %396 = vst [vmem:[%s352_s12 + $0x18] sm:$0xff] %v395_v3 }
  0x14 PF: > { %p4992_p5 = scmp.ge.s32.totalorder %s5661_s19, 1  ;;  %p401_p6 = scmp.lt.s32.totalorder %s5661_s19, 3 }
  0x16   : > { %p402_p7 = pnand %p4992_p5, %p401_p6 }
  0x17   : > { %s408_s13 = sand.u32 (!%p402_p7), 1, %s5653_s17   ;;  %p454_p8 = scmp.lt.s32.totalorder (!%p402_p7), %s4986_s20, 1 }
  0x18   : > { %405 = sbr.rel (%p402_p7) target bundleno = 1942 (0x796), region = 98  ;;  %s4993_s14 = sshll.u32 (!%p402_p7), %s408_s13, 5 }
  0x19   : > { %s5769_s22 = scalar_lea.vmem (!%p402_p7), [#allocation4], %s4993_s14 }
  0x1d   : > { %v475_v4 = vld [vmem:[%s7374_s4 + $0x10] sm:$0xff]  ;;  %vm602_vm0 = vcmask 1040384   ;;  %v5663_v5 = vmov 0   ;;  %s7386_s20 = smov (!%p454_p8, %s4986_s20), 1  ;;  %v5277_v6 = vld [vmem:[%s5769_s22] ss:$0 sm:$0xff] }
  0x1e   : > { %5274 = vset.pattern.permute.xlu0 %v5663_v5  ;;  %5275 = vset.pattern.permute.xlu1 %v5663_v5  ;;  %vm490_vm1 = vcmask 1042432   ;;  %v5278_v7 = vld [vmem:[%s5769_s22 + $0x1] ss:$0 sm:$0xff]  ;;  %s5773_s17 = sshll.u32 %s7386_s20, 2  ;;  %v5664_v8 = vmov 65535   ;;  %vm603_vm2 = vcmask 1041408  }
  0x1f   : > { %577 = vperm.xlu0 %5274, %v475_v4   ;;  %5276 = vset.pattern.permute.xlu2 %v5663_v5  ;;  %v604_v9 = vsel %vm602_vm0, 4294967295, %v5664_v8  ;;  %v5279_v10 = vld [vmem:[%s5769_s22 + $0x2] ss:$0 sm:$0xff]  ;;  %s5781_s25 = scalar_lea.vmem %s7370_s0, %s5773_s17  ;;  %s5787_s28 = scalar_lea.vmem %s7371_s1, %s5773_s17  ;;  %v5280_v11 = vld [vmem:[%s5769_s22 + $0x3] ss:$0 sm:$0xff]  ;;  %v476_v49 = vld [vmem:[%s7374_s4 + $0x18] sm:$0xff] }
  0x20   : > { %v5281_v12 = vld [vmem:[%s5769_s22 + $0x6] ss:$0 sm:$0xff]  ;;  %v5792_v13 = vld [vmem:[%s5781_s25] sm:$0x7]  ;;  %v5282_v19 = vld [vmem:[%s5769_s22 + $0x7] ss:$0 sm:$0xff]  ;;  %s465_s27 = scalar_lea.vmem %s7381_s11, %s5773_s17 }
  0x21   : > { %v5795_v14 = vld [vmem:[%s5787_s28] sm:$0x7]  ;;  %v5283_v22 = vld [vmem:[%s5769_s22 + $0x4] ss:$0 sm:$0xff]  ;;  %v5284_v23 = vld [vmem:[%s5769_s22 + $0x5] ss:$0 sm:$0xff] }
  0x22   : > { %v483_v15 = vmul.f32 %v5277_v6, %v5795_v14  ;;  %v5799_v16 = vrot.slane %v5795_v14, 5  ;;  %v495_v17 = vmul.f32 %v5278_v7, %v5795_v14  ;;  %v503_v18 = vmul.f32 %v5279_v10, %v5795_v14  ;;  %v473_v50 = vld [vmem:[%s7374_s4] sm:$0xff]  ;;  %v3088_v54 = vld [vmem:[%s7378_s8 + $0x10] sm:$0xff]  ;;  %v474_v55 = vld [vmem:[%s7374_s4 + $0x8] sm:$0xff] }
  0x23   : > { %v511_v20 = vmul.f32 %v5280_v11, %v5795_v14  ;;  %v535_v21 = vmul.f32 %v5281_v12, %v5795_v14  ;;  %v543_v27 = vmul.f32 %v5282_v19, %v5795_v14  ;;  %v519_v30 = vmul.f32 %v5283_v22, %v5795_v14  ;;  %567 = vperm.xlu1 %5275, %v473_v50   ;;  %v5855_v2 = vld [vmem:[%s7373_s3] sm:$0xff]  ;;  %v5880_v22 = vld [vmem:[%s7373_s3 + $0x8] sm:$0xff] }
  0x24   : > { %v484_v24 = vadd.f32 %v483_v15, %v5792_v13  ;;  %v496_v25 = vadd.f32 %v495_v17, %v5792_v13  ;;  %v504_v26 = vadd.f32 %v503_v18, %v5792_v13  ;;  %v527_v31 = vmul.f32 %v5284_v23, %v5795_v14  ;;  %v3091_v23 = vld [vmem:[%s7380_s10] sm:$0x3] }
  0x25   : > { %v512_v28 = vadd.f32 %v511_v20, %v5792_v13  ;;  %v536_v29 = vadd.f32 %v535_v21, %v5792_v13  ;;  %v544_v35 = vadd.f32 %v543_v27, %v5792_v13  ;;  %v520_v38 = vadd.f32 %v519_v30, %v5792_v13  ;;  %v3087_v20 = vld [vmem:[%s7378_s8 + $0x8] sm:$0xff]  ;;  %v3089_v21 = vld [vmem:[%s7378_s8 + $0x18] sm:$0xff] }
  0x26   : > { %v4997_v32 = vclamps-f32 %v484_v24, 1.0  ;;  %v4998_v33 = vclamps-f32 %v496_v25, 1.0  ;;  %v4999_v34 = vclamps-f32 %v504_v26, 1.0  ;;  %v528_v39 = vadd.f32 %v527_v31, %v5792_v13 }
  0x27   : > { %v5000_v36 = vclamps-f32 %v512_v28, 1.0  ;;  %v5003_v37 = vclamps-f32 %v536_v29, 1.0  ;;  %v5004_v43 = vclamps-f32 %v544_v35, 1.0  ;;  %v5001_v45 = vclamps-f32 %v520_v38, 1.0  ;;  %582 = vperm.xlu0 %5274, %v476_v49  }
  0x28   : > { %v491_v40 = vsel %vm490_vm1, %v4997_v32, %v5799_v16  ;;  %v499_v41 = vsel %vm490_vm1, %v4998_v33, %v5799_v16  ;;  %v507_v42 = vsel %vm490_vm1, %v4999_v34, %v5799_v16  ;;  %v5002_v46 = vclamps-f32 %v528_v39, 1.0 }
  0x29   : > { %492 = vst [vmem:[#allocation2 + $0x1f0] sm:$0x3f] %v491_v40  ;;  %v515_v44 = vsel %vm490_vm1, %v5000_v36, %v5799_v16  ;;  %v539_v47 = vsel %vm490_vm1, %v5003_v37, %v5799_v16  ;;  %v547_v48 = vsel %vm490_vm1, %v5004_v43, %v5799_v16  ;;  %v5838_v51 = vsel %vm603_vm2, %v604_v9, 0 }
  0x2a   : > { %500 = vst [vmem:[#allocation2 + $0x50] sm:$0x3f] %v499_v41  ;;  %v523_v52 = vsel %vm490_vm1, %v5001_v45, %v5799_v16  ;;  %v531_v53 = vsel %vm490_vm1, %v5002_v46, %v5799_v16  ;;  %vm595_vm3 = vcmask 23552   ;;  %vm845_vm4 = vcmask 261120  }
  0x2b   : > { %508 = vst [vmem:[#allocation2 + $0x10] sm:$0x3f] %v507_v42  ;;  %572 = vperm.xlu1 %5275, %v474_v55   ;;  %vm977_vm5 = vcmask 1045504   ;;  %vm2913_vm6 = vcmask 1046528   ;;  %vm3019_vm7 = vcmask 1043456   ;;  %vm3162_vm8 = vcmask 179200  }
  0x2c   : > { %516 = vst [vmem:[#allocation2 + $0x108] sm:$0x3f] %v515_v44 }
  0x2d   : > { %540 = vst [vmem:[#allocation2 + $0x78] sm:$0x3f] %v539_v47 }
  0x2e   : > { %548 = vst [vmem:[#allocation2 + $0x138] sm:$0x3f] %v547_v48 }
  0x2f   : > { %524 = vst [vmem:[#allocation2 + $0x30] sm:$0x3f] %v523_v52  ;;  %3144 = vperm.xlu0 %5274, %v3088_v54  }
  0x30   : > { %v549_v56 = vld [vmem:[#allocation2 + $0x1f0] sm:$0x7]  ;;  %532 = vst [vmem:[#allocation2 + $0x70] sm:$0x3f] %v531_v53 }
  0x31   : > { %v557_v57 = vpack.c.bf16 %v549_v56, %v549_v56  ;;  %v550_v58 = vld [vmem:[#allocation2 + $0x50] sm:$0x7] }
  0x32   : > { %v558_v59 = vpack.c.bf16 %v550_v58, %v550_v58  ;;  %v551_v60 = vld [vmem:[#allocation2 + $0x10] sm:$0x7] }
  0x33   : > { %v607_v61 = vand.u32 %v5838_v51, %v557_v57  ;;  %v559_v62 = vpack.c.bf16 %v551_v60, %v551_v60  ;;  %v552_v63 = vld [vmem:[#allocation2 + $0x108] sm:$0x7]  ;;  %3149 = vperm.xlu1 %5275, %v3089_v21  }
  0x34   : > { %v610_v0 = vand.u32 %v5838_v51, %v558_v59  ;;  %v560_v1 = vpack.c.bf16 %v552_v63, %v552_v63  ;;  %v555_v3 = vld [vmem:[#allocation2 + $0x78] sm:$0x7] }
  0x35   : > { %637 = vmatpush.bf16.msra.mxu0 %v607_v61  ;;  %v613_v4 = vand.u32 %v5838_v51, %v559_v62  ;;  %v563_v5 = vpack.c.bf16 %v555_v3, %v555_v3  ;;  %v556_v6 = vld [vmem:[#allocation2 + $0x138] sm:$0x7] }
  0x36   : > { %656 = vmatpush.bf16.msra.mxu1 %v610_v0  ;;  %v616_v7 = vand.u32 %v5838_v51, %v560_v1  ;;  %v564_v8 = vpack.c.bf16 %v556_v6, %v556_v6  ;;  %v553_v9 = vld [vmem:[#allocation2 + $0x30] sm:$0x7] }
  0x37   : > { %675 = vmatpush.bf16.msra.mxu2 %v613_v4  ;;  %v625_v10 = vand.u32 %v5838_v51, %v563_v5  ;;  %v561_v11 = vpack.c.bf16 %v553_v9, %v553_v9  ;;  %v554_v12 = vld [vmem:[#allocation2 + $0x70] sm:$0x7]  ;;  %3139 = vperm.xlu0 %5274, %v3087_v20   ;;  %v5286_v9 = vld [vmem:[%s5769_s22 + $0x9] ss:$0 sm:$0xff] }
  0x38   : > { %694 = vmatpush.bf16.msra.mxu3 %v616_v7  ;;  %5013 = vmatmul.msk.bf16.vlgmr.msra.gmra.mxu0 %vm595_vm3, %v5855_v2  ;;  %v628_v15 = vand.u32 %v5838_v51, %v564_v8  ;;  %v562_v17 = vpack.c.bf16 %v554_v12, %v554_v12  ;;  %v5285_v8 = vld [vmem:[%s5769_s22 + $0x8] ss:$0 sm:$0xff] }
  0x39   : > { %5015 = vmatmul.msk.bf16.vlgmr.msra.gmra.mxu1 %vm595_vm3, %v5855_v2  ;;  %v619_v18 = vand.u32 %v5838_v51, %v561_v11 }
  0x3a   : > { %5017 = vmatmul.msk.bf16.vlgmr.msra.gmra.mxu2 %vm595_vm3, %v5855_v2  ;;  %v622_v19 = vand.u32 %v5838_v51, %v562_v17 }
  0x3b   : > { %751 = vmatpush.bf16.msrb.mxu2 %v625_v10  ;;  %5019 = vmatmul.msk.bf16.vlgmr.msra.gmra.mxu3 %vm595_vm3, %v5855_v2 }
  0x3c   : > { %770 = vmatpush.bf16.msrb.mxu3 %v628_v15  ;;  %713 = vmatpush.bf16.msrb.mxu0 %v619_v18  ;;  %v1132_v18 = vmul.f32 %v5285_v8, %v5795_v14 }
  0x3d   : > { %732 = vmatpush.bf16.msrb.mxu1 %v622_v19  ;;  %3395 = vperm.xlu1 %5275, %v3091_v23   ;;  %v1140_v19 = vmul.f32 %v5286_v9, %v5795_v14 }
  0x48   : > { %5014 = vmatmul.msk.bf16.gmra.mxu0 %vm595_vm3, %v5880_v22 }
  0x49   : > { %5016 = vmatmul.msk.bf16.gmra.mxu1 %vm595_vm3, %v5880_v22 }
  0x4a   : > { %5018 = vmatmul.msk.bf16.gmra.mxu2 %vm595_vm3, %v5880_v22 }
  0x4b   : > { %5020 = vmatmul.msk.bf16.gmra.mxu3 %vm595_vm3, %v5880_v22 }
  0x58   : > { %5021 = vmatmul.msk.bf16.vlgmr.msrb.gmra.mxu0 %vm595_vm3, %v5855_v2 }
  0x59   : > { %5023 = vmatmul.msk.bf16.vlgmr.msrb.gmra.mxu1 %vm595_vm3, %v5855_v2 }
  0x5a   : > { %5025 = vmatmul.msk.bf16.vlgmr.msrb.gmra.mxu2 %vm595_vm3, %v5855_v2 }
  0x5b   : > { %5027 = vmatmul.msk.bf16.vlgmr.msrb.gmra.mxu3 %vm595_vm3, %v5855_v2 }
  0x68   : > { %5022 = vmatmul.msk.bf16.gmra.mxu0 %vm595_vm3, %v5880_v22 }
  0x69   : > { %5024 = vmatmul.msk.bf16.gmra.mxu1 %vm595_vm3, %v5880_v22 }
  0x6a   : > { %5026 = vmatmul.msk.bf16.gmra.mxu2 %vm595_vm3, %v5880_v22 }
  0x6b   : > { %5028 = vmatmul.msk.bf16.gmra.mxu3 %vm595_vm3, %v5880_v22 }
  0x91   : > { %v5911_v31 = vpop.permute.xlu0 %577 }
  0x95   : > { %v5909_v30 = vpop.permute.xlu1 %567 }
  0x99   : > { %v5917_v39 = vpop.permute.xlu0 %582 }
  0x9d   : > { %v5914_v37 = vpop.permute.xlu1 %572 }
  0xb5   : > { %v639_v24 = vpop.f32.mrf.mxu0 }
  0xb6   : > { %v658_v25 = vpop.f32.mrf.mxu1  ;;  %v640_v40 = vadd.f32 %v639_v24, %v5909_v30  ;;  %v5944_v24 = vld [vmem:[%s7375_s5] sm:$0xff] }
  0xb7   : > { %v659_v44 = vadd.f32 %v658_v25, %v5909_v30 }
  0xb8   : > { %v782_v54 = vmax.f32 %v640_v40, 0.0 }
  0xb9   : > { %v783_v57 = vmax.f32 %v659_v44, 0.0 }
  0xbd   : > { %v677_v26 = vpop.f32.mrf.mxu2  ;;  %v641_v27 = vpop.f32.mrf.mxu0 }
  0xbe   : > { %v696_v28 = vpop.f32.mrf.mxu3  ;;  %v660_v29 = vpop.f32.mrf.mxu1  ;;  %v642_v41 = vadd.f32 %v641_v27, %v5914_v37  ;;  %v678_v10 = vadd.f32 %v677_v26, %v5909_v30  ;;  %v1133_v27 = vadd.f32 %v1132_v18, %v5792_v13 }
  0xbf   : > { %v661_v45 = vadd.f32 %v660_v29, %v5914_v37  ;;  %v697_v20 = vadd.f32 %v696_v28, %v5909_v30  ;;  %v1141_v29 = vadd.f32 %v1140_v19, %v5792_v13 }
  0xc0   : > { %v790_v55 = vmax.f32 %v642_v41, 0.0 }
  0xc1   : > { %v791_v58 = vmax.f32 %v661_v45, 0.0  ;;  %v785_v40 = vmax.f32 %v697_v20, 0.0 }
  0xc2   : > { %v814_v62 = vpack.c.bf16 %v790_v55, %v782_v54 }
  0xc3   : > { %v815_v3 = vpack.c.bf16 %v791_v58, %v783_v57 }
  0xc5   : > { %v679_v32 = vpop.f32.mrf.mxu2  ;;  %v644_v33 = vpop.f32.mrf.mxu0 }
  0xc6   : > { %v698_v34 = vpop.f32.mrf.mxu3  ;;  %v663_v35 = vpop.f32.mrf.mxu1  ;;  %v645_v36 = vadd.f32 %v644_v33, %v5911_v31  ;;  %v680_v4 = vadd.f32 %v679_v32, %v5914_v37  ;;  %v784_v32 = vmax.f32 %v678_v10, 0.0 }
  0xc7   : > { %v664_v38 = vadd.f32 %v663_v35, %v5911_v31  ;;  %v699_v11 = vadd.f32 %v698_v34, %v5914_v37  ;;  %v5041_v34 = vclamps-f32 %v1133_v27, 1.0  ;;  %v5042_v35 = vclamps-f32 %v1141_v29, 1.0 }
  0xc8   : > { %v798_v46 = vmax.f32 %v645_v36, 0.0  ;;  %v792_v25 = vmax.f32 %v680_v4, 0.0  ;;  %v5287_v36 = vld [vmem:[%s5769_s22 + $0xa] ss:$0 sm:$0xff] }
  0xc9   : > { %v799_v50 = vmax.f32 %v664_v38, 0.0  ;;  %v793_v33 = vmax.f32 %v699_v11, 0.0  ;;  %v5288_v38 = vld [vmem:[%s5769_s22 + $0xb] ss:$0 sm:$0xff] }
  0xca   : > { %v816_v45 = vpack.c.bf16 %v792_v25, %v784_v32 }
  0xcd   : > { %v682_v42 = vpop.f32.mrf.mxu2  ;;  %v646_v43 = vpop.f32.mrf.mxu0 }
  0xce   : > { %v701_v47 = vpop.f32.mrf.mxu3  ;;  %v647_v48 = vadd.f32 %v646_v43, %v5917_v39  ;;  %v665_v49 = vpop.f32.mrf.mxu1  ;;  %v683_v61 = vadd.f32 %v682_v42, %v5911_v31 }
  0xcf   : > { %v666_v52 = vadd.f32 %v665_v49, %v5917_v39  ;;  %v702_v63 = vadd.f32 %v701_v47, %v5911_v31  ;;  %v1144_v47 = vsel %vm490_vm1, %v5042_v35, %v5799_v16  ;;  %v1148_v49 = vmul.f32 %v5287_v36, %v5795_v14 }
  0xd0   : > { %v806_v53 = vmax.f32 %v647_v48, 0.0  ;;  %v800_v15 = vmax.f32 %v683_v61, 0.0  ;;  %v817_v48 = vpack.c.bf16 %v793_v33, %v785_v40  ;;  %1145 = vst [vmem:[#allocation2 + $0xd8] sm:$0x3f] %v1144_v47 }
  0xd1   : > { %v807_v56 = vmax.f32 %v666_v52, 0.0  ;;  %v801_v21 = vmax.f32 %v702_v63, 0.0  ;;  %v1149_v52 = vadd.f32 %v1148_v49, %v5792_v13  ;;  %v479_v63 = vld [vmem:[%s7376_s6] sm:$0xff] }
  0xd2   : > { %v822_v59 = vpack.c.bf16 %v806_v53, %v798_v46  ;;  %v1136_v46 = vsel %vm490_vm1, %v5041_v34, %v5799_v16 }
  0xd3   : > { %v823_v60 = vpack.c.bf16 %v807_v56, %v799_v50  ;;  %1137 = vst [vmem:[#allocation2 + $0x2a0] sm:$0x3f] %v1136_v46  ;;  %v1156_v50 = vmul.f32 %v5288_v38, %v5795_v14  ;;  %v5043_v54 = vclamps-f32 %v1149_v52, 1.0  ;;  %v480_v56 = vld [vmem:[%s7376_s6 + $0x8] sm:$0xff] }
  0xd4   : > { %855 = vmatpush.bf16.msra.mxu0 %v822_v59  ;;  %837 = vperm.xlu2 %5276, %v480_v56   ;;  %v5289_v38 = vld [vmem:[%s5769_s22 + $0xe] ss:$0 sm:$0xff] }
  0xd5   : > { %v684_v0 = vpop.f32.mrf.mxu2  ;;  %869 = vmatpush.bf16.msra.mxu1 %v823_v60  ;;  %v5927_v1 = vpop.f32.mrf.mxu0  ;;  %v1157_v53 = vadd.f32 %v1156_v50, %v5792_v13  ;;  %v1152_v59 = vsel %vm490_vm1, %v5043_v54, %v5799_v16  ;;  %v5291_v54 = vld [vmem:[%s5769_s22 + $0xc] ss:$0 sm:$0xff] }
  0xd6   : > { %v685_v5 = vadd.f32 %v684_v0, %v5917_v39  ;;  %v703_v6 = vpop.f32.mrf.mxu3  ;;  %v5931_v7 = vpop.f32.mrf.mxu1  ;;  %1153 = vst [vmem:[#allocation2 + $0x2b8] sm:$0x3f] %v1152_v59  ;;  %v716_v0 = vadd.f32 %v5927_v1, %v5909_v30 }
  0xd7   : > { %v704_v12 = vadd.f32 %v703_v6, %v5917_v39  ;;  %v5044_v55 = vclamps-f32 %v1157_v53, 1.0  ;;  %v735_v9 = vadd.f32 %v5931_v7, %v5909_v30  ;;  %v1195_v18 = vld [vmem:[#allocation2 + $0xd8] sm:$0x7]  ;;  %v1180_v53 = vmul.f32 %v5289_v38, %v5795_v14 }
  0xd8   : > { %v808_v17 = vmax.f32 %v685_v5, 0.0  ;;  %856 = vmatpush.bf16.msra.mxu0 %v814_v62  ;;  %v786_v19 = vmax.f32 %v716_v0, 0.0  ;;  %v1203_v33 = vpack.c.bf16 %v1195_v18, %v1195_v18 }
  0xd9   : > { %v809_v23 = vmax.f32 %v704_v12, 0.0  ;;  %870 = vmatpush.bf16.msra.mxu1 %v815_v3  ;;  %v1160_v60 = vsel %vm490_vm1, %v5044_v55, %v5799_v16  ;;  %v787_v29 = vmax.f32 %v735_v9, 0.0  ;;  %v5292_v55 = vld [vmem:[%s5769_s22 + $0xd] ss:$0 sm:$0xff] }
  0xda   : > { %v824_v26 = vpack.c.bf16 %v808_v17, %v800_v15  ;;  %1161 = vst [vmem:[#allocation2 + $0x170] sm:$0x3f] %v1160_v60  ;;  %v1194_v17 = vld [vmem:[#allocation2 + $0x2a0] sm:$0x7]  ;;  %v1181_v60 = vadd.f32 %v1180_v53, %v5792_v13 }
  0xdb   : > { %v825_v28 = vpack.c.bf16 %v809_v23, %v801_v21  ;;  %5033 = vmatmul.msk.bf16.vlgmr.msra.gmra.mxu0 %vm845_vm4, %v5944_v24  ;;  %v1202_v27 = vpack.c.bf16 %v1194_v17, %v1194_v17  ;;  %v5290_v17 = vld [vmem:[%s5769_s22 + $0xf] ss:$0 sm:$0xff] }
  0xdc   : > { %883 = vmatpush.bf16.msra.mxu2 %v824_v26  ;;  %5034 = vmatmul.msk.bf16.vlgmr.msra.gmra.mxu1 %vm845_vm4, %v5944_v24 }
  0xdd   : > { %897 = vmatpush.bf16.msra.mxu3 %v825_v28  ;;  %v753_v41 = vpop.f32.mrf.mxu2  ;;  %v717_v42 = vpop.f32.mrf.mxu0  ;;  %832 = vperm.xlu2 %5276, %v479_v63   ;;  %v1211_v46 = vand.u32 %v1202_v27, %v5838_v51  ;;  %v1196_v47 = vld [vmem:[#allocation2 + $0x2b8] sm:$0x7]  ;;  %v1172_v63 = vmul.f32 %v5292_v55, %v5795_v14 }
  0xde   : > { %v772_v43 = vpop.f32.mrf.mxu3  ;;  %v736_v44 = vpop.f32.mrf.mxu1  ;;  %v718_v4 = vadd.f32 %v717_v42, %v5914_v37  ;;  %v754_v36 = vadd.f32 %v753_v41, %v5909_v30  ;;  %v1214_v41 = vand.u32 %v1203_v33, %v5838_v51 }
  0xdf   : > { %v737_v10 = vadd.f32 %v736_v44, %v5914_v37  ;;  %v773_v40 = vadd.f32 %v772_v43, %v5909_v30  ;;  %v1173_v9 = vadd.f32 %v1172_v63, %v5792_v13 }
  0xe0   : > { %884 = vmatpush.bf16.msra.mxu2 %v816_v45  ;;  %v794_v23 = vmax.f32 %v718_v4, 0.0  ;;  %v1204_v4 = vpack.c.bf16 %v1196_v47, %v1196_v47 }
  0xe1   : > { %898 = vmatpush.bf16.msra.mxu3 %v817_v48  ;;  %v795_v7 = vmax.f32 %v737_v10, 0.0  ;;  %v1197_v52 = vld [vmem:[#allocation2 + $0x170] sm:$0x7]  ;;  %v788_v10 = vmax.f32 %v754_v36, 0.0  ;;  %v5046_v18 = vclamps-f32 %v1173_v9, 1.0 }
  0xe2   : > { %v818_v45 = vpack.c.bf16 %v794_v23, %v786_v19  ;;  %v789_v19 = vmax.f32 %v773_v40, 0.0 }
  0xe3   : > { %5035 = vmatmul.msk.bf16.vlgmr.msra.gmra.mxu2 %vm845_vm4, %v5944_v24  ;;  %v819_v50 = vpack.c.bf16 %v795_v7, %v787_v29  ;;  %v1176_v27 = vsel %vm490_vm1, %v5046_v18, %v5799_v16 }
  0xe4   : > { %5036 = vmatmul.msk.bf16.vlgmr.msra.gmra.mxu3 %vm845_vm4, %v5944_v24  ;;  %1177 = vst [vmem:[#allocation2 + $0x218] sm:$0x3f] %v1176_v27 }
  0xe5   : > { %v755_v57 = vpop.f32.mrf.mxu2  ;;  %v720_v58 = vpop.f32.mrf.mxu0 }
  0xe6   : > { %v774_v61 = vpop.f32.mrf.mxu3  ;;  %v739_v62 = vpop.f32.mrf.mxu1  ;;  %v721_v3 = vadd.f32 %v720_v58, %v5911_v31  ;;  %v756_v28 = vadd.f32 %v755_v57, %v5914_v37 }
  0xe7   : > { %v740_v5 = vadd.f32 %v739_v62, %v5911_v31  ;;  %v775_v56 = vadd.f32 %v774_v61, %v5914_v37  ;;  %v1164_v62 = vmul.f32 %v5291_v54, %v5795_v14  ;;  %v5047_v61 = vclamps-f32 %v1181_v60, 1.0 }
  0xe8   : > { %v802_v20 = vmax.f32 %v721_v3, 0.0  ;;  %v796_v43 = vmax.f32 %v756_v28, 0.0 }
  0xe9   : > { %v803_v25 = vmax.f32 %v740_v5, 0.0  ;;  %v1205_v5 = vpack.c.bf16 %v1197_v52, %v1197_v52 }
  0xeb   : > { %v1220_v23 = vand.u32 %v1205_v5, %v5838_v51  ;;  %v1199_v36 = vld [vmem:[#allocation2 + $0x218] sm:$0x7] }
  0xec   : > { %v1207_v38 = vpack.c.bf16 %v1199_v36, %v1199_v36 }
  0xed   : > { %v758_v6 = vpop.f32.mrf.mxu2  ;;  %v722_v8 = vpop.f32.mrf.mxu0 }
  0xee   : > { %v777_v11 = vpop.f32.mrf.mxu3  ;;  %v723_v12 = vadd.f32 %v722_v8, %v5917_v39  ;;  %v741_v15 = vpop.f32.mrf.mxu1  ;;  %v759_v34 = vadd.f32 %v758_v6, %v5911_v31  ;;  %v1165_v8 = vadd.f32 %v1164_v62, %v5792_v13 }
  0xef   : > { %v742_v1 = vadd.f32 %v741_v15, %v5917_v39  ;;  %v778_v42 = vadd.f32 %v777_v11, %v5911_v31  ;;  %v797_v11 = vmax.f32 %v775_v56, 0.0  ;;  %v1184_v15 = vsel %vm490_vm1, %v5047_v61, %v5799_v16 }
  0xf0   : > { %v810_v21 = vmax.f32 %v723_v12, 0.0  ;;  %v804_v57 = vmax.f32 %v759_v34, 0.0  ;;  %1185 = vst [vmem:[#allocation2 + $0x2e0] sm:$0x3f] %v1184_v15 }
  0xf1   : > { %v811_v26 = vmax.f32 %v742_v1, 0.0  ;;  %v805_v0 = vmax.f32 %v778_v42, 0.0  ;;  %v5045_v1 = vclamps-f32 %v1165_v8, 1.0  ;;  %v821_v29 = vpack.c.bf16 %v797_v11, %v789_v19 }
  0xf2   : > { %v826_v32 = vpack.c.bf16 %v810_v21, %v802_v20  ;;  %v820_v20 = vpack.c.bf16 %v796_v43, %v788_v10  ;;  %v1217_v21 = vand.u32 %v1204_v4, %v5838_v51  ;;  %v1226_v42 = vand.u32 %v1207_v38, %v5838_v51 }
  0xf3   : > { %v827_v35 = vpack.c.bf16 %v811_v26, %v803_v25  ;;  %v1188_v25 = vmul.f32 %v5290_v17, %v5795_v14  ;;  %v1168_v26 = vsel %vm490_vm1, %v5045_v1, %v5799_v16 }
  0xf4   : > { %911 = vmatpush.bf16.msrb.mxu0 %v826_v32  ;;  %1169 = vst [vmem:[#allocation2 + $0x258] sm:$0x3f] %v1168_v26 }
  0xf5   : > { %v760_v44 = vpop.f32.mrf.mxu2  ;;  %925 = vmatpush.bf16.msrb.mxu1 %v827_v35  ;;  %v1189_v7 = vadd.f32 %v1188_v25, %v5792_v13 }
  0xf6   : > { %v761_v48 = vadd.f32 %v760_v44, %v5917_v39  ;;  %v779_v49 = vpop.f32.mrf.mxu3 }
  0xf7   : > { %v780_v58 = vadd.f32 %v779_v49, %v5917_v39  ;;  %v5048_v32 = vclamps-f32 %v1189_v7, 1.0  ;;  %v1200_v14 = vld [vmem:[#allocation2 + $0x2e0] sm:$0x7] }
  0xf8   : > { %v812_v59 = vmax.f32 %v761_v48, 0.0  ;;  %912 = vmatpush.bf16.msrb.mxu0 %v818_v45  ;;  %v1208_v28 = vpack.c.bf16 %v1200_v14, %v1200_v14 }
  0xf9   : > { %v813_v3 = vmax.f32 %v780_v58, 0.0  ;;  %926 = vmatpush.bf16.msrb.mxu1 %v819_v50  ;;  %v1192_v33 = vsel %vm490_vm1, %v5048_v32, %v5799_v16 }
  0xfa   : > { %v828_v6 = vpack.c.bf16 %v812_v59, %v804_v57  ;;  %1193 = vst [vmem:[#allocation2 + $0xa8] sm:$0x3f] %v1192_v33  ;;  %v1229_v13 = vand.u32 %v1208_v28, %v5838_v51 }
  0xfb   : > { %v829_v12 = vpack.c.bf16 %v813_v3, %v805_v0  ;;  %5037 = vmatmul.msk.bf16.vlgmr.msrb.gmra.mxu0 %vm845_vm4, %v5944_v24  ;;  %v1198_v34 = vld [vmem:[#allocation2 + $0x258] sm:$0x7] }
  0xfc   : > { %1241 = vmatpush.bf16.msra.mxu0 %v1211_v46  ;;  %939 = vmatpush.bf16.msrb.mxu2 %v828_v6  ;;  %v1206_v35 = vpack.c.bf16 %v1198_v34, %v1198_v34 }
  0xfd   : > { %1260 = vmatpush.bf16.msra.mxu1 %v1214_v41  ;;  %953 = vmatpush.bf16.msrb.mxu3 %v829_v12 }
  0xfe   : > { %5038 = vmatmul.msk.bf16.vlgmr.msrb.gmra.mxu1 %vm845_vm4, %v5944_v24  ;;  %v1223_v40 = vand.u32 %v1206_v35, %v5838_v51 }
 0x100   : > { %940 = vmatpush.bf16.msrb.mxu2 %v820_v20  ;;  %1317 = vmatpush.bf16.msrb.mxu0 %v1223_v40 }
 0x101   : > { %954 = vmatpush.bf16.msrb.mxu3 %v821_v29  ;;  %v1201_v44 = vld [vmem:[#allocation2 + $0xa8] sm:$0x7]  ;;  %1336 = vmatpush.bf16.msrb.mxu1 %v1226_v42 }
 0x102   : > { %v1209_v45 = vpack.c.bf16 %v1201_v44, %v1201_v44 }
 0x103   : > { %5039 = vmatmul.msk.bf16.vlgmr.msrb.gmra.mxu2 %vm845_vm4, %v5944_v24 }
 0x104   : > { %1279 = vmatpush.bf16.msra.mxu2 %v1217_v21  ;;  %5040 = vmatmul.msk.bf16.vlgmr.msrb.gmra.mxu3 %vm845_vm4, %v5944_v24  ;;  %v1232_v46 = vand.u32 %v1209_v45, %v5838_v51 }
 0x105   : > { %1298 = vmatpush.bf16.msra.mxu3 %v1220_v23 }
 0x108   : > { %1355 = vmatpush.bf16.msrb.mxu2 %v1229_v13 }
 0x109   : > { %1374 = vmatpush.bf16.msrb.mxu3 %v1232_v46 }
 0x10b   : > { %5049 = vmatmul.msk.bf16.vlgmr.msra.gmra.mxu0 %vm595_vm3, %v5855_v2 }
 0x10e   : > { %5051 = vmatmul.msk.bf16.vlgmr.msra.gmra.mxu1 %vm595_vm3, %v5855_v2 }
 0x113   : > { %5053 = vmatmul.msk.bf16.vlgmr.msra.gmra.mxu2 %vm595_vm3, %v5855_v2 }
 0x114   : > { %5055 = vmatmul.msk.bf16.vlgmr.msra.gmra.mxu3 %vm595_vm3, %v5855_v2 }
 0x11b   : > { %5050 = vmatmul.msk.bf16.gmra.mxu0 %vm595_vm3, %v5880_v22 }
 0x11e   : > { %5052 = vmatmul.msk.bf16.gmra.mxu1 %vm595_vm3, %v5880_v22 }
 0x123   : > { %5054 = vmatmul.msk.bf16.gmra.mxu2 %vm595_vm3, %v5880_v22 }
 0x124   : > { %5056 = vmatmul.msk.bf16.gmra.mxu3 %vm595_vm3, %v5880_v22 }
 0x12b   : > { %5057 = vmatmul.msk.bf16.vlgmr.msrb.gmra.mxu0 %vm595_vm3, %v5855_v2 }
 0x12e   : > { %5059 = vmatmul.msk.bf16.vlgmr.msrb.gmra.mxu1 %vm595_vm3, %v5855_v2  ;;  %v6062_v47 = vpop.permute.xlu2 %837 }
 0x133   : > { %5061 = vmatmul.msk.bf16.vlgmr.msrb.gmra.mxu2 %vm595_vm3, %v5855_v2 }
 0x134   : > { %5063 = vmatmul.msk.bf16.vlgmr.msrb.gmra.mxu3 %vm595_vm3, %v5855_v2 }
 0x137   : > { %v6064_v50 = vpop.permute.xlu2 %832 }
 0x13b   : > { %5058 = vmatmul.msk.bf16.gmra.mxu0 %vm595_vm3, %v5880_v22 }
 0x13e   : > { %5060 = vmatmul.msk.bf16.gmra.mxu1 %vm595_vm3, %v5880_v22 }
 0x143   : > { %5062 = vmatmul.msk.bf16.gmra.mxu2 %vm595_vm3, %v5880_v22 }
 0x144   : > { %5064 = vmatmul.msk.bf16.gmra.mxu3 %vm595_vm3, %v5880_v22 }
 0x158   : > { %v858_v48 = vpop.f32.mrf.mxu0 }
 0x159   : > { %v872_v49 = vpop.f32.mrf.mxu1  ;;  %v6067_v2 = vadd.f32 %v858_v48, %v6064_v50 }
 0x15a   : > { %v6070_v41 = vadd.f32 %v872_v49, %v6064_v50 }
 0x15b   : > { %v978_v22 = vrot.slane %v6067_v2, 2  ;;  %v1058_v56 = vand.u32 2147483647, %v6067_v2  ;;  %v1050_v42 = vmax.f32 %v6067_v2, 0.0 }
 0x15c   : > { %v979_v57 = vrot.slane %v6070_v41, 2  ;;  %v1059_v60 = vand.u32 2147483647, %v6070_v41  ;;  %v1051_v2 = vmax.f32 %v6070_v41, 0.0 }
 0x15d   : > { %1026 = vst [vmem:[#allocation2 + $0x1f0] sm:$0xc0] %v978_v22  ;;  %v1066_v0 = vsub.f32 0.0, %v1058_v56 }
 0x15e   : > { %1027 = vst [vmem:[#allocation2 + $0x50] sm:$0xc0] %v979_v57  ;;  %v1067_v11 = vsub.f32 0.0, %v1059_v60 }
 0x15f   : > { %v1074_v8 = vmul.f32 1.442695, %v1066_v0 }
 0x160   : > { %v860_v52 = vpop.f32.mrf.mxu0  ;;  %v1076_v1 = vmul.f32 1.442695, %v1067_v11 }
 0x161   : > { %v874_v53 = vpop.f32.mrf.mxu1  ;;  %v861_v54 = vadd.f32 %v860_v52, %v6062_v47  ;;  %5341 = vpow2.f32 %v1074_v8 }
 0x162   : > { %v875_v55 = vadd.f32 %v874_v53, %v6062_v47 }
 0x163   : > { %v986_v62 = vrot.slane %v861_v54, 2 }
 0x164   : > { %v988_v3 = vrot.slane %v875_v55, 2 }
 0x165   : > { %v987_v9 = vsel %vm977_vm5, %v978_v22, %v986_v62  ;;  %1042 = vst [vmem:[#allocation2] sm:$0x3f] %v986_v62 }
 0x166   : > { %v886_v43 = vpop.f32.mrf.mxu2  ;;  %v989_v15 = vsel %vm977_vm5, %v979_v57, %v988_v3  ;;  %1034 = vst [vmem:[#allocation2 + $0x168] sm:$0xff] %v987_v9 }
 0x167   : > { %v6078_v58 = vadd.f32 %v886_v43, %v6064_v50  ;;  %v900_v59 = vpop.f32.mrf.mxu3  ;;  %1035 = vst [vmem:[#allocation2 + $0x60] sm:$0xff] %v989_v15  ;;  %v5342_v26 = vpop.eup %5341 }
 0x168   : > { %v6082_v63 = vadd.f32 %v900_v59, %v6064_v50  ;;  %1043 = vst [vmem:[#allocation2 + $0xc8] sm:$0x3f] %v988_v3  ;;  %v1090_v29 = vadd.f32 1.0, %v5342_v26 }
 0x169   : > { %v980_v4 = vrot.slane %v6078_v58, 2  ;;  %v1060_v5 = vand.u32 2147483647, %v6078_v58  ;;  %v1052_v57 = vmax.f32 %v6078_v58, 0.0 }
 0x16a   : > { %v981_v6 = vrot.slane %v6082_v63, 2  ;;  %v1061_v61 = vand.u32 2147483647, %v6082_v63  ;;  %v1053_v60 = vmax.f32 %v6082_v63, 0.0 }
 0x16b   : > { %1028 = vst [vmem:[#allocation2 + $0x10] sm:$0xc0] %v980_v4  ;;  %v1068_v10 = vsub.f32 0.0, %v1060_v5 }
 0x16c   : > { %1029 = vst [vmem:[#allocation2 + $0x108] sm:$0xc0] %v981_v6  ;;  %v1069_v12 = vsub.f32 0.0, %v1061_v61 }
 0x16d   : > { %v1078_v17 = vmul.f32 1.442695, %v1068_v10 }
 0x16e   : > { %v1080_v18 = vmul.f32 1.442695, %v1069_v12  ;;  %v888_v19 = vpop.f32.mrf.mxu2 }
 0x16f   : > { %5343 = vpow2.f32 %v1078_v17  ;;  %v889_v20 = vadd.f32 %v888_v19, %v6062_v47  ;;  %v902_v21 = vpop.f32.mrf.mxu3 }
 0x170   : > { %5345 = vpow2.f32 %v1080_v18  ;;  %v903_v23 = vadd.f32 %v902_v21, %v6062_v47 }
 0x171   : > { %5347 = vpow2.f32 %v1076_v1  ;;  %v990_v25 = vrot.slane %v889_v20, 2 }
 0x172   : > { %v992_v27 = vrot.slane %v903_v23, 2  ;;  %5349 = vlog2.f32 %v1090_v29 }
 0x173   : > { %v991_v7 = vsel %vm977_vm5, %v980_v4, %v990_v25  ;;  %1044 = vst [vmem:[#allocation2 + $0x68] sm:$0x3f] %v990_v25 }
 0x174   : > { %1036 = vst [vmem:[#allocation2 + $0x2f8] sm:$0xff] %v991_v7  ;;  %v993_v32 = vsel %vm977_vm5, %v981_v6, %v992_v27 }
 0x175   : > { %v5344_v14 = vpop.eup %5343  ;;  %1037 = vst [vmem:[#allocation2 + $0x1f8] sm:$0xff] %v993_v32 }
 0x176   : > { %v5346_v33 = vpop.eup %5345  ;;  %v1092_v28 = vadd.f32 1.0, %v5344_v14  ;;  %1045 = vst [vmem:[#allocation2 + $0x128] sm:$0x3f] %v992_v27 }
 0x177   : > { %v5348_v34 = vpop.eup %5347  ;;  %v1093_v13 = vadd.f32 1.0, %v5346_v33 }
 0x178   : > { %5351 = vlog2.f32 %v1092_v28  ;;  %v1091_v35 = vadd.f32 1.0, %v5348_v34  ;;  %v914_v36 = vpop.f32.mrf.mxu0  ;;  %v5350_v45 = vpop.eup %5349 }
 0x179   : > { %5353 = vlog2.f32 %v1093_v13  ;;  %v6095_v38 = vadd.f32 %v914_v36, %v6064_v50  ;;  %v1099_v49 = vmul.f32 0.6931472, %v5350_v45 }
 0x17a   : > { %5355 = vlog2.f32 %v1091_v35 }
 0x17b   : > { %v928_v40 = vpop.f32.mrf.mxu1  ;;  %v982_v46 = vrot.slane %v6095_v38, 2  ;;  %v1062_v48 = vand.u32 2147483647, %v6095_v38  ;;  %v1114_v43 = vadd.f32 %v1099_v49, %v1050_v42  ;;  %v1054_v35 = vmax.f32 %v6095_v38, 0.0  ;;  %v6132_v38 = vld [vmem:[%s5769_s22 + $0x8] sm:$0xff] }
 0x17c   : > { %v6099_v44 = vadd.f32 %v928_v40, %v6064_v50 }
 0x17d   : > { %1030 = vst [vmem:[#allocation2 + $0x30] sm:$0xc0] %v982_v46  ;;  %v1070_v54 = vsub.f32 0.0, %v1062_v48 }
 0x17e   : > { %v983_v52 = vrot.slane %v6099_v44, 2  ;;  %v1063_v53 = vand.u32 2147483647, %v6099_v44  ;;  %v5352_v55 = vpop.eup %5351  ;;  %1122 = vst [vmem:[#allocation3] sm:$0x1] %v1114_v43 }
 0x17f   : > { %v5354_v56 = vpop.eup %5353  ;;  %v1103_v59 = vmul.f32 0.6931472, %v5352_v55  ;;  %v1082_v62 = vmul.f32 1.442695, %v1070_v54 }
 0x180   : > { %1031 = vst [vmem:[#allocation2 + $0x70] sm:$0xc0] %v983_v52  ;;  %v1071_v22 = vsub.f32 0.0, %v1063_v53  ;;  %v5356_v0 = vpop.eup %5355  ;;  %v1105_v3 = vmul.f32 0.6931472, %v5354_v56  ;;  %v916_v5 = vpop.f32.mrf.mxu0 }
 0x181   : > { %v1116_v6 = vadd.f32 %v1103_v59, %v1052_v57  ;;  %v1101_v61 = vmul.f32 0.6931472, %v5356_v0  ;;  %5357 = vpow2.f32 %v1082_v62  ;;  %v917_v8 = vadd.f32 %v916_v5, %v6062_v47 }
 0x182   : > { %v1084_v4 = vmul.f32 1.442695, %v1071_v22  ;;  %v1117_v9 = vadd.f32 %v1105_v3, %v1053_v60  ;;  %v2895_v62 = vrot.slane %v6132_v38, 7 }
 0x183   : > { %v930_v41 = vpop.f32.mrf.mxu1  ;;  %1124 = vst [vmem:[#allocation3 + $0x2] sm:$0x1] %v1116_v6  ;;  %v1115_v58 = vadd.f32 %v1101_v61, %v1051_v2  ;;  %v994_v11 = vrot.slane %v917_v8, 2  ;;  %v2882_v2 = vld [vmem:[%s5769_s22] sm:$0xff] }
 0x184   : > { %5359 = vpow2.f32 %v1084_v4  ;;  %v931_v10 = vadd.f32 %v930_v41, %v6062_v47  ;;  %1125 = vst [vmem:[#allocation3 + $0x3] sm:$0x1] %v1117_v9  ;;  %v2894_v60 = vrot.slane %v2882_v2, 7 }
 0x185   : > { %1123 = vst [vmem:[#allocation3 + $0x1] sm:$0x1] %v1115_v58  ;;  %v995_v12 = vsel %vm977_vm5, %v982_v46, %v994_v11  ;;  %v1055_v46 = vmax.f32 %v6099_v44, 0.0 }
 0x186   : > { %v996_v63 = vrot.slane %v931_v10, 2  ;;  %1038 = vst [vmem:[#allocation2 + $0x1e0] sm:$0xff] %v995_v12  ;;  %v942_v17 = vpop.f32.mrf.mxu2  ;;  %v2896_v41 = vsel %vm602_vm0, %v2894_v60, %v2895_v62  ;;  %v2905_v10 = vsub.f32 %v2882_v2, %v2894_v60 }
 0x187   : > { %v5358_v1 = vpop.eup %5357  ;;  %1046 = vst [vmem:[#allocation2 + $0x2a8] sm:$0x3f] %v994_v11  ;;  %v6113_v18 = vadd.f32 %v942_v17, %v6064_v50  ;;  %v956_v19 = vpop.f32.mrf.mxu3  ;;  %v2906_v58 = vsub.f32 %v6132_v38, %v2896_v41 }
 0x188   : > { %v997_v15 = vsel %vm977_vm5, %v983_v52, %v996_v63  ;;  %v1094_v21 = vadd.f32 1.0, %v5358_v1  ;;  %v6116_v23 = vadd.f32 %v956_v19, %v6064_v50  ;;  %v6118_v25 = vpop.f32.mrf.mxu0  ;;  %1047 = vst [vmem:[#allocation2 + $0x228] sm:$0x3f] %v996_v63  ;;  %v2914_v12 = vrot.slane %v2905_v10, 1 }
 0x189   : > { %1039 = vst [vmem:[#allocation2 + $0x268] sm:$0xff] %v997_v15  ;;  %v984_v27 = vrot.slane %v6113_v18, 2  ;;  %v1064_v7 = vand.u32 2147483647, %v6113_v18  ;;  %v1056_v19 = vmax.f32 %v6113_v18, 0.0 }
 0x18a   : > { %v5360_v20 = vpop.eup %5359  ;;  %5361 = vlog2.f32 %v1094_v21  ;;  %v985_v32 = vrot.slane %v6116_v23, 2  ;;  %v1065_v14 = vand.u32 2147483647, %v6116_v23  ;;  %v6147_v21 = vrot.slane %v2906_v58, 1 }
 0x18b   : > { %v1095_v26 = vadd.f32 1.0, %v5360_v20  ;;  %v6121_v29 = vpop.f32.mrf.mxu1  ;;  %1032 = vst [vmem:[#allocation2 + $0x78] sm:$0xc0] %v984_v27  ;;  %v1072_v33 = vsub.f32 0.0, %v1064_v7  ;;  %v1057_v7 = vmax.f32 %v6116_v23, 0.0 }
 0x18c   : > { %1033 = vst [vmem:[#allocation2 + $0x138] sm:$0xc0] %v985_v32  ;;  %v1073_v28 = vsub.f32 0.0, %v1065_v14  ;;  %v1263_v23 = vadd.f32 %v6121_v29, %v5909_v30 }
 0x18d   : > { %5363 = vlog2.f32 %v1095_v26  ;;  %v1086_v34 = vmul.f32 1.442695, %v1072_v33 }
 0x18e   : > { %v944_v13 = vpop.f32.mrf.mxu2  ;;  %v1088_v36 = vmul.f32 1.442695, %v1073_v28  ;;  %v1387_v2 = vmax.f32 %v1263_v23, 0.0 }
 0x18f   : > { %v945_v40 = vadd.f32 %v944_v13, %v6062_v47  ;;  %v958_v42 = vpop.f32.mrf.mxu3  ;;  %5365 = vpow2.f32 %v1086_v34 }
 0x190   : > { %v5362_v45 = vpop.eup %5361  ;;  %v959_v48 = vadd.f32 %v958_v42, %v6062_v47  ;;  %v1245_v49 = vpop.f32.mrf.mxu0  ;;  %5367 = vpow2.f32 %v1088_v36  ;;  %v1244_v36 = vadd.f32 %v6118_v25, %v5909_v30 }
 0x191   : > { %v1107_v53 = vmul.f32 0.6931472, %v5362_v45  ;;  %v998_v54 = vrot.slane %v945_v40, 2  ;;  %v1246_v14 = vadd.f32 %v1245_v49, %v5914_v37 }
 0x192   : > { %v1000_v22 = vrot.slane %v959_v48, 2 }
 0x193   : > { %v5364_v52 = vpop.eup %5363  ;;  %v1264_v55 = vpop.f32.mrf.mxu1  ;;  %v1118_v56 = vadd.f32 %v1107_v53, %v1054_v35  ;;  %v999_v57 = vsel %vm977_vm5, %v984_v27, %v998_v54  ;;  %1048 = vst [vmem:[#allocation2 + $0x20] sm:$0x3f] %v998_v54  ;;  %v1394_v48 = vmax.f32 %v1246_v14, 0.0 }
 0x194   : > { %v1109_v43 = vmul.f32 0.6931472, %v5364_v52  ;;  %1040 = vst [vmem:[#allocation2 + $0x278] sm:$0xff] %v999_v57  ;;  %v1001_v44 = vsel %vm977_vm5, %v985_v32, %v1000_v22  ;;  %v1265_v13 = vadd.f32 %v1264_v55, %v5914_v37  ;;  %v2916_v52 = vsel %vm2913_vm6, %v2914_v12, %v6147_v21 }
 0x195   : > { %1126 = vst [vmem:[#allocation3 + $0x4] sm:$0x1] %v1118_v56  ;;  %v5366_v0 = vpop.eup %5365  ;;  %v2926_v29 = vsub.f32 0.0, %v2916_v52 }
 0x196   : > { %v1119_v59 = vadd.f32 %v1109_v43, %v1055_v46  ;;  %v6137_v3 = vpop.f32.mrf.mxu2  ;;  %v5368_v4 = vpop.eup %5367  ;;  %v1096_v5 = vadd.f32 1.0, %v5366_v0  ;;  %1041 = vst [vmem:[#allocation2 + $0x100] sm:$0xff] %v1001_v44  ;;  %v1395_v53 = vmax.f32 %v1265_v13, 0.0  ;;  %v1386_v43 = vmax.f32 %v1244_v36, 0.0 }
 0x197   : > { %v6139_v6 = vpop.f32.mrf.mxu3  ;;  %v1097_v61 = vadd.f32 1.0, %v5368_v4  ;;  %1049 = vst [vmem:[#allocation2 + $0xb0] sm:$0x3f] %v1000_v22  ;;  %v5293_v4 = vld [vmem:[%s5769_s22 + $0x10] ss:$0 sm:$0xff] }
 0x198   : > { %1127 = vst [vmem:[#allocation3 + $0x5] sm:$0x1] %v1119_v59  ;;  %v1248_v8 = vpop.f32.mrf.mxu0  ;;  %5369 = vlog2.f32 %v1096_v5  ;;  %v1418_v57 = vpack.c.bf16 %v1394_v48, %v1386_v43  ;;  %v1419_v59 = vpack.c.bf16 %v1395_v53, %v1387_v2  ;;  %v5294_v5 = vld [vmem:[%s5769_s22 + $0x11] ss:$0 sm:$0xff]  ;;  %v5296_v2 = vld [vmem:[%s5769_s22 + $0x13] ss:$0 sm:$0xff] }
 0x199   : > { %5371 = vlog2.f32 %v1097_v61  ;;  %v1249_v15 = vadd.f32 %v1248_v8, %v5911_v31 }
 0x19b   : > { %v1267_v9 = vpop.f32.mrf.mxu1  ;;  %v1402_v40 = vmax.f32 %v1249_v15, 0.0  ;;  %v1282_v15 = vadd.f32 %v6137_v3, %v5909_v30 }
 0x19c   : > { %v1268_v26 = vadd.f32 %v1267_v9, %v5911_v31 }
 0x19e   : > { %v1283_v11 = vpop.f32.mrf.mxu2  ;;  %v5370_v63 = vpop.eup %5369  ;;  %v1403_v45 = vmax.f32 %v1268_v26, 0.0 }
 0x19f   : > { %v1302_v17 = vpop.f32.mrf.mxu3  ;;  %v5372_v1 = vpop.eup %5371  ;;  %v1111_v20 = vmul.f32 0.6931472, %v5370_v63  ;;  %v1284_v61 = vadd.f32 %v1283_v11, %v5914_v37  ;;  %v6176_v63 = vld [vmem:[%s5787_s28] sm:$0x7] }
 0x1a0   : > { %v1250_v27 = vpop.f32.mrf.mxu0  ;;  %v1113_v32 = vmul.f32 0.6931472, %v5372_v1  ;;  %v1716_v12 = vmul.f32 %v6176_v63, %v5293_v4  ;;  %v1724_v11 = vmul.f32 %v6176_v63, %v5294_v5  ;;  %v1303_v1 = vadd.f32 %v1302_v17, %v5914_v37 }
 0x1a1   : > { %v1251_v33 = vadd.f32 %v1250_v27, %v5917_v39  ;;  %v1120_v34 = vadd.f32 %v1111_v20, %v1056_v19  ;;  %v1396_v13 = vmax.f32 %v1284_v61, 0.0 }
 0x1a2   : > { %v1121_v35 = vadd.f32 %v1113_v32, %v1057_v7  ;;  %v6185_v32 = vld [vmem:[%s5781_s25] sm:$0x7] }
 0x1a3   : > { %v1269_v28 = vpop.f32.mrf.mxu1  ;;  %v1410_v42 = vmax.f32 %v1251_v33, 0.0  ;;  %1128 = vst [vmem:[#allocation3 + $0x6] sm:$0x1] %v1120_v34  ;;  %v1717_v14 = vadd.f32 %v6185_v32, %v1716_v12  ;;  %v1301_v33 = vadd.f32 %v6139_v6, %v5909_v30  ;;  %v1725_v3 = vadd.f32 %v6185_v32, %v1724_v11 }
 0x1a4   : > { %v1270_v18 = vadd.f32 %v1269_v28, %v5917_v39  ;;  %1129 = vst [vmem:[#allocation3 + $0x7] sm:$0x1] %v1121_v35  ;;  %v1397_v35 = vmax.f32 %v1303_v1, 0.0 }
 0x1a5   : > { %v1426_v49 = vpack.c.bf16 %v1410_v42, %v1402_v40  ;;  %v5074_v40 = vclamps-f32 %v1725_v3, 1.0  ;;  %v1388_v42 = vmax.f32 %v1282_v15, 0.0 }
 0x1a6   : > { %v1411_v46 = vmax.f32 %v1270_v18, 0.0  ;;  %v1286_v55 = vpop.f32.mrf.mxu2  ;;  %v5073_v18 = vclamps-f32 %v1717_v14, 1.0 }
 0x1a7   : > { %v1305_v25 = vpop.f32.mrf.mxu3  ;;  %1440 = vmatpush.bf16.msra.mxu0 %v1426_v49  ;;  %v1287_v0 = vadd.f32 %v1286_v55, %v5911_v31  ;;  %v1420_v52 = vpack.c.bf16 %v1396_v13, %v1388_v42 }
 0x1a8   : > { %v1427_v54 = vpack.c.bf16 %v1411_v46, %v1403_v45  ;;  %v6161_v22 = vpop.f32.mrf.mxu0  ;;  %v1306_v8 = vadd.f32 %v1305_v25, %v5911_v31  ;;  %v1720_v23 = vsel %vm490_vm1, %v5073_v18, %v5799_v16  ;;  %v1389_v45 = vmax.f32 %v1301_v33, 0.0  ;;  %v5295_v25 = vld [vmem:[%s5769_s22 + $0x12] ss:$0 sm:$0xff] }
 0x1a9   : > { %v1404_v26 = vmax.f32 %v1287_v0, 0.0  ;;  %1721 = vst [vmem:[#allocation2 + $0x1a8] sm:$0x3f] %v1720_v23  ;;  %v1728_v46 = vsel %vm490_vm1, %v5074_v40, %v5799_v16 }
 0x1aa   : > { %1454 = vmatpush.bf16.msra.mxu1 %v1427_v54  ;;  %v1405_v28 = vmax.f32 %v1306_v8, 0.0  ;;  %1729 = vst [vmem:[#allocation2 + $0x2d0] sm:$0x3f] %v1728_v46  ;;  %v1421_v54 = vpack.c.bf16 %v1397_v35, %v1389_v45 }
 0x1ab   : > { %v6163_v56 = vpop.f32.mrf.mxu1  ;;  %1441 = vmatpush.bf16.msra.mxu0 %v1418_v57  ;;  %v2886_v44 = vld [vmem:[#allocation3] sm:$0xff]  ;;  %v1732_v57 = vmul.f32 %v6176_v63, %v5295_v25 }
 0x1ac   : > { %v2930_v60 = vmul.f32 %v2926_v29, %v2886_v44 }
 0x1ae   : > { %1455 = vmatpush.bf16.msra.mxu1 %v1419_v59  ;;  %v1288_v41 = vpop.f32.mrf.mxu2  ;;  %5065 = vmatmul.msk.bf16.vlgmr.msra.gmra.mxu0 %vm845_vm4, %v5944_v24  ;;  %v2934_v9 = vmul.f32 1.442695, %v2930_v60  ;;  %v1740_v59 = vmul.f32 %v6176_v63, %v5296_v2  ;;  %v1733_v60 = vadd.f32 %v6185_v32, %v1732_v57 }
 0x1af   : > { %v1289_v10 = vadd.f32 %v1288_v41, %v5917_v39  ;;  %v1307_v58 = vpop.f32.mrf.mxu3 }
 0x1b0   : > { %v1308_v19 = vadd.f32 %v1307_v58, %v5917_v39  ;;  %v1321_v20 = vpop.f32.mrf.mxu0  ;;  %5373 = vpow2.f32 %v2934_v9  ;;  %v1741_v0 = vadd.f32 %v6185_v32, %v1740_v59  ;;  %v5075_v8 = vclamps-f32 %v1733_v60, 1.0  ;;  %v1778_v15 = vld [vmem:[#allocation2 + $0x1a8] sm:$0x7] }
 0x1b1   : > { %5066 = vmatmul.msk.bf16.vlgmr.msra.gmra.mxu1 %vm845_vm4, %v5944_v24  ;;  %v1412_v27 = vmax.f32 %v1289_v10, 0.0  ;;  %v1322_v9 = vadd.f32 %v1321_v20, %v5914_v37  ;;  %v1320_v20 = vadd.f32 %v6161_v22, %v5909_v30 }
 0x1b2   : > { %v1413_v34 = vmax.f32 %v1308_v19, 0.0  ;;  %v5076_v41 = vclamps-f32 %v1741_v0, 1.0  ;;  %v1736_v1 = vsel %vm490_vm1, %v5075_v8, %v5799_v16  ;;  %v5299_v8 = vld [vmem:[%s5769_s22 + $0x14] ss:$0 sm:$0xff] }
 0x1b3   : > { %v1340_v7 = vpop.f32.mrf.mxu1  ;;  %v1428_v17 = vpack.c.bf16 %v1412_v27, %v1404_v26  ;;  %v1779_v26 = vld [vmem:[#allocation2 + $0x2d0] sm:$0x7]  ;;  %1737 = vst [vmem:[#allocation2 + $0x1b0] sm:$0x3f] %v1736_v1  ;;  %v1390_v45 = vmax.f32 %v1320_v20, 0.0 }
 0x1b4   : > { %v1429_v36 = vpack.c.bf16 %v1413_v34, %v1405_v28  ;;  %v1341_v12 = vadd.f32 %v1340_v7, %v5914_v37  ;;  %v1744_v27 = vsel %vm490_vm1, %v5076_v41, %v5799_v16  ;;  %v1339_v7 = vadd.f32 %v6163_v56, %v5909_v30  ;;  %v5300_v41 = vld [vmem:[%s5769_s22 + $0x15] ss:$0 sm:$0xff] }
 0x1b5   : > { %1468 = vmatpush.bf16.msra.mxu2 %v1428_v17  ;;  %1745 = vst [vmem:[#allocation2 + $0x28] sm:$0x3f] %v1744_v27  ;;  %v1398_v34 = vmax.f32 %v1322_v9, 0.0  ;;  %v1786_v17 = vpack.c.bf16 %v1778_v15, %v1778_v15  ;;  %v1787_v40 = vpack.c.bf16 %v1779_v26, %v1779_v26  ;;  %v1748_v26 = vmul.f32 %v6176_v63, %v5299_v8 }
 0x1b6   : > { %1482 = vmatpush.bf16.msra.mxu3 %v1429_v36  ;;  %v6193_v6 = vpop.f32.mrf.mxu2  ;;  %v6197_v48 = vpop.eup %5373  ;;  %v1399_v35 = vmax.f32 %v1341_v12, 0.0  ;;  %v1391_v46 = vmax.f32 %v1339_v7, 0.0  ;;  %v1756_v27 = vmul.f32 %v6176_v63, %v5300_v41 }
 0x1b7   : > { %v6199_v49 = vpop.f32.mrf.mxu3  ;;  %v2942_v53 = vsub.f32 1.0, %v6197_v48  ;;  %v1798_v25 = vand.u32 %v1787_v40, %v5838_v51  ;;  %v6327_v48 = vld [vmem:[%s7373_s3 + $0x8] sm:$0xff] }
 0x1b8   : > { %v1324_v55 = vpop.f32.mrf.mxu0  ;;  %v1757_v40 = vadd.f32 %v6185_v32, %v1756_v27 }
 0x1b9   : > { %1469 = vmatpush.bf16.msra.mxu2 %v1420_v52  ;;  %v2946_v29 = vsub.f32 1.0, %v2942_v53  ;;  %v1325_v5 = vadd.f32 %v1324_v55, %v5911_v31  ;;  %v1795_v52 = vand.u32 %v1786_v17, %v5838_v51  ;;  %v1422_v55 = vpack.c.bf16 %v1398_v34, %v1390_v45 }
 0x1ba   : > { %1483 = vmatpush.bf16.msra.mxu3 %v1421_v54  ;;  %v1780_v0 = vld [vmem:[#allocation2 + $0x1b0] sm:$0x7] }
 0x1bb   : > { %v1343_v43 = vpop.f32.mrf.mxu1  ;;  %v2950_v44 = vadd.f32 1e-15, %v2946_v29  ;;  %v1406_v14 = vmax.f32 %v1325_v5, 0.0  ;;  %v1358_v29 = vadd.f32 %v6193_v6, %v5909_v30  ;;  %v1377_v6 = vadd.f32 %v6199_v49, %v5909_v30 }
 0x1bc   : > { %5067 = vmatmul.msk.bf16.vlgmr.msra.gmra.mxu2 %vm845_vm4, %v5944_v24  ;;  %v1344_v10 = vadd.f32 %v1343_v43, %v5911_v31  ;;  %v1423_v43 = vpack.c.bf16 %v1399_v35, %v1391_v46 }
 0x1bd   : > { %5068 = vmatmul.msk.bf16.vlgmr.msra.gmra.mxu3 %vm845_vm4, %v5944_v24  ;;  %5375 = vlog2.f32 %v2950_v44  ;;  %v1392_v9 = vmax.f32 %v1358_v29, 0.0 }
 0x1be   : > { %v1359_v4 = vpop.f32.mrf.mxu2  ;;  %v1407_v3 = vmax.f32 %v1344_v10, 0.0 }
 0x1bf   : > { %v1378_v61 = vpop.f32.mrf.mxu3  ;;  %v1360_v57 = vadd.f32 %v1359_v4, %v5914_v37  ;;  %v1781_v4 = vld [vmem:[#allocation2 + $0x28] sm:$0x7] }
 0x1c0   : > { %v1326_v58 = vpop.f32.mrf.mxu0 }
 0x1c1   : > { %v1327_v24 = vadd.f32 %v1326_v58, %v5917_v39  ;;  %v1400_v10 = vmax.f32 %v1360_v57, 0.0  ;;  %v1379_v58 = vadd.f32 %v1378_v61, %v5914_v37  ;;  %v5298_v61 = vld [vmem:[%s5769_s22 + $0x17] ss:$0 sm:$0xff] }
 0x1c3   : > { %v1345_v11 = vpop.f32.mrf.mxu1  ;;  %v1414_v33 = vmax.f32 %v1327_v24, 0.0  ;;  %v5376_v28 = vpop.eup %5375  ;;  %v1424_v29 = vpack.c.bf16 %v1400_v10, %v1392_v9 }
 0x1c4   : > { %v1346_v19 = vadd.f32 %v1345_v11, %v5917_v39  ;;  %v6228_v18 = vmul.f32 0.6931472, %v5376_v28  ;;  %v6258_v11 = vld [vmem:[%s7375_s5] sm:$0xff] }
 0x1c5   : > { %v1430_v36 = vpack.c.bf16 %v1414_v33, %v1406_v14  ;;  %v1788_v14 = vpack.c.bf16 %v1780_v0, %v1780_v0  ;;  %v1789_v33 = vpack.c.bf16 %v1781_v4, %v1781_v4 }
 0x1c6   : > { %v1415_v13 = vmax.f32 %v1346_v19, 0.0  ;;  %v1362_v23 = vpop.f32.mrf.mxu2  ;;  %v2966_v22 = vrot.slane %v6228_v18, 7  ;;  %v5297_v19 = vld [vmem:[%s5769_s22 + $0x16] ss:$0 sm:$0xff] }
 0x1c7   : > { %v1381_v56 = vpop.f32.mrf.mxu3  ;;  %1496 = vmatpush.bf16.msrb.mxu0 %v1430_v36  ;;  %v1363_v59 = vadd.f32 %v1362_v23, %v5911_v31  ;;  %v1749_v36 = vadd.f32 %v6185_v32, %v1748_v26  ;;  %v1804_v0 = vand.u32 %v1789_v33, %v5838_v51 }
 0x1c8   : > { %v1431_v42 = vpack.c.bf16 %v1415_v13, %v1407_v3  ;;  %v6235_v54 = vsel %vm602_vm0, 0.0, %v2966_v22  ;;  %v1382_v60 = vadd.f32 %v1381_v56, %v5911_v31  ;;  %v1764_v3 = vmul.f32 %v6176_v63, %v5297_v19 }
 0x1c9   : > { %v2979_v2 = vrot.slane %v6235_v54, 7  ;;  %v1408_v12 = vmax.f32 %v1363_v59, 0.0  ;;  %v1772_v13 = vmul.f32 %v6176_v63, %v5298_v61 }
 0x1ca   : > { %1510 = vmatpush.bf16.msrb.mxu1 %v1431_v42  ;;  %v1409_v20 = vmax.f32 %v1382_v60, 0.0  ;;  %v1401_v42 = vmax.f32 %v1379_v58, 0.0  ;;  %v1765_v45 = vadd.f32 %v6185_v32, %v1764_v3  ;;  %v1801_v60 = vand.u32 %v1788_v14, %v5838_v51 }
 0x1cb   : > { %1497 = vmatpush.bf16.msrb.mxu0 %v1422_v55  ;;  %v2990_v44 = vsel %vm602_vm0, 0.0, %v2979_v2  ;;  %v1773_v46 = vadd.f32 %v6185_v32, %v1772_v13  ;;  %v5077_v55 = vclamps-f32 %v1749_v36, 1.0 }
 0x1cc   : > { %v6248_v5 = vadd.f32 %v2990_v44, %v6235_v54  ;;  %v5079_v57 = vclamps-f32 %v1765_v45, 1.0 }
 0x1cd   : > { %v5080_v59 = vclamps-f32 %v1773_v46, 1.0  ;;  %v1752_v4 = vsel %vm490_vm1, %v5077_v55, %v5799_v16 }
 0x1ce   : > { %1511 = vmatpush.bf16.msrb.mxu1 %v1423_v43  ;;  %v1364_v24 = vpop.f32.mrf.mxu2  ;;  %5069 = vmatmul.msk.bf16.vlgmr.msrb.gmra.mxu0 %vm845_vm4, %v6258_v11  ;;  %v2999_v49 = vrot.slane %v6248_v5, 6  ;;  %v5078_v43 = vclamps-f32 %v1757_v40, 1.0  ;;  %1753 = vst [vmem:[#allocation2 + $0x178] sm:$0x3f] %v1752_v4 }
 0x1cf   : > { %1825 = vmatpush.bf16.msra.mxu0 %v1795_v52  ;;  %v1365_v15 = vadd.f32 %v1364_v24, %v5917_v39  ;;  %v1383_v1 = vpop.f32.mrf.mxu3  ;;  %v1776_v41 = vsel %vm490_vm1, %v5080_v59, %v5799_v16 }
 0x1d0   : > { %v1384_v7 = vadd.f32 %v1383_v1, %v5917_v39  ;;  %v3010_v28 = vsel %vm603_vm2, 0.0, %v2999_v49  ;;  %v1760_v9 = vsel %vm490_vm1, %v5078_v43, %v5799_v16  ;;  %1777 = vst [vmem:[#allocation2 + $0x180] sm:$0x3f] %v1776_v41 }
 0x1d1   : > { %5070 = vmatmul.msk.bf16.vlgmr.msrb.gmra.mxu1 %vm845_vm4, %v6258_v11  ;;  %v1416_v34 = vmax.f32 %v1365_v15, 0.0  ;;  %v6277_v17 = vadd.f32 %v3010_v28, %v6248_v5  ;;  %1761 = vst [vmem:[#allocation2 + $0x48] sm:$0x3f] %v1760_v9 }
 0x1d2   : > { %1844 = vmatpush.bf16.msra.mxu1 %v1798_v25  ;;  %v1417_v35 = vmax.f32 %v1384_v7, 0.0  ;;  %v1393_v25 = vmax.f32 %v1377_v6, 0.0  ;;  %v1768_v6 = vsel %vm490_vm1, %v5079_v57, %v5799_v16 }
 0x1d3   : > { %v1432_v23 = vpack.c.bf16 %v1416_v34, %v1408_v12  ;;  %v3020_v56 = vrot.slane %v6277_v17, 4  ;;  %1769 = vst [vmem:[#allocation2 + $0x118] sm:$0x3f] %v1768_v6  ;;  %v6308_v12 = vld [vmem:[%s7373_s3] sm:$0xff] }
 0x1d4   : > { %v1433_v52 = vpack.c.bf16 %v1417_v35, %v1409_v20  ;;  %v1425_v10 = vpack.c.bf16 %v1401_v42, %v1393_v25 }
 0x1d5   : > { %1524 = vmatpush.bf16.msrb.mxu2 %v1432_v23  ;;  %v3031_v44 = vsel %vm3019_vm7, 0.0, %v3020_v56  ;;  %v1782_v24 = vld [vmem:[#allocation2 + $0x178] sm:$0x7] }
 0x1d6   : > { %1538 = vmatpush.bf16.msrb.mxu3 %v1433_v52  ;;  %v6292_v8 = vadd.f32 %v3031_v44, %v6277_v17  ;;  %v1790_v1 = vpack.c.bf16 %v1782_v24, %v1782_v24 }
 0x1d7   : > { %v1785_v61 = vld [vmem:[#allocation2 + $0x180] sm:$0x7] }
 0x1d8   : > { %v3044_v58 = vmul.f32 1.442695, %v6292_v8  ;;  %v1793_v27 = vpack.c.bf16 %v1785_v61, %v1785_v61  ;;  %v1807_v20 = vand.u32 %v1790_v1, %v5838_v51  ;;  %v1783_v7 = vld [vmem:[#allocation2 + $0x48] sm:$0x7] }
 0x1d9   : > { %1525 = vmatpush.bf16.msrb.mxu2 %v1424_v29  ;;  %v1791_v28 = vpack.c.bf16 %v1783_v7, %v1783_v7 }
 0x1da   : > { %1539 = vmatpush.bf16.msrb.mxu3 %v1425_v10  ;;  %5377 = vpow2.f32 %v3044_v58  ;;  %v1784_v15 = vld [vmem:[#allocation2 + $0x118] sm:$0x7]  ;;  %v1816_v34 = vand.u32 %v1793_v27, %v5838_v51  ;;  %1901 = vmatpush.bf16.msrb.mxu0 %v1807_v20 }
 0x1db   : > { %v1792_v19 = vpack.c.bf16 %v1784_v15, %v1784_v15  ;;  %v1810_v3 = vand.u32 %v1791_v28, %v5838_v51 }
 0x1dc   : > { %5071 = vmatmul.msk.bf16.vlgmr.msrb.gmra.mxu2 %vm845_vm4, %v6258_v11 }
 0x1dd   : > { %1863 = vmatpush.bf16.msra.mxu2 %v1801_v60  ;;  %5072 = vmatmul.msk.bf16.vlgmr.msrb.gmra.mxu3 %vm845_vm4, %v6258_v11  ;;  %v1813_v33 = vand.u32 %v1792_v19, %v5838_v51 }
 0x1de   : > { %1882 = vmatpush.bf16.msra.mxu3 %v1804_v0  ;;  %5081 = vmatmul.msk.bf16.vlgmr.msra.gmra.mxu0 %vm595_vm3, %v6308_v12 }
 0x1df   : > { %1920 = vmatpush.bf16.msrb.mxu1 %v1810_v3 }
 0x1e0   : > { %v5378_v26 = vpop.eup %5377 }
 0x1e1   : > { %5083 = vmatmul.msk.bf16.vlgmr.msra.gmra.mxu1 %vm595_vm3, %v6308_v12  ;;  %v3052_v14 = vmul.f32 %v5378_v26, %v2942_v53  ;;  %1939 = vmatpush.bf16.msrb.mxu2 %v1813_v33 }
 0x1e2   : > { %1958 = vmatpush.bf16.msrb.mxu3 %v1816_v34 }
 0x1e3   : > { %3078 = vst [vmem:[#allocation3] sm:$0xff] %v3052_v14 }
 0x1ec   : > { %5085 = vmatmul.msk.bf16.vlgmr.msra.gmra.mxu2 %vm595_vm3, %v6308_v12 }
 0x1ed   : > { %5087 = vmatmul.msk.bf16.vlgmr.msra.gmra.mxu3 %vm595_vm3, %v6308_v12 }
 0x1ee   : > { %5082 = vmatmul.msk.bf16.gmra.mxu0 %vm595_vm3, %v6327_v48 }
 0x1f1   : > { %5084 = vmatmul.msk.bf16.gmra.mxu1 %vm595_vm3, %v6327_v48 }
 0x1fc   : > { %5086 = vmatmul.msk.bf16.gmra.mxu2 %vm595_vm3, %v6327_v48 }
 0x1fd   : > { %5088 = vmatmul.msk.bf16.gmra.mxu3 %vm595_vm3, %v6327_v48 }
 0x1fe   : > { %5089 = vmatmul.msk.bf16.vlgmr.msrb.gmra.mxu0 %vm595_vm3, %v6308_v12 }
 0x201   : > { %5091 = vmatmul.msk.bf16.vlgmr.msrb.gmra.mxu1 %vm595_vm3, %v6308_v12 }
 0x20c   : > { %5093 = vmatmul.msk.bf16.vlgmr.msrb.gmra.mxu2 %vm595_vm3, %v6308_v12 }
 0x20d   : > { %5095 = vmatmul.msk.bf16.vlgmr.msrb.gmra.mxu3 %vm595_vm3, %v6308_v12 }
 0x20e   : > { %5090 = vmatmul.msk.bf16.gmra.mxu0 %vm595_vm3, %v6327_v48 }
 0x211   : > { %5092 = vmatmul.msk.bf16.gmra.mxu1 %vm595_vm3, %v6327_v48 }
 0x21c   : > { %5094 = vmatmul.msk.bf16.gmra.mxu2 %vm595_vm3, %v6327_v48 }
 0x21d   : > { %5096 = vmatmul.msk.bf16.gmra.mxu3 %vm595_vm3, %v6327_v48 }
 0x22b   : > { %v1443_v53 = vpop.f32.mrf.mxu0 }
 0x22c   : > { %v1444_v13 = vadd.f32 %v1443_v53, %v6064_v50 }
 0x22e   : > { %v1457_v35 = vpop.f32.mrf.mxu1  ;;  %v1562_v40 = vrot.slane %v1444_v13, 2  ;;  %v1642_v42 = vand.u32 2147483647, %v1444_v13  ;;  %v1634_v19 = vmax.f32 %v1444_v13, 0.0 }
 0x22f   : > { %v1458_v36 = vadd.f32 %v1457_v35, %v6064_v50 }
 0x230   : > { %1610 = vst [vmem:[#allocation2 + $0x2a0] sm:$0xc0] %v1562_v40  ;;  %v1650_v46 = vsub.f32 0.0, %v1642_v42 }
 0x231   : > { %v1563_v23 = vrot.slane %v1458_v36, 2  ;;  %v1643_v45 = vand.u32 2147483647, %v1458_v36  ;;  %v1635_v20 = vmax.f32 %v1458_v36, 0.0 }
 0x232   : > { %v1658_v55 = vmul.f32 1.442695, %v1650_v46 }
 0x233   : > { %1611 = vst [vmem:[#allocation2 + $0xd8] sm:$0xc0] %v1563_v23  ;;  %v1651_v52 = vsub.f32 0.0, %v1643_v45  ;;  %v1445_v44 = vpop.f32.mrf.mxu0 }
 0x234   : > { %5379 = vpow2.f32 %v1658_v55  ;;  %v1446_v0 = vadd.f32 %v1445_v44, %v6062_v47 }
 0x235   : > { %v1660_v43 = vmul.f32 1.442695, %v1651_v52 }
 0x236   : > { %v1459_v60 = vpop.f32.mrf.mxu1  ;;  %v1570_v41 = vrot.slane %v1446_v0, 2 }
 0x237   : > { %5381 = vpow2.f32 %v1660_v43  ;;  %v1460_v4 = vadd.f32 %v1459_v60, %v6062_v47 }
 0x238   : > { %v1571_v15 = vsel %vm977_vm5, %v1562_v40, %v1570_v41  ;;  %1626 = vst [vmem:[#allocation2 + $0x188] sm:$0x3f] %v1570_v41 }
 0x239   : > { %v1572_v9 = vrot.slane %v1460_v4, 2  ;;  %1618 = vst [vmem:[#allocation2 + $0xb8] sm:$0xff] %v1571_v15 }
 0x23a   : > { %v5380_v25 = vpop.eup %5379 }
 0x23b   : > { %v1674_v57 = vadd.f32 1.0, %v5380_v25  ;;  %v1573_v1 = vsel %vm977_vm5, %v1563_v23, %v1572_v9  ;;  %1627 = vst [vmem:[#allocation2 + $0x1c0] sm:$0x3f] %v1572_v9 }
 0x23c   : > { %1619 = vst [vmem:[#allocation2 + $0x200] sm:$0xff] %v1573_v1 }
 0x23d   : > { %v5382_v29 = vpop.eup %5381  ;;  %5383 = vlog2.f32 %v1674_v57 }
 0x23e   : > { %v1675_v59 = vadd.f32 1.0, %v5382_v29 }
 0x23f   : > { %v1471_v6 = vpop.f32.mrf.mxu2 }
 0x240   : > { %5385 = vlog2.f32 %v1675_v59  ;;  %v6358_v10 = vadd.f32 %v1471_v6, %v6064_v50  ;;  %v1485_v58 = vpop.f32.mrf.mxu3 }
 0x241   : > { %v6361_v24 = vadd.f32 %v1485_v58, %v6064_v50 }
 0x242   : > { %v1564_v61 = vrot.slane %v6358_v10, 2  ;;  %v1644_v26 = vand.u32 2147483647, %v6358_v10 }
 0x243   : > { %v5384_v27 = vpop.eup %5383  ;;  %v1565_v7 = vrot.slane %v6361_v24, 2  ;;  %v1645_v14 = vand.u32 2147483647, %v6361_v24 }
 0x244   : > { %v1683_v28 = vmul.f32 0.6931472, %v5384_v27  ;;  %1612 = vst [vmem:[#allocation2 + $0x2b8] sm:$0xc0] %v1564_v61  ;;  %v1652_v34 = vsub.f32 0.0, %v1644_v26 }
 0x245   : > { %1613 = vst [vmem:[#allocation2 + $0x170] sm:$0xc0] %v1565_v7  ;;  %v1653_v53 = vsub.f32 0.0, %v1645_v14 }
 0x246   : > { %v5386_v33 = vpop.eup %5385  ;;  %v1698_v13 = vadd.f32 %v1683_v28, %v1634_v19  ;;  %v1662_v35 = vmul.f32 1.442695, %v1652_v34 }
 0x247   : > { %v1685_v3 = vmul.f32 0.6931472, %v5386_v33  ;;  %v1664_v42 = vmul.f32 1.442695, %v1653_v53  ;;  %v1473_v23 = vpop.f32.mrf.mxu2  ;;  %v1636_v53 = vmax.f32 %v6358_v10, 0.0 }
 0x248   : > { %1706 = vst [vmem:[#allocation3 + $0x8] sm:$0x1] %v1698_v13  ;;  %5387 = vpow2.f32 %v1662_v35  ;;  %v1474_v36 = vadd.f32 %v1473_v23, %v6062_v47  ;;  %v1487_v45 = vpop.f32.mrf.mxu3 }
 0x249   : > { %v1699_v40 = vadd.f32 %v1685_v3, %v1635_v20  ;;  %5389 = vpow2.f32 %v1664_v42  ;;  %v1488_v46 = vadd.f32 %v1487_v45, %v6062_v47 }
 0x24a   : > { %v1574_v52 = vrot.slane %v1474_v36, 2 }
 0x24b   : > { %1707 = vst [vmem:[#allocation3 + $0x9] sm:$0x1] %v1699_v40  ;;  %v1499_v55 = vpop.f32.mrf.mxu0  ;;  %v1576_v43 = vrot.slane %v1488_v46, 2  ;;  %v1637_v40 = vmax.f32 %v6361_v24, 0.0 }
 0x24c   : > { %v6372_v25 = vadd.f32 %v1499_v55, %v6064_v50  ;;  %v1575_v57 = vsel %vm977_vm5, %v1564_v61, %v1574_v52  ;;  %1628 = vst [vmem:[#allocation2 + $0x140] sm:$0x3f] %v1574_v52 }
 0x24d   : > { %1620 = vst [vmem:[#allocation2 + $0x88] sm:$0xff] %v1575_v57  ;;  %v1577_v44 = vsel %vm977_vm5, %v1565_v7, %v1576_v43 }
 0x24e   : > { %v1513_v29 = vpop.f32.mrf.mxu1  ;;  %v5388_v60 = vpop.eup %5387  ;;  %v1566_v0 = vrot.slane %v6372_v25, 2  ;;  %v1646_v4 = vand.u32 2147483647, %v6372_v25  ;;  %1621 = vst [vmem:[#allocation2 + $0x288] sm:$0xff] %v1577_v44 }
 0x24f   : > { %v6376_v59 = vadd.f32 %v1513_v29, %v6064_v50  ;;  %v5390_v6 = vpop.eup %5389  ;;  %v1676_v41 = vadd.f32 1.0, %v5388_v60  ;;  %1629 = vst [vmem:[#allocation2 + $0x238] sm:$0x3f] %v1576_v43 }
 0x250   : > { %v1677_v15 = vadd.f32 1.0, %v5390_v6  ;;  %1614 = vst [vmem:[#allocation2 + $0x258] sm:$0xc0] %v1566_v0  ;;  %v1654_v1 = vsub.f32 0.0, %v1646_v4 }
 0x251   : > { %v1567_v9 = vrot.slane %v6376_v59, 2  ;;  %v1647_v58 = vand.u32 2147483647, %v6376_v59  ;;  %5391 = vlog2.f32 %v1676_v41 }
 0x252   : > { %5393 = vlog2.f32 %v1677_v15  ;;  %v1666_v61 = vmul.f32 1.442695, %v1654_v1 }
 0x253   : > { %1615 = vst [vmem:[#allocation2 + $0x218] sm:$0xc0] %v1567_v9  ;;  %v1655_v19 = vsub.f32 0.0, %v1647_v58  ;;  %v1501_v27 = vpop.f32.mrf.mxu0 }
 0x254   : > { %5395 = vpow2.f32 %v1666_v61  ;;  %v1502_v20 = vadd.f32 %v1501_v27, %v6062_v47 }
 0x255   : > { %v1668_v26 = vmul.f32 1.442695, %v1655_v19 }
 0x256   : > { %v1515_v7 = vpop.f32.mrf.mxu1  ;;  %v1578_v33 = vrot.slane %v1502_v20, 2 }
 0x257   : > { %5397 = vpow2.f32 %v1668_v26  ;;  %v1516_v14 = vadd.f32 %v1515_v7, %v6062_v47  ;;  %v5392_v28 = vpop.eup %5391 }
 0x258   : > { %v5394_v3 = vpop.eup %5393  ;;  %v1687_v13 = vmul.f32 0.6931472, %v5392_v28  ;;  %v1579_v35 = vsel %vm977_vm5, %v1566_v0, %v1578_v33  ;;  %1630 = vst [vmem:[#allocation2 + $0x1c8] sm:$0x3f] %v1578_v33  ;;  %v1638_v0 = vmax.f32 %v6372_v25, 0.0 }
 0x259   : > { %v1580_v34 = vrot.slane %v1516_v14, 2  ;;  %v1689_v42 = vmul.f32 0.6931472, %v5394_v3  ;;  %1622 = vst [vmem:[#allocation2 + $0x38] sm:$0xff] %v1579_v35 }
 0x25a   : > { %v5396_v36 = vpop.eup %5395  ;;  %v1700_v45 = vadd.f32 %v1687_v13, %v1636_v53 }
 0x25b   : > { %v1581_v23 = vsel %vm977_vm5, %v1567_v9, %v1580_v34  ;;  %v1701_v52 = vadd.f32 %v1689_v42, %v1637_v40  ;;  %v1678_v55 = vadd.f32 1.0, %v5396_v36  ;;  %1631 = vst [vmem:[#allocation2 + $0x120] sm:$0x3f] %v1580_v34  ;;  %v6389_v43 = vpop.f32.mrf.mxu0  ;;  %v1639_v9 = vmax.f32 %v6376_v59, 0.0  ;;  %v6408_v42 = vld [vmem:[%s5769_s22 + $0x10] sm:$0xff] }
 0x25c   : > { %1623 = vst [vmem:[#allocation2 + $0x90] sm:$0xff] %v1581_v23 }
 0x25d   : > { %v5398_v46 = vpop.eup %5397  ;;  %1708 = vst [vmem:[#allocation3 + $0xa] sm:$0x1] %v1700_v45  ;;  %5399 = vlog2.f32 %v1678_v55 }
 0x25e   : > { %v1679_v10 = vadd.f32 1.0, %v5398_v46  ;;  %v6391_v29 = vpop.f32.mrf.mxu1  ;;  %1709 = vst [vmem:[#allocation3 + $0xb] sm:$0x1] %v1701_v52 }
 0x25f   : > { %v1527_v24 = vpop.f32.mrf.mxu2 }
 0x260   : > { %5401 = vlog2.f32 %v1679_v10  ;;  %v6394_v57 = vadd.f32 %v1527_v24, %v6064_v50  ;;  %v1541_v44 = vpop.f32.mrf.mxu3  ;;  %v2897_v10 = vrot.slane %v6408_v42, 7 }
 0x261   : > { %v6397_v60 = vadd.f32 %v1541_v44, %v6064_v50 }
 0x262   : > { %v1568_v4 = vrot.slane %v6394_v57, 2  ;;  %v1648_v6 = vand.u32 2147483647, %v6394_v57 }
 0x263   : > { %v5400_v41 = vpop.eup %5399  ;;  %v1569_v58 = vrot.slane %v6397_v60, 2  ;;  %v1649_v15 = vand.u32 2147483647, %v6397_v60  ;;  %v1829_v1 = vpop.f32.mrf.mxu0 }
 0x264   : > { %v1691_v61 = vmul.f32 0.6931472, %v5400_v41  ;;  %1616 = vst [vmem:[#allocation2 + $0x2e0] sm:$0xc0] %v1568_v4  ;;  %v1656_v26 = vsub.f32 0.0, %v1648_v6  ;;  %v2898_v6 = vsel %vm602_vm0, %v2895_v62, %v2897_v10 }
 0x265   : > { %1617 = vst [vmem:[#allocation2 + $0xa8] sm:$0xc0] %v1569_v58  ;;  %v1657_v25 = vsub.f32 0.0, %v1649_v15 }
 0x266   : > { %v5402_v19 = vpop.eup %5401  ;;  %v1848_v27 = vpop.f32.mrf.mxu1  ;;  %v1702_v7 = vadd.f32 %v1691_v61, %v1638_v0  ;;  %v1670_v14 = vmul.f32 1.442695, %v1656_v26 }
 0x267   : > { %v1693_v20 = vmul.f32 0.6931472, %v5402_v19  ;;  %v1672_v28 = vmul.f32 1.442695, %v1657_v25  ;;  %v1529_v34 = vpop.f32.mrf.mxu2  ;;  %v1849_v61 = vadd.f32 %v1848_v27, %v5914_v37  ;;  %v2907_v25 = vsub.f32 %v6408_v42, %v2898_v6 }
 0x268   : > { %1710 = vst [vmem:[#allocation3 + $0xc] sm:$0x1] %v1702_v7  ;;  %5403 = vpow2.f32 %v1670_v14  ;;  %v1530_v59 = vadd.f32 %v1529_v34, %v6062_v47  ;;  %v1543_v3 = vpop.f32.mrf.mxu3  ;;  %v1847_v14 = vadd.f32 %v6391_v29, %v5909_v30 }
 0x269   : > { %v1703_v33 = vadd.f32 %v1693_v20, %v1639_v9  ;;  %5405 = vpow2.f32 %v1672_v28  ;;  %v1544_v53 = vadd.f32 %v1543_v3, %v6062_v47  ;;  %v1828_v20 = vadd.f32 %v6389_v43, %v5909_v30 }
 0x26a   : > { %v1582_v13 = vrot.slane %v1530_v59, 2  ;;  %v1640_v59 = vmax.f32 %v6394_v57, 0.0  ;;  %v1641_v43 = vmax.f32 %v6397_v60, 0.0  ;;  %v1971_v29 = vmax.f32 %v1847_v14, 0.0 }
 0x26b   : > { %1711 = vst [vmem:[#allocation3 + $0xd] sm:$0x1] %v1703_v33  ;;  %v1584_v35 = vrot.slane %v1544_v53, 2  ;;  %v1832_v40 = vpop.f32.mrf.mxu0 }
 0x26c   : > { %v1583_v23 = vsel %vm977_vm5, %v1568_v4, %v1582_v13  ;;  %1632 = vst [vmem:[#allocation2 + $0x290] sm:$0x3f] %v1582_v13  ;;  %v1833_v4 = vadd.f32 %v1832_v40, %v5911_v31  ;;  %v1979_v40 = vmax.f32 %v1849_v61, 0.0 }
 0x26d   : > { %1624 = vst [vmem:[#allocation2 + $0x298] sm:$0xff] %v1583_v23  ;;  %v1585_v45 = vsel %vm977_vm5, %v1569_v58, %v1584_v35  ;;  %v1830_v58 = vadd.f32 %v1829_v1, %v5914_v37 }
 0x26e   : > { %v1851_v36 = vpop.f32.mrf.mxu1  ;;  %v5404_v46 = vpop.eup %5403  ;;  %1625 = vst [vmem:[#allocation2 + $0xd0] sm:$0xff] %v1585_v45  ;;  %v1986_v38 = vmax.f32 %v1833_v4, 0.0  ;;  %v2003_v60 = vpack.c.bf16 %v1979_v40, %v1971_v29 }
 0x26f   : > { %v5406_v52 = vpop.eup %5405  ;;  %v1680_v55 = vadd.f32 1.0, %v5404_v46  ;;  %1633 = vst [vmem:[#allocation2 + $0x110] sm:$0x3f] %v1584_v35  ;;  %v6413_v24 = vpop.f32.mrf.mxu2  ;;  %v1852_v41 = vadd.f32 %v1851_v36, %v5911_v31  ;;  %v1978_v3 = vmax.f32 %v1830_v58, 0.0  ;;  %v1970_v36 = vmax.f32 %v1828_v20, 0.0 }
 0x270   : > { %v1681_v44 = vadd.f32 1.0, %v5406_v52  ;;  %v6415_v0 = vpop.f32.mrf.mxu3  ;;  %v6435_v46 = vrot.slane %v2907_v25, 1  ;;  %v5302_v58 = vld [vmem:[%s5769_s22 + $0x19] ss:$0 sm:$0xff] }
 0x271   : > { %5407 = vlog2.f32 %v1680_v55  ;;  %v1987_v33 = vmax.f32 %v1852_v41, 0.0  ;;  %v2308_v61 = vmul.f32 %v6176_v63, %v5302_v58  ;;  %v1885_v29 = vadd.f32 %v6415_v0, %v5909_v30 }
 0x272   : > { %5409 = vlog2.f32 %v1681_v44  ;;  %v2002_v44 = vpack.c.bf16 %v1978_v3, %v1970_v36  ;;  %v2918_v4 = vsel %vm2913_vm6, %v6147_v21, %v6435_v46  ;;  %v1866_v36 = vadd.f32 %v6413_v24, %v5909_v30 }
 0x273   : > { %v1834_v9 = vpop.f32.mrf.mxu0  ;;  %v1973_v24 = vmax.f32 %v1885_v29, 0.0 }
 0x274   : > { %v1835_v15 = vadd.f32 %v1834_v9, %v5917_v39  ;;  %v5301_v9 = vld [vmem:[%s5769_s22 + $0x18] ss:$0 sm:$0xff]  ;;  %v1972_v58 = vmax.f32 %v1866_v36, 0.0 }
 0x276   : > { %v1853_v19 = vpop.f32.mrf.mxu1  ;;  %v1994_v7 = vmax.f32 %v1835_v15, 0.0  ;;  %v2927_v15 = vsub.f32 0.0, %v2918_v4 }
 0x277   : > { %v1854_v26 = vadd.f32 %v1853_v19, %v5917_v39  ;;  %v5408_v62 = vpop.eup %5407  ;;  %v1867_v28 = vpop.f32.mrf.mxu2  ;;  %v2300_v19 = vmul.f32 %v6176_v63, %v5301_v9 }
 0x278   : > { %v5410_v34 = vpop.eup %5409  ;;  %v1695_v27 = vmul.f32 0.6931472, %v5408_v62  ;;  %v2010_v53 = vpack.c.bf16 %v1994_v7, %v1986_v38  ;;  %v1886_v13 = vpop.f32.mrf.mxu3  ;;  %v2309_v38 = vadd.f32 %v6185_v32, %v2308_v61 }
 0x279   : > { %v1995_v1 = vmax.f32 %v1854_v26, 0.0  ;;  %v1697_v35 = vmul.f32 0.6931472, %v5410_v34  ;;  %v2301_v25 = vadd.f32 %v6185_v32, %v2300_v19  ;;  %v1887_v40 = vadd.f32 %v1886_v13, %v5914_v37 }
 0x27a   : > { %v1704_v45 = vadd.f32 %v1695_v27, %v1640_v59  ;;  %2024 = vmatpush.bf16.msra.mxu0 %v2010_v53  ;;  %v1868_v27 = vadd.f32 %v1867_v28, %v5914_v37 }
 0x27b   : > { %v2011_v23 = vpack.c.bf16 %v1995_v1, %v1987_v33  ;;  %v1705_v52 = vadd.f32 %v1697_v35, %v1641_v43  ;;  %v6437_v57 = vpop.f32.mrf.mxu0  ;;  %v5105_v14 = vclamps-f32 %v2301_v25, 1.0  ;;  %v5106_v33 = vclamps-f32 %v2309_v38, 1.0 }
 0x27c   : > { %1712 = vst [vmem:[#allocation3 + $0xe] sm:$0x1] %v1704_v45  ;;  %v1980_v4 = vmax.f32 %v1868_v27, 0.0  ;;  %v1981_v13 = vmax.f32 %v1887_v40, 0.0 }
 0x27d   : > { %2038 = vmatpush.bf16.msra.mxu1 %v2011_v23  ;;  %1713 = vst [vmem:[#allocation3 + $0xf] sm:$0x1] %v1705_v52  ;;  %v2304_v43 = vsel %vm490_vm1, %v5105_v14, %v5799_v16  ;;  %v2312_v35 = vsel %vm490_vm1, %v5106_v33, %v5799_v16  ;;  %v5304_v14 = vld [vmem:[%s5769_s22 + $0x1b] ss:$0 sm:$0xff]  ;;  %v1904_v33 = vadd.f32 %v6437_v57, %v5909_v30 }
 0x27e   : > { %v6439_v55 = vpop.f32.mrf.mxu1  ;;  %2025 = vmatpush.bf16.msra.mxu0 %v2002_v44  ;;  %2305 = vst [vmem:[#allocation2 + $0x1a0] sm:$0x3f] %v2304_v43  ;;  %v2005_v25 = vpack.c.bf16 %v1981_v13, %v1973_v24 }
 0x27f   : > { %v1870_v6 = vpop.f32.mrf.mxu2  ;;  %2313 = vst [vmem:[#allocation2 + $0x250] sm:$0x3f] %v2312_v35  ;;  %v1923_v40 = vadd.f32 %v6439_v55, %v5909_v30 }
 0x280   : > { %v1889_v41 = vpop.f32.mrf.mxu3  ;;  %v1871_v62 = vadd.f32 %v1870_v6, %v5911_v31 }
 0x281   : > { %2039 = vmatpush.bf16.msra.mxu1 %v2003_v60  ;;  %5097 = vmatmul.msk.bf16.vlgmr.msra.gmra.mxu0 %vm845_vm4, %v6258_v11  ;;  %v1890_v34 = vadd.f32 %v1889_v41, %v5911_v31 }
 0x282   : > { %v1988_v45 = vmax.f32 %v1871_v62, 0.0  ;;  %v5303_v62 = vld [vmem:[%s5769_s22 + $0x1a] ss:$0 sm:$0xff] }
 0x283   : > { %v1905_v26 = vpop.f32.mrf.mxu0  ;;  %v1989_v52 = vmax.f32 %v1890_v34, 0.0  ;;  %v2316_v35 = vmul.f32 %v6176_v63, %v5303_v62 }
 0x284   : > { %5098 = vmatmul.msk.bf16.vlgmr.msra.gmra.mxu1 %vm845_vm4, %v6258_v11  ;;  %v2887_v20 = vld [vmem:[#allocation3 + $0x8] sm:$0xff]  ;;  %v1906_v27 = vadd.f32 %v1905_v26, %v5914_v37 }
 0x285   : > { %v2931_v7 = vmul.f32 %v2927_v15, %v2887_v20  ;;  %v2004_v20 = vpack.c.bf16 %v1980_v4, %v1972_v58  ;;  %v2362_v43 = vld [vmem:[#allocation2 + $0x1a0] sm:$0x7]  ;;  %v2317_v29 = vadd.f32 %v6185_v32, %v2316_v35 }
 0x286   : > { %v1924_v21 = vpop.f32.mrf.mxu1  ;;  %v2363_v36 = vld [vmem:[#allocation2 + $0x250] sm:$0x7]  ;;  %v1982_v4 = vmax.f32 %v1906_v27, 0.0 }
 0x287   : > { %v2936_v1 = vmul.f32 1.442695, %v2931_v7  ;;  %v1872_v59 = vpop.f32.mrf.mxu2  ;;  %v2371_v13 = vpack.c.bf16 %v2363_v36, %v2363_v36 }
 0x288   : > { %v1873_v3 = vadd.f32 %v1872_v59, %v5917_v39  ;;  %v1891_v53 = vpop.f32.mrf.mxu3 }
 0x289   : > { %5411 = vpow2.f32 %v2936_v1  ;;  %v1892_v23 = vadd.f32 %v1891_v53, %v5917_v39 }
 0x28a   : > { %v1996_v28 = vmax.f32 %v1873_v3, 0.0 }
 0x28b   : > { %v1997_v44 = vmax.f32 %v1892_v23, 0.0  ;;  %v1908_v60 = vpop.f32.mrf.mxu0  ;;  %v1925_v23 = vadd.f32 %v1924_v21, %v5914_v37  ;;  %v2370_v21 = vpack.c.bf16 %v2362_v43, %v2362_v43  ;;  %v5307_v43 = vld [vmem:[%s5769_s22 + $0x1d] ss:$0 sm:$0xff] }
 0x28c   : > { %v2012_v6 = vpack.c.bf16 %v1996_v28, %v1988_v45  ;;  %v1909_v7 = vadd.f32 %v1908_v60, %v5911_v31  ;;  %v2324_v45 = vmul.f32 %v6176_v63, %v5304_v14 }
 0x28d   : > { %v2013_v9 = vpack.c.bf16 %v1997_v44, %v1989_v52  ;;  %v1983_v63 = vmax.f32 %v1925_v23, 0.0  ;;  %v5626_v23 = vld [vmem:[%s5787_s28] sm:$0x7] }
 0x28e   : > { %v1927_v41 = vpop.f32.mrf.mxu1  ;;  %2052 = vmatpush.bf16.msra.mxu2 %v2012_v6  ;;  %v1990_v26 = vmax.f32 %v1909_v7, 0.0  ;;  %v2325_v60 = vadd.f32 %v6185_v32, %v2324_v45  ;;  %v2379_v7 = vand.u32 %v2370_v21, %v5838_v51  ;;  %v2340_v36 = vmul.f32 %v5626_v23, %v5307_v43 }
 0x28f   : > { %v6468_v15 = vpop.eup %5411  ;;  %2066 = vmatpush.bf16.msra.mxu3 %v2013_v9  ;;  %v6470_v19 = vpop.f32.mrf.mxu2  ;;  %v1928_v1 = vadd.f32 %v1927_v41, %v5911_v31  ;;  %v5107_v9 = vclamps-f32 %v2317_v29, 1.0 }
 0x290   : > { %v2943_v0 = vsub.f32 1.0, %v6468_v15  ;;  %v6473_v61 = vpop.f32.mrf.mxu3  ;;  %v5108_v24 = vclamps-f32 %v2325_v60, 1.0 }
 0x291   : > { %v1991_v52 = vmax.f32 %v1928_v1, 0.0  ;;  %v2382_v1 = vand.u32 %v2371_v13, %v5838_v51 }
 0x292   : > { %v2947_v38 = vsub.f32 1.0, %v2943_v0  ;;  %2053 = vmatpush.bf16.msra.mxu2 %v2004_v20  ;;  %v1974_v20 = vmax.f32 %v1904_v33, 0.0  ;;  %v2328_v32 = vsel %vm490_vm1, %v5108_v24, %v5799_v16 }
 0x293   : > { %2067 = vmatpush.bf16.msra.mxu3 %v2005_v25  ;;  %v1910_v34 = vpop.f32.mrf.mxu0  ;;  %v2320_v25 = vsel %vm490_vm1, %v5107_v9, %v5799_v16  ;;  %2329 = vst [vmem:[#allocation2 + $0x190] sm:$0x3f] %v2328_v32 }
 0x294   : > { %v2951_v59 = vadd.f32 1e-15, %v2947_v38  ;;  %v1911_v3 = vadd.f32 %v1910_v34, %v5917_v39  ;;  %v1975_v38 = vmax.f32 %v1923_v40, 0.0  ;;  %2321 = vst [vmem:[#allocation2 + $0x2c8] sm:$0x3f] %v2320_v25  ;;  %v2006_v14 = vpack.c.bf16 %v1982_v4, %v1974_v20 }
 0x295   : > { %5099 = vmatmul.msk.bf16.vlgmr.msra.gmra.mxu2 %vm845_vm4, %v6258_v11  ;;  %v5308_v4 = vld [vmem:[%s5769_s22 + $0x1f] ss:$0 sm:$0xff] }
 0x296   : > { %v1929_v53 = vpop.f32.mrf.mxu1  ;;  %5413 = vlog2.f32 %v2951_v59  ;;  %v1998_v28 = vmax.f32 %v1911_v3, 0.0  ;;  %5100 = vmatmul.msk.bf16.vlgmr.msra.gmra.mxu3 %vm845_vm4, %v6258_v11  ;;  %v2007_v34 = vpack.c.bf16 %v1983_v63, %v1975_v38 }
 0x297   : > { %v1930_v57 = vadd.f32 %v1929_v53, %v5917_v39  ;;  %v1943_v44 = vpop.f32.mrf.mxu2  ;;  %v5306_v53 = vld [vmem:[%s5769_s22 + $0x1c] ss:$0 sm:$0xff] }
 0x298   : > { %v2014_v6 = vpack.c.bf16 %v1998_v28, %v1990_v26  ;;  %v1962_v41 = vpop.f32.mrf.mxu3  ;;  %v1944_v29 = vadd.f32 %v1943_v44, %v5914_v37 }
 0x299   : > { %v1999_v55 = vmax.f32 %v1930_v57, 0.0  ;;  %v2332_v57 = vmul.f32 %v5626_v23, %v5306_v53 }
 0x29a   : > { %2080 = vmatpush.bf16.msrb.mxu0 %v2014_v6  ;;  %v1963_v6 = vadd.f32 %v1962_v41, %v5914_v37  ;;  %v1984_v41 = vmax.f32 %v1944_v29, 0.0  ;;  %v2365_v38 = vld [vmem:[#allocation2 + $0x190] sm:$0x7] }
 0x29b   : > { %v2015_v58 = vpack.c.bf16 %v1999_v55, %v1991_v52  ;;  %v5305_v55 = vld [vmem:[%s5769_s22 + $0x1e] ss:$0 sm:$0xff]  ;;  %v2373_v43 = vpack.c.bf16 %v2365_v38, %v2365_v38 }
 0x29c   : > { %v5414_v62 = vpop.eup %5413 }
 0x29d   : > { %2094 = vmatpush.bf16.msrb.mxu1 %v2015_v58  ;;  %v6503_v33 = vmul.f32 0.6931472, %v5414_v62  ;;  %v2348_v58 = vmul.f32 %v5626_v23, %v5305_v55  ;;  %v2388_v17 = vand.u32 %v2373_v43, %v5838_v51 }
 0x29e   : > { %2081 = vmatpush.bf16.msrb.mxu0 %v2006_v14 }
 0x29f   : > { %v2967_v59 = vrot.slane %v6503_v33, 7  ;;  %v1946_v27 = vpop.f32.mrf.mxu2 }
 0x2a0   : > { %v1965_v3 = vpop.f32.mrf.mxu3  ;;  %v1947_v52 = vadd.f32 %v1946_v27, %v5911_v31 }
 0x2a1   : > { %2095 = vmatpush.bf16.msrb.mxu1 %v2007_v34  ;;  %v6513_v35 = vsel %vm602_vm0, %v2966_v22, %v2967_v59  ;;  %5101 = vmatmul.msk.bf16.vlgmr.msrb.gmra.mxu0 %vm845_vm4, %v6258_v11  ;;  %v5627_v22 = vld [vmem:[%s5781_s25] sm:$0x7]  ;;  %v1966_v13 = vadd.f32 %v1965_v3, %v5911_v31 }
 0x2a2   : > { %2409 = vmatpush.bf16.msra.mxu0 %v2379_v7  ;;  %v2980_v40 = vrot.slane %v6513_v35, 7  ;;  %v2333_v45 = vadd.f32 %v5627_v22, %v2332_v57  ;;  %v2341_v26 = vadd.f32 %v5627_v22, %v2340_v36  ;;  %v2356_v7 = vmul.f32 %v5626_v23, %v5308_v4 }
 0x2a3   : > { %v1992_v62 = vmax.f32 %v1947_v52, 0.0  ;;  %v1993_v34 = vmax.f32 %v1966_v13, 0.0  ;;  %v1985_v36 = vmax.f32 %v1963_v6, 0.0 }
 0x2a4   : > { %5102 = vmatmul.msk.bf16.vlgmr.msrb.gmra.mxu1 %vm845_vm4, %v6258_v11  ;;  %v2981_v18 = vsel %vm602_vm0, %v2979_v2, %v2980_v40  ;;  %v1942_v11 = vadd.f32 %v6470_v19, %v5909_v30  ;;  %v5109_v21 = vclamps-f32 %v2333_v45, 1.0  ;;  %v5110_v60 = vclamps-f32 %v2341_v26, 1.0  ;;  %v2364_v19 = vld [vmem:[#allocation2 + $0x2c8] sm:$0x7] }
 0x2a5   : > { %2428 = vmatpush.bf16.msra.mxu1 %v2382_v1  ;;  %v6528_v28 = vadd.f32 %v2981_v18, %v6513_v35  ;;  %v1961_v2 = vadd.f32 %v6473_v61, %v5909_v30  ;;  %v2349_v1 = vadd.f32 %v5627_v22, %v2348_v58  ;;  %v2372_v3 = vpack.c.bf16 %v2364_v19, %v2364_v19 }
 0x2a6   : > { %v2336_v24 = vsel %vm490_vm1, %v5109_v21, %v5799_v16  ;;  %v2344_v20 = vsel %vm490_vm1, %v5110_v60, %v5799_v16  ;;  %v2357_v53 = vadd.f32 %v5627_v22, %v2356_v7  ;;  %v1976_v26 = vmax.f32 %v1942_v11, 0.0 }
 0x2a7   : > { %v3000_v54 = vrot.slane %v6528_v28, 6  ;;  %v1948_v9 = vpop.f32.mrf.mxu2  ;;  %2337 = vst [vmem:[#allocation2 + $0x240] sm:$0x3f] %v2336_v24  ;;  %v5111_v57 = vclamps-f32 %v2349_v1, 1.0  ;;  %v1977_v52 = vmax.f32 %v1961_v2, 0.0  ;;  %v2385_v55 = vand.u32 %v2372_v3, %v5838_v51 }
 0x2a8   : > { %v1949_v44 = vadd.f32 %v1948_v9, %v5917_v39  ;;  %v1967_v63 = vpop.f32.mrf.mxu3  ;;  %2345 = vst [vmem:[#allocation2 + $0x2b0] sm:$0x3f] %v2344_v20  ;;  %v5112_v45 = vclamps-f32 %v2357_v53, 1.0  ;;  %v2008_v60 = vpack.c.bf16 %v1984_v41, %v1976_v26 }
 0x2a9   : > { %v3001_v61 = vsel %vm603_vm2, %v2999_v49, %v3000_v54  ;;  %v1968_v25 = vadd.f32 %v1967_v63, %v5917_v39  ;;  %v2352_v29 = vsel %vm490_vm1, %v5111_v57, %v5799_v16  ;;  %v2009_v4 = vpack.c.bf16 %v1985_v36, %v1977_v52  ;;  %v6584_v63 = vld [vmem:[%s7375_s5] sm:$0xff] }
 0x2aa   : > { %v6553_v32 = vadd.f32 %v3001_v61, %v6528_v28  ;;  %v2000_v14 = vmax.f32 %v1949_v44, 0.0  ;;  %2353 = vst [vmem:[#allocation2 + $0x260] sm:$0x3f] %v2352_v29  ;;  %v2360_v21 = vsel %vm490_vm1, %v5112_v45, %v5799_v16  ;;  %v3086_v29 = vld [vmem:[%s7378_s8] sm:$0xff]  ;;  %v3110_v28 = vld [vmem:[#allocation2 + $0x68] sm:$0x3f] }
 0x2ab   : > { %v2001_v27 = vmax.f32 %v1968_v25, 0.0  ;;  %2361 = vst [vmem:[#allocation2 + $0x2d8] sm:$0x3f] %v2360_v21  ;;  %3134 = vperm.xlu2 %5276, %v3086_v29  }
 0x2ac   : > { %v3021_v5 = vrot.slane %v6553_v32, 4  ;;  %v2016_v49 = vpack.c.bf16 %v2000_v14, %v1992_v62 }
 0x2ad   : > { %v2017_v18 = vpack.c.bf16 %v2001_v27, %v1993_v34 }
 0x2ae   : > { %v3022_v23 = vsel %vm3019_vm7, %v3020_v56, %v3021_v5  ;;  %2108 = vmatpush.bf16.msrb.mxu2 %v2016_v49  ;;  %v2366_v56 = vld [vmem:[#allocation2 + $0x240] sm:$0x7] }
 0x2af   : > { %v6564_v22 = vadd.f32 %v3022_v23, %v6553_v32  ;;  %2122 = vmatpush.bf16.msrb.mxu3 %v2017_v18  ;;  %v2374_v2 = vpack.c.bf16 %v2366_v56, %v2366_v56  ;;  %v2367_v6 = vld [vmem:[#allocation2 + $0x2b0] sm:$0x7] }
 0x2b0   : > { %v2375_v16 = vpack.c.bf16 %v2367_v6, %v2367_v6 }
 0x2b1   : > { %v6572_v11 = vadd.f32 %v6564_v22, %v6292_v8  ;;  %5113 = vmatmul.msk.bf16.vlgmr.msra.gmra.mxu0 %vm595_vm3, %v6308_v12  ;;  %v2391_v9 = vand.u32 %v2374_v2, %v5838_v51  ;;  %v2368_v19 = vld [vmem:[#allocation2 + $0x260] sm:$0x7] }
 0x2b2   : > { %2109 = vmatpush.bf16.msrb.mxu2 %v2008_v60  ;;  %v2394_v44 = vand.u32 %v2375_v16, %v5838_v51  ;;  %v2376_v58 = vpack.c.bf16 %v2368_v19, %v2368_v19  ;;  %v2369_v24 = vld [vmem:[#allocation2 + $0x2d8] sm:$0x7] }
 0x2b3   : > { %v3046_v13 = vmul.f32 1.442695, %v6572_v11  ;;  %2123 = vmatpush.bf16.msrb.mxu3 %v2009_v4  ;;  %2485 = vmatpush.bf16.msrb.mxu0 %v2391_v9  ;;  %v2377_v20 = vpack.c.bf16 %v2369_v24, %v2369_v24 }
 0x2b4   : > { %5115 = vmatmul.msk.bf16.vlgmr.msra.gmra.mxu1 %vm595_vm3, %v6308_v12  ;;  %v2397_v61 = vand.u32 %v2376_v58, %v5838_v51 }
 0x2b5   : > { %5415 = vpow2.f32 %v3046_v13  ;;  %5103 = vmatmul.msk.bf16.vlgmr.msrb.gmra.mxu2 %vm845_vm4, %v6584_v63  ;;  %2504 = vmatpush.bf16.msrb.mxu1 %v2394_v44  ;;  %v2400_v41 = vand.u32 %v2377_v20, %v5838_v51 }
 0x2b6   : > { %2447 = vmatpush.bf16.msra.mxu2 %v2385_v55  ;;  %5104 = vmatmul.msk.bf16.vlgmr.msrb.gmra.mxu3 %vm845_vm4, %v6584_v63 }
 0x2b7   : > { %2466 = vmatpush.bf16.msra.mxu3 %v2388_v17 }
 0x2ba   : > { %2523 = vmatpush.bf16.msrb.mxu2 %v2397_v61 }
 0x2bb   : > { %v5416_v25 = vpop.eup %5415  ;;  %2542 = vmatpush.bf16.msrb.mxu3 %v2400_v41 }
 0x2bc   : > { %v6594_v38 = vmul.f32 %v5416_v25, %v2943_v0 }
 0x2be   : > { %3079 = vst [vmem:[#allocation3 + $0x8] sm:$0xff] %v6594_v38 }
 0x2c1   : > { %5114 = vmatmul.msk.bf16.gmra.mxu0 %vm595_vm3, %v6327_v48 }
 0x2c4   : > { %5116 = vmatmul.msk.bf16.gmra.mxu1 %vm595_vm3, %v6327_v48 }
 0x2c5   : > { %5117 = vmatmul.msk.bf16.vlgmr.msra.gmra.mxu2 %vm595_vm3, %v6308_v12 }
 0x2c6   : > { %5119 = vmatmul.msk.bf16.vlgmr.msra.gmra.mxu3 %vm595_vm3, %v6308_v12 }
 0x2d1   : > { %5121 = vmatmul.msk.bf16.vlgmr.msrb.gmra.mxu0 %vm595_vm3, %v6308_v12 }
 0x2d4   : > { %5123 = vmatmul.msk.bf16.vlgmr.msrb.gmra.mxu1 %vm595_vm3, %v6308_v12 }
 0x2d5   : > { %5118 = vmatmul.msk.bf16.gmra.mxu2 %vm595_vm3, %v6327_v48 }
 0x2d6   : > { %5120 = vmatmul.msk.bf16.gmra.mxu3 %vm595_vm3, %v6327_v48 }
 0x2e1   : > { %5122 = vmatmul.msk.bf16.gmra.mxu0 %vm595_vm3, %v6327_v48 }
 0x2e4   : > { %5124 = vmatmul.msk.bf16.gmra.mxu1 %vm595_vm3, %v6327_v48 }
 0x2e5   : > { %5125 = vmatmul.msk.bf16.vlgmr.msrb.gmra.mxu2 %vm595_vm3, %v6308_v12 }
 0x2e6   : > { %5127 = vmatmul.msk.bf16.vlgmr.msrb.gmra.mxu3 %vm595_vm3, %v6308_v12 }
 0x2f5   : > { %5126 = vmatmul.msk.bf16.gmra.mxu2 %vm595_vm3, %v6327_v48 }
 0x2f6   : > { %5128 = vmatmul.msk.bf16.gmra.mxu3 %vm595_vm3, %v6327_v48 }
 0x2fe   : > { %v2027_v51 = vpop.f32.mrf.mxu0 }
 0x2ff   : > { %v2028_v15 = vadd.f32 %v2027_v51, %v6064_v50 }
 0x301   : > { %v2041_v0 = vpop.f32.mrf.mxu1  ;;  %v2146_v62 = vrot.slane %v2028_v15, 2  ;;  %v2226_v14 = vand.u32 2147483647, %v2028_v15  ;;  %v2218_v60 = vmax.f32 %v2028_v15, 0.0 }
 0x302   : > { %v2042_v7 = vadd.f32 %v2041_v0, %v6064_v50 }
 0x303   : > { %2194 = vst [vmem:[#allocation2 + $0x1a8] sm:$0xc0] %v2146_v62  ;;  %v2234_v27 = vsub.f32 0.0, %v2226_v14 }
 0x304   : > { %v2147_v1 = vrot.slane %v2042_v7, 2  ;;  %v2227_v34 = vand.u32 2147483647, %v2042_v7  ;;  %v2219_v56 = vmax.f32 %v2042_v7, 0.0 }
 0x305   : > { %v2242_v3 = vmul.f32 1.442695, %v2234_v27 }
 0x306   : > { %2195 = vst [vmem:[#allocation2 + $0x2d0] sm:$0xc0] %v2147_v1  ;;  %v2235_v12 = vsub.f32 0.0, %v2227_v34  ;;  %v2029_v49 = vpop.f32.mrf.mxu0 }
 0x307   : > { %5417 = vpow2.f32 %v2242_v3  ;;  %v2030_v48 = vadd.f32 %v2029_v49, %v6062_v47 }
 0x308   : > { %v2244_v53 = vmul.f32 1.442695, %v2235_v12 }
 0x309   : > { %v2043_v43 = vpop.f32.mrf.mxu1  ;;  %v2154_v36 = vrot.slane %v2030_v48, 2 }
 0x30a   : > { %5419 = vpow2.f32 %v2244_v53  ;;  %v2044_v57 = vadd.f32 %v2043_v43, %v6062_v47 }
 0x30b   : > { %v2155_v45 = vsel %vm977_vm5, %v2146_v62, %v2154_v36  ;;  %2210 = vst [vmem:[#allocation2 + $0x220] sm:$0x3f] %v2154_v36 }
 0x30c   : > { %v2156_v18 = vrot.slane %v2044_v57, 2  ;;  %2202 = vst [vmem:[#allocation2 + $0x1d8] sm:$0xff] %v2155_v45 }
 0x30d   : > { %v5418_v26 = vpop.eup %5417 }
 0x30e   : > { %v2157_v23 = vsel %vm977_vm5, %v2147_v1, %v2156_v18  ;;  %v2258_v55 = vadd.f32 1.0, %v5418_v26  ;;  %2211 = vst [vmem:[#allocation2 + $0xf8] sm:$0x3f] %v2156_v18 }
 0x30f   : > { %2203 = vst [vmem:[#allocation2 + $0x130] sm:$0xff] %v2157_v23 }
 0x310   : > { %v5420_v52 = vpop.eup %5419  ;;  %5421 = vlog2.f32 %v2258_v55 }
 0x311   : > { %v2259_v21 = vadd.f32 1.0, %v5420_v52 }
 0x313   : > { %5423 = vlog2.f32 %v2259_v21 }
 0x316   : > { %v5422_v17 = vpop.eup %5421 }
 0x317   : > { %v2267_v2 = vmul.f32 0.6931472, %v5422_v17 }
 0x318   : > { %v2055_v16 = vpop.f32.mrf.mxu2 }
 0x319   : > { %v5424_v4 = vpop.eup %5423  ;;  %v2282_v13 = vadd.f32 %v2267_v2, %v2218_v60  ;;  %v6635_v9 = vadd.f32 %v2055_v16, %v6064_v50  ;;  %v2069_v44 = vpop.f32.mrf.mxu3 }
 0x31a   : > { %v2269_v6 = vmul.f32 0.6931472, %v5424_v4  ;;  %v6638_v58 = vadd.f32 %v2069_v44, %v6064_v50 }
 0x31b   : > { %2290 = vst [vmem:[#allocation3 + $0x10] sm:$0x1] %v2282_v13  ;;  %v2148_v24 = vrot.slane %v6635_v9, 2  ;;  %v2228_v20 = vand.u32 2147483647, %v6635_v9 }
 0x31c   : > { %v2283_v19 = vadd.f32 %v2269_v6, %v2219_v56  ;;  %v2149_v61 = vrot.slane %v6638_v58, 2  ;;  %v2229_v41 = vand.u32 2147483647, %v6638_v58 }
 0x31d   : > { %2196 = vst [vmem:[#allocation2 + $0x1b0] sm:$0xc0] %v2148_v24  ;;  %v2236_v25 = vsub.f32 0.0, %v2228_v20 }
 0x31e   : > { %2291 = vst [vmem:[#allocation3 + $0x11] sm:$0x1] %v2283_v19  ;;  %v2237_v51 = vsub.f32 0.0, %v2229_v41  ;;  %v2083_v15 = vpop.f32.mrf.mxu0 }
 0x31f   : > { %2197 = vst [vmem:[#allocation2 + $0x28] sm:$0xc0] %v2149_v61  ;;  %v2246_v0 = vmul.f32 1.442695, %v2236_v25  ;;  %v6645_v7 = vadd.f32 %v2083_v15, %v6064_v50 }
 0x320   : > { %v2248_v14 = vmul.f32 1.442695, %v2237_v51  ;;  %v2057_v34 = vpop.f32.mrf.mxu2 }
 0x321   : > { %v2097_v62 = vpop.f32.mrf.mxu1  ;;  %5425 = vpow2.f32 %v2246_v0  ;;  %v2150_v27 = vrot.slane %v6645_v7, 2  ;;  %v2230_v12 = vand.u32 2147483647, %v6645_v7  ;;  %v2071_v3 = vpop.f32.mrf.mxu3  ;;  %v2058_v43 = vadd.f32 %v2057_v34, %v6062_v47 }
 0x322   : > { %v6648_v1 = vadd.f32 %v2097_v62, %v6064_v50  ;;  %5427 = vpow2.f32 %v2248_v14  ;;  %v2072_v57 = vadd.f32 %v2071_v3, %v6062_v47  ;;  %v2220_v62 = vmax.f32 %v6635_v9, 0.0 }
 0x323   : > { %2198 = vst [vmem:[#allocation2 + $0x178] sm:$0xc0] %v2150_v27  ;;  %v2238_v48 = vsub.f32 0.0, %v2230_v12  ;;  %v2158_v45 = vrot.slane %v2058_v43, 2  ;;  %v2221_v34 = vmax.f32 %v6638_v58, 0.0 }
 0x324   : > { %v2151_v53 = vrot.slane %v6648_v1, 2  ;;  %v2231_v49 = vand.u32 2147483647, %v6648_v1  ;;  %v2160_v23 = vrot.slane %v2072_v57, 2 }
 0x325   : > { %v2250_v18 = vmul.f32 1.442695, %v2238_v48  ;;  %v2159_v55 = vsel %vm977_vm5, %v2148_v24, %v2158_v45  ;;  %2212 = vst [vmem:[#allocation2 + $0x8] sm:$0x3f] %v2158_v45  ;;  %v2223_v48 = vmax.f32 %v6648_v1, 0.0 }
 0x326   : > { %2199 = vst [vmem:[#allocation2 + $0x48] sm:$0xc0] %v2151_v53  ;;  %v2239_v36 = vsub.f32 0.0, %v2231_v49  ;;  %v2085_v29 = vpop.f32.mrf.mxu0  ;;  %v2161_v17 = vsel %vm977_vm5, %v2149_v61, %v2160_v23 }
 0x327   : > { %v5426_v52 = vpop.eup %5425  ;;  %5429 = vpow2.f32 %v2250_v18  ;;  %v2086_v21 = vadd.f32 %v2085_v29, %v6062_v47  ;;  %2204 = vst [vmem:[#allocation2 + $0x18] sm:$0xff] %v2159_v55 }
 0x328   : > { %v2252_v26 = vmul.f32 1.442695, %v2239_v36  ;;  %v5428_v56 = vpop.eup %5427  ;;  %v2260_v4 = vadd.f32 1.0, %v5426_v52  ;;  %2205 = vst [vmem:[#allocation2 + $0x160] sm:$0xff] %v2161_v17 }
 0x329   : > { %v2099_v60 = vpop.f32.mrf.mxu1  ;;  %v2261_v6 = vadd.f32 1.0, %v5428_v56  ;;  %v2162_v16 = vrot.slane %v2086_v21, 2  ;;  %2213 = vst [vmem:[#allocation2 + $0x2c0] sm:$0x3f] %v2160_v23 }
 0x32a   : > { %5431 = vpow2.f32 %v2252_v26  ;;  %v2100_v2 = vadd.f32 %v2099_v60, %v6062_v47 }
 0x32b   : > { %5433 = vlog2.f32 %v2260_v4  ;;  %v2163_v44 = vsel %vm977_vm5, %v2150_v27, %v2162_v16  ;;  %2214 = vst [vmem:[#allocation2 + $0xf0] sm:$0x3f] %v2162_v16 }
 0x32c   : > { %v2164_v13 = vrot.slane %v2100_v2, 2  ;;  %5435 = vlog2.f32 %v2261_v6  ;;  %2206 = vst [vmem:[#allocation2 + $0xc0] sm:$0xff] %v2163_v44 }
 0x32d   : > { %v5430_v24 = vpop.eup %5429 }
 0x32e   : > { %v2165_v19 = vsel %vm977_vm5, %v2151_v53, %v2164_v13  ;;  %v2262_v61 = vadd.f32 1.0, %v5430_v24  ;;  %2215 = vst [vmem:[#allocation2 + $0x1d0] sm:$0x3f] %v2164_v13  ;;  %v6662_v41 = vpop.f32.mrf.mxu0  ;;  %v2222_v53 = vmax.f32 %v6645_v7, 0.0 }
 0x32f   : > { %2207 = vst [vmem:[#allocation2 + $0x80] sm:$0xff] %v2165_v19 }
 0x330   : > { %v5432_v20 = vpop.eup %5431  ;;  %5437 = vlog2.f32 %v2262_v61  ;;  %v2885_v61 = vld [vmem:[%s5769_s22 + $0x18] sm:$0xff] }
 0x331   : > { %v2263_v25 = vadd.f32 1.0, %v5432_v20  ;;  %v6664_v51 = vpop.f32.mrf.mxu1  ;;  %v5434_v15 = vpop.eup %5433 }
 0x332   : > { %v5436_v0 = vpop.eup %5435  ;;  %v2271_v14 = vmul.f32 0.6931472, %v5434_v15 }
 0x333   : > { %5439 = vlog2.f32 %v2263_v25  ;;  %v2273_v27 = vmul.f32 0.6931472, %v5436_v0 }
 0x334   : > { %v2284_v12 = vadd.f32 %v2271_v14, %v2220_v62 }
 0x335   : > { %v2285_v3 = vadd.f32 %v2273_v27, %v2221_v34 }
 0x336   : > { %2292 = vst [vmem:[#allocation3 + $0x12] sm:$0x1] %v2284_v12  ;;  %v5438_v49 = vpop.eup %5437  ;;  %v2413_v43 = vpop.f32.mrf.mxu0 }
 0x337   : > { %2293 = vst [vmem:[#allocation3 + $0x13] sm:$0x1] %v2285_v3  ;;  %v2275_v36 = vmul.f32 0.6931472, %v5438_v49  ;;  %v2414_v27 = vadd.f32 %v2413_v43, %v5914_v37 }
 0x338   : > { %v2111_v9 = vpop.f32.mrf.mxu2 }
 0x339   : > { %v5440_v57 = vpop.eup %5439  ;;  %v2432_v18 = vpop.f32.mrf.mxu1  ;;  %v2286_v23 = vadd.f32 %v2275_v36, %v2222_v53  ;;  %v6671_v26 = vadd.f32 %v2111_v9, %v6064_v50  ;;  %v2412_v9 = vadd.f32 %v6662_v41, %v5909_v30 }
 0x33a   : > { %v2277_v45 = vmul.f32 0.6931472, %v5440_v57  ;;  %v2125_v58 = vpop.f32.mrf.mxu3  ;;  %v2433_v57 = vadd.f32 %v2432_v18, %v5914_v37 }
 0x33b   : > { %v6674_v52 = vadd.f32 %v2125_v58, %v6064_v50  ;;  %2294 = vst [vmem:[#allocation3 + $0x14] sm:$0x1] %v2286_v23  ;;  %v2152_v7 = vrot.slane %v6671_v26, 2  ;;  %v2232_v1 = vand.u32 2147483647, %v6671_v26  ;;  %v2554_v41 = vmax.f32 %v2412_v9, 0.0 }
 0x33c   : > { %v2287_v29 = vadd.f32 %v2277_v45, %v2223_v48  ;;  %v2899_v48 = vrot.slane %v2885_v61, 7 }
 0x33d   : > { %v2153_v55 = vrot.slane %v6674_v52, 2  ;;  %v2233_v21 = vand.u32 2147483647, %v6674_v52  ;;  %2200 = vst [vmem:[#allocation2 + $0x118] sm:$0xc0] %v2152_v7  ;;  %v2240_v60 = vsub.f32 0.0, %v2232_v1 }
 0x33e   : > { %2295 = vst [vmem:[#allocation3 + $0x15] sm:$0x1] %v2287_v29  ;;  %v2416_v56 = vpop.f32.mrf.mxu0 }
 0x33f   : > { %2201 = vst [vmem:[#allocation2 + $0x180] sm:$0xc0] %v2153_v55  ;;  %v2241_v17 = vsub.f32 0.0, %v2233_v21  ;;  %v2254_v4 = vmul.f32 1.442695, %v2240_v60  ;;  %v2417_v15 = vadd.f32 %v2416_v56, %v5911_v31  ;;  %v2562_v21 = vmax.f32 %v2414_v27, 0.0 }
 0x340   : > { %v2113_v16 = vpop.f32.mrf.mxu2  ;;  %v2900_v60 = vsel %vm602_vm0, %v2897_v10, %v2899_v48  ;;  %v2225_v10 = vmax.f32 %v6674_v52, 0.0 }
 0x341   : > { %v2435_v2 = vpop.f32.mrf.mxu1  ;;  %v2256_v6 = vmul.f32 1.442695, %v2241_v17  ;;  %5441 = vpow2.f32 %v2254_v4  ;;  %v2114_v13 = vadd.f32 %v2113_v16, %v6062_v47  ;;  %v2570_v58 = vmax.f32 %v2417_v15, 0.0 }
 0x342   : > { %v2127_v44 = vpop.f32.mrf.mxu3  ;;  %v2436_v62 = vadd.f32 %v2435_v2, %v5911_v31  ;;  %v2563_v17 = vmax.f32 %v2433_v57, 0.0 }
 0x343   : > { %5443 = vpow2.f32 %v2256_v6  ;;  %v2128_v19 = vadd.f32 %v2127_v44, %v6062_v47  ;;  %v2166_v24 = vrot.slane %v2114_v13, 2  ;;  %v2908_v6 = vsub.f32 %v2885_v61, %v2900_v60 }
 0x344   : > { %v2571_v1 = vmax.f32 %v2436_v62, 0.0 }
 0x345   : > { %v2168_v20 = vrot.slane %v2128_v19, 2  ;;  %v2167_v25 = vsel %vm977_vm5, %v2152_v7, %v2166_v24  ;;  %2216 = vst [vmem:[#allocation2 + $0x1e8] sm:$0x3f] %v2166_v24  ;;  %v2431_v7 = vadd.f32 %v6664_v51, %v5909_v30  ;;  %v2586_v51 = vpack.c.bf16 %v2562_v21, %v2554_v41 }
 0x346   : > { %2208 = vst [vmem:[#allocation2 + $0x1b8] sm:$0xff] %v2167_v25  ;;  %v2418_v14 = vpop.f32.mrf.mxu0  ;;  %v6702_v62 = vrot.slane %v2908_v6, 1 }
 0x347   : > { %v2169_v0 = vsel %vm977_vm5, %v2153_v55, %v2168_v20  ;;  %v5442_v34 = vpop.eup %5441  ;;  %v2419_v12 = vadd.f32 %v2418_v14, %v5917_v39  ;;  %2217 = vst [vmem:[#allocation2 + $0x2f0] sm:$0x3f] %v2168_v20  ;;  %v2555_v4 = vmax.f32 %v2431_v7, 0.0  ;;  %v2224_v20 = vmax.f32 %v6671_v26, 0.0 }
 0x348   : > { %2209 = vst [vmem:[#allocation2 + $0xa0] sm:$0xff] %v2169_v0  ;;  %v2264_v49 = vadd.f32 1.0, %v5442_v34  ;;  %v2449_v45 = vpop.f32.mrf.mxu2  ;;  %v2920_v14 = vsel %vm2913_vm6, %v6435_v46, %v6702_v62 }
 0x349   : > { %v2437_v3 = vpop.f32.mrf.mxu1  ;;  %v5444_v53 = vpop.eup %5443  ;;  %v2578_v29 = vmax.f32 %v2419_v12, 0.0  ;;  %v2587_v19 = vpack.c.bf16 %v2563_v17, %v2555_v4  ;;  %v2928_v12 = vsub.f32 0.0, %v2920_v14 }
 0x34a   : > { %v2438_v36 = vadd.f32 %v2437_v3, %v5917_v39  ;;  %v2265_v23 = vadd.f32 1.0, %v5444_v53  ;;  %v2468_v43 = vpop.f32.mrf.mxu3  ;;  %5445 = vlog2.f32 %v2264_v49 }
 0x34b   : > { %v2594_v18 = vpack.c.bf16 %v2578_v29, %v2570_v58  ;;  %v2469_v60 = vadd.f32 %v2468_v43, %v5909_v30 }
 0x34c   : > { %v2579_v55 = vmax.f32 %v2438_v36, 0.0  ;;  %5447 = vlog2.f32 %v2265_v23 }
 0x34d   : > { %2608 = vmatpush.bf16.msra.mxu0 %v2594_v18  ;;  %v2557_v43 = vmax.f32 %v2469_v60, 0.0 }
 0x34e   : > { %v2595_v56 = vpack.c.bf16 %v2579_v55, %v2571_v1  ;;  %v2487_v2 = vpop.f32.mrf.mxu0  ;;  %v2450_v55 = vadd.f32 %v2449_v45, %v5909_v30 }
 0x350   : > { %2622 = vmatpush.bf16.msra.mxu1 %v2595_v56  ;;  %v5446_v13 = vpop.eup %5445  ;;  %v2451_v44 = vpop.f32.mrf.mxu2 }
 0x351   : > { %v6698_v16 = vpop.f32.mrf.mxu1  ;;  %v2279_v42 = vmul.f32 0.6931472, %v5446_v13  ;;  %2609 = vmatpush.bf16.msra.mxu0 %v2586_v51  ;;  %v2452_v58 = vadd.f32 %v2451_v44, %v5914_v37 }
 0x352   : > { %v5448_v24 = vpop.eup %5447  ;;  %v2470_v25 = vpop.f32.mrf.mxu3 }
 0x353   : > { %v2281_v15 = vmul.f32 0.6931472, %v5448_v24  ;;  %v2288_v0 = vadd.f32 %v2279_v42, %v2224_v20  ;;  %v2471_v46 = vadd.f32 %v2470_v25, %v5914_v37  ;;  %v2564_v41 = vmax.f32 %v2452_v58, 0.0 }
 0x354   : > { %2623 = vmatpush.bf16.msra.mxu1 %v2587_v19  ;;  %5129 = vmatmul.msk.bf16.vlgmr.msra.gmra.mxu0 %vm845_vm4, %v6584_v63  ;;  %v2556_v24 = vmax.f32 %v2450_v55, 0.0 }
 0x355   : > { %v2289_v61 = vadd.f32 %v2281_v15, %v2225_v10  ;;  %2296 = vst [vmem:[#allocation3 + $0x16] sm:$0x1] %v2288_v0  ;;  %v2565_v51 = vmax.f32 %v2471_v46, 0.0  ;;  %v2488_v10 = vadd.f32 %v2487_v2, %v5909_v30 }
 0x356   : > { %v2489_v26 = vpop.f32.mrf.mxu0 }
 0x357   : > { %5130 = vmatmul.msk.bf16.vlgmr.msra.gmra.mxu1 %vm845_vm4, %v6584_v63  ;;  %2297 = vst [vmem:[#allocation3 + $0x17] sm:$0x1] %v2289_v61  ;;  %v2490_v20 = vadd.f32 %v2489_v26, %v5914_v37  ;;  %v2589_v2 = vpack.c.bf16 %v2565_v51, %v2557_v43 }
 0x358   : > { %v2454_v34 = vpop.f32.mrf.mxu2 }
 0x359   : > { %v2508_v52 = vpop.f32.mrf.mxu1  ;;  %v2455_v48 = vadd.f32 %v2454_v34, %v5911_v31 }
 0x35a   : > { %v2473_v27 = vpop.f32.mrf.mxu3  ;;  %v2509_v15 = vadd.f32 %v2508_v52, %v5914_v37 }
 0x35b   : > { %v2474_v9 = vadd.f32 %v2473_v27, %v5911_v31  ;;  %v2572_v21 = vmax.f32 %v2455_v48, 0.0  ;;  %v3108_v48 = vld [vmem:[#allocation2] sm:$0x3f] }
 0x35c   : > { %v3124_v46 = vpack.c.bf16 %v3108_v48, %v3108_v48 }
 0x35d   : > { %v2573_v17 = vmax.f32 %v2474_v9, 0.0  ;;  %v3109_v9 = vld [vmem:[#allocation2 + $0xc8] sm:$0x3f] }
 0x35e   : > { %v2888_v3 = vld [vmem:[#allocation3 + $0x10] sm:$0xff]  ;;  %v2492_v49 = vpop.f32.mrf.mxu0 }
 0x35f   : > { %v2932_v53 = vmul.f32 %v2928_v12, %v2888_v3  ;;  %v2493_v6 = vadd.f32 %v2492_v49, %v5911_v31  ;;  %v2588_v12 = vpack.c.bf16 %v2564_v41, %v2556_v24  ;;  %v2507_v3 = vadd.f32 %v6698_v16, %v5909_v30 }
 0x360   : > { %v2456_v23 = vpop.f32.mrf.mxu2  ;;  %v3125_v16 = vpack.c.bf16 %v3109_v9, %v3109_v9  ;;  %v3170_v41 = vsel %vm490_vm1, %v3124_v46, 0 }
 0x361   : > { %v2511_v57 = vpop.f32.mrf.mxu1  ;;  %v2938_v36 = vmul.f32 1.442695, %v2932_v53  ;;  %v2457_v29 = vadd.f32 %v2456_v23, %v5917_v39  ;;  %v2574_v34 = vmax.f32 %v2493_v6, 0.0  ;;  %v2567_v23 = vmax.f32 %v2509_v15, 0.0  ;;  %v3100_v6 = vld [vmem:[#allocation2 + $0x168] sm:$0xff]  ;;  %v3096_v15 = vld [vmem:[#allocation2 + $0x30] sm:$0xff] }
 0x362   : > { %v2475_v7 = vpop.f32.mrf.mxu3  ;;  %v2512_v44 = vadd.f32 %v2511_v57, %v5911_v31  ;;  %v2566_v57 = vmax.f32 %v2490_v20, 0.0  ;;  %v3173_v51 = vsel %vm490_vm1, %v3125_v16, 0 }
 0x363   : > { %5449 = vpow2.f32 %v2938_v36  ;;  %v2476_v1 = vadd.f32 %v2475_v7, %v5917_v39  ;;  %v2580_v18 = vmax.f32 %v2457_v29, 0.0  ;;  %v2558_v7 = vmax.f32 %v2488_v10, 0.0 }
 0x364   : > { %v2575_v53 = vmax.f32 %v2512_v44, 0.0  ;;  %v3101_v44 = vld [vmem:[#allocation2 + $0x60] sm:$0xff] }
 0x365   : > { %v2581_v56 = vmax.f32 %v2476_v1, 0.0  ;;  %v2596_v4 = vpack.c.bf16 %v2580_v18, %v2572_v21  ;;  %v2559_v1 = vmax.f32 %v2507_v3, 0.0  ;;  %v2590_v55 = vpack.c.bf16 %v2566_v57, %v2558_v7  ;;  %v3112_v21 = vld [vmem:[#allocation2 + $0x2a8] sm:$0x3f] }
 0x366   : > { %v2494_v19 = vpop.f32.mrf.mxu0 }
 0x367   : > { %v2597_v13 = vpack.c.bf16 %v2581_v56, %v2573_v17  ;;  %2636 = vmatpush.bf16.msra.mxu2 %v2596_v4  ;;  %v2495_v45 = vadd.f32 %v2494_v19, %v5917_v39  ;;  %v2591_v60 = vpack.c.bf16 %v2567_v23, %v2559_v1  ;;  %v3113_v17 = vld [vmem:[#allocation2 + $0x228] sm:$0x3f]  ;;  %v3092_v4 = vld [vmem:[#allocation2 + $0x1f0] sm:$0xff]  ;;  %v3128_v19 = vpack.c.bf16 %v3112_v21, %v3112_v21 }
 0x368   : > { %v6728_v61 = vpop.f32.mrf.mxu2  ;;  %v3129_v24 = vpack.c.bf16 %v3113_v17, %v3113_v17  ;;  %v3116_v20 = vpack.c.bf16 %v3100_v6, %v3092_v4  ;;  %v3126_v6 = vpack.c.bf16 %v3110_v28, %v3110_v28 }
 0x369   : > { %v2513_v42 = vpop.f32.mrf.mxu1  ;;  %v6723_v25 = vpop.eup %5449  ;;  %2650 = vmatpush.bf16.msra.mxu3 %v2597_v13  ;;  %v2582_v26 = vmax.f32 %v2495_v45, 0.0  ;;  %v3093_v13 = vld [vmem:[#allocation2 + $0x50] sm:$0xff]  ;;  %v3182_v10 = vsel %vm490_vm1, %v3128_v19, 0 }
 0x36a   : > { %v2514_v0 = vadd.f32 %v2513_v42, %v5917_v39  ;;  %v2944_v14 = vsub.f32 1.0, %v6723_v25  ;;  %v6731_v27 = vpop.f32.mrf.mxu3  ;;  %v3117_v42 = vpack.c.bf16 %v3101_v44, %v3093_v13  ;;  %v3176_v32 = vsel %vm490_vm1, %v3126_v6, 0 }
 0x36b   : > { %v2598_v36 = vpack.c.bf16 %v2582_v26, %v2574_v34  ;;  %2637 = vmatpush.bf16.msra.mxu2 %v2588_v12  ;;  %v3185_v34 = vsel %vm490_vm1, %v3129_v24, 0  ;;  %v3097_v26 = vld [vmem:[#allocation2 + $0x70] sm:$0xff]  ;;  %v3105_v12 = vld [vmem:[#allocation2 + $0x268] sm:$0xff]  ;;  %v3114_v24 = vld [vmem:[#allocation2 + $0x20] sm:$0x3f] }
 0x36c   : > { %v2583_v49 = vmax.f32 %v2514_v0, 0.0  ;;  %v2948_v52 = vsub.f32 1.0, %v2944_v14  ;;  %v3104_v0 = vld [vmem:[#allocation2 + $0x1e0] sm:$0xff] }
 0x36d   : > { %2651 = vmatpush.bf16.msra.mxu3 %v2589_v2  ;;  %2664 = vmatpush.bf16.msrb.mxu0 %v2598_v36  ;;  %v3120_v2 = vpack.c.bf16 %v3104_v0, %v3096_v15 }
 0x36e   : > { %v2599_v58 = vpack.c.bf16 %v2583_v49, %v2575_v53  ;;  %v2952_v29 = vadd.f32 1e-15, %v2948_v52  ;;  %5131 = vmatmul.msk.bf16.vlgmr.msra.gmra.mxu2 %vm845_vm4, %v6584_v63  ;;  %v3121_v52 = vpack.c.bf16 %v3105_v12, %v3097_v26  ;;  %v3103_v26 = vld [vmem:[#allocation2 + $0x1f8] sm:$0xff]  ;;  %v3130_v12 = vpack.c.bf16 %v3114_v24, %v3114_v24 }
 0x370   : > { %2678 = vmatpush.bf16.msrb.mxu1 %v2599_v58  ;;  %5451 = vlog2.f32 %v2952_v29  ;;  %5132 = vmatmul.msk.bf16.vlgmr.msra.gmra.mxu3 %vm845_vm4, %v6584_v63  ;;  %v2527_v18 = vpop.f32.mrf.mxu2  ;;  %v6774_v29 = vld [vmem:[%s7377_s7] sm:$0xff] }
 0x371   : > { %2665 = vmatpush.bf16.msrb.mxu0 %v2590_v55  ;;  %v2528_v7 = vadd.f32 %v2527_v18, %v5914_v37  ;;  %v2526_v55 = vadd.f32 %v6728_v61, %v5909_v30 }
 0x372   : > { %v2546_v56 = vpop.f32.mrf.mxu3 }
 0x374   : > { %2679 = vmatpush.bf16.msrb.mxu1 %v2591_v60  ;;  %5133 = vmatmul.msk.bf16.vlgmr.msrb.gmra.mxu0 %vm845_vm4, %v6584_v63  ;;  %v2545_v60 = vadd.f32 %v6731_v27, %v5909_v30  ;;  %v2560_v27 = vmax.f32 %v2526_v55, 0.0  ;;  %v5630_v55 = vld [vmem:[#allocation3] sm:$0xff] }
 0x375   : > { %3199 = vmatpush.bf16.msra.mxu0 %v3170_v41 }
 0x376   : > { %v5452_v45 = vpop.eup %5451  ;;  %v2561_v13 = vmax.f32 %v2545_v60, 0.0 }
 0x377   : > { %5134 = vmatmul.msk.bf16.vlgmr.msrb.gmra.mxu1 %vm845_vm4, %v6584_v63  ;;  %v6747_v43 = vmul.f32 0.6931472, %v5452_v45 }
 0x378   : > { %3218 = vmatpush.bf16.msra.mxu1 %v3173_v51  ;;  %v2530_v53 = vpop.f32.mrf.mxu2 }
 0x379   : > { %3200 = vmatpush.bf16.msra.mxu0 %v3116_v20  ;;  %v2969_v3 = vrot.slane %v6747_v43, 7  ;;  %v2531_v23 = vadd.f32 %v2530_v53, %v5911_v31 }
 0x37a   : > { %v2549_v49 = vpop.f32.mrf.mxu3 }
 0x37b   : > { %v6757_v48 = vsel %vm602_vm0, %v2967_v59, %v2969_v3  ;;  %v2550_v59 = vadd.f32 %v2549_v49, %v5911_v31  ;;  %v2547_v31 = vadd.f32 %v2546_v56, %v5914_v37  ;;  %v2576_v21 = vmax.f32 %v2531_v23, 0.0  ;;  %v3111_v56 = vld [vmem:[#allocation2 + $0x128] sm:$0x3f] }
 0x37c   : > { %3219 = vmatpush.bf16.msra.mxu1 %v3117_v42  ;;  %v2982_v57 = vrot.slane %v6757_v48, 7  ;;  %v3127_v44 = vpack.c.bf16 %v3111_v56, %v3111_v56  ;;  %v3115_v42 = vld [vmem:[#allocation2 + $0xb0] sm:$0x3f] }
 0x37d   : > { %3275 = vmatpush.bf16.msrb.mxu0 %v3182_v10  ;;  %v2577_v17 = vmax.f32 %v2550_v59, 0.0  ;;  %v2569_v61 = vmax.f32 %v2547_v31, 0.0  ;;  %v3102_v10 = vld [vmem:[#allocation2 + $0x2f8] sm:$0xff]  ;;  %v3131_v53 = vpack.c.bf16 %v3115_v42, %v3115_v42  ;;  %v3107_v59 = vld [vmem:[#allocation2 + $0x100] sm:$0xff] }
 0x37e   : > { %v2983_v36 = vsel %vm602_vm0, %v2980_v40, %v2982_v57  ;;  %v3179_v0 = vsel %vm490_vm1, %v3127_v44, 0 }
 0x37f   : > { %v6766_v9 = vadd.f32 %v2983_v36, %v6757_v48  ;;  %v2593_v45 = vpack.c.bf16 %v2569_v61, %v2561_v13  ;;  %v6818_v36 = vld [vmem:[%s7377_s7 + $0x8] sm:$0xff]  ;;  %v3191_v23 = vsel %vm490_vm1, %v3131_v53, 0 }
 0x380   : > { %3294 = vmatpush.bf16.msrb.mxu1 %v3185_v34  ;;  %v2532_v58 = vpop.f32.mrf.mxu2  ;;  %v3095_v34 = vld [vmem:[#allocation2 + $0x108] sm:$0xff] }
 0x381   : > { %3276 = vmatpush.bf16.msrb.mxu0 %v3120_v2  ;;  %v3002_v33 = vrot.slane %v6766_v9, 6  ;;  %v2533_v35 = vadd.f32 %v2532_v58, %v5917_v39  ;;  %v3119_v2 = vpack.c.bf16 %v3103_v26, %v3095_v34 }
 0x382   : > { %v2551_v40 = vpop.f32.mrf.mxu3 }
 0x383   : > { %v3003_v46 = vsel %vm603_vm2, %v3000_v54, %v3002_v33  ;;  %v2552_v1 = vadd.f32 %v2551_v40, %v5917_v39  ;;  %v2584_v18 = vmax.f32 %v2533_v35, 0.0  ;;  %v2568_v39 = vmax.f32 %v2528_v7, 0.0  ;;  %v3099_v7 = vld [vmem:[#allocation2 + $0x138] sm:$0xff]  ;;  %v5629_v40 = vld [vmem:[%s5769_s22 + $0x8] sm:$0xff] }
 0x384   : > { %3295 = vmatpush.bf16.msrb.mxu1 %v3121_v52  ;;  %v6786_v16 = vadd.f32 %v3003_v46, %v6766_v9  ;;  %5145 = vmatmul.msk.bf16.vlgmr.msra.gmra.mxu0 %vm3162_vm8, %v6774_v29  ;;  %v3106_v52 = vld [vmem:[#allocation2 + $0x278] sm:$0xff]  ;;  %v3123_v35 = vpack.c.bf16 %v3107_v59, %v3099_v7  ;;  %v3066_v46 = vmul.f32 %v5629_v40, %v6594_v38 }
 0x385   : > { %v2585_v41 = vmax.f32 %v2552_v1, 0.0  ;;  %v2600_v54 = vpack.c.bf16 %v2584_v18, %v2576_v21  ;;  %v2592_v19 = vpack.c.bf16 %v2568_v39, %v2560_v27  ;;  %v3056_v21 = vadd.f32 %v5630_v55, %v6594_v38  ;;  %v5631_v18 = vld [vmem:[%s5769_s22] sm:$0xff] }
 0x386   : > { %v3023_v37 = vrot.slane %v6786_v16, 4  ;;  %v3065_v60 = vmul.f32 %v5631_v18, %v5630_v55 }
 0x387   : > { %5147 = vmatmul.msk.bf16.vlgmr.msra.gmra.mxu1 %vm3162_vm8, %v6774_v29  ;;  %v2601_v4 = vpack.c.bf16 %v2585_v41, %v2577_v17  ;;  %2692 = vmatpush.bf16.msrb.mxu2 %v2600_v54  ;;  %v5632_v41 = vld [vmem:[%s5769_s22 + $0x10] sm:$0xff] }
 0x388   : > { %v3024_v30 = vsel %vm3019_vm7, %v3021_v5, %v3023_v37  ;;  %v3094_v5 = vld [vmem:[#allocation2 + $0x10] sm:$0xff]  ;;  %v3069_v39 = vadd.f32 %v3066_v46, %v3065_v60 }
 0x389   : > { %v6803_v51 = vadd.f32 %v3024_v30, %v6786_v16  ;;  %2706 = vmatpush.bf16.msrb.mxu3 %v2601_v4  ;;  %v3587_v16 = vld [vmem:[#allocation2 + $0x88] sm:$0xff] }
 0x38b   : > { %v3038_v20 = vadd.f32 %v6803_v51, %v6564_v22  ;;  %2693 = vmatpush.bf16.msrb.mxu2 %v2592_v19  ;;  %v3118_v22 = vpack.c.bf16 %v3102_v10, %v3094_v5 }
 0x38d   : > { %v3042_v15 = vadd.f32 %v3038_v20, %v6292_v8  ;;  %2707 = vmatpush.bf16.msrb.mxu3 %v2593_v45  ;;  %v3188_v8 = vsel %vm490_vm1, %v3130_v12, 0 }
 0x38e   : > { %5135 = vmatmul.msk.bf16.vlgmr.msrb.gmra.mxu2 %vm845_vm4, %v6584_v63 }
 0x38f   : > { %3237 = vmatpush.bf16.msra.mxu2 %v3176_v32  ;;  %v3048_v49 = vmul.f32 1.442695, %v3042_v15 }
 0x390   : > { %5136 = vmatmul.msk.bf16.vlgmr.msrb.gmra.mxu3 %vm845_vm4, %v6584_v63  ;;  %v3098_v63 = vld [vmem:[#allocation2 + $0x78] sm:$0xff] }
 0x391   : > { %3256 = vmatpush.bf16.msra.mxu3 %v3179_v0  ;;  %5453 = vpow2.f32 %v3048_v49  ;;  %v3122_v58 = vpack.c.bf16 %v3106_v52, %v3098_v63 }
 0x393   : > { %3238 = vmatpush.bf16.msra.mxu2 %v3118_v22 }
 0x394   : > { %5146 = vmatmul.msk.bf16.gmra.mxu0 %vm3162_vm8, %v6818_v36 }
 0x395   : > { %3257 = vmatpush.bf16.msra.mxu3 %v3119_v2 }
 0x397   : > { %3313 = vmatpush.bf16.msrb.mxu2 %v3188_v8  ;;  %5148 = vmatmul.msk.bf16.gmra.mxu1 %vm3162_vm8, %v6818_v36  ;;  %v5454_v31 = vpop.eup %5453 }
 0x398   : > { %v3054_v1 = vmul.f32 %v5454_v31, %v2944_v14 }
 0x399   : > { %3332 = vmatpush.bf16.msrb.mxu3 %v3191_v23 }
 0x39a   : > { %3080 = vst [vmem:[#allocation3 + $0x10] sm:$0xff] %v3054_v1  ;;  %v6831_v17 = vadd.f32 %v3056_v21, %v3054_v1  ;;  %v3067_v28 = vmul.f32 %v5632_v41, %v3054_v1 }
 0x39b   : > { %3314 = vmatpush.bf16.msrb.mxu2 %v3122_v58 }
 0x39c   : > { %v6834_v54 = vadd.f32 %v3069_v39, %v3067_v28 }
 0x39d   : > { %3333 = vmatpush.bf16.msrb.mxu3 %v3123_v35 }
 0x39e   : > { %5149 = vmatmul.msk.bf16.vlgmr.msra.gmra.mxu2 %vm3162_vm8, %v6774_v29 }
 0x3a0   : > { %5151 = vmatmul.msk.bf16.vlgmr.msra.gmra.mxu3 %vm3162_vm8, %v6774_v29 }
 0x3a4   : > { %5153 = vmatmul.msk.bf16.vlgmr.msrb.gmra.mxu0 %vm3162_vm8, %v6774_v29 }
 0x3a7   : > { %5155 = vmatmul.msk.bf16.vlgmr.msrb.gmra.mxu1 %vm3162_vm8, %v6774_v29 }
 0x3ae   : > { %5150 = vmatmul.msk.bf16.gmra.mxu2 %vm3162_vm8, %v6818_v36 }
 0x3b0   : > { %5152 = vmatmul.msk.bf16.gmra.mxu3 %vm3162_vm8, %v6818_v36 }
 0x3b4   : > { %5154 = vmatmul.msk.bf16.gmra.mxu0 %vm3162_vm8, %v6818_v36 }
 0x3b7   : > { %5156 = vmatmul.msk.bf16.gmra.mxu1 %vm3162_vm8, %v6818_v36 }
 0x3be   : > { %5157 = vmatmul.msk.bf16.vlgmr.msrb.gmra.mxu2 %vm3162_vm8, %v6774_v29 }
 0x3c0   : > { %5159 = vmatmul.msk.bf16.vlgmr.msrb.gmra.mxu3 %vm3162_vm8, %v6774_v29 }
 0x3ce   : > { %5158 = vmatmul.msk.bf16.gmra.mxu2 %vm3162_vm8, %v6818_v36 }
 0x3d0   : > { %5160 = vmatmul.msk.bf16.gmra.mxu3 %vm3162_vm8, %v6818_v36 }
 0x3d1   : > { %v2611_v38 = vpop.f32.mrf.mxu0 }
 0x3d2   : > { %v2612_v25 = vadd.f32 %v2611_v38, %v6064_v50 }
 0x3d4   : > { %v2625_v14 = vpop.f32.mrf.mxu1  ;;  %v2730_v61 = vrot.slane %v2612_v25, 2  ;;  %v2810_v4 = vand.u32 2147483647, %v2612_v25  ;;  %v2802_v22 = vmax.f32 %v2612_v25, 0.0 }
 0x3d5   : > { %v2626_v56 = vadd.f32 %v2625_v14, %v6064_v50 }
 0x3d6   : > { %2778 = vst [vmem:[#allocation2 + $0x1a0] sm:$0xc0] %v2730_v61  ;;  %v2818_v6 = vsub.f32 0.0, %v2810_v4 }
 0x3d7   : > { %v2731_v30 = vrot.slane %v2626_v56, 2  ;;  %v2811_v27 = vand.u32 2147483647, %v2626_v56  ;;  %v2803_v8 = vmax.f32 %v2626_v56, 0.0 }
 0x3d8   : > { %v2826_v44 = vmul.f32 1.442695, %v2818_v6 }
 0x3d9   : > { %2779 = vst [vmem:[#allocation2 + $0x250] sm:$0xc0] %v2731_v30  ;;  %v2819_v13 = vsub.f32 0.0, %v2811_v27  ;;  %v2613_v24 = vpop.f32.mrf.mxu0 }
 0x3da   : > { %5455 = vpow2.f32 %v2826_v44  ;;  %v2614_v20 = vadd.f32 %v2613_v24, %v6062_v47 }
 0x3db   : > { %v2828_v19 = vmul.f32 1.442695, %v2819_v13 }
 0x3dc   : > { %v2627_v45 = vpop.f32.mrf.mxu1  ;;  %v2738_v32 = vrot.slane %v2614_v20, 2 }
 0x3dd   : > { %5457 = vpow2.f32 %v2828_v19  ;;  %v2628_v42 = vadd.f32 %v2627_v45, %v6062_v47 }
 0x3de   : > { %v2739_v10 = vsel %vm977_vm5, %v2730_v61, %v2738_v32  ;;  %2794 = vst [vmem:[#allocation2 + $0xe0] sm:$0x3f] %v2738_v32 }
 0x3df   : > { %v2740_v5 = vrot.slane %v2628_v42, 2  ;;  %2786 = vst [vmem:[#allocation2 + $0x40] sm:$0xff] %v2739_v10 }
 0x3e0   : > { %v5456_v0 = vpop.eup %5455 }
 0x3e1   : > { %v2741_v15 = vsel %vm977_vm5, %v2731_v30, %v2740_v5  ;;  %v2842_v26 = vadd.f32 1.0, %v5456_v0  ;;  %2795 = vst [vmem:[#allocation2 + $0xe8] sm:$0x3f] %v2740_v5 }
 0x3e2   : > { %2787 = vst [vmem:[#allocation2 + $0x270] sm:$0xff] %v2741_v15 }
 0x3e3   : > { %v5458_v34 = vpop.eup %5457  ;;  %5459 = vlog2.f32 %v2842_v26 }
 0x3e4   : > { %v2843_v12 = vadd.f32 1.0, %v5458_v34 }
 0x3e6   : > { %5461 = vlog2.f32 %v2843_v12 }
 0x3e9   : > { %v5460_v53 = vpop.eup %5459 }
 0x3ea   : > { %v2851_v2 = vmul.f32 0.6931472, %v5460_v53 }
 0x3ec   : > { %v5462_v49 = vpop.eup %5461  ;;  %v2866_v23 = vadd.f32 %v2851_v2, %v2802_v22 }
 0x3ed   : > { %v2853_v52 = vmul.f32 0.6931472, %v5462_v49 }
 0x3ee   : > { %2874 = vst [vmem:[#allocation3 + $0x18] sm:$0x1] %v2866_v23 }
 0x3ef   : > { %v2867_v59 = vadd.f32 %v2853_v52, %v2803_v8 }
 0x3f1   : > { %2875 = vst [vmem:[#allocation3 + $0x19] sm:$0x1] %v2867_v59  ;;  %v2639_v63 = vpop.f32.mrf.mxu2  ;;  %v2667_v58 = vpop.f32.mrf.mxu0 }
 0x3f2   : > { %v6867_v7 = vadd.f32 %v2639_v63, %v6064_v50  ;;  %v6870_v40 = vadd.f32 %v2667_v58, %v6064_v50 }
 0x3f3   : > { %v2653_v35 = vpop.f32.mrf.mxu3 }
 0x3f4   : > { %v2681_v46 = vpop.f32.mrf.mxu1  ;;  %v6873_v31 = vadd.f32 %v2653_v35, %v6064_v50  ;;  %v2732_v55 = vrot.slane %v6867_v7, 2  ;;  %v2812_v21 = vand.u32 2147483647, %v6867_v7  ;;  %v2734_v18 = vrot.slane %v6870_v40, 2 }
 0x3f5   : > { %v6876_v1 = vadd.f32 %v2681_v46, %v6064_v50  ;;  %v2814_v39 = vand.u32 2147483647, %v6870_v40 }
 0x3f6   : > { %v2733_v60 = vrot.slane %v6873_v31, 2  ;;  %v2813_v41 = vand.u32 2147483647, %v6873_v31  ;;  %2780 = vst [vmem:[#allocation2 + $0x2c8] sm:$0xc0] %v2732_v55  ;;  %v2820_v28 = vsub.f32 0.0, %v2812_v21 }
 0x3f7   : > { %v2735_v38 = vrot.slane %v6876_v1, 2  ;;  %v2815_v14 = vand.u32 2147483647, %v6876_v1  ;;  %2782 = vst [vmem:[#allocation2 + $0x240] sm:$0xc0] %v2734_v18  ;;  %v2822_v61 = vsub.f32 0.0, %v2814_v39 }
 0x3f8   : > { %2781 = vst [vmem:[#allocation2 + $0x190] sm:$0xc0] %v2733_v60  ;;  %v2821_v25 = vsub.f32 0.0, %v2813_v41  ;;  %v2830_v56 = vmul.f32 1.442695, %v2820_v28  ;;  %v2805_v39 = vmax.f32 %v6873_v31, 0.0 }
 0x3f9   : > { %2783 = vst [vmem:[#allocation2 + $0x2b0] sm:$0xc0] %v2735_v38  ;;  %v2823_v30 = vsub.f32 0.0, %v2815_v14  ;;  %v2641_v27 = vpop.f32.mrf.mxu2  ;;  %v2669_v6 = vpop.f32.mrf.mxu0  ;;  %v2834_v13 = vmul.f32 1.442695, %v2822_v61 }
 0x3fa   : > { %v2832_v4 = vmul.f32 1.442695, %v2821_v25  ;;  %5463 = vpow2.f32 %v2830_v56  ;;  %v2642_v44 = vadd.f32 %v2641_v27, %v6062_v47  ;;  %v2670_v24 = vadd.f32 %v2669_v6, %v6062_v47  ;;  %v6902_v6 = vpop.permute.xlu0 %3144 }
 0x3fb   : > { %v2655_v19 = vpop.f32.mrf.mxu3  ;;  %v2836_v45 = vmul.f32 1.442695, %v2823_v30  ;;  %v2806_v56 = vmax.f32 %v6870_v40, 0.0  ;;  %v2807_v30 = vmax.f32 %v6876_v1, 0.0 }
 0x3fc   : > { %v2683_v20 = vpop.f32.mrf.mxu1  ;;  %5465 = vpow2.f32 %v2832_v4  ;;  %v2656_v42 = vadd.f32 %v2655_v19, %v6062_v47  ;;  %v2742_v5 = vrot.slane %v2642_v44, 2  ;;  %v2746_v10 = vrot.slane %v2670_v24, 2 }
 0x3fd   : > { %v2684_v32 = vadd.f32 %v2683_v20, %v6062_v47  ;;  %5467 = vpow2.f32 %v2834_v13 }
 0x3fe   : > { %5469 = vpow2.f32 %v2836_v45  ;;  %v2744_v15 = vrot.slane %v2656_v42, 2  ;;  %v2743_v34 = vsel %vm977_vm5, %v2732_v55, %v2742_v5  ;;  %2796 = vst [vmem:[#allocation2 + $0x208] sm:$0x3f] %v2742_v5  ;;  %v2747_v12 = vsel %vm977_vm5, %v2734_v18, %v2746_v10 }
 0x3ff   : > { %v2748_v0 = vrot.slane %v2684_v32, 2  ;;  %2788 = vst [vmem:[#allocation2 + $0x210] sm:$0xff] %v2743_v34  ;;  %v2804_v18 = vmax.f32 %v6867_v7, 0.0 }
 0x400   : > { %v2745_v26 = vsel %vm977_vm5, %v2733_v60, %v2744_v15  ;;  %v5464_v53 = vpop.eup %5463  ;;  %2797 = vst [vmem:[#allocation2 + $0x150] sm:$0x3f] %v2744_v15 }
 0x401   : > { %2789 = vst [vmem:[#allocation2 + $0x230] sm:$0xff] %v2745_v26  ;;  %v2844_v22 = vadd.f32 1.0, %v5464_v53  ;;  %v2749_v2 = vsel %vm977_vm5, %v2735_v38, %v2748_v0  ;;  %v6894_v8 = vpop.f32.mrf.mxu0 }
 0x402   : > { %v5466_v49 = vpop.eup %5465  ;;  %2790 = vst [vmem:[#allocation2 + $0x280] sm:$0xff] %v2747_v12  ;;  %v6914_v15 = vpop.permute.xlu0 %3139 }
 0x403   : > { %v5468_v52 = vpop.eup %5467  ;;  %v2845_v23 = vadd.f32 1.0, %v5466_v49  ;;  %5471 = vlog2.f32 %v2844_v22  ;;  %2798 = vst [vmem:[#allocation2 + $0x148] sm:$0x3f] %v2746_v10 }
 0x404   : > { %v6896_v59 = vpop.f32.mrf.mxu1  ;;  %v5470_v63 = vpop.eup %5469  ;;  %v2846_v58 = vadd.f32 1.0, %v5468_v52  ;;  %2791 = vst [vmem:[#allocation2 + $0x58] sm:$0xff] %v2749_v2 }
 0x405   : > { %5473 = vlog2.f32 %v2845_v23  ;;  %v2847_v35 = vadd.f32 1.0, %v5470_v63  ;;  %2799 = vst [vmem:[#allocation2 + $0x98] sm:$0x3f] %v2748_v0  ;;  %v6916_v0 = vpop.permute.xlu1 %3149 }
 0x406   : > { %5475 = vlog2.f32 %v2846_v58  ;;  %v6923_v58 = vpop.permute.xlu2 %3134 }
 0x407   : > { %5477 = vlog2.f32 %v2847_v35 }
 0x409   : > { %v5472_v46 = vpop.eup %5471  ;;  %v3204_v55 = vpop.f32.mrf.mxu0 }
 0x40a   : > { %v2855_v60 = vmul.f32 0.6931472, %v5472_v46  ;;  %v3205_v22 = vadd.f32 %v3204_v55, %v6914_v15 }
 0x40b   : > { %v5474_v21 = vpop.eup %5473 }
 0x40c   : > { %v3223_v41 = vpop.f32.mrf.mxu1  ;;  %v5476_v28 = vpop.eup %5475  ;;  %v2857_v38 = vmul.f32 0.6931472, %v5474_v21  ;;  %v2868_v14 = vadd.f32 %v2855_v60, %v2804_v18  ;;  %v3203_v18 = vadd.f32 %v6894_v8, %v6923_v58 }
 0x40d   : > { %v5478_v25 = vpop.eup %5477  ;;  %v2859_v61 = vmul.f32 0.6931472, %v5476_v28  ;;  %v3224_v35 = vadd.f32 %v3223_v41, %v6914_v15 }
 0x40e   : > { %v2869_v4 = vadd.f32 %v2857_v38, %v2805_v39  ;;  %v2861_v27 = vmul.f32 0.6931472, %v5478_v25  ;;  %2876 = vst [vmem:[#allocation3 + $0x1a] sm:$0x1] %v2868_v14  ;;  %v3222_v39 = vadd.f32 %v6896_v59, %v6923_v58 }
 0x40f   : > { %v2870_v13 = vadd.f32 %v2859_v61, %v2806_v56  ;;  %v3353_v56 = vmax.f32 %v3205_v22, 0.0 }
 0x410   : > { %2877 = vst [vmem:[#allocation3 + $0x1b] sm:$0x1] %v2869_v4  ;;  %v2871_v7 = vadd.f32 %v2861_v27, %v2807_v30  ;;  %v3345_v27 = vmax.f32 %v3203_v18, 0.0 }
 0x411   : > { %2878 = vst [vmem:[#allocation3 + $0x1c] sm:$0x1] %v2870_v13  ;;  %v2695_v44 = vpop.f32.mrf.mxu2  ;;  %v3207_v31 = vpop.f32.mrf.mxu0 }
 0x412   : > { %2879 = vst [vmem:[#allocation3 + $0x1d] sm:$0x1] %v2871_v7  ;;  %v6905_v19 = vadd.f32 %v2695_v44, %v6064_v50  ;;  %v3346_v7 = vmax.f32 %v3222_v39, 0.0 }
 0x413   : > { %v2709_v24 = vpop.f32.mrf.mxu3 }
 0x414   : > { %v3226_v40 = vpop.f32.mrf.mxu1  ;;  %v6908_v20 = vadd.f32 %v2709_v24, %v6064_v50  ;;  %v2736_v1 = vrot.slane %v6905_v19, 2  ;;  %v2816_v45 = vand.u32 2147483647, %v6905_v19  ;;  %v3208_v50 = vadd.f32 %v3207_v31, %v6902_v6 }
 0x415   : > { %v3227_v12 = vadd.f32 %v3226_v40, %v6902_v6 }
 0x416   : > { %v2737_v42 = vrot.slane %v6908_v20, 2  ;;  %v2817_v32 = vand.u32 2147483647, %v6908_v20  ;;  %2784 = vst [vmem:[#allocation2 + $0x260] sm:$0xc0] %v2736_v1  ;;  %v2824_v5 = vsub.f32 0.0, %v2816_v45  ;;  %v3377_v45 = vpack.c.bf16 %v3353_v56, %v3345_v27 }
 0x417   : > { %v3361_v55 = vmax.f32 %v3208_v50, 0.0  ;;  %v3362_v38 = vmax.f32 %v3227_v12, 0.0  ;;  %v2809_v22 = vmax.f32 %v6908_v20, 0.0 }
 0x418   : > { %2785 = vst [vmem:[#allocation2 + $0x2d8] sm:$0xc0] %v2737_v42  ;;  %v2825_v10 = vsub.f32 0.0, %v2817_v32  ;;  %v2838_v34 = vmul.f32 1.442695, %v2824_v5 }
 0x419   : > { %v2697_v53 = vpop.f32.mrf.mxu2  ;;  %v3209_v49 = vpop.f32.mrf.mxu0 }
 0x41a   : > { %v2840_v26 = vmul.f32 1.442695, %v2825_v10  ;;  %5479 = vpow2.f32 %v2838_v34  ;;  %v2698_v2 = vadd.f32 %v2697_v53, %v6062_v47  ;;  %v3210_v23 = vadd.f32 %v3209_v49, %v6916_v0 }
 0x41b   : > { %v2711_v52 = vpop.f32.mrf.mxu3 }
 0x41c   : > { %v3228_v63 = vpop.f32.mrf.mxu1  ;;  %5481 = vpow2.f32 %v2840_v26  ;;  %v2712_v46 = vadd.f32 %v2711_v52, %v6062_v47  ;;  %v2750_v60 = vrot.slane %v2698_v2, 2  ;;  %v3369_v28 = vmax.f32 %v3210_v23, 0.0 }
 0x41d   : > { %v3229_v21 = vadd.f32 %v3228_v63, %v6916_v0  ;;  %v3354_v47 = vmax.f32 %v3224_v35, 0.0  ;;  %v2808_v26 = vmax.f32 %v6905_v19, 0.0  ;;  %v2925_v63 = vsel %vm2913_vm6, %v6702_v62, 1.0 }
 0x41e   : > { %v2752_v25 = vrot.slane %v2712_v46, 2  ;;  %v2751_v41 = vsel %vm977_vm5, %v2736_v1, %v2750_v60  ;;  %2800 = vst [vmem:[#allocation2 + $0x248] sm:$0x3f] %v2750_v60  ;;  %v3385_v61 = vpack.c.bf16 %v3369_v28, %v3361_v55  ;;  %v2929_v55 = vsub.f32 0.0, %v2925_v63 }
 0x41f   : > { %v3370_v14 = vmax.f32 %v3229_v21, 0.0  ;;  %2792 = vst [vmem:[#allocation2 + $0x198] sm:$0xff] %v2751_v41  ;;  %v3378_v32 = vpack.c.bf16 %v3354_v47, %v3346_v7 }
 0x420   : > { %v2753_v4 = vsel %vm977_vm5, %v2737_v42, %v2752_v25  ;;  %v5480_v8 = vpop.eup %5479  ;;  %3407 = vmatpush.bf16.msra.mxu0 %v3385_v61  ;;  %2801 = vst [vmem:[#allocation2 + $0x158] sm:$0x3f] %v2752_v25  ;;  %v6937_v42 = vld [vmem:[%s7379_s9] sm:$0x1] }
 0x421   : > { %v3386_v30 = vpack.c.bf16 %v3370_v14, %v3362_v38  ;;  %2793 = vst [vmem:[#allocation2 + $0x2e8] sm:$0xff] %v2753_v4  ;;  %v2848_v59 = vadd.f32 1.0, %v5480_v8  ;;  %v3240_v44 = vpop.f32.mrf.mxu2  ;;  %v3278_v31 = vpop.f32.mrf.mxu0 }
 0x422   : > { %v5482_v13 = vpop.eup %5481  ;;  %v3241_v28 = vadd.f32 %v3240_v44, %v6923_v58  ;;  %v3279_v39 = vadd.f32 %v3278_v31, %v6923_v58 }
 0x423   : > { %3420 = vmatpush.bf16.msra.mxu1 %v3386_v30  ;;  %v2849_v24 = vadd.f32 1.0, %v5482_v13  ;;  %v3259_v40 = vpop.f32.mrf.mxu3  ;;  %5483 = vlog2.f32 %v2848_v59 }
 0x424   : > { %v3297_v1 = vpop.f32.mrf.mxu1  ;;  %3408 = vmatpush.bf16.msra.mxu0 %v3377_v45  ;;  %v3260_v20 = vadd.f32 %v3259_v40, %v6923_v58 }
 0x425   : > { %5485 = vlog2.f32 %v2849_v24  ;;  %v3298_v38 = vadd.f32 %v3297_v1, %v6923_v58 }
 0x427   : > { %3421 = vmatpush.bf16.msra.mxu1 %v3378_v32  ;;  %5161 = vmatmul.msk.bf16.vlgmr.msra.gmra.mxu0 %vm845_vm4, %v6937_v42 }
 0x429   : > { %v5484_v5 = vpop.eup %5483  ;;  %v3242_v10 = vpop.f32.mrf.mxu2 }
 0x42a   : > { %5162 = vmatmul.msk.bf16.vlgmr.msra.gmra.mxu1 %vm845_vm4, %v6937_v42  ;;  %v3280_v34 = vpop.f32.mrf.mxu0  ;;  %v2863_v12 = vmul.f32 0.6931472, %v5484_v5  ;;  %v3243_v56 = vadd.f32 %v3242_v10, %v6914_v15 }
 0x42b   : > { %v5486_v50 = vpop.eup %5485  ;;  %v3261_v53 = vpop.f32.mrf.mxu3  ;;  %v3281_v8 = vadd.f32 %v3280_v34, %v6914_v15 }
 0x42c   : > { %v3299_v49 = vpop.f32.mrf.mxu1  ;;  %v2865_v2 = vmul.f32 0.6931472, %v5486_v50  ;;  %v2872_v52 = vadd.f32 %v2863_v12, %v2808_v26  ;;  %v3262_v30 = vadd.f32 %v3261_v53, %v6914_v15  ;;  %v3355_v26 = vmax.f32 %v3243_v56, 0.0 }
 0x42d   : > { %v3300_v44 = vadd.f32 %v3299_v49, %v6914_v15  ;;  %v3357_v12 = vmax.f32 %v3281_v8, 0.0 }
 0x42e   : > { %v2873_v23 = vadd.f32 %v2865_v2, %v2809_v22  ;;  %2880 = vst [vmem:[#allocation3 + $0x1e] sm:$0x1] %v2872_v52  ;;  %v3593_v2 = vld [vmem:[#allocation2 + $0x188] sm:$0x3f]  ;;  %v3594_v52 = vld [vmem:[#allocation2 + $0x1c0] sm:$0x3f] }
 0x42f   : > { %v3358_v49 = vmax.f32 %v3300_v44, 0.0 }
 0x430   : > { %2881 = vst [vmem:[#allocation3 + $0x1f] sm:$0x1] %v2873_v23  ;;  %v3356_v23 = vmax.f32 %v3262_v30, 0.0 }
 0x431   : > { %v3245_v35 = vpop.f32.mrf.mxu2 }
 0x432   : > { %v3283_v46 = vpop.f32.mrf.mxu0  ;;  %v3246_v25 = vadd.f32 %v3245_v35, %v6902_v6 }
 0x433   : > { %v3264_v21 = vpop.f32.mrf.mxu3  ;;  %v3284_v14 = vadd.f32 %v3283_v46, %v6902_v6  ;;  %v3347_v46 = vmax.f32 %v3241_v28, 0.0 }
 0x434   : > { %v3302_v18 = vpop.f32.mrf.mxu1  ;;  %v3265_v41 = vadd.f32 %v3264_v21, %v6902_v6  ;;  %v3363_v40 = vmax.f32 %v3246_v25, 0.0  ;;  %v3349_v21 = vmax.f32 %v3279_v39, 0.0  ;;  %v3609_v25 = vpack.c.bf16 %v3593_v2, %v3593_v2 }
 0x435   : > { %v3303_v61 = vadd.f32 %v3302_v18, %v6902_v6  ;;  %v3365_v1 = vmax.f32 %v3284_v14, 0.0  ;;  %v3610_v14 = vpack.c.bf16 %v3594_v52, %v3594_v52 }
 0x436   : > { %v3364_v5 = vmax.f32 %v3265_v41, 0.0  ;;  %v3379_v41 = vpack.c.bf16 %v3355_v26, %v3347_v46  ;;  %v3618_v30 = vsel %vm490_vm1, %v3609_v25, 0  ;;  %v3590_v26 = vld [vmem:[#allocation2 + $0x90] sm:$0xff] }
 0x437   : > { %v2889_v60 = vld [vmem:[#allocation3 + $0x18] sm:$0xff]  ;;  %v3366_v10 = vmax.f32 %v3303_v61, 0.0  ;;  %v3381_v61 = vpack.c.bf16 %v3357_v12, %v3349_v21  ;;  %v3621_v8 = vsel %vm490_vm1, %v3610_v14, 0 }
 0x438   : > { %v2933_v19 = vmul.f32 %v2929_v55, %v2889_v60  ;;  %v3348_v55 = vmax.f32 %v3260_v20, 0.0  ;;  %v3350_v60 = vmax.f32 %v3298_v38, 0.0  ;;  %v3577_v38 = vld [vmem:[#allocation2 + $0x2a0] sm:$0xff] }
 0x439   : > { %v3247_v47 = vpop.f32.mrf.mxu2 }
 0x43a   : > { %v2940_v62 = vmul.f32 1.442695, %v2933_v19  ;;  %v3285_v4 = vpop.f32.mrf.mxu0  ;;  %v3248_v27 = vadd.f32 %v3247_v47, %v6916_v0  ;;  %v3380_v28 = vpack.c.bf16 %v3356_v23, %v3348_v55  ;;  %v3382_v39 = vpack.c.bf16 %v3358_v49, %v3350_v60  ;;  %v3597_v47 = vld [vmem:[#allocation2 + $0x1c8] sm:$0x3f] }
 0x43b   : > { %v3266_v13 = vpop.f32.mrf.mxu3  ;;  %v3286_v7 = vadd.f32 %v3285_v4, %v6916_v0  ;;  %v3598_v4 = vld [vmem:[#allocation2 + $0x120] sm:$0x3f]  ;;  %v3613_v44 = vpack.c.bf16 %v3597_v47, %v3597_v47 }
 0x43c   : > { %v3304_v59 = vpop.f32.mrf.mxu1  ;;  %5487 = vpow2.f32 %v2940_v62  ;;  %v3267_v31 = vadd.f32 %v3266_v13, %v6916_v0  ;;  %v3371_v45 = vmax.f32 %v3248_v27, 0.0  ;;  %v3585_v27 = vld [vmem:[#allocation2 + $0xb8] sm:$0xff] }
 0x43d   : > { %v3305_v24 = vadd.f32 %v3304_v59, %v6916_v0  ;;  %v3373_v32 = vmax.f32 %v3286_v7, 0.0  ;;  %v3578_v13 = vld [vmem:[#allocation2 + $0xd8] sm:$0xff]  ;;  %v3586_v7 = vld [vmem:[#allocation2 + $0x200] sm:$0xff] }
 0x43e   : > { %v3372_v34 = vmax.f32 %v3267_v31, 0.0  ;;  %v3387_v53 = vpack.c.bf16 %v3371_v45, %v3363_v40  ;;  %v3614_v31 = vpack.c.bf16 %v3598_v4, %v3598_v4  ;;  %v3602_v40 = vpack.c.bf16 %v3586_v7, %v3578_v13  ;;  %v3581_v45 = vld [vmem:[#allocation2 + $0x258] sm:$0xff] }
 0x43f   : > { %v3374_v50 = vmax.f32 %v3305_v24, 0.0  ;;  %v3389_v22 = vpack.c.bf16 %v3373_v32, %v3365_v1  ;;  %v3601_v24 = vpack.c.bf16 %v3585_v27, %v3577_v38 }
 0x440   : > { %v3388_v63 = vpack.c.bf16 %v3372_v34, %v3364_v5  ;;  %3433 = vmatpush.bf16.msra.mxu2 %v3387_v53  ;;  %v3630_v5 = vsel %vm490_vm1, %v3613_v44, 0  ;;  %v3589_v34 = vld [vmem:[#allocation2 + $0x38] sm:$0xff] }
 0x441   : > { %v3390_v35 = vpack.c.bf16 %v3374_v50, %v3366_v10  ;;  %3459 = vmatpush.bf16.msrb.mxu0 %v3389_v22  ;;  %v6965_v19 = vpop.f32.mrf.mxu2  ;;  %v3633_v10 = vsel %vm490_vm1, %v3614_v31, 0  ;;  %v3582_v50 = vld [vmem:[#allocation2 + $0x218] sm:$0xff]  ;;  %v3605_v12 = vpack.c.bf16 %v3589_v34, %v3581_v45 }
 0x442   : > { %v6963_v18 = vpop.eup %5487  ;;  %3446 = vmatpush.bf16.msra.mxu3 %v3388_v63  ;;  %v3606_v53 = vpack.c.bf16 %v3590_v26, %v3582_v50  ;;  %v3579_v34 = vld [vmem:[#allocation2 + $0x2b8] sm:$0xff]  ;;  %v3580_v26 = vld [vmem:[#allocation2 + $0x170] sm:$0xff] }
 0x443   : > { %3472 = vmatpush.bf16.msrb.mxu1 %v3390_v35  ;;  %v2945_v62 = vsub.f32 1.0, %v6963_v18  ;;  %v6968_v56 = vpop.f32.mrf.mxu3 }
 0x444   : > { %3434 = vmatpush.bf16.msra.mxu2 %v3379_v41  ;;  %v3336_v4 = vadd.f32 %v6968_v56, %v6923_v58 }
 0x445   : > { %v2949_v20 = vsub.f32 1.0, %v2945_v62  ;;  %3460 = vmatpush.bf16.msrb.mxu0 %v3381_v61 }
 0x446   : > { %3447 = vmatpush.bf16.msra.mxu3 %v3380_v28 }
 0x447   : > { %3473 = vmatpush.bf16.msrb.mxu1 %v3382_v39  ;;  %v2953_v59 = vadd.f32 1e-15, %v2949_v20  ;;  %5163 = vmatmul.msk.bf16.vlgmr.msra.gmra.mxu2 %vm845_vm4, %v6937_v42 }
 0x448   : > { %5165 = vmatmul.msk.bf16.vlgmr.msrb.gmra.mxu0 %vm845_vm4, %v6937_v42 }
 0x449   : > { %3647 = vmatpush.bf16.msra.mxu0 %v3618_v30  ;;  %5489 = vlog2.f32 %v2953_v59  ;;  %5164 = vmatmul.msk.bf16.vlgmr.msra.gmra.mxu3 %vm845_vm4, %v6937_v42  ;;  %v3318_v1 = vpop.f32.mrf.mxu2  ;;  %v3595_v30 = vld [vmem:[#allocation2 + $0x140] sm:$0x3f] }
 0x44a   : > { %5166 = vmatmul.msk.bf16.vlgmr.msrb.gmra.mxu1 %vm845_vm4, %v6937_v42 }
 0x44b   : > { %3666 = vmatpush.bf16.msra.mxu1 %v3621_v8  ;;  %v3337_v32 = vpop.f32.mrf.mxu3 }
 0x44c   : > { %v3338_v41 = vadd.f32 %v3337_v32, %v6914_v15 }
 0x44d   : > { %3648 = vmatpush.bf16.msra.mxu0 %v3601_v24  ;;  %v3352_v24 = vmax.f32 %v3336_v4, 0.0 }
 0x44e   : > { %v3360_v13 = vmax.f32 %v3338_v41, 0.0 }
 0x44f   : > { %3667 = vmatpush.bf16.msra.mxu1 %v3602_v40  ;;  %v5490_v22 = vpop.eup %5489 }
 0x450   : > { %v2961_v2 = vmul.f32 0.6931472, %v5490_v22  ;;  %v3384_v32 = vpack.c.bf16 %v3360_v13, %v3352_v24 }
 0x451   : > { %3723 = vmatpush.bf16.msrb.mxu0 %v3630_v5  ;;  %v3321_v23 = vpop.f32.mrf.mxu2  ;;  %v3600_v5 = vld [vmem:[#allocation2 + $0x110] sm:$0x3f] }
 0x452   : > { %v2971_v52 = vrot.slane %v2961_v2, 7  ;;  %v3322_v55 = vadd.f32 %v3321_v23, %v6902_v6  ;;  %v3616_v22 = vpack.c.bf16 %v3600_v5, %v3600_v5  ;;  %v3591_v23 = vld [vmem:[#allocation2 + $0x298] sm:$0xff]  ;;  %v5310_v5 = vld [vmem:[#allocation3 + $0x1] ss:$0 sm:$0xff] }
 0x453   : > { %3742 = vmatpush.bf16.msrb.mxu1 %v3633_v10  ;;  %v3340_v49 = vpop.f32.mrf.mxu3 }
 0x454   : > { %v2972_v63 = vsel %vm602_vm0, %v2969_v3, %v2971_v52  ;;  %v3341_v25 = vadd.f32 %v3340_v49, %v6902_v6  ;;  %v3319_v3 = vadd.f32 %v3318_v1, %v6914_v15  ;;  %v3367_v39 = vmax.f32 %v3322_v55, 0.0  ;;  %v3599_v1 = vld [vmem:[#allocation2 + $0x290] sm:$0x3f] }
 0x455   : > { %3724 = vmatpush.bf16.msrb.mxu0 %v3605_v12  ;;  %v2984_v35 = vrot.slane %v2972_v63, 7  ;;  %v3588_v12 = vld [vmem:[#allocation2 + $0x288] sm:$0xff]  ;;  %v3639_v49 = vsel %vm490_vm1, %v3616_v22, 0 }
 0x456   : > { %v3368_v20 = vmax.f32 %v3341_v25, 0.0  ;;  %v3359_v9 = vmax.f32 %v3319_v3, 0.0  ;;  %v5633_v3 = vld [vmem:[%s5769_s22 + $0x18] sm:$0xff] }
 0x457   : > { %3743 = vmatpush.bf16.msrb.mxu1 %v3606_v53  ;;  %v2985_v46 = vsel %vm602_vm0, %v2982_v57, %v2984_v35  ;;  %v3615_v53 = vpack.c.bf16 %v3599_v1, %v3599_v1  ;;  %v3583_v35 = vld [vmem:[#allocation2 + $0x2e0] sm:$0xff] }
 0x458   : > { %v2994_v21 = vadd.f32 %v2985_v46, %v2972_v63  ;;  %5169 = vmatmul.msk.bf16.vlgmr.msra.gmra.mxu0 %vm3162_vm8, %v6774_v29  ;;  %v3592_v63 = vld [vmem:[#allocation2 + $0xd0] sm:$0xff]  ;;  %v3607_v46 = vpack.c.bf16 %v3591_v23, %v3583_v35 }
 0x459   : > { %v3323_v43 = vpop.f32.mrf.mxu2  ;;  %v3636_v52 = vsel %vm490_vm1, %v3615_v53, 0 }
 0x45a   : > { %5171 = vmatmul.msk.bf16.vlgmr.msra.gmra.mxu1 %vm3162_vm8, %v6774_v29  ;;  %v3004_v60 = vrot.slane %v2994_v21, 6  ;;  %v3324_v14 = vadd.f32 %v3323_v43, %v6916_v0  ;;  %v3317_v29 = vadd.f32 %v6965_v19, %v6923_v58  ;;  %v3611_v19 = vpack.c.bf16 %v3595_v30, %v3595_v30  ;;  %v7057_v30 = vpop.permute.xlu1 %3395 }
 0x45b   : > { %v3342_v48 = vpop.f32.mrf.mxu3 }
 0x45c   : > { %v3005_v57 = vsel %vm603_vm2, %v3002_v33, %v3004_v60  ;;  %v3343_v61 = vadd.f32 %v3342_v48, %v6916_v0  ;;  %v3375_v47 = vmax.f32 %v3324_v14, 0.0  ;;  %v3596_v33 = vld [vmem:[#allocation2 + $0x238] sm:$0x3f]  ;;  %v3351_v44 = vmax.f32 %v3317_v29, 0.0 }
 0x45d   : > { %v3014_v28 = vadd.f32 %v3005_v57, %v2994_v21  ;;  %v3612_v56 = vpack.c.bf16 %v3596_v33, %v3596_v33  ;;  %v3624_v10 = vsel %vm490_vm1, %v3611_v19, 0  ;;  %v3584_v21 = vld [vmem:[#allocation2 + $0xa8] sm:$0xff] }
 0x45e   : > { %v3376_v38 = vmax.f32 %v3343_v61, 0.0  ;;  %v3391_v27 = vpack.c.bf16 %v3375_v47, %v3367_v39  ;;  %v3383_v40 = vpack.c.bf16 %v3359_v9, %v3351_v44  ;;  %v3608_v55 = vpack.c.bf16 %v3592_v63, %v3584_v21 }
 0x45f   : > { %v3025_v8 = vrot.slane %v3014_v28, 4  ;;  %v3627_v50 = vsel %vm490_vm1, %v3612_v56, 0 }
 0x460   : > { %v3392_v7 = vpack.c.bf16 %v3376_v38, %v3368_v20  ;;  %3485 = vmatpush.bf16.msrb.mxu2 %v3391_v27 }
 0x461   : > { %v3026_v59 = vsel %vm3019_vm7, %v3023_v37, %v3025_v8 }
 0x462   : > { %v3035_v31 = vadd.f32 %v3026_v59, %v3014_v28  ;;  %3498 = vmatpush.bf16.msrb.mxu3 %v3392_v7  ;;  %v7032_v28 = vld [vmem:[%s7377_s7] sm:$0xff] }
 0x464   : > { %v3039_v45 = vadd.f32 %v3035_v31, %v6803_v51  ;;  %3486 = vmatpush.bf16.msrb.mxu2 %v3383_v40  ;;  %v3603_v51 = vpack.c.bf16 %v3587_v16, %v3579_v34 }
 0x466   : > { %v3043_v37 = vadd.f32 %v3039_v45, %v6572_v11  ;;  %3499 = vmatpush.bf16.msrb.mxu3 %v3384_v32  ;;  %v3604_v11 = vpack.c.bf16 %v3588_v12, %v3580_v26  ;;  %v5309_v45 = vld [vmem:[#allocation3] ss:$0 sm:$0xff] }
 0x467   : > { %5167 = vmatmul.msk.bf16.vlgmr.msrb.gmra.mxu2 %vm845_vm4, %v6937_v42 }
 0x468   : > { %3685 = vmatpush.bf16.msra.mxu2 %v3624_v10  ;;  %v3050_v2 = vmul.f32 1.442695, %v3043_v37  ;;  %5170 = vmatmul.msk.bf16.gmra.mxu0 %vm3162_vm8, %v6818_v36 }
 0x469   : > { %5168 = vmatmul.msk.bf16.vlgmr.msrb.gmra.mxu3 %vm845_vm4, %v6937_v42 }
 0x46a   : > { %3704 = vmatpush.bf16.msra.mxu3 %v3627_v50  ;;  %5172 = vmatmul.msk.bf16.gmra.mxu1 %vm3162_vm8, %v6818_v36  ;;  %5491 = vpow2.f32 %v3050_v2 }
 0x46c   : > { %3686 = vmatpush.bf16.msra.mxu2 %v3603_v51 }
 0x46e   : > { %3705 = vmatpush.bf16.msra.mxu3 %v3604_v11 }
 0x470   : > { %3761 = vmatpush.bf16.msrb.mxu2 %v3636_v52  ;;  %v5492_v60 = vpop.eup %5491 }
 0x471   : > { %v3055_v25 = vmul.f32 %v5492_v60, %v2945_v62 }
 0x472   : > { %3780 = vmatpush.bf16.msrb.mxu3 %v3639_v49 }
 0x473   : > { %3081 = vst [vmem:[#allocation3 + $0x18] sm:$0xff] %v3055_v25  ;;  %v3058_v43 = vadd.f32 %v6831_v17, %v3055_v25  ;;  %v3068_v14 = vmul.f32 %v5633_v3, %v3055_v25 }
 0x474   : > { %3762 = vmatpush.bf16.msrb.mxu2 %v3607_v46 }
 0x475   : > { %v3059_v48 = vrot.slane %v3058_v43, 4  ;;  %v3071_v57 = vadd.f32 %v6834_v54, %v3068_v14 }
 0x476   : > { %3781 = vmatpush.bf16.msrb.mxu3 %v3608_v55 }
 0x477   : > { %v3060_v41 = vadd.f32 %v3059_v48, %v3058_v43  ;;  %v3072_v61 = vrot.slane %v3071_v57, 4  ;;  %5173 = vmatmul.msk.bf16.vlgmr.msra.gmra.mxu2 %vm3162_vm8, %v7032_v28 }
 0x478   : > { %5177 = vmatmul.msk.bf16.vlgmr.msrb.gmra.mxu0 %vm3162_vm8, %v7032_v28 }
 0x479   : > { %5175 = vmatmul.msk.bf16.vlgmr.msra.gmra.mxu3 %vm3162_vm8, %v7032_v28  ;;  %v3061_v17 = vrot.slane %v3060_v41, 2  ;;  %v3073_v54 = vadd.f32 %v3072_v61, %v3071_v57 }
 0x47a   : > { %5179 = vmatmul.msk.bf16.vlgmr.msrb.gmra.mxu1 %vm3162_vm8, %v7032_v28 }
 0x47b   : > { %v3062_v18 = vadd.f32 %v3061_v17, %v3060_v41  ;;  %v3074_v62 = vrot.slane %v3073_v54, 2 }
 0x47d   : > { %v3063_v29 = vrot.slane %v3062_v18, 1  ;;  %v3075_v39 = vadd.f32 %v3074_v62, %v3073_v54 }
 0x47f   : > { %v3076_v47 = vrot.slane %v3075_v39, 1  ;;  %v3064_v4 = vadd.f32 %v3063_v29, %v3062_v18 }
 0x481   : > { %v3077_v20 = vadd.f32 %v3076_v47, %v3075_v39  ;;  %v5313_v47 = vld [vmem:[#allocation3 + $0x2] ss:$0 sm:$0xff] }
 0x483   : > { %v7043_v38 = vsel %vm602_vm0, %v3064_v4, %v3077_v20 }
 0x487   : > { %5174 = vmatmul.msk.bf16.gmra.mxu2 %vm3162_vm8, %v6818_v36 }
 0x488   : > { %5178 = vmatmul.msk.bf16.gmra.mxu0 %vm3162_vm8, %v6818_v36 }
 0x489   : > { %5176 = vmatmul.msk.bf16.gmra.mxu3 %vm3162_vm8, %v6818_v36 }
 0x48a   : > { %5180 = vmatmul.msk.bf16.gmra.mxu1 %vm3162_vm8, %v6818_v36 }
 0x497   : > { %5181 = vmatmul.msk.bf16.vlgmr.msrb.gmra.mxu2 %vm3162_vm8, %v7032_v28 }
 0x499   : > { %5183 = vmatmul.msk.bf16.vlgmr.msrb.gmra.mxu3 %vm3162_vm8, %v7032_v28 }
 0x4a4   : > { %v3410_v8 = vpop.f32.mrf.mxu0 }
 0x4a5   : > { %v3411_v9 = vadd.f32 %v3410_v8, %v7057_v30 }
 0x4a7   : > { %v3423_v27 = vpop.f32.mrf.mxu1  ;;  %v3505_v13 = vsub.f32 0.0, %v3411_v9  ;;  %5182 = vmatmul.msk.bf16.gmra.mxu2 %vm3162_vm8, %v6818_v36  ;;  %v5314_v9 = vld [vmem:[#allocation3 + $0x3] ss:$0 sm:$0xff] }
 0x4a8   : > { %v3424_v33 = vadd.f32 %v3423_v27, %v7057_v30 }
 0x4a9   : > { %5184 = vmatmul.msk.bf16.gmra.mxu3 %vm3162_vm8, %v6818_v36  ;;  %v3513_v59 = vmul.f32 1.442695, %v3505_v13 }
 0x4aa   : > { %v3506_v7 = vsub.f32 0.0, %v3424_v33  ;;  %v5311_v33 = vld [vmem:[#allocation3 + $0x4] ss:$0 sm:$0xff] }
 0x4ab   : > { %5493 = vpow2.f32 %v3513_v59 }
 0x4ac   : > { %v3515_v44 = vmul.f32 1.442695, %v3506_v7  ;;  %v3412_v19 = vpop.f32.mrf.mxu0 }
 0x4ae   : > { %5495 = vpow2.f32 %v3515_v44 }
 0x4af   : > { %v3425_v31 = vpop.f32.mrf.mxu1 }
 0x4b0   : > { %v5312_v31 = vld [vmem:[#allocation3 + $0x5] ss:$0 sm:$0xff] }
 0x4b1   : > { %v5494_v24 = vpop.eup %5493 }
 0x4b2   : > { %v3529_v40 = vadd.f32 1.0, %v5494_v24 }
 0x4b4   : > { %v5496_v56 = vpop.eup %5495  ;;  %5497 = vrcp.f32 %v3529_v40 }
 0x4b5   : > { %v3530_v1 = vadd.f32 1.0, %v5496_v56 }
 0x4b7   : > { %5499 = vrcp.f32 %v3530_v1 }
 0x4ba   : > { %v5498_v32 = vpop.eup %5497 }
 0x4bb   : > { %v3547_v34 = vmul.f32 %v5498_v32, %v5309_v45 }
 0x4bd   : > { %v5500_v10 = vpop.eup %5499 }
 0x4be   : > { %v3551_v16 = vmul.f32 %v5500_v10, %v5310_v5 }
 0x4c0   : > { %v3552_v37 = vadd.f32 %v3551_v16, %v3547_v34 }
 0x4c5   : > { %v3462_v36 = vpop.f32.mrf.mxu0 }
 0x4c6   : > { %v3463_v50 = vadd.f32 %v3462_v36, %v7057_v30 }
 0x4c7   : > { %v3475_v26 = vpop.f32.mrf.mxu1 }
 0x4c8   : > { %v3476_v12 = vadd.f32 %v3475_v26, %v7057_v30  ;;  %v3509_v53 = vsub.f32 0.0, %v3463_v50 }
 0x4ca   : > { %v3510_v22 = vsub.f32 0.0, %v3476_v12  ;;  %v3436_v2 = vpop.f32.mrf.mxu2  ;;  %v3521_v51 = vmul.f32 1.442695, %v3509_v53 }
 0x4cb   : > { %v3437_v11 = vadd.f32 %v3436_v2, %v7057_v30 }
 0x4cc   : > { %v3449_v52 = vpop.f32.mrf.mxu3  ;;  %v3523_v23 = vmul.f32 1.442695, %v3510_v22  ;;  %5501 = vpow2.f32 %v3521_v51 }
 0x4cd   : > { %v3450_v49 = vadd.f32 %v3449_v52, %v7057_v30  ;;  %v3464_v63 = vpop.f32.mrf.mxu0  ;;  %v3507_v35 = vsub.f32 0.0, %v3437_v11 }
 0x4ce   : > { %5503 = vpow2.f32 %v3523_v23 }
 0x4cf   : > { %v3477_v46 = vpop.f32.mrf.mxu1  ;;  %v3508_v21 = vsub.f32 0.0, %v3450_v49  ;;  %v3517_v55 = vmul.f32 1.442695, %v3507_v35 }
 0x4d1   : > { %v3519_v60 = vmul.f32 1.442695, %v3508_v21  ;;  %5505 = vpow2.f32 %v3517_v55 }
 0x4d2   : > { %v3438_v25 = vpop.f32.mrf.mxu2  ;;  %v5502_v14 = vpop.eup %5501 }
 0x4d3   : > { %5507 = vpow2.f32 %v3519_v60  ;;  %v3533_v17 = vadd.f32 1.0, %v5502_v14 }
 0x4d4   : > { %v3451_v43 = vpop.f32.mrf.mxu3  ;;  %v5504_v57 = vpop.eup %5503 }
 0x4d5   : > { %v3650_v3 = vpop.f32.mrf.mxu0  ;;  %v3534_v62 = vadd.f32 1.0, %v5504_v57 }
 0x4d6   : > { %v3651_v11 = vadd.f32 %v3650_v3, %v6923_v58 }
 0x4d7   : > { %v3669_v48 = vpop.f32.mrf.mxu1  ;;  %v5506_v41 = vpop.eup %5505 }
 0x4d8   : > { %v3531_v54 = vadd.f32 1.0, %v5506_v41  ;;  %v3670_v63 = vadd.f32 %v3669_v48, %v6923_v58  ;;  %v3793_v57 = vmax.f32 %v3651_v11, 0.0  ;;  %v4033_v11 = vld [vmem:[#allocation2 + $0x220] sm:$0x3f] }
 0x4d9   : > { %v5508_v61 = vpop.eup %5507 }
 0x4da   : > { %v3532_v18 = vadd.f32 1.0, %v5508_v61  ;;  %5509 = vrcp.f32 %v3531_v54  ;;  %v3794_v61 = vmax.f32 %v3670_v63, 0.0  ;;  %v4034_v63 = vld [vmem:[#allocation2 + $0xf8] sm:$0x3f] }
 0x4dc   : > { %5511 = vrcp.f32 %v3532_v18 }
 0x4dd   : > { %5513 = vrcp.f32 %v3533_v17  ;;  %v3652_v29 = vpop.f32.mrf.mxu0 }
 0x4de   : > { %5515 = vrcp.f32 %v3534_v62  ;;  %v3653_v50 = vadd.f32 %v3652_v29, %v6914_v15 }
 0x4df   : > { %v3671_v39 = vpop.f32.mrf.mxu1 }
 0x4e0   : > { %v5510_v4 = vpop.eup %5509  ;;  %v3672_v22 = vadd.f32 %v3671_v39, %v6914_v15  ;;  %v3801_v55 = vmax.f32 %v3653_v50, 0.0 }
 0x4e1   : > { %v3555_v8 = vmul.f32 %v5510_v4, %v5313_v47 }
 0x4e2   : > { %v5512_v20 = vpop.eup %5511  ;;  %v3802_v25 = vmax.f32 %v3672_v22, 0.0  ;;  %v3825_v54 = vpack.c.bf16 %v3801_v55, %v3793_v57  ;;  %v4049_v57 = vpack.c.bf16 %v4033_v11, %v4033_v11 }
 0x4e3   : > { %v5514_v27 = vpop.eup %5513  ;;  %v3556_v13 = vadd.f32 %v3555_v8, %v3552_v37  ;;  %v3559_v7 = vmul.f32 %v5512_v20, %v5314_v9  ;;  %v5315_v9 = vld [vmem:[#allocation3 + $0x6] ss:$0 sm:$0xff] }
 0x4e4   : > { %v5516_v59 = vpop.eup %5515  ;;  %v3563_v19 = vmul.f32 %v5514_v27, %v5311_v33  ;;  %v3826_v18 = vpack.c.bf16 %v3802_v25, %v3794_v61 }
 0x4e5   : > { %v3655_v44 = vpop.f32.mrf.mxu0  ;;  %v3560_v24 = vadd.f32 %v3559_v7, %v3556_v13  ;;  %v3567_v40 = vmul.f32 %v5516_v59, %v5312_v31  ;;  %v5316_v7 = vld [vmem:[#allocation3 + $0x7] ss:$0 sm:$0xff] }
 0x4e6   : > { %v3656_v5 = vadd.f32 %v3655_v44, %v6902_v6 }
 0x4e7   : > { %v3674_v56 = vpop.f32.mrf.mxu1  ;;  %v3564_v1 = vadd.f32 %v3563_v19, %v3560_v24 }
 0x4e8   : > { %v3675_v16 = vadd.f32 %v3674_v56, %v6902_v6  ;;  %v3809_v52 = vmax.f32 %v3656_v5, 0.0 }
 0x4e9   : > { %v3568_v45 = vadd.f32 %v3567_v40, %v3564_v1 }
 0x4ea   : > { %v3488_v32 = vpop.f32.mrf.mxu2  ;;  %v3810_v35 = vmax.f32 %v3675_v16, 0.0 }
 0x4eb   : > { %v3489_v10 = vadd.f32 %v3488_v32, %v7057_v30 }
 0x4ec   : > { %v3501_v34 = vpop.f32.mrf.mxu3 }
 0x4ed   : > { %v3502_v37 = vadd.f32 %v3501_v34, %v7057_v30  ;;  %v3657_v36 = vpop.f32.mrf.mxu0  ;;  %v3511_v26 = vsub.f32 0.0, %v3489_v10 }
 0x4ee   : > { %v3658_v12 = vadd.f32 %v3657_v36, %v6916_v0 }
 0x4ef   : > { %v3676_v53 = vpop.f32.mrf.mxu1  ;;  %v3512_v2 = vsub.f32 0.0, %v3502_v37  ;;  %v3525_v23 = vmul.f32 1.442695, %v3511_v26 }
 0x4f0   : > { %v3677_v51 = vadd.f32 %v3676_v53, %v6916_v0  ;;  %v3817_v49 = vmax.f32 %v3658_v12, 0.0 }
 0x4f1   : > { %v3527_v46 = vmul.f32 1.442695, %v3512_v2  ;;  %5517 = vpow2.f32 %v3525_v23 }
 0x4f2   : > { %v3818_v21 = vmax.f32 %v3677_v51, 0.0  ;;  %v3833_v60 = vpack.c.bf16 %v3817_v49, %v3809_v52  ;;  %v3490_v14 = vpop.f32.mrf.mxu2 }
 0x4f3   : > { %5519 = vpow2.f32 %v3527_v46 }
 0x4f4   : > { %v3834_v43 = vpack.c.bf16 %v3818_v21, %v3810_v35  ;;  %v3503_v41 = vpop.f32.mrf.mxu3  ;;  %3847 = vmatpush.bf16.msra.mxu0 %v3833_v60 }
 0x4f5   : > { %v3726_v3 = vpop.f32.mrf.mxu0 }
 0x4f6   : > { %3860 = vmatpush.bf16.msra.mxu1 %v3834_v43  ;;  %v3727_v26 = vadd.f32 %v3726_v3, %v6923_v58 }
 0x4f7   : > { %v3745_v17 = vpop.f32.mrf.mxu1  ;;  %v5518_v48 = vpop.eup %5517 }
 0x4f8   : > { %3848 = vmatpush.bf16.msra.mxu0 %v3825_v54  ;;  %v3535_v29 = vadd.f32 1.0, %v5518_v48  ;;  %v3746_v22 = vadd.f32 %v3745_v17, %v6923_v58  ;;  %v3797_v60 = vmax.f32 %v3727_v26, 0.0  ;;  %v4050_v17 = vpack.c.bf16 %v4034_v63, %v4034_v63  ;;  %v4021_v26 = vld [vmem:[#allocation2 + $0x178] sm:$0xff] }
 0x4f9   : > { %v5520_v62 = vpop.eup %5519 }
 0x4fa   : > { %3861 = vmatpush.bf16.msra.mxu1 %v3826_v18  ;;  %v3536_v39 = vadd.f32 1.0, %v5520_v62  ;;  %5521 = vrcp.f32 %v3535_v29  ;;  %v3688_v47 = vpop.f32.mrf.mxu2  ;;  %v3798_v41 = vmax.f32 %v3746_v22, 0.0  ;;  %v4022_v22 = vld [vmem:[#allocation2 + $0x48] sm:$0xff] }
 0x4fb   : > { %5185 = vmatmul.msk.bf16.vlgmr.msra.gmra.mxu0 %vm845_vm4, %v6937_v42  ;;  %v3689_v54 = vadd.f32 %v3688_v47, %v6923_v58  ;;  %v4061_v47 = vsel %vm490_vm1, %v4050_v17, 0 }
 0x4fc   : > { %5523 = vrcp.f32 %v3536_v39  ;;  %v3707_v4 = vpop.f32.mrf.mxu3 }
 0x4fd   : > { %5186 = vmatmul.msk.bf16.vlgmr.msra.gmra.mxu1 %vm845_vm4, %v6937_v42  ;;  %v3728_v20 = vpop.f32.mrf.mxu0  ;;  %v3708_v29 = vadd.f32 %v3707_v4, %v6923_v58  ;;  %v4026_v4 = vld [vmem:[#allocation2 + $0x130] sm:$0xff] }
 0x4fe   : > { %v3729_v16 = vadd.f32 %v3728_v20, %v6914_v15 }
 0x4ff   : > { %v3747_v8 = vpop.f32.mrf.mxu1 }
 0x500   : > { %v5522_v27 = vpop.eup %5521  ;;  %v3805_v52 = vmax.f32 %v3729_v16, 0.0 }
 0x501   : > { %v3571_v13 = vmul.f32 %v5522_v27, %v5315_v9  ;;  %v4037_v9 = vld [vmem:[#allocation2 + $0xf0] sm:$0x3f] }
 0x502   : > { %v5524_v33 = vpop.eup %5523  ;;  %v3690_v59 = vpop.f32.mrf.mxu2  ;;  %v3829_v62 = vpack.c.bf16 %v3805_v52, %v3797_v60 }
 0x503   : > { %v3572_v44 = vadd.f32 %v3571_v13, %v3568_v45  ;;  %v3575_v19 = vmul.f32 %v5524_v33, %v5316_v7  ;;  %v3748_v45 = vadd.f32 %v3747_v8, %v6914_v15  ;;  %v3691_v25 = vadd.f32 %v3690_v59, %v6914_v15  ;;  %v4017_v7 = vld [vmem:[#allocation2 + $0x1a8] sm:$0xff]  ;;  %v4025_v59 = vld [vmem:[#allocation2 + $0x1d8] sm:$0xff] }
 0x504   : > { %v3709_v31 = vpop.f32.mrf.mxu3  ;;  %v4058_v13 = vsel %vm490_vm1, %v4049_v57, 0 }
 0x505   : > { %v3731_v24 = vpop.f32.mrf.mxu0  ;;  %v7083_v56 = vadd.f32 %v3575_v19, %v3572_v44  ;;  %v3806_v35 = vmax.f32 %v3748_v45, 0.0  ;;  %v3710_v61 = vadd.f32 %v3709_v31, %v6914_v15  ;;  %v3803_v27 = vmax.f32 %v3691_v25, 0.0  ;;  %v4038_v44 = vld [vmem:[#allocation2 + $0x1d0] sm:$0x3f] }
 0x506   : > { %v3732_v32 = vadd.f32 %v3731_v24, %v6902_v6  ;;  %v4018_v24 = vld [vmem:[#allocation2 + $0x2d0] sm:$0xff] }
 0x507   : > { %v3750_v40 = vpop.f32.mrf.mxu1  ;;  %v3830_v8 = vpack.c.bf16 %v3806_v35, %v3798_v41  ;;  %v3804_v19 = vmax.f32 %v3710_v61, 0.0 }
 0x508   : > { %v3751_v10 = vadd.f32 %v3750_v40, %v6902_v6  ;;  %v3813_v12 = vmax.f32 %v3732_v32, 0.0  ;;  %v3795_v40 = vmax.f32 %v3689_v54, 0.0  ;;  %v3796_v32 = vmax.f32 %v3708_v29, 0.0  ;;  %v4035_v54 = vld [vmem:[#allocation2 + $0x8] sm:$0x3f] }
 0x50a   : > { %v3693_v1 = vpop.f32.mrf.mxu2  ;;  %v3814_v2 = vmax.f32 %v3751_v10, 0.0  ;;  %v4041_v10 = vpack.c.bf16 %v4025_v59, %v4017_v7  ;;  %v3828_v45 = vpack.c.bf16 %v3804_v19, %v3796_v32  ;;  %v4039_v7 = vld [vmem:[#allocation2 + $0x1e8] sm:$0x3f] }
 0x50b   : > { %v3694_v23 = vadd.f32 %v3693_v1, %v6902_v6  ;;  %v4053_v1 = vpack.c.bf16 %v4037_v9, %v4037_v9 }
 0x50c   : > { %v3712_v5 = vpop.f32.mrf.mxu3 }
 0x50d   : > { %v3733_v34 = vpop.f32.mrf.mxu0  ;;  %v3713_v46 = vadd.f32 %v3712_v5, %v6902_v6  ;;  %v3811_v18 = vmax.f32 %v3694_v23, 0.0 }
 0x50e   : > { %v3734_v37 = vadd.f32 %v3733_v34, %v6916_v0  ;;  %v4054_v34 = vpack.c.bf16 %v4038_v44, %v4038_v44  ;;  %v4040_v44 = vld [vmem:[#allocation2 + $0x2f0] sm:$0x3f] }
 0x50f   : > { %v3752_v36 = vpop.f32.mrf.mxu1  ;;  %v3812_v39 = vmax.f32 %v3713_v46, 0.0  ;;  %v4056_v32 = vpack.c.bf16 %v4040_v44, %v4040_v44 }
 0x510   : > { %v3753_v50 = vadd.f32 %v3752_v36, %v6916_v0  ;;  %v3821_v53 = vmax.f32 %v3734_v37, 0.0  ;;  %v3827_v37 = vpack.c.bf16 %v3803_v27, %v3795_v40  ;;  %v4042_v36 = vpack.c.bf16 %v4026_v4, %v4018_v24  ;;  %v7128_v27 = vld [vmem:[%s7377_s7 + $0x8] sm:$0xff]  ;;  %v4028_v40 = vld [vmem:[#allocation2 + $0x160] sm:$0xff] }
 0x511   : > { %v4020_v4 = vld [vmem:[#allocation2 + $0x28] sm:$0xff] }
 0x512   : > { %v3822_v51 = vmax.f32 %v3753_v50, 0.0  ;;  %v3837_v49 = vpack.c.bf16 %v3821_v53, %v3813_v12  ;;  %v3695_v55 = vpop.f32.mrf.mxu2  ;;  %v4070_v50 = vsel %vm490_vm1, %v4053_v1, 0  ;;  %v4029_v12 = vld [vmem:[#allocation2 + $0xc0] sm:$0xff]  ;;  %v4073_v53 = vsel %vm490_vm1, %v4054_v34, 0 }
 0x513   : > { %v3696_v43 = vadd.f32 %v3695_v55, %v6916_v0  ;;  %v4055_v1 = vpack.c.bf16 %v4039_v7, %v4039_v7  ;;  %v4044_v34 = vpack.c.bf16 %v4028_v40, %v4020_v4 }
 0x514   : > { %v3838_v21 = vpack.c.bf16 %v3822_v51, %v3814_v2  ;;  %v3714_v14 = vpop.f32.mrf.mxu3  ;;  %3899 = vmatpush.bf16.msrb.mxu0 %v3837_v49  ;;  %v4030_v2 = vld [vmem:[#allocation2 + $0x80] sm:$0xff]  ;;  %v4045_v51 = vpack.c.bf16 %v4029_v12, %v4021_v26 }
 0x515   : > { %v3715_v3 = vadd.f32 %v3714_v14, %v6916_v0  ;;  %v3819_v48 = vmax.f32 %v3696_v43, 0.0  ;;  %v4046_v11 = vpack.c.bf16 %v4030_v2, %v4022_v22  ;;  %v4024_v12 = vld [vmem:[#allocation2 + $0x180] sm:$0xff] }
 0x516   : > { %3912 = vmatpush.bf16.msrb.mxu1 %v3838_v21 }
 0x517   : > { %v3820_v20 = vmax.f32 %v3715_v3, 0.0  ;;  %v3835_v33 = vpack.c.bf16 %v3819_v48, %v3811_v18 }
 0x518   : > { %3900 = vmatpush.bf16.msrb.mxu0 %v3829_v62  ;;  %v4036_v62 = vld [vmem:[#allocation2 + $0x2c0] sm:$0x3f] }
 0x519   : > { %v3836_v31 = vpack.c.bf16 %v3820_v20, %v3812_v39  ;;  %3873 = vmatpush.bf16.msra.mxu2 %v3835_v33  ;;  %v4052_v33 = vpack.c.bf16 %v4036_v62, %v4036_v62 }
 0x51a   : > { %3913 = vmatpush.bf16.msrb.mxu1 %v3830_v8  ;;  %v3764_v5 = vpop.f32.mrf.mxu2  ;;  %v4051_v8 = vpack.c.bf16 %v4035_v54, %v4035_v54 }
 0x51b   : > { %3886 = vmatpush.bf16.msra.mxu3 %v3836_v31  ;;  %5189 = vmatmul.msk.bf16.vlgmr.msrb.gmra.mxu0 %vm845_vm4, %v6937_v42  ;;  %v3765_v14 = vadd.f32 %v3764_v5, %v6923_v58  ;;  %v4019_v31 = vld [vmem:[#allocation2 + $0x1b0] sm:$0xff]  ;;  %v4067_v24 = vsel %vm490_vm1, %v4052_v33, 0  ;;  %v7139_v5 = vld [vmem:[%s7379_s9] sm:$0x1] }
 0x51c   : > { %4087 = vmatpush.bf16.msra.mxu0 %v4058_v13  ;;  %v3783_v16 = vpop.f32.mrf.mxu3  ;;  %v4064_v19 = vsel %vm490_vm1, %v4051_v8, 0 }
 0x51d   : > { %5190 = vmatmul.msk.bf16.vlgmr.msrb.gmra.mxu1 %vm845_vm4, %v6937_v42  ;;  %3874 = vmatpush.bf16.msra.mxu2 %v3827_v37  ;;  %v3784_v61 = vadd.f32 %v3783_v16, %v6923_v58  ;;  %v3799_v20 = vmax.f32 %v3765_v14, 0.0  ;;  %v4076_v16 = vsel %vm490_vm1, %v4055_v1, 0  ;;  %v4031_v37 = vld [vmem:[#allocation2 + $0x1b8] sm:$0xff] }
 0x51e   : > { %4106 = vmatpush.bf16.msra.mxu1 %v4061_v47  ;;  %v4027_v47 = vld [vmem:[#allocation2 + $0x18] sm:$0xff] }
 0x51f   : > { %3887 = vmatpush.bf16.msra.mxu3 %v3828_v45  ;;  %v3800_v9 = vmax.f32 %v3784_v61, 0.0  ;;  %v4032_v45 = vld [vmem:[#allocation2 + $0xa0] sm:$0xff] }
 0x520   : > { %4088 = vmatpush.bf16.msra.mxu0 %v4041_v10  ;;  %5187 = vmatmul.msk.bf16.vlgmr.msra.gmra.mxu2 %vm845_vm4, %v6937_v42  ;;  %v4043_v10 = vpack.c.bf16 %v4027_v47, %v4019_v31 }
 0x522   : > { %4107 = vmatpush.bf16.msra.mxu1 %v4042_v36  ;;  %5188 = vmatmul.msk.bf16.vlgmr.msra.gmra.mxu3 %vm845_vm4, %v6937_v42  ;;  %v3766_v52 = vpop.f32.mrf.mxu2  ;;  %v4079_v36 = vsel %vm490_vm1, %v4056_v32, 0 }
 0x523   : > { %v3767_v42 = vadd.f32 %v3766_v52, %v6914_v15 }
 0x524   : > { %4163 = vmatpush.bf16.msrb.mxu0 %v4070_v50  ;;  %v3785_v23 = vpop.f32.mrf.mxu3  ;;  %v4023_v50 = vld [vmem:[#allocation2 + $0x118] sm:$0xff] }
 0x525   : > { %v3786_v25 = vadd.f32 %v3785_v23, %v6914_v15  ;;  %v3807_v18 = vmax.f32 %v3767_v42, 0.0  ;;  %v4047_v26 = vpack.c.bf16 %v4031_v37, %v4023_v50 }
 0x526   : > { %4182 = vmatpush.bf16.msrb.mxu1 %v4073_v53  ;;  %v4048_v53 = vpack.c.bf16 %v4032_v45, %v4024_v12 }
 0x527   : > { %v3808_v29 = vmax.f32 %v3786_v25, 0.0  ;;  %v3831_v13 = vpack.c.bf16 %v3807_v18, %v3799_v20 }
 0x528   : > { %4164 = vmatpush.bf16.msrb.mxu0 %v4045_v51 }
 0x529   : > { %v3832_v59 = vpack.c.bf16 %v3808_v29, %v3800_v9 }
 0x52a   : > { %4183 = vmatpush.bf16.msrb.mxu1 %v4046_v11  ;;  %v3769_v49 = vpop.f32.mrf.mxu2 }
 0x52b   : > { %5193 = vmatmul.msk.bf16.vlgmr.msra.gmra.mxu0 %vm3162_vm8, %v7032_v28  ;;  %v3770_v35 = vadd.f32 %v3769_v49, %v6902_v6 }
 0x52c   : > { %v3788_v63 = vpop.f32.mrf.mxu3 }
 0x52d   : > { %5195 = vmatmul.msk.bf16.vlgmr.msra.gmra.mxu1 %vm3162_vm8, %v7032_v28  ;;  %v3789_v46 = vadd.f32 %v3788_v63, %v6902_v6  ;;  %v3815_v57 = vmax.f32 %v3770_v35, 0.0 }
 0x52f   : > { %v3816_v3 = vmax.f32 %v3789_v46, 0.0 }
 0x532   : > { %v3771_v21 = vpop.f32.mrf.mxu2 }
 0x533   : > { %v3772_v55 = vadd.f32 %v3771_v21, %v6916_v0 }
 0x534   : > { %v3790_v60 = vpop.f32.mrf.mxu3 }
 0x535   : > { %v3791_v43 = vadd.f32 %v3790_v60, %v6916_v0  ;;  %v3823_v41 = vmax.f32 %v3772_v55, 0.0  ;;  %v5317_v60 = vld [vmem:[#allocation3 + $0x8] ss:$0 sm:$0xff] }
 0x537   : > { %v3824_v17 = vmax.f32 %v3791_v43, 0.0  ;;  %v3839_v48 = vpack.c.bf16 %v3823_v41, %v3815_v57  ;;  %v5318_v57 = vld [vmem:[#allocation3 + $0x9] ss:$0 sm:$0xff] }
 0x539   : > { %v3840_v39 = vpack.c.bf16 %v3824_v17, %v3816_v3  ;;  %3925 = vmatpush.bf16.msrb.mxu2 %v3839_v48 }
 0x53b   : > { %3938 = vmatpush.bf16.msrb.mxu3 %v3840_v39  ;;  %5194 = vmatmul.msk.bf16.gmra.mxu0 %vm3162_vm8, %v7128_v27 }
 0x53d   : > { %5196 = vmatmul.msk.bf16.gmra.mxu1 %vm3162_vm8, %v7128_v27  ;;  %3926 = vmatpush.bf16.msrb.mxu2 %v3831_v13 }
 0x53f   : > { %3939 = vmatpush.bf16.msrb.mxu3 %v3832_v59 }
 0x540   : > { %5191 = vmatmul.msk.bf16.vlgmr.msrb.gmra.mxu2 %vm845_vm4, %v7139_v5 }
 0x541   : > { %4125 = vmatpush.bf16.msra.mxu2 %v4064_v19 }
 0x542   : > { %5192 = vmatmul.msk.bf16.vlgmr.msrb.gmra.mxu3 %vm845_vm4, %v7139_v5 }
 0x543   : > { %4144 = vmatpush.bf16.msra.mxu3 %v4067_v24 }
 0x545   : > { %4126 = vmatpush.bf16.msra.mxu2 %v4043_v10 }
 0x547   : > { %4145 = vmatpush.bf16.msra.mxu3 %v4044_v34 }
 0x549   : > { %4201 = vmatpush.bf16.msrb.mxu2 %v4076_v16 }
 0x54b   : > { %4220 = vmatpush.bf16.msrb.mxu3 %v4079_v36  ;;  %5201 = vmatmul.msk.bf16.vlgmr.msrb.gmra.mxu0 %vm3162_vm8, %v7032_v28 }
 0x54d   : > { %4202 = vmatpush.bf16.msrb.mxu2 %v4047_v26  ;;  %5203 = vmatmul.msk.bf16.vlgmr.msrb.gmra.mxu1 %vm3162_vm8, %v7032_v28 }
 0x54f   : > { %4221 = vmatpush.bf16.msrb.mxu3 %v4048_v53  ;;  %v5321_v53 = vld [vmem:[#allocation3 + $0xa] ss:$0 sm:$0xff] }
 0x550   : > { %5197 = vmatmul.msk.bf16.vlgmr.msra.gmra.mxu2 %vm3162_vm8, %v7032_v28 }
 0x552   : > { %5199 = vmatmul.msk.bf16.vlgmr.msra.gmra.mxu3 %vm3162_vm8, %v7032_v28 }
 0x55b   : > { %5202 = vmatmul.msk.bf16.gmra.mxu0 %vm3162_vm8, %v7128_v27 }
 0x55d   : > { %5204 = vmatmul.msk.bf16.gmra.mxu1 %vm3162_vm8, %v7128_v27 }
 0x560   : > { %5198 = vmatmul.msk.bf16.gmra.mxu2 %vm3162_vm8, %v7128_v27 }
 0x562   : > { %5200 = vmatmul.msk.bf16.gmra.mxu3 %vm3162_vm8, %v7128_v27 }
 0x570   : > { %5205 = vmatmul.msk.bf16.vlgmr.msrb.gmra.mxu2 %vm3162_vm8, %v7032_v28 }
 0x572   : > { %5207 = vmatmul.msk.bf16.vlgmr.msrb.gmra.mxu3 %vm3162_vm8, %v7032_v28 }
 0x578   : > { %v3850_v22 = vpop.f32.mrf.mxu0 }
 0x579   : > { %v3851_v2 = vadd.f32 %v3850_v22, %v7057_v30 }
 0x57a   : > { %v3863_v51 = vpop.f32.mrf.mxu1 }
 0x57b   : > { %v3864_v11 = vadd.f32 %v3863_v51, %v7057_v30  ;;  %v3945_v52 = vsub.f32 0.0, %v3851_v2 }
 0x57d   : > { %v3946_v23 = vsub.f32 0.0, %v3864_v11  ;;  %v3953_v49 = vmul.f32 1.442695, %v3945_v52  ;;  %v5322_v52 = vld [vmem:[#allocation3 + $0xb] ss:$0 sm:$0xff] }
 0x57f   : > { %v3955_v63 = vmul.f32 1.442695, %v3946_v23  ;;  %5525 = vpow2.f32 %v3953_v49  ;;  %v5319_v49 = vld [vmem:[#allocation3 + $0xc] ss:$0 sm:$0xff] }
 0x580   : > { %v3852_v35 = vpop.f32.mrf.mxu0  ;;  %5206 = vmatmul.msk.bf16.gmra.mxu2 %vm3162_vm8, %v7128_v27 }
 0x581   : > { %5527 = vpow2.f32 %v3955_v63 }
 0x582   : > { %v3865_v46 = vpop.f32.mrf.mxu1  ;;  %5208 = vmatmul.msk.bf16.gmra.mxu3 %vm3162_vm8, %v7128_v27 }
 0x585   : > { %v5526_v28 = vpop.eup %5525 }
 0x586   : > { %v3969_v42 = vadd.f32 1.0, %v5526_v28 }
 0x587   : > { %v5528_v21 = vpop.eup %5527 }
 0x588   : > { %v3970_v55 = vadd.f32 1.0, %v5528_v21  ;;  %5529 = vrcp.f32 %v3969_v42  ;;  %v5320_v21 = vld [vmem:[#allocation3 + $0xd] ss:$0 sm:$0xff] }
 0x58a   : > { %5531 = vrcp.f32 %v3970_v55 }
 0x58e   : > { %v5530_v25 = vpop.eup %5529 }
 0x58f   : > { %v3987_v14 = vmul.f32 %v5530_v25, %v5317_v60 }
 0x590   : > { %v5532_v43 = vpop.eup %5531 }
 0x591   : > { %v3988_v41 = vadd.f32 %v3987_v14, %v7083_v56  ;;  %v3991_v61 = vmul.f32 %v5532_v43, %v5318_v57 }
 0x593   : > { %v3992_v3 = vadd.f32 %v3991_v61, %v3988_v41 }
 0x598   : > { %v3902_v17 = vpop.f32.mrf.mxu0 }
 0x599   : > { %v3903_v18 = vadd.f32 %v3902_v17, %v7057_v30 }
 0x59a   : > { %v3915_v54 = vpop.f32.mrf.mxu1 }
 0x59b   : > { %v3916_v48 = vadd.f32 %v3915_v54, %v7057_v30  ;;  %v3949_v29 = vsub.f32 0.0, %v3903_v18 }
 0x59d   : > { %v3950_v20 = vsub.f32 0.0, %v3916_v48  ;;  %v3961_v9 = vmul.f32 1.442695, %v3949_v29 }
 0x59f   : > { %v3963_v7 = vmul.f32 1.442695, %v3950_v20  ;;  %5533 = vpow2.f32 %v3961_v9 }
 0x5a0   : > { %v3904_v62 = vpop.f32.mrf.mxu0 }
 0x5a1   : > { %5535 = vpow2.f32 %v3963_v7 }
 0x5a2   : > { %v3917_v39 = vpop.f32.mrf.mxu1 }
 0x5a3   : > { %v3876_v8 = vpop.f32.mrf.mxu2 }
 0x5a4   : > { %v3877_v33 = vadd.f32 %v3876_v8, %v7057_v30 }
 0x5a5   : > { %v3889_v13 = vpop.f32.mrf.mxu3  ;;  %v5534_v1 = vpop.eup %5533 }
 0x5a6   : > { %v3890_v56 = vadd.f32 %v3889_v13, %v7057_v30  ;;  %v3947_v59 = vsub.f32 0.0, %v3877_v33  ;;  %v3973_v36 = vadd.f32 1.0, %v5534_v1 }
 0x5a7   : > { %v5536_v32 = vpop.eup %5535 }
 0x5a8   : > { %v3948_v44 = vsub.f32 0.0, %v3890_v56  ;;  %v4090_v19 = vpop.f32.mrf.mxu0  ;;  %v3957_v31 = vmul.f32 1.442695, %v3947_v59  ;;  %v3974_v26 = vadd.f32 1.0, %v5536_v32 }
 0x5a9   : > { %v4091_v54 = vadd.f32 %v4090_v19, %v6923_v58 }
 0x5aa   : > { %v4109_v47 = vpop.f32.mrf.mxu1  ;;  %v3959_v24 = vmul.f32 1.442695, %v3948_v44  ;;  %5537 = vpow2.f32 %v3957_v31 }
 0x5ab   : > { %v3878_v4 = vpop.f32.mrf.mxu2  ;;  %v4110_v29 = vadd.f32 %v4109_v47, %v6923_v58  ;;  %v4233_v31 = vmax.f32 %v4091_v54, 0.0 }
 0x5ac   : > { %5539 = vpow2.f32 %v3959_v24 }
 0x5ad   : > { %v3891_v40 = vpop.f32.mrf.mxu3  ;;  %v4234_v19 = vmax.f32 %v4110_v29, 0.0 }
 0x5b0   : > { %v4092_v10 = vpop.f32.mrf.mxu0  ;;  %v5538_v34 = vpop.eup %5537 }
 0x5b1   : > { %v3971_v45 = vadd.f32 1.0, %v5538_v34  ;;  %v4093_v57 = vadd.f32 %v4092_v10, %v6914_v15 }
 0x5b2   : > { %v4111_v16 = vpop.f32.mrf.mxu1  ;;  %v5540_v37 = vpop.eup %5539 }
 0x5b3   : > { %v3972_v50 = vadd.f32 1.0, %v5540_v37  ;;  %5541 = vrcp.f32 %v3971_v45  ;;  %v4112_v17 = vadd.f32 %v4111_v16, %v6914_v15  ;;  %v4241_v9 = vmax.f32 %v4093_v57, 0.0 }
 0x5b5   : > { %5543 = vrcp.f32 %v3972_v50  ;;  %v4242_v56 = vmax.f32 %v4112_v17, 0.0  ;;  %v4265_v47 = vpack.c.bf16 %v4241_v9, %v4233_v31 }
 0x5b6   : > { %5545 = vrcp.f32 %v3973_v36 }
 0x5b7   : > { %5547 = vrcp.f32 %v3974_v26  ;;  %v4266_v10 = vpack.c.bf16 %v4242_v56, %v4234_v19 }
 0x5b8   : > { %v4095_v12 = vpop.f32.mrf.mxu0 }
 0x5b9   : > { %v5542_v2 = vpop.eup %5541  ;;  %v4096_v55 = vadd.f32 %v4095_v12, %v6902_v6 }
 0x5ba   : > { %v4114_v22 = vpop.f32.mrf.mxu1  ;;  %v3995_v11 = vmul.f32 %v5542_v2, %v5321_v53 }
 0x5bb   : > { %v5544_v51 = vpop.eup %5543  ;;  %v4115_v60 = vadd.f32 %v4114_v22, %v6902_v6  ;;  %v4249_v18 = vmax.f32 %v4096_v55, 0.0 }
 0x5bc   : > { %v5546_v23 = vpop.eup %5545  ;;  %v3996_v63 = vadd.f32 %v3995_v11, %v3992_v3  ;;  %v3999_v35 = vmul.f32 %v5544_v51, %v5322_v52  ;;  %v5323_v11 = vld [vmem:[#allocation3 + $0xe] ss:$0 sm:$0xff] }
 0x5bd   : > { %v5548_v46 = vpop.eup %5547  ;;  %v4003_v28 = vmul.f32 %v5546_v23, %v5319_v49  ;;  %v4250_v39 = vmax.f32 %v4115_v60, 0.0 }
 0x5be   : > { %v4000_v42 = vadd.f32 %v3999_v35, %v3996_v63  ;;  %v4007_v43 = vmul.f32 %v5548_v46, %v5320_v21  ;;  %v5324_v35 = vld [vmem:[#allocation3 + $0xf] ss:$0 sm:$0xff] }
 0x5c0   : > { %v4097_v25 = vpop.f32.mrf.mxu0  ;;  %v4004_v14 = vadd.f32 %v4003_v28, %v4000_v42 }
 0x5c1   : > { %v4098_v41 = vadd.f32 %v4097_v25, %v6916_v0 }
 0x5c2   : > { %v4116_v61 = vpop.f32.mrf.mxu1  ;;  %v4008_v62 = vadd.f32 %v4007_v43, %v4004_v14 }
 0x5c3   : > { %v4117_v3 = vadd.f32 %v4116_v61, %v6916_v0  ;;  %v4257_v48 = vmax.f32 %v4098_v41, 0.0  ;;  %v3928_v8 = vpop.f32.mrf.mxu2 }
 0x5c4   : > { %v3929_v13 = vadd.f32 %v3928_v8, %v7057_v30 }
 0x5c5   : > { %v4258_v20 = vmax.f32 %v4117_v3, 0.0  ;;  %v4273_v33 = vpack.c.bf16 %v4257_v48, %v4249_v18  ;;  %v3941_v7 = vpop.f32.mrf.mxu3 }
 0x5c6   : > { %v3942_v44 = vadd.f32 %v3941_v7, %v7057_v30  ;;  %v3951_v24 = vsub.f32 0.0, %v3929_v13  ;;  %v4474_v13 = vld [vmem:[#allocation2 + $0xe8] sm:$0x3f] }
 0x5c7   : > { %v4274_v59 = vpack.c.bf16 %v4258_v20, %v4250_v39  ;;  %4287 = vmatpush.bf16.msra.mxu0 %v4273_v33  ;;  %v4473_v20 = vld [vmem:[#allocation2 + $0xe0] sm:$0x3f] }
 0x5c8   : > { %v3952_v4 = vsub.f32 0.0, %v3942_v44  ;;  %v4166_v40 = vpop.f32.mrf.mxu0  ;;  %v3965_v1 = vmul.f32 1.442695, %v3951_v24  ;;  %v4489_v44 = vpack.c.bf16 %v4473_v20, %v4473_v20  ;;  %v4490_v24 = vpack.c.bf16 %v4474_v13, %v4474_v13  ;;  %v7231_v13 = vld [vmem:[%s7377_s7] sm:$0xff] }
 0x5c9   : > { %4300 = vmatpush.bf16.msra.mxu1 %v4274_v59  ;;  %v4167_v3 = vadd.f32 %v4166_v40, %v6923_v58 }
 0x5ca   : > { %v4185_v32 = vpop.f32.mrf.mxu1  ;;  %v3967_v34 = vmul.f32 1.442695, %v3952_v4  ;;  %5549 = vpow2.f32 %v3965_v1  ;;  %v4477_v4 = vld [vmem:[#allocation2 + $0x148] sm:$0x3f] }
 0x5cb   : > { %4288 = vmatpush.bf16.msra.mxu0 %v4265_v47  ;;  %v3930_v16 = vpop.f32.mrf.mxu2  ;;  %v4186_v48 = vadd.f32 %v4185_v32, %v6923_v58  ;;  %v4237_v59 = vmax.f32 %v4167_v3, 0.0  ;;  %v4478_v47 = vld [vmem:[#allocation2 + $0x98] sm:$0x3f]  ;;  %v4498_v32 = vsel %vm490_vm1, %v4489_v44, 0  ;;  %v4461_v3 = vld [vmem:[#allocation2 + $0x240] sm:$0xff] }
 0x5cc   : > { %5551 = vpow2.f32 %v3967_v34 }
 0x5cd   : > { %4301 = vmatpush.bf16.msra.mxu1 %v4266_v10  ;;  %v3943_v37 = vpop.f32.mrf.mxu3  ;;  %v4238_v31 = vmax.f32 %v4186_v48, 0.0  ;;  %v4465_v10 = vld [vmem:[#allocation2 + $0x40] sm:$0xff] }
 0x5ce   : > { %5209 = vmatmul.msk.bf16.vlgmr.msra.gmra.mxu0 %vm845_vm4, %v7139_v5  ;;  %v4501_v37 = vsel %vm490_vm1, %v4490_v24, 0 }
 0x5d0   : > { %5210 = vmatmul.msk.bf16.vlgmr.msra.gmra.mxu1 %vm845_vm4, %v7139_v5  ;;  %v4168_v36 = vpop.f32.mrf.mxu0  ;;  %v5550_v45 = vpop.eup %5549 }
 0x5d1   : > { %v3975_v12 = vadd.f32 1.0, %v5550_v45  ;;  %v4169_v14 = vadd.f32 %v4168_v36, %v6914_v15  ;;  %v4466_v36 = vld [vmem:[#allocation2 + $0x270] sm:$0xff]  ;;  %v4493_v45 = vpack.c.bf16 %v4477_v4, %v4477_v4 }
 0x5d2   : > { %v4187_v50 = vpop.f32.mrf.mxu1  ;;  %v5552_v26 = vpop.eup %5551 }
 0x5d3   : > { %v3976_v53 = vadd.f32 1.0, %v5552_v26  ;;  %5553 = vrcp.f32 %v3975_v12  ;;  %v7192_v22 = vpop.f32.mrf.mxu2  ;;  %v4188_v61 = vadd.f32 %v4187_v50, %v6914_v15  ;;  %v4245_v8 = vmax.f32 %v4169_v14, 0.0 }
 0x5d5   : > { %5555 = vrcp.f32 %v3976_v53  ;;  %v7194_v2 = vpop.f32.mrf.mxu3  ;;  %v4246_v7 = vmax.f32 %v4188_v61, 0.0  ;;  %v4269_v19 = vpack.c.bf16 %v4245_v8, %v4237_v59  ;;  %v4457_v53 = vld [vmem:[#allocation2 + $0x1a0] sm:$0xff] }
 0x5d7   : > { %v4270_v40 = vpack.c.bf16 %v4246_v7, %v4238_v31 }
 0x5d8   : > { %v4171_v51 = vpop.f32.mrf.mxu0 }
 0x5d9   : > { %v5554_v23 = vpop.eup %5553  ;;  %v4172_v60 = vadd.f32 %v4171_v51, %v6902_v6  ;;  %v4494_v51 = vpack.c.bf16 %v4478_v47, %v4478_v47 }
 0x5da   : > { %v4190_v52 = vpop.f32.mrf.mxu1  ;;  %v4011_v63 = vmul.f32 %v5554_v23, %v5323_v11  ;;  %v4481_v23 = vpack.c.bf16 %v4465_v10, %v4457_v53 }
 0x5db   : > { %v5556_v49 = vpop.eup %5555  ;;  %v4130_v46 = vpop.f32.mrf.mxu2  ;;  %v4191_v25 = vadd.f32 %v4190_v52, %v6902_v6  ;;  %v4253_v54 = vmax.f32 %v4172_v60, 0.0 }
 0x5dc   : > { %v4012_v28 = vadd.f32 %v4011_v63, %v4008_v62  ;;  %v4015_v21 = vmul.f32 %v5556_v49, %v5324_v35  ;;  %v4131_v50 = vadd.f32 %v4130_v46, %v6914_v15  ;;  %v4458_v49 = vld [vmem:[#allocation2 + $0x250] sm:$0xff]  ;;  %v4129_v63 = vadd.f32 %v7192_v22, %v6923_v58 }
 0x5dd   : > { %v4149_v42 = vpop.f32.mrf.mxu3  ;;  %v4254_v62 = vmax.f32 %v4191_v25, 0.0  ;;  %v4510_v25 = vsel %vm490_vm1, %v4493_v45, 0  ;;  %v4513_v22 = vsel %vm490_vm1, %v4494_v51, 0 }
 0x5de   : > { %v7196_v55 = vadd.f32 %v4015_v21, %v4012_v28  ;;  %v4150_v11 = vadd.f32 %v4149_v42, %v6914_v15  ;;  %v4482_v28 = vpack.c.bf16 %v4466_v36, %v4458_v49  ;;  %v4148_v21 = vadd.f32 %v7194_v2, %v6923_v58  ;;  %v4475_v36 = vld [vmem:[#allocation2 + $0x208] sm:$0x3f] }
 0x5df   : > { %v4243_v14 = vmax.f32 %v4131_v50, 0.0 }
 0x5e0   : > { %v4173_v43 = vpop.f32.mrf.mxu0  ;;  %v4244_v61 = vmax.f32 %v4150_v11, 0.0  ;;  %v4236_v48 = vmax.f32 %v4148_v21, 0.0  ;;  %v4491_v11 = vpack.c.bf16 %v4475_v36, %v4475_v36  ;;  %v4467_v21 = vld [vmem:[#allocation2 + $0x210] sm:$0xff] }
 0x5e1   : > { %v4174_v57 = vadd.f32 %v4173_v43, %v6916_v0  ;;  %v4469_v43 = vld [vmem:[#allocation2 + $0x280] sm:$0xff] }
 0x5e2   : > { %v4192_v41 = vpop.f32.mrf.mxu1  ;;  %v4485_v2 = vpack.c.bf16 %v4469_v43, %v4461_v3  ;;  %v4268_v8 = vpack.c.bf16 %v4244_v61, %v4236_v48  ;;  %v4459_v43 = vld [vmem:[#allocation2 + $0x2c8] sm:$0xff]  ;;  %v4464_v48 = vld [vmem:[#allocation2 + $0x2d8] sm:$0xff] }
 0x5e3   : > { %v4193_v17 = vadd.f32 %v4192_v41, %v6916_v0  ;;  %v4261_v18 = vmax.f32 %v4174_v57, 0.0  ;;  %v4133_v39 = vpop.f32.mrf.mxu2  ;;  %v4470_v41 = vld [vmem:[#allocation2 + $0x58] sm:$0xff] }
 0x5e4   : > { %v4134_v1 = vadd.f32 %v4133_v39, %v6902_v6 }
 0x5e5   : > { %v4262_v29 = vmax.f32 %v4193_v17, 0.0  ;;  %v4277_v9 = vpack.c.bf16 %v4261_v18, %v4253_v54  ;;  %v4152_v33 = vpop.f32.mrf.mxu3  ;;  %v4235_v54 = vmax.f32 %v4129_v63, 0.0  ;;  %v4462_v18 = vld [vmem:[#allocation2 + $0x2b0] sm:$0xff]  ;;  %v4479_v63 = vld [vmem:[#allocation2 + $0x248] sm:$0x3f] }
 0x5e6   : > { %v4153_v34 = vadd.f32 %v4152_v33, %v6902_v6  ;;  %v4251_v35 = vmax.f32 %v4134_v1, 0.0 }
 0x5e7   : > { %v4278_v56 = vpack.c.bf16 %v4262_v29, %v4254_v62  ;;  %4339 = vmatpush.bf16.msrb.mxu0 %v4277_v9  ;;  %v4486_v29 = vpack.c.bf16 %v4470_v41, %v4462_v18  ;;  %v4267_v39 = vpack.c.bf16 %v4243_v14, %v4235_v54  ;;  %v4472_v54 = vld [vmem:[#allocation2 + $0x2e8] sm:$0xff] }
 0x5e8   : > { %v4252_v42 = vmax.f32 %v4153_v34, 0.0 }
 0x5e9   : > { %4352 = vmatpush.bf16.msrb.mxu1 %v4278_v56 }
 0x5eb   : > { %4340 = vmatpush.bf16.msrb.mxu0 %v4269_v19  ;;  %v4135_v16 = vpop.f32.mrf.mxu2 }
 0x5ec   : > { %v4136_v26 = vadd.f32 %v4135_v16, %v6916_v0 }
 0x5ed   : > { %4353 = vmatpush.bf16.msrb.mxu1 %v4270_v40  ;;  %v4154_v12 = vpop.f32.mrf.mxu3 }
 0x5ee   : > { %v4155_v52 = vadd.f32 %v4154_v12, %v6916_v0  ;;  %5213 = vmatmul.msk.bf16.vlgmr.msrb.gmra.mxu0 %vm845_vm4, %v7139_v5  ;;  %v4259_v46 = vmax.f32 %v4136_v26, 0.0  ;;  %v4476_v26 = vld [vmem:[#allocation2 + $0x150] sm:$0x3f] }
 0x5ef   : > { %4527 = vmatpush.bf16.msra.mxu0 %v4498_v32 }
 0x5f0   : > { %5214 = vmatmul.msk.bf16.vlgmr.msrb.gmra.mxu1 %vm845_vm4, %v7139_v5  ;;  %v4260_v60 = vmax.f32 %v4155_v52, 0.0  ;;  %v4275_v57 = vpack.c.bf16 %v4259_v46, %v4251_v35  ;;  %v4480_v46 = vld [vmem:[#allocation2 + $0x158] sm:$0x3f] }
 0x5f1   : > { %4546 = vmatpush.bf16.msra.mxu1 %v4501_v37  ;;  %v4496_v14 = vpack.c.bf16 %v4480_v46, %v4480_v46 }
 0x5f2   : > { %v4276_v17 = vpack.c.bf16 %v4260_v60, %v4252_v42  ;;  %4313 = vmatpush.bf16.msra.mxu2 %v4275_v57  ;;  %v4468_v60 = vld [vmem:[#allocation2 + $0x230] sm:$0xff]  ;;  %v4483_v57 = vpack.c.bf16 %v4467_v21, %v4459_v43 }
 0x5f3   : > { %4528 = vmatpush.bf16.msra.mxu0 %v4481_v23  ;;  %v4204_v62 = vpop.f32.mrf.mxu2  ;;  %v4492_v23 = vpack.c.bf16 %v4476_v26, %v4476_v26  ;;  %v4519_v3 = vsel %vm490_vm1, %v4496_v14, 0 }
 0x5f4   : > { %4326 = vmatpush.bf16.msra.mxu3 %v4276_v17  ;;  %v4205_v1 = vadd.f32 %v4204_v62, %v6923_v58  ;;  %v4471_v17 = vld [vmem:[#allocation2 + $0x198] sm:$0xff]  ;;  %v4488_v62 = vpack.c.bf16 %v4472_v54, %v4464_v48 }
 0x5f5   : > { %4547 = vmatpush.bf16.msra.mxu1 %v4482_v28  ;;  %v4223_v20 = vpop.f32.mrf.mxu3  ;;  %v4504_v28 = vsel %vm490_vm1, %v4491_v11, 0  ;;  %v4507_v42 = vsel %vm490_vm1, %v4492_v23, 0 }
 0x5f6   : > { %4314 = vmatpush.bf16.msra.mxu2 %v4267_v39  ;;  %v4224_v34 = vadd.f32 %v4223_v20, %v6923_v58  ;;  %v4239_v51 = vmax.f32 %v4205_v1, 0.0 }
 0x5f7   : > { %4603 = vmatpush.bf16.msrb.mxu0 %v4510_v25  ;;  %v4495_v25 = vpack.c.bf16 %v4479_v63, %v4479_v63 }
 0x5f8   : > { %4327 = vmatpush.bf16.msra.mxu3 %v4268_v8  ;;  %v4240_v52 = vmax.f32 %v4224_v34, 0.0 }
 0x5f9   : > { %4622 = vmatpush.bf16.msrb.mxu1 %v4513_v22  ;;  %5211 = vmatmul.msk.bf16.vlgmr.msra.gmra.mxu2 %vm845_vm4, %v7139_v5  ;;  %v4460_v22 = vld [vmem:[#allocation2 + $0x190] sm:$0xff]  ;;  %v4516_v61 = vsel %vm490_vm1, %v4495_v25, 0 }
 0x5fa   : > { %v4484_v41 = vpack.c.bf16 %v4468_v60, %v4460_v22 }
 0x5fb   : > { %4604 = vmatpush.bf16.msrb.mxu0 %v4485_v2  ;;  %5212 = vmatmul.msk.bf16.vlgmr.msra.gmra.mxu3 %vm845_vm4, %v7139_v5  ;;  %v4206_v9 = vpop.f32.mrf.mxu2  ;;  %v4463_v2 = vld [vmem:[#allocation2 + $0x260] sm:$0xff] }
 0x5fc   : > { %v4207_v24 = vadd.f32 %v4206_v9, %v6914_v15  ;;  %v4487_v18 = vpack.c.bf16 %v4471_v17, %v4463_v2 }
 0x5fd   : > { %4623 = vmatpush.bf16.msrb.mxu1 %v4486_v29  ;;  %v4225_v33 = vpop.f32.mrf.mxu3 }
 0x5fe   : > { %5217 = vmatmul.msk.bf16.vlgmr.msra.gmra.mxu0 %vm3162_vm8, %v7231_v13  ;;  %v4226_v40 = vadd.f32 %v4225_v33, %v6914_v15  ;;  %v4247_v45 = vmax.f32 %v4207_v24, 0.0 }
 0x600   : > { %5219 = vmatmul.msk.bf16.vlgmr.msra.gmra.mxu1 %vm3162_vm8, %v7231_v13  ;;  %v4248_v12 = vmax.f32 %v4226_v40, 0.0  ;;  %v4271_v49 = vpack.c.bf16 %v4247_v45, %v4239_v51 }
 0x602   : > { %v4272_v35 = vpack.c.bf16 %v4248_v12, %v4240_v52 }
 0x603   : > { %v4209_v7 = vpop.f32.mrf.mxu2 }
 0x604   : > { %v4210_v59 = vadd.f32 %v4209_v7, %v6902_v6 }
 0x605   : > { %v4228_v56 = vpop.f32.mrf.mxu3 }
 0x606   : > { %v4229_v44 = vadd.f32 %v4228_v56, %v6902_v6  ;;  %v4255_v32 = vmax.f32 %v4210_v59, 0.0 }
 0x608   : > { %v4256_v16 = vmax.f32 %v4229_v44, 0.0 }
 0x60b   : > { %v4211_v31 = vpop.f32.mrf.mxu2 }
 0x60c   : > { %v4212_v19 = vadd.f32 %v4211_v31, %v6916_v0 }
 0x60d   : > { %v4230_v4 = vpop.f32.mrf.mxu3 }
 0x60e   : > { %v4231_v47 = vadd.f32 %v4230_v4, %v6916_v0  ;;  %5218 = vmatmul.msk.bf16.gmra.mxu0 %vm3162_vm8, %v7128_v27  ;;  %v4263_v10 = vmax.f32 %v4212_v19, 0.0 }
 0x610   : > { %5220 = vmatmul.msk.bf16.gmra.mxu1 %vm3162_vm8, %v7128_v27  ;;  %v4264_v37 = vmax.f32 %v4231_v47, 0.0  ;;  %v4279_v50 = vpack.c.bf16 %v4263_v10, %v4255_v32  ;;  %v5326_v32 = vld [vmem:[#allocation3 + $0x11] ss:$0 sm:$0xff] }
 0x612   : > { %v4280_v53 = vpack.c.bf16 %v4264_v37, %v4256_v16  ;;  %4365 = vmatpush.bf16.msrb.mxu2 %v4279_v50 }
 0x614   : > { %4378 = vmatpush.bf16.msrb.mxu3 %v4280_v53 }
 0x616   : > { %4366 = vmatpush.bf16.msrb.mxu2 %v4271_v49 }
 0x618   : > { %4379 = vmatpush.bf16.msrb.mxu3 %v4272_v35 }
 0x619   : > { %5215 = vmatmul.msk.bf16.vlgmr.msrb.gmra.mxu2 %vm845_vm4, %v7139_v5 }
 0x61a   : > { %4565 = vmatpush.bf16.msra.mxu2 %v4504_v28 }
 0x61b   : > { %5216 = vmatmul.msk.bf16.vlgmr.msrb.gmra.mxu3 %vm845_vm4, %v7139_v5 }
 0x61c   : > { %4584 = vmatpush.bf16.msra.mxu3 %v4507_v42 }
 0x61e   : > { %4566 = vmatpush.bf16.msra.mxu2 %v4483_v57  ;;  %5225 = vmatmul.msk.bf16.vlgmr.msrb.gmra.mxu0 %vm3162_vm8, %v7231_v13 }
 0x620   : > { %4585 = vmatpush.bf16.msra.mxu3 %v4484_v41  ;;  %5227 = vmatmul.msk.bf16.vlgmr.msrb.gmra.mxu1 %vm3162_vm8, %v7231_v13 }
 0x622   : > { %4641 = vmatpush.bf16.msrb.mxu2 %v4516_v61 }
 0x624   : > { %4660 = vmatpush.bf16.msrb.mxu3 %v4519_v3 }
 0x626   : > { %4642 = vmatpush.bf16.msrb.mxu2 %v4487_v18 }
 0x628   : > { %4661 = vmatpush.bf16.msrb.mxu3 %v4488_v62  ;;  %v5329_v62 = vld [vmem:[#allocation3 + $0x12] ss:$0 sm:$0xff] }
 0x629   : > { %5221 = vmatmul.msk.bf16.vlgmr.msra.gmra.mxu2 %vm3162_vm8, %v7231_v13 }
 0x62b   : > { %5223 = vmatmul.msk.bf16.vlgmr.msra.gmra.mxu3 %vm3162_vm8, %v7231_v13 }
 0x62e   : > { %5226 = vmatmul.msk.bf16.gmra.mxu0 %vm3162_vm8, %v7128_v27 }
 0x630   : > { %5228 = vmatmul.msk.bf16.gmra.mxu1 %vm3162_vm8, %v7128_v27 }
 0x639   : > { %5222 = vmatmul.msk.bf16.gmra.mxu2 %vm3162_vm8, %v7128_v27 }
 0x63b   : > { %5224 = vmatmul.msk.bf16.gmra.mxu3 %vm3162_vm8, %v7128_v27 }
 0x649   : > { %5229 = vmatmul.msk.bf16.vlgmr.msrb.gmra.mxu2 %vm3162_vm8, %v7231_v13 }
 0x64b   : > { %5231 = vmatmul.msk.bf16.vlgmr.msrb.gmra.mxu3 %vm3162_vm8, %v7231_v13  ;;  %v4290_v29 = vpop.f32.mrf.mxu0  ;;  %v5325_v13 = vld [vmem:[#allocation3 + $0x10] ss:$0 sm:$0xff] }
 0x64c   : > { %v4291_v39 = vadd.f32 %v4290_v29, %v7057_v30 }
 0x64d   : > { %v4303_v20 = vpop.f32.mrf.mxu1 }
 0x64e   : > { %v4304_v8 = vadd.f32 %v4303_v20, %v7057_v30  ;;  %v4385_v9 = vsub.f32 0.0, %v4291_v39 }
 0x650   : > { %v4386_v33 = vsub.f32 0.0, %v4304_v8  ;;  %v4393_v7 = vmul.f32 1.442695, %v4385_v9 }
 0x652   : > { %v4395_v56 = vmul.f32 1.442695, %v4386_v33  ;;  %5557 = vpow2.f32 %v4393_v7  ;;  %v5330_v7 = vld [vmem:[#allocation3 + $0x13] ss:$0 sm:$0xff] }
 0x653   : > { %v4292_v59 = vpop.f32.mrf.mxu0 }
 0x654   : > { %5559 = vpow2.f32 %v4395_v56 }
 0x655   : > { %v4305_v44 = vpop.f32.mrf.mxu1 }
 0x658   : > { %v5558_v31 = vpop.eup %5557 }
 0x659   : > { %v4409_v19 = vadd.f32 1.0, %v5558_v31  ;;  %5230 = vmatmul.msk.bf16.gmra.mxu2 %vm3162_vm8, %v7128_v27 }
 0x65a   : > { %v5560_v24 = vpop.eup %5559 }
 0x65b   : > { %v4410_v4 = vadd.f32 1.0, %v5560_v24  ;;  %5561 = vrcp.f32 %v4409_v19  ;;  %5232 = vmatmul.msk.bf16.gmra.mxu3 %vm3162_vm8, %v7128_v27 }
 0x65d   : > { %5563 = vrcp.f32 %v4410_v4 }
 0x661   : > { %v5562_v40 = vpop.eup %5561 }
 0x662   : > { %v4427_v1 = vmul.f32 %v5562_v40, %v5325_v13  ;;  %v5327_v13 = vld [vmem:[#allocation3 + $0x14] ss:$0 sm:$0xff] }
 0x663   : > { %v5564_v47 = vpop.eup %5563 }
 0x664   : > { %v4428_v10 = vadd.f32 %v4427_v1, %v7196_v55  ;;  %v4431_v34 = vmul.f32 %v5564_v47, %v5326_v32 }
 0x666   : > { %v4432_v16 = vadd.f32 %v4431_v34, %v4428_v10 }
 0x66b   : > { %v4342_v37 = vpop.f32.mrf.mxu0 }
 0x66c   : > { %v4343_v26 = vadd.f32 %v4342_v37, %v7057_v30 }
 0x66d   : > { %v4355_v36 = vpop.f32.mrf.mxu1 }
 0x66e   : > { %v4356_v12 = vadd.f32 %v4355_v36, %v7057_v30  ;;  %v4389_v53 = vsub.f32 0.0, %v4343_v26 }
 0x670   : > { %v4390_v27 = vsub.f32 0.0, %v4356_v12  ;;  %v4401_v23 = vmul.f32 1.442695, %v4389_v53 }
 0x672   : > { %v4403_v55 = vmul.f32 1.442695, %v4390_v27  ;;  %5565 = vpow2.f32 %v4401_v23 }
 0x673   : > { %v4344_v45 = vpop.f32.mrf.mxu0 }
 0x674   : > { %5567 = vpow2.f32 %v4403_v55 }
 0x675   : > { %v4357_v50 = vpop.f32.mrf.mxu1 }
 0x676   : > { %v5328_v50 = vld [vmem:[#allocation3 + $0x15] ss:$0 sm:$0xff] }
 0x678   : > { %v5566_v57 = vpop.eup %5565 }
 0x679   : > { %v4413_v17 = vadd.f32 1.0, %v5566_v57 }
 0x67a   : > { %v5568_v22 = vpop.eup %5567 }
 0x67b   : > { %v4530_v51 = vpop.f32.mrf.mxu0  ;;  %v4414_v48 = vadd.f32 1.0, %v5568_v22 }
 0x67c   : > { %v4316_v52 = vpop.f32.mrf.mxu2  ;;  %v4531_v24 = vadd.f32 %v4530_v51, %v6923_v58 }
 0x67d   : > { %v4549_v11 = vpop.f32.mrf.mxu1  ;;  %v4317_v49 = vadd.f32 %v4316_v52, %v7057_v30 }
 0x67e   : > { %v4329_v63 = vpop.f32.mrf.mxu3  ;;  %v4550_v34 = vadd.f32 %v4549_v11, %v6923_v58 }
 0x67f   : > { %v4330_v35 = vadd.f32 %v4329_v63, %v7057_v30  ;;  %v4387_v46 = vsub.f32 0.0, %v4317_v49  ;;  %v4673_v49 = vmax.f32 %v4531_v24, 0.0 }
 0x681   : > { %v4388_v28 = vsub.f32 0.0, %v4330_v35  ;;  %v4397_v21 = vmul.f32 1.442695, %v4387_v46 }
 0x683   : > { %v4399_v42 = vmul.f32 1.442695, %v4388_v28  ;;  %v4532_v60 = vpop.f32.mrf.mxu0  ;;  %5569 = vpow2.f32 %v4397_v21 }
 0x684   : > { %v4318_v43 = vpop.f32.mrf.mxu2  ;;  %v4533_v56 = vadd.f32 %v4532_v60, %v6914_v15 }
 0x685   : > { %v4551_v25 = vpop.f32.mrf.mxu1  ;;  %5571 = vpow2.f32 %v4399_v42 }
 0x686   : > { %v4331_v14 = vpop.f32.mrf.mxu3  ;;  %v4552_v19 = vadd.f32 %v4551_v25, %v6914_v15  ;;  %v4681_v12 = vmax.f32 %v4533_v56, 0.0 }
 0x688   : > { %v4682_v27 = vmax.f32 %v4552_v19, 0.0  ;;  %v4705_v55 = vpack.c.bf16 %v4681_v12, %v4673_v49 }
 0x689   : > { %v5570_v41 = vpop.eup %5569 }
 0x68a   : > { %v4411_v3 = vadd.f32 1.0, %v5570_v41 }
 0x68b   : > { %v5572_v61 = vpop.eup %5571  ;;  %v4535_v54 = vpop.f32.mrf.mxu0 }
 0x68c   : > { %v4412_v2 = vadd.f32 1.0, %v5572_v61  ;;  %5573 = vrcp.f32 %v4411_v3  ;;  %v4536_v29 = vadd.f32 %v4535_v54, %v6902_v6 }
 0x68d   : > { %v4554_v18 = vpop.f32.mrf.mxu1 }
 0x68e   : > { %5575 = vrcp.f32 %v4412_v2  ;;  %v4555_v20 = vadd.f32 %v4554_v18, %v6902_v6  ;;  %v4689_v1 = vmax.f32 %v4536_v29, 0.0 }
 0x68f   : > { %5577 = vrcp.f32 %v4413_v17 }
 0x690   : > { %5579 = vrcp.f32 %v4414_v48  ;;  %v4690_v37 = vmax.f32 %v4555_v20, 0.0  ;;  %v5331_v20 = vld [vmem:[#allocation3 + $0x16] ss:$0 sm:$0xff] }
 0x692   : > { %v5574_v39 = vpop.eup %5573 }
 0x693   : > { %v4537_v8 = vpop.f32.mrf.mxu0  ;;  %v4435_v33 = vmul.f32 %v5574_v39, %v5329_v62 }
 0x694   : > { %v5576_v9 = vpop.eup %5575  ;;  %v4538_v59 = vadd.f32 %v4537_v8, %v6916_v0 }
 0x695   : > { %v4556_v44 = vpop.f32.mrf.mxu1  ;;  %v5578_v31 = vpop.eup %5577  ;;  %v4436_v40 = vadd.f32 %v4435_v33, %v4432_v16  ;;  %v4439_v47 = vmul.f32 %v5576_v9, %v5330_v7  ;;  %v4674_v16 = vmax.f32 %v4550_v34, 0.0 }
 0x696   : > { %v4557_v4 = vadd.f32 %v4556_v44, %v6916_v0  ;;  %v4697_v32 = vmax.f32 %v4538_v59, 0.0  ;;  %v5580_v10 = vpop.eup %5579  ;;  %v4443_v45 = vmul.f32 %v5578_v31, %v5327_v13  ;;  %v5332_v59 = vld [vmem:[#allocation3 + $0x17] ss:$0 sm:$0xff] }
 0x697   : > { %v4440_v26 = vadd.f32 %v4439_v47, %v4436_v40  ;;  %v4447_v52 = vmul.f32 %v5580_v10, %v5328_v50  ;;  %v4706_v11 = vpack.c.bf16 %v4682_v27, %v4674_v16 }
 0x698   : > { %v4698_v36 = vmax.f32 %v4557_v4, 0.0  ;;  %v4713_v53 = vpack.c.bf16 %v4697_v32, %v4689_v1 }
 0x699   : > { %v4444_v23 = vadd.f32 %v4443_v45, %v4440_v26 }
 0x69a   : > { %v4714_v51 = vpack.c.bf16 %v4698_v36, %v4690_v37  ;;  %4727 = vmatpush.bf16.msra.mxu0 %v4713_v53 }
 0x69b   : > { %v4606_v63 = vpop.f32.mrf.mxu0  ;;  %v4448_v35 = vadd.f32 %v4447_v52, %v4444_v23 }
 0x69c   : > { %4740 = vmatpush.bf16.msra.mxu1 %v4714_v51  ;;  %v4368_v28 = vpop.f32.mrf.mxu2  ;;  %v4607_v19 = vadd.f32 %v4606_v63, %v6923_v58 }
 0x69d   : > { %v4625_v46 = vpop.f32.mrf.mxu1  ;;  %v4369_v21 = vadd.f32 %v4368_v28, %v7057_v30 }
 0x69e   : > { %v4381_v42 = vpop.f32.mrf.mxu3  ;;  %4728 = vmatpush.bf16.msra.mxu0 %v4705_v55  ;;  %v4626_v37 = vadd.f32 %v4625_v46, %v6923_v58  ;;  %v4677_v51 = vmax.f32 %v4607_v19, 0.0  ;;  %v7315_v55 = vld [vmem:[%s7379_s9] sm:$0x1] }
 0x69f   : > { %v4382_v60 = vadd.f32 %v4381_v42, %v7057_v30  ;;  %v4391_v25 = vsub.f32 0.0, %v4369_v21 }
 0x6a0   : > { %4741 = vmatpush.bf16.msra.mxu1 %v4706_v11  ;;  %v4678_v52 = vmax.f32 %v4626_v37, 0.0 }
 0x6a1   : > { %v4392_v43 = vsub.f32 0.0, %v4382_v60  ;;  %5233 = vmatmul.msk.bf16.vlgmr.msra.gmra.mxu0 %vm845_vm4, %v7139_v5  ;;  %v4405_v14 = vmul.f32 1.442695, %v4391_v25 }
 0x6a3   : > { %5234 = vmatmul.msk.bf16.vlgmr.msra.gmra.mxu1 %vm845_vm4, %v7139_v5  ;;  %v4407_v57 = vmul.f32 1.442695, %v4392_v43  ;;  %v4608_v22 = vpop.f32.mrf.mxu0  ;;  %5581 = vpow2.f32 %v4405_v14 }
 0x6a4   : > { %v4370_v61 = vpop.f32.mrf.mxu2  ;;  %v4609_v44 = vadd.f32 %v4608_v22, %v6914_v15 }
 0x6a5   : > { %v4627_v41 = vpop.f32.mrf.mxu1  ;;  %5583 = vpow2.f32 %v4407_v57 }
 0x6a6   : > { %v4383_v17 = vpop.f32.mrf.mxu3  ;;  %v4628_v4 = vadd.f32 %v4627_v41, %v6914_v15  ;;  %v4685_v26 = vmax.f32 %v4609_v44, 0.0 }
 0x6a8   : > { %v4686_v53 = vmax.f32 %v4628_v4, 0.0  ;;  %v4709_v23 = vpack.c.bf16 %v4685_v26, %v4677_v51 }
 0x6a9   : > { %v5582_v3 = vpop.eup %5581 }
 0x6aa   : > { %v4415_v2 = vadd.f32 1.0, %v5582_v3  ;;  %v4710_v49 = vpack.c.bf16 %v4686_v53, %v4678_v52 }
 0x6ab   : > { %v5584_v54 = vpop.eup %5583  ;;  %v4611_v18 = vpop.f32.mrf.mxu0 }
 0x6ac   : > { %v4416_v48 = vadd.f32 1.0, %v5584_v54  ;;  %5585 = vrcp.f32 %v4415_v2  ;;  %v4568_v29 = vpop.f32.mrf.mxu2  ;;  %v4612_v5 = vadd.f32 %v4611_v18, %v6902_v6 }
 0x6ad   : > { %v4630_v62 = vpop.f32.mrf.mxu1  ;;  %v4569_v43 = vadd.f32 %v4568_v29, %v6923_v58 }
 0x6ae   : > { %5587 = vrcp.f32 %v4416_v48  ;;  %v4587_v39 = vpop.f32.mrf.mxu3  ;;  %v4631_v9 = vadd.f32 %v4630_v62, %v6902_v6  ;;  %v4693_v32 = vmax.f32 %v4612_v5, 0.0 }
 0x6af   : > { %v4588_v22 = vadd.f32 %v4587_v39, %v6923_v58  ;;  %v4675_v18 = vmax.f32 %v4569_v43, 0.0 }
 0x6b0   : > { %v4694_v36 = vmax.f32 %v4631_v9, 0.0 }
 0x6b1   : > { %v4676_v48 = vmax.f32 %v4588_v22, 0.0 }
 0x6b2   : > { %v5586_v8 = vpop.eup %5585 }
 0x6b3   : > { %v4613_v33 = vpop.f32.mrf.mxu0  ;;  %v4451_v56 = vmul.f32 %v5586_v8, %v5331_v20 }
 0x6b4   : > { %v5588_v7 = vpop.eup %5587  ;;  %v4614_v31 = vadd.f32 %v4613_v33, %v6916_v0  ;;  %v4570_v13 = vpop.f32.mrf.mxu2 }
 0x6b5   : > { %v4632_v24 = vpop.f32.mrf.mxu1  ;;  %v4452_v47 = vadd.f32 %v4451_v56, %v4448_v35  ;;  %v4455_v1 = vmul.f32 %v5588_v7, %v5332_v59  ;;  %v4571_v28 = vadd.f32 %v4570_v13, %v6914_v15 }
 0x6b6   : > { %v4633_v40 = vadd.f32 %v4632_v24, %v6916_v0  ;;  %v4589_v10 = vpop.f32.mrf.mxu3  ;;  %v4701_v34 = vmax.f32 %v4614_v31, 0.0 }
 0x6b7   : > { %v7310_v50 = vadd.f32 %v4455_v1, %v4452_v47  ;;  %v4590_v60 = vadd.f32 %v4589_v10, %v6914_v15  ;;  %v4683_v17 = vmax.f32 %v4571_v28, 0.0 }
 0x6b8   : > { %v4702_v45 = vmax.f32 %v4633_v40, 0.0  ;;  %v4717_v12 = vpack.c.bf16 %v4701_v34, %v4693_v32 }
 0x6b9   : > { %v4684_v54 = vmax.f32 %v4590_v60, 0.0  ;;  %v4707_v20 = vpack.c.bf16 %v4683_v17, %v4675_v18 }
 0x6ba   : > { %v4718_v27 = vpack.c.bf16 %v4702_v45, %v4694_v36  ;;  %4779 = vmatpush.bf16.msrb.mxu0 %v4717_v12 }
 0x6bb   : > { %v4708_v8 = vpack.c.bf16 %v4684_v54, %v4676_v48 }
 0x6bc   : > { %4792 = vmatpush.bf16.msrb.mxu1 %v4718_v27  ;;  %v4573_v16 = vpop.f32.mrf.mxu2 }
 0x6bd   : > { %v4574_v35 = vadd.f32 %v4573_v16, %v6902_v6 }
 0x6be   : > { %v4592_v63 = vpop.f32.mrf.mxu3  ;;  %4780 = vmatpush.bf16.msrb.mxu0 %v4709_v23 }
 0x6bf   : > { %v4593_v46 = vadd.f32 %v4592_v63, %v6902_v6  ;;  %v4691_v14 = vmax.f32 %v4574_v35, 0.0 }
 0x6c0   : > { %4793 = vmatpush.bf16.msrb.mxu1 %v4710_v49 }
 0x6c1   : > { %5237 = vmatmul.msk.bf16.vlgmr.msrb.gmra.mxu0 %vm845_vm4, %v7315_v55  ;;  %v4692_v41 = vmax.f32 %v4593_v46, 0.0 }
 0x6c3   : > { %5238 = vmatmul.msk.bf16.vlgmr.msrb.gmra.mxu1 %vm845_vm4, %v7315_v55 }
 0x6c4   : > { %v4575_v11 = vpop.f32.mrf.mxu2 }
 0x6c5   : > { %v4576_v21 = vadd.f32 %v4575_v11, %v6916_v0 }
 0x6c6   : > { %v4594_v42 = vpop.f32.mrf.mxu3 }
 0x6c7   : > { %v4595_v25 = vadd.f32 %v4594_v42, %v6916_v0  ;;  %v4699_v57 = vmax.f32 %v4576_v21, 0.0 }
 0x6c9   : > { %v4700_v61 = vmax.f32 %v4595_v25, 0.0  ;;  %v4715_v3 = vpack.c.bf16 %v4699_v57, %v4691_v14  ;;  %v5334_v25 = vld [vmem:[#allocation3 + $0x19] ss:$0 sm:$0xff] }
 0x6cb   : > { %v4716_v2 = vpack.c.bf16 %v4700_v61, %v4692_v41  ;;  %4753 = vmatpush.bf16.msra.mxu2 %v4715_v3 }
 0x6cc   : > { %v4644_v62 = vpop.f32.mrf.mxu2 }
 0x6cd   : > { %4766 = vmatpush.bf16.msra.mxu3 %v4716_v2  ;;  %v4645_v13 = vadd.f32 %v4644_v62, %v6923_v58 }
 0x6ce   : > { %v4663_v5 = vpop.f32.mrf.mxu3 }
 0x6cf   : > { %4754 = vmatpush.bf16.msra.mxu2 %v4707_v20  ;;  %v4664_v1 = vadd.f32 %v4663_v5, %v6923_v58  ;;  %v4679_v45 = vmax.f32 %v4645_v13, 0.0 }
 0x6d1   : > { %4767 = vmatpush.bf16.msra.mxu3 %v4708_v8  ;;  %v4680_v26 = vmax.f32 %v4664_v1, 0.0 }
 0x6d2   : > { %5235 = vmatmul.msk.bf16.vlgmr.msra.gmra.mxu2 %vm845_vm4, %v7315_v55 }
 0x6d4   : > { %5236 = vmatmul.msk.bf16.vlgmr.msra.gmra.mxu3 %vm845_vm4, %v7315_v55  ;;  %v4646_v29 = vpop.f32.mrf.mxu2 }
 0x6d5   : > { %v4647_v44 = vadd.f32 %v4646_v29, %v6914_v15 }
 0x6d6   : > { %v4665_v39 = vpop.f32.mrf.mxu3 }
 0x6d7   : > { %v4666_v19 = vadd.f32 %v4665_v39, %v6914_v15  ;;  %v4687_v34 = vmax.f32 %v4647_v44, 0.0 }
 0x6d9   : > { %v4688_v37 = vmax.f32 %v4666_v19, 0.0  ;;  %v4711_v12 = vpack.c.bf16 %v4687_v34, %v4679_v45 }
 0x6db   : > { %v4712_v15 = vpack.c.bf16 %v4688_v37, %v4680_v26  ;;  %v5337_v37 = vld [vmem:[#allocation3 + $0x1a] ss:$0 sm:$0xff] }
 0x6dc   : > { %v4649_v9 = vpop.f32.mrf.mxu2 }
 0x6dd   : > { %v4650_v7 = vadd.f32 %v4649_v9, %v6902_v6 }
 0x6de   : > { %v4668_v33 = vpop.f32.mrf.mxu3 }
 0x6df   : > { %v4669_v56 = vadd.f32 %v4668_v33, %v6902_v6  ;;  %v4695_v40 = vmax.f32 %v4650_v7, 0.0 }
 0x6e1   : > { %v4696_v32 = vmax.f32 %v4669_v56, 0.0 }
 0x6e4   : > { %v4651_v59 = vpop.f32.mrf.mxu2 }
 0x6e5   : > { %v4652_v31 = vadd.f32 %v4651_v59, %v6916_v0 }
 0x6e6   : > { %v4670_v24 = vpop.f32.mrf.mxu3 }
 0x6e7   : > { %v4671_v4 = vadd.f32 %v4670_v24, %v6916_v0  ;;  %v4703_v47 = vmax.f32 %v4652_v31, 0.0 }
 0x6e9   : > { %v4704_v10 = vmax.f32 %v4671_v4, 0.0  ;;  %v4719_v6 = vpack.c.bf16 %v4703_v47, %v4695_v40 }
 0x6eb   : > { %v4720_v36 = vpack.c.bf16 %v4704_v10, %v4696_v32  ;;  %4805 = vmatpush.bf16.msrb.mxu2 %v4719_v6 }
 0x6ed   : > { %4818 = vmatpush.bf16.msrb.mxu3 %v4720_v36 }
 0x6ef   : > { %4806 = vmatpush.bf16.msrb.mxu2 %v4711_v12 }
 0x6f1   : > { %4819 = vmatpush.bf16.msrb.mxu3 %v4712_v15 }
 0x6f2   : > { %5239 = vmatmul.msk.bf16.vlgmr.msrb.gmra.mxu2 %vm845_vm4, %v7315_v55 }
 0x6f4   : > { %5240 = vmatmul.msk.bf16.vlgmr.msrb.gmra.mxu3 %vm845_vm4, %v7315_v55  ;;  %v5333_v55 = vld [vmem:[#allocation3 + $0x18] ss:$0 sm:$0xff] }
 0x71e   : > { %v4730_v0 = vpop.f32.mrf.mxu0 }
 0x71f   : > { %v4731_v58 = vadd.f32 %v4730_v0, %v7057_v30 }
 0x720   : > { %v4743_v53 = vpop.f32.mrf.mxu1 }
 0x721   : > { %v4744_v27 = vadd.f32 %v4743_v53, %v7057_v30  ;;  %v4825_v51 = vsub.f32 0.0, %v4731_v58 }
 0x723   : > { %v4826_v52 = vsub.f32 0.0, %v4744_v27  ;;  %v4833_v23 = vmul.f32 1.442695, %v4825_v51  ;;  %v5338_v27 = vld [vmem:[#allocation3 + $0x1b] ss:$0 sm:$0xff] }
 0x725   : > { %v4835_v49 = vmul.f32 1.442695, %v4826_v52  ;;  %5589 = vpow2.f32 %v4833_v23 }
 0x726   : > { %v4732_v16 = vpop.f32.mrf.mxu0 }
 0x727   : > { %5591 = vpow2.f32 %v4835_v49  ;;  %v5335_v16 = vld [vmem:[#allocation3 + $0x1c] ss:$0 sm:$0xff] }
 0x728   : > { %v4745_v63 = vpop.f32.mrf.mxu1 }
 0x72b   : > { %v5590_v35 = vpop.eup %5589 }
 0x72c   : > { %v4849_v11 = vadd.f32 1.0, %v5590_v35 }
 0x72d   : > { %v5592_v46 = vpop.eup %5591 }
 0x72e   : > { %v4850_v28 = vadd.f32 1.0, %v5592_v46  ;;  %5593 = vrcp.f32 %v4849_v11 }
 0x730   : > { %5595 = vrcp.f32 %v4850_v28  ;;  %v5336_v28 = vld [vmem:[#allocation3 + $0x1d] ss:$0 sm:$0xff] }
 0x734   : > { %v5594_v21 = vpop.eup %5593 }
 0x735   : > { %v4867_v60 = vmul.f32 %v5594_v21, %v5333_v55 }
 0x736   : > { %v5596_v42 = vpop.eup %5595 }
 0x737   : > { %v4868_v43 = vadd.f32 %v4867_v60, %v7310_v50  ;;  %v4871_v14 = vmul.f32 %v5596_v42, %v5334_v25  ;;  %v5339_v42 = vld [vmem:[#allocation3 + $0x1e] ss:$0 sm:$0xff] }
 0x739   : > { %v4872_v57 = vadd.f32 %v4871_v14, %v4868_v43 }
 0x73e   : > { %v4782_v22 = vpop.f32.mrf.mxu0 }
 0x73f   : > { %v4783_v5 = vadd.f32 %v4782_v22, %v7057_v30 }
 0x740   : > { %v4795_v41 = vpop.f32.mrf.mxu1 }
 0x741   : > { %v4829_v50 = vsub.f32 0.0, %v4783_v5  ;;  %v4796_v39 = vadd.f32 %v4795_v41, %v7057_v30 }
 0x743   : > { %v4841_v33 = vmul.f32 1.442695, %v4829_v50  ;;  %v4830_v56 = vsub.f32 0.0, %v4796_v39 }
 0x745   : > { %v4843_v44 = vmul.f32 1.442695, %v4830_v56 }
 0x746   : > { %v4784_v61 = vpop.f32.mrf.mxu0 }
 0x748   : > { %v4797_v17 = vpop.f32.mrf.mxu1 }
 0x755   : > { %v4756_v3 = vpop.f32.mrf.mxu2 }
 0x756   : > { %v4757_v2 = vadd.f32 %v4756_v3, %v7057_v30 }
 0x757   : > { %v4769_v54 = vpop.f32.mrf.mxu3 }
 0x758   : > { %v4827_v48 = vsub.f32 0.0, %v4757_v2  ;;  %v4770_v20 = vadd.f32 %v4769_v54, %v7057_v30 }
 0x75a   : > { %v4837_v8 = vmul.f32 1.442695, %v4827_v48  ;;  %v4828_v29 = vsub.f32 0.0, %v4770_v20 }
 0x75c   : > { %5597 = vpow2.f32 %v4837_v8  ;;  %v4839_v9 = vmul.f32 1.442695, %v4828_v29 }
 0x75d   : > { %v4758_v18 = vpop.f32.mrf.mxu2 }
 0x75e   : > { %5599 = vpow2.f32 %v4839_v9 }
 0x75f   : > { %v4771_v62 = vpop.f32.mrf.mxu3  ;;  %5601 = vpow2.f32 %v4841_v33 }
 0x762   : > { %v5598_v7 = vpop.eup %5597 }
 0x763   : > { %v4851_v59 = vadd.f32 1.0, %v5598_v7 }
 0x764   : > { %v5600_v31 = vpop.eup %5599 }
 0x765   : > { %5603 = vrcp.f32 %v4851_v59  ;;  %v5602_v24 = vpop.eup %5601  ;;  %v4852_v19 = vadd.f32 1.0, %v5600_v31 }
 0x766   : > { %5605 = vpow2.f32 %v4843_v44  ;;  %v4853_v47 = vadd.f32 1.0, %v5602_v24 }
 0x767   : > { %5607 = vrcp.f32 %v4852_v19 }
 0x768   : > { %5609 = vrcp.f32 %v4853_v47 }
 0x76b   : > { %v5604_v10 = vpop.eup %5603 }
 0x76c   : > { %v5606_v6 = vpop.eup %5605  ;;  %v4875_v26 = vmul.f32 %v5604_v10, %v5337_v37 }
 0x76d   : > { %v4854_v12 = vadd.f32 1.0, %v5606_v6  ;;  %v5608_v58 = vpop.eup %5607 }
 0x76e   : > { %v4876_v53 = vadd.f32 %v4875_v26, %v4872_v57  ;;  %v5610_v51 = vpop.eup %5609  ;;  %v4879_v52 = vmul.f32 %v5608_v58, %v5338_v27  ;;  %v5340_v57 = vld [vmem:[#allocation3 + $0x1f] ss:$0 sm:$0xff] }
 0x76f   : > { %v4883_v46 = vmul.f32 %v5610_v51, %v5335_v16 }
 0x770   : > { %v4880_v63 = vadd.f32 %v4879_v52, %v4876_v53 }
 0x772   : > { %v4884_v55 = vadd.f32 %v4883_v46, %v4880_v63 }
 0x775   : > { %v4808_v4 = vpop.f32.mrf.mxu2 }
 0x776   : > { %v4809_v13 = vadd.f32 %v4808_v4, %v7057_v30 }
 0x777   : > { %v4821_v40 = vpop.f32.mrf.mxu3 }
 0x778   : > { %v4822_v1 = vadd.f32 %v4821_v40, %v7057_v30  ;;  %v4831_v32 = vsub.f32 0.0, %v4809_v13 }
 0x77a   : > { %v4832_v34 = vsub.f32 0.0, %v4822_v1  ;;  %v4845_v36 = vmul.f32 1.442695, %v4831_v32 }
 0x77c   : > { %v4847_v45 = vmul.f32 1.442695, %v4832_v34  ;;  %5611 = vpow2.f32 %v4845_v36 }
 0x77d   : > { %v4810_v15 = vpop.f32.mrf.mxu2 }
 0x77e   : > { %5613 = vpow2.f32 %v4847_v45 }
 0x77f   : > { %v4823_v0 = vpop.f32.mrf.mxu3  ;;  %5615 = vrcp.f32 %v4854_v12 }
 0x782   : > { %v5612_v30 = vpop.eup %5611 }
 0x783   : > { %v4855_v49 = vadd.f32 1.0, %v5612_v30 }
 0x784   : > { %v5614_v23 = vpop.eup %5613 }
 0x785   : > { %v4856_v35 = vadd.f32 1.0, %v5614_v23  ;;  %5617 = vrcp.f32 %v4855_v49  ;;  %v5616_v11 = vpop.eup %5615 }
 0x786   : > { %v4887_v21 = vmul.f32 %v5616_v11, %v5336_v28 }
 0x787   : > { %5619 = vrcp.f32 %v4856_v35 }
 0x788   : > { %v4888_v43 = vadd.f32 %v4887_v21, %v4884_v55 }
 0x78b   : > { %v5618_v60 = vpop.eup %5617 }
 0x78c   : > { %v4891_v14 = vmul.f32 %v5618_v60, %v5339_v42 }
 0x78d   : > { %v5620_v25 = vpop.eup %5619 }
 0x78e   : > { %v4892_v22 = vadd.f32 %v4891_v14, %v4888_v43  ;;  %v4895_v41 = vmul.f32 %v5620_v25, %v5340_v57 }
 0x790   : > { %v4896_v61 = vadd.f32 %v4895_v41, %v4892_v22 }
 0x792   : > { %v4898_v17 = vrot.slane %v4896_v61, 6 }
 0x794   : > { %v4901_v3 = vsel %vm603_vm2, %v7043_v38, %v4898_v17 }
 0x795   : > { %4902 = vst [vmem:[%s465_s27] sm:$0xf] %v4901_v3 }
 0x796 PF: > { %p18_p9 = scmp.ge.s32.totalorder %s5742_s21, 4   ;;  %s7382_s17 = smov %s5657_s18 }
 0x797   : > { %s7383_s18 = smov %s5751_s24  ;;  %s7384_s19 = smov %s5742_s21 }
 0x798   :  { %20 = sbr.rel (!%p18_p9) target bundleno = 2 (0x2), region = 143 }

</bundles_post_ra>
